<compile_context>
chip_gen: v7x
topology: tpu7x:2x2x1
jax: 0.10.0
libtpu: 0.0.40
codegen_flags: <defaults>
</compile_context>

<pallas_src>
import functools

import jax
import jax.numpy as jnp
from jax import lax
from jax.experimental import pallas as pl
from jax.experimental.pallas import tpu as pltpu

EPS = 1e-5


def _bn_kernel(x_ref, gamma_ref, beta_ref, o_ref):
    # x_ref: (TC, S)   gamma_ref/beta_ref: (TC, 1)   o_ref: (TC, S)
    x = x_ref[...].astype(jnp.float32)
    s = x.shape[-1]
    inv_s = 1.0 / s

    # Row sums via the MXU (ones-vector matmuls) instead of XLU cross-lane
    # reductions.  One pass over x: sum and sum-of-squares together.
    ones_s1 = jnp.ones((s, 1), dtype=jnp.float32)
    sums = jnp.dot(x, ones_s1, preferred_element_type=jnp.float32)
    sumsq = jnp.dot(x * x, ones_s1, preferred_element_type=jnp.float32)

    mean = sums * inv_s
    # Clamp guards against tiny negative variances from E[x^2]-mean^2
    # cancellation.
    var = jnp.maximum(sumsq * inv_s - mean * mean, 0.0)
    inv_std = lax.rsqrt(var + EPS)

    # Fold the affine into a single per-channel scale/shift so the bulk
    # elementwise pass is just one mul + one add per element.
    scale = inv_std * gamma_ref[...]
    shift = beta_ref[...] - mean * scale
    o_ref[...] = (x * scale + shift).astype(o_ref.dtype)


def _default_block_c(c):
    """Channel tile: 2 steps/TensorCore on v7x, fewest steps on v5e/v6e."""
    try:
        kind = jax.devices()[0].device_kind.lower()
    except Exception:  # pragma: no cover - defensive
        kind = ""
    preferred = (768, 1536, 384) if "v7" in kind else (1536, 768, 384)
    for cand in preferred:
        if c % cand == 0:
            return cand
    return c  # single block fallback


@functools.partial(jax.jit, static_argnames=("block_c",))
def batchnorm2d(x_nchw, gamma, beta, *, block_c):
    """Training-mode BatchNorm2d forward (batch statistics), NCHW in/out.

    # TODO(synk): running_mean / running_var momentum updates
    # (track_running_stats buffers) are not produced; only the forward output.
    """
    n, c, h, w = x_nchw.shape
    assert c % block_c == 0, "channel count must be divisible by the channel tile"
    assert block_c % 8 == 0, "channel tile must be sublane aligned"
    s = n * h * w

    # NCHW -> (C, N*H*W): channels on sublanes, spatial on lanes.
    # With N=1 this is a free reshape (no real transpose).
    x_cs = jnp.transpose(x_nchw, (1, 0, 2, 3)).reshape(c, s)
    gamma_c1 = gamma.reshape(c, 1).astype(jnp.float32)
    beta_c1 = beta.reshape(c, 1).astype(jnp.float32)

    itemsize = jnp.dtype(x_nchw.dtype).itemsize
    cost = pl.CostEstimate(
        flops=10 * c * s,          # 2 ones-matmuls + stats + scale/shift pass
        transcendentals=c,         # rsqrt per channel
        bytes_accessed=2 * c * s * itemsize + 2 * c * 4,
    )

    grid = (c // block_c,)
    out_cs = pl.pallas_call(
        _bn_kernel,
        out_shape=jax.ShapeDtypeStruct((c, s), x_nchw.dtype),
        grid_spec=pl.GridSpec(
            grid=grid,
            in_specs=[
                pl.BlockSpec((block_c, s), lambda i: (i, 0)),
                pl.BlockSpec((block_c, 1), lambda i: (i, 0)),
                pl.BlockSpec((block_c, 1), lambda i: (i, 0)),
            ],
            out_specs=pl.BlockSpec((block_c, s), lambda i: (i, 0)),
        ),
        compiler_params=pltpu.CompilerParams(
            dimension_semantics=("parallel",)
        ),
        cost_estimate=cost,
    )(x_cs, gamma_c1, beta_c1)

    # (C, N*H*W) -> NCHW
    return jnp.transpose(out_cs.reshape(c, n, h, w), (1, 0, 2, 3))


def _reference(x_nchw, gamma, beta):
    # Pure-JAX reference of training-mode BatchNorm2d forward.
    mean = jnp.mean(x_nchw, axis=(0, 2, 3), keepdims=True)
    var = jnp.mean((x_nchw - mean) ** 2, axis=(0, 2, 3), keepdims=True)
    g = gamma.reshape(1, -1, 1, 1)
    b = beta.reshape(1, -1, 1, 1)
    return (x_nchw - mean) * lax.rsqrt(var + EPS) * g + b


if __name__ == "__main__":
    # Shapes from the module's forward: x549 = [1, 3072, 7, 7].
    N, C, H, W = 1, 3072, 7, 7

    key = jax.random.PRNGKey(0)
    kx, kg, kb = jax.random.split(key, 3)
    x = jax.random.normal(kx, (N, C, H, W), dtype=jnp.float32)
    # Deterministic synthetic affine parameters (PyTorch default would be
    # gamma=1, beta=0; use random values so the affine path is exercised).
    gamma = 1.0 + 0.1 * jax.random.normal(kg, (C,), dtype=jnp.float32)
    beta = 0.1 * jax.random.normal(kb, (C,), dtype=jnp.float32)

    block_c = _default_block_c(C)   # 768 on v7x (grid=(4,)), 1536 otherwise
    out = batchnorm2d(x, gamma, beta, block_c=block_c)
    out = jax.block_until_ready(out)

    ref = _reference(x, gamma, beta)
    assert out.shape == (N, C, H, W)
    assert jnp.max(jnp.abs(out - ref)) < 1e-4

    print("KERNEL_OK")
</pallas_src>

<mosaic_0001>
module attributes {stable_mosaic.version = 11 : i64} {
  func.func @_bn_kernel(%arg0: i32, %arg1: memref<1536x49xf32, #tpu.memory_space<vmem>>, %arg2: memref<1536x1xf32, #tpu.memory_space<vmem>>, %arg3: memref<1536x1xf32, #tpu.memory_space<vmem>>, %arg4: memref<1536x49xf32, #tpu.memory_space<vmem>>) attributes {dimension_semantics = [#tpu.dimension_semantics<parallel>], iteration_bounds = array<i64: 2>, scalar_prefetch = 0 : i64, scratch_operands = 0 : i64, tpu.core_type = #tpu.core_type<tc>, window_params = [{transform_indices = @transform_0, window_bounds = array<i64: 1536, 49>}, {transform_indices = @transform_1, window_bounds = array<i64: 1536, 1>}, {transform_indices = @transform_2, window_bounds = array<i64: 1536, 1>}, {transform_indices = @transform_3, window_bounds = array<i64: 1536, 49>}]} {
    %c0 = arith.constant 0 : index
    %c0_0 = arith.constant 0 : index
    %0 = vector.load %arg1[%c0, %c0_0] : memref<1536x49xf32, #tpu.memory_space<vmem>>, vector<1536x49xf32>
    %cst = arith.constant 1.000000e+00 : f32
    %1 = vector.broadcast %cst : f32 to vector<49x1xf32>
    %cst_1 = arith.constant dense<0.000000e+00> : vector<1536x1xf32>
    %2 = tpu.matmul %0, %1, %cst_1 {dimension_numbers = #tpu.dot_dimension_numbers<[1], [0], [0], [1], [0, 0, 1, 1], [], []>} : vector<1536x49xf32>, vector<49x1xf32>, vector<1536x1xf32> -> vector<1536x1xf32>
    %3 = arith.mulf %0, %0 : vector<1536x49xf32>
    %cst_2 = arith.constant dense<0.000000e+00> : vector<1536x1xf32>
    %4 = tpu.matmul %3, %1, %cst_2 {dimension_numbers = #tpu.dot_dimension_numbers<[1], [0], [0], [1], [0, 0, 1, 1], [], []>} : vector<1536x49xf32>, vector<49x1xf32>, vector<1536x1xf32> -> vector<1536x1xf32>
    %cst_3 = arith.constant 0.0204081628 : f32
    %5 = vector.broadcast %cst_3 : f32 to vector<1536x1xf32>
    %6 = arith.mulf %2, %5 : vector<1536x1xf32>
    %cst_4 = arith.constant 0.0204081628 : f32
    %7 = vector.broadcast %cst_4 : f32 to vector<1536x1xf32>
    %8 = arith.mulf %4, %7 : vector<1536x1xf32>
    %9 = arith.mulf %6, %6 : vector<1536x1xf32>
    %10 = arith.subf %8, %9 : vector<1536x1xf32>
    %cst_5 = arith.constant 0.000000e+00 : f32
    %11 = vector.broadcast %cst_5 : f32 to vector<1536x1xf32>
    %12 = arith.maximumf %10, %11 : vector<1536x1xf32>
    %cst_6 = arith.constant 9.99999974E-6 : f32
    %13 = vector.broadcast %cst_6 : f32 to vector<1536x1xf32>
    %14 = arith.addf %12, %13 : vector<1536x1xf32>
    %15 = math.rsqrt %14 : vector<1536x1xf32>
    %c0_7 = arith.constant 0 : index
    %c0_8 = arith.constant 0 : index
    %16 = vector.load %arg2[%c0_7, %c0_8] : memref<1536x1xf32, #tpu.memory_space<vmem>>, vector<1536x1xf32>
    %17 = arith.mulf %15, %16 : vector<1536x1xf32>
    %c0_9 = arith.constant 0 : index
    %c0_10 = arith.constant 0 : index
    %18 = vector.load %arg3[%c0_9, %c0_10] : memref<1536x1xf32, #tpu.memory_space<vmem>>, vector<1536x1xf32>
    %19 = arith.mulf %6, %17 : vector<1536x1xf32>
    %20 = arith.subf %18, %19 : vector<1536x1xf32>
    %21 = vector.broadcast %17 : vector<1536x1xf32> to vector<1536x49xf32>
    %22 = arith.mulf %0, %21 : vector<1536x49xf32>
    %23 = vector.broadcast %20 : vector<1536x1xf32> to vector<1536x49xf32>
    %24 = arith.addf %22, %23 : vector<1536x49xf32>
    %c0_11 = arith.constant 0 : index
    %c0_12 = arith.constant 0 : index
    %25 = vector.load %arg4[%c0_11, %c0_12] : memref<1536x49xf32, #tpu.memory_space<vmem>>, vector<1536x49xf32>
    tpu.vector_store %arg4[%c0_11, %c0_12], %24 {strides = array<i32>} : memref<1536x49xf32, #tpu.memory_space<vmem>>, vector<1536x49xf32>,
    return
  }
  func.func @transform_0(%arg0: i32) -> (i32, i32) {
    %c0_i32 = arith.constant 0 : i32
    %c0_i32_0 = arith.constant 0 : i32
    return %arg0, %c0_i32 : i32, i32
  }
  func.func @transform_1(%arg0: i32) -> (i32, i32) {
    %c0_i32 = arith.constant 0 : i32
    %c0_i32_0 = arith.constant 0 : i32
    return %arg0, %c0_i32 : i32, i32
  }
  func.func @transform_2(%arg0: i32) -> (i32, i32) {
    %c0_i32 = arith.constant 0 : i32
    %c0_i32_0 = arith.constant 0 : i32
    return %arg0, %c0_i32 : i32, i32
  }
  func.func @transform_3(%arg0: i32) -> (i32, i32) {
    %c0_i32 = arith.constant 0 : i32
    %c0_i32_0 = arith.constant 0 : i32
    return %arg0, %c0_i32 : i32, i32
  }
}

</mosaic_0001>

<bundles_post_ra>
// kernel: batchnorm2d.1
= control target key start
LH: loop header
LB: loop body
LE: loop exit
PB: predicated region body
PF: predicated region fallthrough
CT: control target
= control target key end

     0   :  { %s10726_s12 = smov 0   ;;  %s17286_s0 = inlined_call_operand.vmem [shape: f32[3072,49], index: 0, kind: input, shape index: {}]   ;;  %s17287_s1 = inlined_call_operand.vmem [shape: f32[3072,1], index: 1, kind: input, shape index: {}]   ;;  %s17288_s2 = inlined_call_operand.vmem [shape: f32[3072,1], index: 2, kind: input, shape index: {}]   ;;  %s17289_s3 = inlined_call_operand.vmem [shape: f32[3072,49], index: 3, kind: output, shape index: {}]  }
   0x1 LB: > { %s8689_s13 = sadd.s32 4294967295, %s10701_s12   ;;  %p8693_p0 = scmp.ge.s32.totalorder %s10701_s12, 1  ;;  %s10701_s12 = sphi %s10726_s12, %s13_s12  }
   0x2   : > { %p160_p1 = scmp.lt.s32.totalorder %s10701_s12, 3 }
   0x4   : > { %p161_p2 = pnand %p8693_p0, %p160_p1 }
   0x6   : > { %164 = sbr.rel (%p161_p2) target bundleno = 1208 (0x4b8), region = 32 }
   0xd   : > { %s194_s14 = smul.u32 192, %s8689_s13  ;;  %v10703_v0 = vmov 1.0|1.0   ;;  %vm410_vm0 = vcmask 400384   ;;  %vm987_vm1 = vcmask 1040384   ;;  %v10704_v5 = vmov 1.0  }
   0xe   : > { %10088 = vmatprep.subr.bf16.mxu0 %v10703_v0  ;;  %10094 = vmatprep.subr.bf16.mxu1 %v10703_v0 }
   0xf   : > { %10089 = vmatpush3.bf16.msra.mxu0 %v10703_v0  ;;  %10095 = vmatpush3.bf16.msra.mxu1 %v10703_v0  ;;  %p195_p3 = scmp.lt.s32.totalorder %s194_s14, 383 }
  0x10   : > { %10090 = vmatprep.subr.bf16.mxu0 %v10703_v0  ;;  %10096 = vmatprep.subr.bf16.mxu1 %v10703_v0 }
  0x11   : > { %s18721_s14 = smov (!%p195_p3, %s194_s14), 383 }
  0x12   : > { %s10734_s15 = sshll.u32 %s18721_s14, 3 }
  0x13   : > { %10091 = vmatpush3.bf16.msra.mxu0 %v10703_v0  ;;  %10097 = vmatpush3.bf16.msra.mxu1 %v10703_v0  ;;  %s10740_s18 = scalar_lea.vmem %s17286_s0, %s10734_s15  ;;  %s11072_s21 = scalar_lea.vmem %s17287_s1, %s10734_s15 }
  0x14   : > { %10092 = vmatprep.subr.bf16.mxu0 %v10703_v0  ;;  %10098 = vmatprep.subr.bf16.mxu1 %v10703_v0  ;;  %v218_v1 = vld [vmem:[%s10740_s18] sm:$0xff]  ;;  %v219_v2 = vld [vmem:[%s10740_s18 + $0x8] sm:$0xff]  ;;  %v220_v4 = vld [vmem:[%s10740_s18 + $0x10] sm:$0xff]  ;;  %s11104_s24 = scalar_lea.vmem %s17288_s2, %s10734_s15  ;;  %s12423_s27 = scalar_lea.vmem %s17289_s3, %s10734_s15 }
  0x15   : > { %9498 = vmatprep.mubr.msk.f32.mxu0 %vm410_vm0, %v218_v1  ;;  %v2016_v3 = vmul.f32 %v218_v1, %v218_v1  ;;  %v2017_v6 = vmul.f32 %v219_v2, %v219_v2  ;;  %v2018_v7 = vmul.f32 %v220_v4, %v220_v4  ;;  %v221_v8 = vld [vmem:[%s10740_s18 + $0x18] sm:$0xff]  ;;  %v222_v9 = vld [vmem:[%s10740_s18 + $0x20] sm:$0xff]  ;;  %v223_v12 = vld [vmem:[%s10740_s18 + $0x28] sm:$0xff] }
  0x16   : > { %v2019_v10 = vmul.f32 %v221_v8, %v221_v8  ;;  %v2020_v11 = vmul.f32 %v222_v9, %v222_v9  ;;  %v224_v13 = vld [vmem:[%s10740_s18 + $0x30] sm:$0xff]  ;;  %v2021_v14 = vmul.f32 %v223_v12, %v223_v12  ;;  %v225_v16 = vld [vmem:[%s10740_s18 + $0x38] sm:$0xff]  ;;  %v226_v17 = vld [vmem:[%s10740_s18 + $0x40] sm:$0xff] }
  0x17   : > { %10093 = vmatpush3.bf16.msra.mxu0 %v10703_v0  ;;  %10099 = vmatpush3.bf16.msra.mxu1 %v10703_v0  ;;  %v2022_v15 = vmul.f32 %v224_v13, %v224_v13  ;;  %v2023_v18 = vmul.f32 %v225_v16, %v225_v16  ;;  %v2024_v19 = vmul.f32 %v226_v17, %v226_v17  ;;  %v227_v20 = vld [vmem:[%s10740_s18 + $0x48] sm:$0xff]  ;;  %v228_v21 = vld [vmem:[%s10740_s18 + $0x50] sm:$0xff]  ;;  %v229_v24 = vld [vmem:[%s10740_s18 + $0x58] sm:$0xff] }
  0x18   : > { %9496 = vmatprep.subr.msk.mxu0 %vm987_vm1, %v10704_v5  ;;  %9798 = vmatprep.subr.msk.mxu1 %vm987_vm1, %v10704_v5  ;;  %v2025_v22 = vmul.f32 %v227_v20, %v227_v20  ;;  %v2026_v23 = vmul.f32 %v228_v21, %v228_v21  ;;  %v230_v25 = vld [vmem:[%s10740_s18 + $0x60] sm:$0xff]  ;;  %v2027_v26 = vmul.f32 %v229_v24, %v229_v24  ;;  %v231_v28 = vld [vmem:[%s10740_s18 + $0x68] sm:$0xff]  ;;  %v232_v29 = vld [vmem:[%s10740_s18 + $0x70] sm:$0xff] }
  0x19   : > { %9800 = vmatprep.mubr.msk.f32.mxu1 %vm410_vm0, %v2016_v3  ;;  %v2028_v27 = vmul.f32 %v230_v25, %v230_v25  ;;  %v2029_v30 = vmul.f32 %v231_v28, %v231_v28  ;;  %v2030_v31 = vmul.f32 %v232_v29, %v232_v29  ;;  %v233_v32 = vld [vmem:[%s10740_s18 + $0x78] sm:$0xff]  ;;  %v234_v33 = vld [vmem:[%s10740_s18 + $0x80] sm:$0xff]  ;;  %v235_v36 = vld [vmem:[%s10740_s18 + $0x88] sm:$0xff] }
  0x1a   : > { %v2031_v34 = vmul.f32 %v233_v32, %v233_v32  ;;  %v2032_v35 = vmul.f32 %v234_v33, %v234_v33  ;;  %v236_v37 = vld [vmem:[%s10740_s18 + $0x90] sm:$0xff]  ;;  %v2033_v38 = vmul.f32 %v235_v36, %v235_v36  ;;  %v237_v40 = vld [vmem:[%s10740_s18 + $0x98] sm:$0xff]  ;;  %v238_v41 = vld [vmem:[%s10740_s18 + $0xa0] sm:$0xff] }
  0x1b   : > { %9497 = vmatpush3.msk.msra.mxu0 %vm987_vm1, %v10704_v5  ;;  %9799 = vmatpush3.msk.msra.mxu1 %vm987_vm1, %v10704_v5  ;;  %v2034_v39 = vmul.f32 %v236_v37, %v236_v37  ;;  %v2035_v42 = vmul.f32 %v237_v40, %v237_v40  ;;  %v2036_v43 = vmul.f32 %v238_v41, %v238_v41  ;;  %v239_v44 = vld [vmem:[%s10740_s18 + $0xa8] sm:$0xff]  ;;  %v240_v45 = vld [vmem:[%s10740_s18 + $0xb0] sm:$0xff]  ;;  %v241_v48 = vld [vmem:[%s10740_s18 + $0xb8] sm:$0xff] }
  0x1c   : > { %9499 = vmatmul.mubr.msk.f32.vlgmr.msra.gmra.mrb[0].mxu0 %vm410_vm0, %v219_v2  ;;  %9801 = vmatmul.mubr.msk.f32.vlgmr.msra.gmra.mrb[0].mxu1 %vm410_vm0, %v2017_v6  ;;  %v2037_v46 = vmul.f32 %v239_v44, %v239_v44  ;;  %v2038_v47 = vmul.f32 %v240_v45, %v240_v45  ;;  %v242_v49 = vld [vmem:[%s10740_s18 + $0xc0] sm:$0xff]  ;;  %v2039_v50 = vmul.f32 %v241_v48, %v241_v48  ;;  %v243_v52 = vld [vmem:[%s10740_s18 + $0xc8] sm:$0xff]  ;;  %v244_v53 = vld [vmem:[%s10740_s18 + $0xd0] sm:$0xff] }
  0x1d   : > { %9501 = vmatprep.mubr.msk.f32.mxu0 %vm410_vm0, %v220_v4  ;;  %9803 = vmatprep.mubr.msk.f32.mxu1 %vm410_vm0, %v2018_v7  ;;  %v2040_v51 = vmul.f32 %v242_v49, %v242_v49  ;;  %v2041_v54 = vmul.f32 %v243_v52, %v243_v52  ;;  %v2042_v55 = vmul.f32 %v244_v53, %v244_v53  ;;  %v245_v56 = vld [vmem:[%s10740_s18 + $0xd8] sm:$0xff]  ;;  %v246_v57 = vld [vmem:[%s10740_s18 + $0xe0] sm:$0xff]  ;;  %v247_v60 = vld [vmem:[%s10740_s18 + $0xe8] sm:$0xff] }
  0x1e   : > { %v2043_v58 = vmul.f32 %v245_v56, %v245_v56  ;;  %v2044_v59 = vmul.f32 %v246_v57, %v246_v57  ;;  %v248_v61 = vld [vmem:[%s10740_s18 + $0xf0] sm:$0xff]  ;;  %v2045_v62 = vmul.f32 %v247_v60, %v247_v60  ;;  %v249_v0 = vld [vmem:[%s10740_s18 + $0xf8] sm:$0xff]  ;;  %v250_v1 = vld [vmem:[%s10740_s18 + $0x100] sm:$0xff] }
  0x1f   : > { %v2046_v63 = vmul.f32 %v248_v61, %v248_v61  ;;  %v2047_v2 = vmul.f32 %v249_v0, %v249_v0  ;;  %v2048_v3 = vmul.f32 %v250_v1, %v250_v1  ;;  %v251_v4 = vld [vmem:[%s10740_s18 + $0x108] sm:$0xff]  ;;  %v252_v5 = vld [vmem:[%s10740_s18 + $0x110] sm:$0xff] }
  0x20   : > { %9502 = vmatmul.mubr.msk.f32.gmra.mrb[2].mxu0 %vm410_vm0, %v221_v8  ;;  %9804 = vmatmul.mubr.msk.f32.gmra.mrb[2].mxu1 %vm410_vm0, %v2019_v10  ;;  %v2049_v6 = vmul.f32 %v251_v4, %v251_v4  ;;  %v2050_v7 = vmul.f32 %v252_v5, %v252_v5  ;;  %v253_v8 = vld [vmem:[%s10740_s18 + $0x118] sm:$0xff] }
  0x21   : > { %9504 = vmatprep.mubr.msk.f32.mxu0 %vm410_vm0, %v222_v9  ;;  %9806 = vmatprep.mubr.msk.f32.mxu1 %vm410_vm0, %v2020_v11  ;;  %v254_v9 = vld [vmem:[%s10740_s18 + $0x120] sm:$0xff]  ;;  %v2051_v10 = vmul.f32 %v253_v8, %v253_v8 }
  0x22   : > { %v2052_v11 = vmul.f32 %v254_v9, %v254_v9 }
  0x24   : > { %9505 = vmatmul.mubr.msk.f32.gmra.mrb[4].mxu0 %vm410_vm0, %v223_v12  ;;  %9807 = vmatmul.mubr.msk.f32.gmra.mrb[4].mxu1 %vm410_vm0, %v2021_v14  ;;  %v255_v12 = vld [vmem:[%s10740_s18 + $0x128] sm:$0xff] }
  0x25   : > { %9507 = vmatprep.mubr.msk.f32.mxu0 %vm410_vm0, %v224_v13  ;;  %9809 = vmatprep.mubr.msk.f32.mxu1 %vm410_vm0, %v2022_v15  ;;  %v256_v13 = vld [vmem:[%s10740_s18 + $0x130] sm:$0xff]  ;;  %v2053_v14 = vmul.f32 %v255_v12, %v255_v12 }
  0x26   : > { %v2054_v15 = vmul.f32 %v256_v13, %v256_v13 }
  0x28   : > { %9508 = vmatmul.mubr.msk.f32.gmra.mrb[6].mxu0 %vm410_vm0, %v225_v16  ;;  %9810 = vmatmul.mubr.msk.f32.gmra.mrb[6].mxu1 %vm410_vm0, %v2023_v18  ;;  %v257_v16 = vld [vmem:[%s10740_s18 + $0x138] sm:$0xff] }
  0x29   : > { %9510 = vmatprep.mubr.msk.f32.mxu0 %vm410_vm0, %v226_v17  ;;  %9812 = vmatprep.mubr.msk.f32.mxu1 %vm410_vm0, %v2024_v19  ;;  %v258_v17 = vld [vmem:[%s10740_s18 + $0x140] sm:$0xff]  ;;  %v2055_v18 = vmul.f32 %v257_v16, %v257_v16 }
  0x2a   : > { %v2056_v19 = vmul.f32 %v258_v17, %v258_v17 }
  0x2c   : > { %9511 = vmatmul.mubr.msk.f32.gmra.mrb[8].mxu0 %vm410_vm0, %v227_v20  ;;  %9813 = vmatmul.mubr.msk.f32.gmra.mrb[8].mxu1 %vm410_vm0, %v2025_v22  ;;  %v259_v20 = vld [vmem:[%s10740_s18 + $0x148] sm:$0xff] }
  0x2d   : > { %9513 = vmatprep.mubr.msk.f32.mxu0 %vm410_vm0, %v228_v21  ;;  %9815 = vmatprep.mubr.msk.f32.mxu1 %vm410_vm0, %v2026_v23  ;;  %v260_v21 = vld [vmem:[%s10740_s18 + $0x150] sm:$0xff]  ;;  %v2057_v22 = vmul.f32 %v259_v20, %v259_v20 }
  0x2e   : > { %v2058_v23 = vmul.f32 %v260_v21, %v260_v21 }
  0x30   : > { %9514 = vmatmul.mubr.msk.f32.gmra.mrb[10].mxu0 %vm410_vm0, %v229_v24  ;;  %9816 = vmatmul.mubr.msk.f32.gmra.mrb[10].mxu1 %vm410_vm0, %v2027_v26  ;;  %v261_v24 = vld [vmem:[%s10740_s18 + $0x158] sm:$0xff] }
  0x31   : > { %9516 = vmatprep.mubr.msk.f32.mxu0 %vm410_vm0, %v230_v25  ;;  %9818 = vmatprep.mubr.msk.f32.mxu1 %vm410_vm0, %v2028_v27  ;;  %v262_v25 = vld [vmem:[%s10740_s18 + $0x160] sm:$0xff]  ;;  %v2059_v26 = vmul.f32 %v261_v24, %v261_v24 }
  0x32   : > { %v2060_v27 = vmul.f32 %v262_v25, %v262_v25 }
  0x34   : > { %9517 = vmatmul.mubr.msk.f32.gmra.mrb[12].mxu0 %vm410_vm0, %v231_v28  ;;  %9819 = vmatmul.mubr.msk.f32.gmra.mrb[12].mxu1 %vm410_vm0, %v2029_v30  ;;  %v263_v28 = vld [vmem:[%s10740_s18 + $0x168] sm:$0xff] }
  0x35   : > { %9519 = vmatprep.mubr.msk.f32.mxu0 %vm410_vm0, %v232_v29  ;;  %9821 = vmatprep.mubr.msk.f32.mxu1 %vm410_vm0, %v2030_v31  ;;  %v264_v29 = vld [vmem:[%s10740_s18 + $0x170] sm:$0xff]  ;;  %v2061_v30 = vmul.f32 %v263_v28, %v263_v28 }
  0x36   : > { %v2062_v31 = vmul.f32 %v264_v29, %v264_v29 }
  0x38   : > { %9520 = vmatmul.mubr.msk.f32.gmra.mrb[14].mxu0 %vm410_vm0, %v233_v32  ;;  %9822 = vmatmul.mubr.msk.f32.gmra.mrb[14].mxu1 %vm410_vm0, %v2031_v34  ;;  %v265_v32 = vld [vmem:[%s10740_s18 + $0x178] sm:$0xff] }
  0x39   : > { %9522 = vmatprep.mubr.msk.f32.mxu0 %vm410_vm0, %v234_v33  ;;  %9824 = vmatprep.mubr.msk.f32.mxu1 %vm410_vm0, %v2032_v35  ;;  %v266_v33 = vld [vmem:[%s10740_s18 + $0x180] sm:$0xff]  ;;  %v2063_v34 = vmul.f32 %v265_v32, %v265_v32 }
  0x3a   : > { %v2064_v35 = vmul.f32 %v266_v33, %v266_v33 }
  0x3c   : > { %9523 = vmatmul.mubr.msk.f32.gmra.mrb[16].mxu0 %vm410_vm0, %v235_v36  ;;  %9825 = vmatmul.mubr.msk.f32.gmra.mrb[16].mxu1 %vm410_vm0, %v2033_v38  ;;  %v267_v36 = vld [vmem:[%s10740_s18 + $0x188] sm:$0xff] }
  0x3d   : > { %9525 = vmatprep.mubr.msk.f32.mxu0 %vm410_vm0, %v236_v37  ;;  %9827 = vmatprep.mubr.msk.f32.mxu1 %vm410_vm0, %v2034_v39  ;;  %v268_v37 = vld [vmem:[%s10740_s18 + $0x190] sm:$0xff]  ;;  %v2065_v38 = vmul.f32 %v267_v36, %v267_v36 }
  0x3e   : > { %v2066_v39 = vmul.f32 %v268_v37, %v268_v37 }
  0x40   : > { %9526 = vmatmul.mubr.msk.f32.gmra.mrb[18].mxu0 %vm410_vm0, %v237_v40  ;;  %9828 = vmatmul.mubr.msk.f32.gmra.mrb[18].mxu1 %vm410_vm0, %v2035_v42  ;;  %v269_v40 = vld [vmem:[%s10740_s18 + $0x198] sm:$0xff] }
  0x41   : > { %9528 = vmatprep.mubr.msk.f32.mxu0 %vm410_vm0, %v238_v41  ;;  %9830 = vmatprep.mubr.msk.f32.mxu1 %vm410_vm0, %v2036_v43  ;;  %v270_v41 = vld [vmem:[%s10740_s18 + $0x1a0] sm:$0xff]  ;;  %v2067_v42 = vmul.f32 %v269_v40, %v269_v40 }
  0x42   : > { %v2068_v43 = vmul.f32 %v270_v41, %v270_v41 }
  0x44   : > { %9529 = vmatmul.mubr.msk.f32.gmra.mrb[20].mxu0 %vm410_vm0, %v239_v44  ;;  %9831 = vmatmul.mubr.msk.f32.gmra.mrb[20].mxu1 %vm410_vm0, %v2037_v46  ;;  %v271_v44 = vld [vmem:[%s10740_s18 + $0x1a8] sm:$0xff] }
  0x45   : > { %9531 = vmatprep.mubr.msk.f32.mxu0 %vm410_vm0, %v240_v45  ;;  %9833 = vmatprep.mubr.msk.f32.mxu1 %vm410_vm0, %v2038_v47  ;;  %v272_v45 = vld [vmem:[%s10740_s18 + $0x1b0] sm:$0xff]  ;;  %v2069_v46 = vmul.f32 %v271_v44, %v271_v44 }
  0x46   : > { %v2070_v47 = vmul.f32 %v272_v45, %v272_v45 }
  0x48   : > { %9532 = vmatmul.mubr.msk.f32.gmra.mrb[22].mxu0 %vm410_vm0, %v241_v48  ;;  %9834 = vmatmul.mubr.msk.f32.gmra.mrb[22].mxu1 %vm410_vm0, %v2039_v50  ;;  %v273_v48 = vld [vmem:[%s10740_s18 + $0x1b8] sm:$0xff] }
  0x49   : > { %9534 = vmatprep.mubr.msk.f32.mxu0 %vm410_vm0, %v242_v49  ;;  %9836 = vmatprep.mubr.msk.f32.mxu1 %vm410_vm0, %v2040_v51  ;;  %v274_v49 = vld [vmem:[%s10740_s18 + $0x1c0] sm:$0xff]  ;;  %v2071_v50 = vmul.f32 %v273_v48, %v273_v48 }
  0x4a   : > { %v2072_v51 = vmul.f32 %v274_v49, %v274_v49 }
  0x4c   : > { %9535 = vmatmul.mubr.msk.f32.gmra.mrb[24].mxu0 %vm410_vm0, %v243_v52  ;;  %9837 = vmatmul.mubr.msk.f32.gmra.mrb[24].mxu1 %vm410_vm0, %v2041_v54  ;;  %v275_v52 = vld [vmem:[%s10740_s18 + $0x1c8] sm:$0xff]  ;;  %v10705_v54 = vmov 0  }
  0x4d   : > { %9537 = vmatprep.mubr.msk.f32.mxu0 %vm410_vm0, %v244_v53  ;;  %9839 = vmatprep.mubr.msk.f32.mxu1 %vm410_vm0, %v2042_v55  ;;  %v276_v53 = vld [vmem:[%s10740_s18 + $0x1d0] sm:$0xff]  ;;  %v2073_v55 = vmul.f32 %v275_v52, %v275_v52 }
  0x4e   : > { %10111 = vset.pattern.permute.xlu0 %v10705_v54  ;;  %10112 = vset.pattern.permute.xlu1 %v10705_v54 }
  0x50   : > { %9538 = vmatmul.mubr.msk.f32.gmra.mrb[26].mxu0 %vm410_vm0, %v245_v56  ;;  %9840 = vmatmul.mubr.msk.f32.gmra.mrb[26].mxu1 %vm410_vm0, %v2043_v58  ;;  %v2074_v56 = vmul.f32 %v276_v53, %v276_v53  ;;  %v278_v58 = vld [vmem:[%s10740_s18 + $0x1e0] sm:$0xff] }
  0x51   : > { %9540 = vmatprep.mubr.msk.f32.mxu0 %vm410_vm0, %v246_v57  ;;  %9842 = vmatprep.mubr.msk.f32.mxu1 %vm410_vm0, %v2044_v59  ;;  %v277_v57 = vld [vmem:[%s10740_s18 + $0x1d8] sm:$0xff] }
  0x52   : > { %v2075_v59 = vmul.f32 %v277_v57, %v277_v57 }
  0x54   : > { %9541 = vmatmul.mubr.msk.f32.gmra.mrb[28].mxu0 %vm410_vm0, %v247_v60  ;;  %9843 = vmatmul.mubr.msk.f32.gmra.mrb[28].mxu1 %vm410_vm0, %v2045_v62  ;;  %v2076_v60 = vmul.f32 %v278_v58, %v278_v58  ;;  %v280_v62 = vld [vmem:[%s10740_s18 + $0x1f0] sm:$0xff] }
  0x55   : > { %9543 = vmatprep.mubr.msk.f32.mxu0 %vm410_vm0, %v248_v61  ;;  %9845 = vmatprep.mubr.msk.f32.mxu1 %vm410_vm0, %v2046_v63  ;;  %v279_v61 = vld [vmem:[%s10740_s18 + $0x1e8] sm:$0xff] }
  0x56   : > { %v2077_v63 = vmul.f32 %v279_v61, %v279_v61 }
  0x58   : > { %9544 = vmatmul.mubr.msk.f32.gmra.mrb[30].mxu0 %vm410_vm0, %v249_v0  ;;  %9846 = vmatmul.mubr.msk.f32.gmra.mrb[30].mxu1 %vm410_vm0, %v2047_v2  ;;  %v2078_v0 = vmul.f32 %v280_v62, %v280_v62  ;;  %v282_v2 = vld [vmem:[%s10740_s18 + $0x200] sm:$0xff] }
  0x59   : > { %9546 = vmatprep.mubr.msk.f32.mxu0 %vm410_vm0, %v250_v1  ;;  %9848 = vmatprep.mubr.msk.f32.mxu1 %vm410_vm0, %v2048_v3  ;;  %v281_v1 = vld [vmem:[%s10740_s18 + $0x1f8] sm:$0xff] }
  0x5a   : > { %v2079_v3 = vmul.f32 %v281_v1, %v281_v1 }
  0x5c   : > { %9547 = vmatmul.mubr.msk.f32.gmra.mrb[32].mxu0 %vm410_vm0, %v251_v4  ;;  %9849 = vmatmul.mubr.msk.f32.gmra.mrb[32].mxu1 %vm410_vm0, %v2049_v6  ;;  %v2080_v4 = vmul.f32 %v282_v2, %v282_v2  ;;  %v284_v6 = vld [vmem:[%s10740_s18 + $0x210] sm:$0xff] }
  0x5d   : > { %9549 = vmatprep.mubr.msk.f32.mxu0 %vm410_vm0, %v252_v5  ;;  %9851 = vmatprep.mubr.msk.f32.mxu1 %vm410_vm0, %v2050_v7  ;;  %v283_v5 = vld [vmem:[%s10740_s18 + $0x208] sm:$0xff] }
  0x5e   : > { %v2081_v7 = vmul.f32 %v283_v5, %v283_v5 }
  0x60   : > { %9550 = vmatmul.mubr.msk.f32.gmra.mrb[34].mxu0 %vm410_vm0, %v253_v8  ;;  %9852 = vmatmul.mubr.msk.f32.gmra.mrb[34].mxu1 %vm410_vm0, %v2051_v10  ;;  %v2082_v8 = vmul.f32 %v284_v6, %v284_v6  ;;  %v286_v10 = vld [vmem:[%s10740_s18 + $0x220] sm:$0xff] }
  0x61   : > { %9552 = vmatprep.mubr.msk.f32.mxu0 %vm410_vm0, %v254_v9  ;;  %9854 = vmatprep.mubr.msk.f32.mxu1 %vm410_vm0, %v2052_v11  ;;  %v285_v9 = vld [vmem:[%s10740_s18 + $0x218] sm:$0xff] }
  0x62   : > { %v2083_v11 = vmul.f32 %v285_v9, %v285_v9 }
  0x64   : > { %9553 = vmatmul.mubr.msk.f32.gmra.mrb[36].mxu0 %vm410_vm0, %v255_v12  ;;  %9855 = vmatmul.mubr.msk.f32.gmra.mrb[36].mxu1 %vm410_vm0, %v2053_v14  ;;  %v2084_v12 = vmul.f32 %v286_v10, %v286_v10  ;;  %v288_v14 = vld [vmem:[%s10740_s18 + $0x230] sm:$0xff] }
  0x65   : > { %9555 = vmatprep.mubr.msk.f32.mxu0 %vm410_vm0, %v256_v13  ;;  %9857 = vmatprep.mubr.msk.f32.mxu1 %vm410_vm0, %v2054_v15  ;;  %v287_v13 = vld [vmem:[%s10740_s18 + $0x228] sm:$0xff] }
  0x66   : > { %v2085_v15 = vmul.f32 %v287_v13, %v287_v13 }
  0x68   : > { %9556 = vmatmul.mubr.msk.f32.gmra.mrb[38].mxu0 %vm410_vm0, %v257_v16  ;;  %9858 = vmatmul.mubr.msk.f32.gmra.mrb[38].mxu1 %vm410_vm0, %v2055_v18  ;;  %v2086_v16 = vmul.f32 %v288_v14, %v288_v14 }
  0x69   : > { %9558 = vmatprep.mubr.msk.f32.mxu0 %vm410_vm0, %v258_v17  ;;  %9860 = vmatprep.mubr.msk.f32.mxu1 %vm410_vm0, %v2056_v19  ;;  %v289_v17 = vld [vmem:[%s10740_s18 + $0x238] sm:$0xff]  ;;  %v290_v19 = vld [vmem:[%s10740_s18 + $0x240] sm:$0xff] }
  0x6a   : > { %v2087_v18 = vmul.f32 %v289_v17, %v289_v17 }
  0x6c   : > { %9559 = vmatmul.mubr.msk.f32.gmra.mrb[40].mxu0 %vm410_vm0, %v259_v20  ;;  %9861 = vmatmul.mubr.msk.f32.gmra.mrb[40].mxu1 %vm410_vm0, %v2057_v22  ;;  %v291_v20 = vld [vmem:[%s10740_s18 + $0x248] sm:$0xff] }
  0x6d   : > { %9561 = vmatprep.mubr.msk.f32.mxu0 %vm410_vm0, %v260_v21  ;;  %9863 = vmatprep.mubr.msk.f32.mxu1 %vm410_vm0, %v2058_v23  ;;  %v2088_v21 = vmul.f32 %v290_v19, %v290_v19  ;;  %v2089_v22 = vmul.f32 %v291_v20, %v291_v20  ;;  %v292_v23 = vld [vmem:[%s10740_s18 + $0x250] sm:$0xff] }
  0x70   : > { %9562 = vmatmul.mubr.msk.f32.gmra.mrb[42].mxu0 %vm410_vm0, %v261_v24  ;;  %9864 = vmatmul.mubr.msk.f32.gmra.mrb[42].mxu1 %vm410_vm0, %v2059_v26  ;;  %v293_v24 = vld [vmem:[%s10740_s18 + $0x258] sm:$0xff] }
  0x71   : > { %9564 = vmatprep.mubr.msk.f32.mxu0 %vm410_vm0, %v262_v25  ;;  %9866 = vmatprep.mubr.msk.f32.mxu1 %vm410_vm0, %v2060_v27  ;;  %v2090_v25 = vmul.f32 %v292_v23, %v292_v23  ;;  %v2091_v26 = vmul.f32 %v293_v24, %v293_v24  ;;  %v294_v27 = vld [vmem:[%s10740_s18 + $0x260] sm:$0xff] }
  0x74   : > { %9565 = vmatmul.mubr.msk.f32.gmra.mrb[44].mxu0 %vm410_vm0, %v263_v28  ;;  %9867 = vmatmul.mubr.msk.f32.gmra.mrb[44].mxu1 %vm410_vm0, %v2061_v30  ;;  %v295_v28 = vld [vmem:[%s10740_s18 + $0x268] sm:$0xff] }
  0x75   : > { %9567 = vmatprep.mubr.msk.f32.mxu0 %vm410_vm0, %v264_v29  ;;  %9869 = vmatprep.mubr.msk.f32.mxu1 %vm410_vm0, %v2062_v31  ;;  %v2092_v29 = vmul.f32 %v294_v27, %v294_v27  ;;  %v2093_v30 = vmul.f32 %v295_v28, %v295_v28  ;;  %v296_v31 = vld [vmem:[%s10740_s18 + $0x270] sm:$0xff] }
  0x78   : > { %9568 = vmatmul.mubr.msk.f32.gmra.mrb[46].mxu0 %vm410_vm0, %v265_v32  ;;  %9870 = vmatmul.mubr.msk.f32.gmra.mrb[46].mxu1 %vm410_vm0, %v2063_v34  ;;  %v297_v32 = vld [vmem:[%s10740_s18 + $0x278] sm:$0xff] }
  0x79   : > { %9570 = vmatprep.mubr.msk.f32.mxu0 %vm410_vm0, %v266_v33  ;;  %9872 = vmatprep.mubr.msk.f32.mxu1 %vm410_vm0, %v2064_v35  ;;  %v2094_v33 = vmul.f32 %v296_v31, %v296_v31  ;;  %v2095_v34 = vmul.f32 %v297_v32, %v297_v32  ;;  %v298_v35 = vld [vmem:[%s10740_s18 + $0x280] sm:$0xff] }
  0x7c   : > { %9571 = vmatmul.mubr.msk.f32.gmra.mrb[48].mxu0 %vm410_vm0, %v267_v36  ;;  %9873 = vmatmul.mubr.msk.f32.gmra.mrb[48].mxu1 %vm410_vm0, %v2065_v38  ;;  %v299_v36 = vld [vmem:[%s10740_s18 + $0x288] sm:$0xff] }
  0x7d   : > { %9573 = vmatprep.mubr.msk.f32.mxu0 %vm410_vm0, %v268_v37  ;;  %9875 = vmatprep.mubr.msk.f32.mxu1 %vm410_vm0, %v2066_v39  ;;  %v2096_v37 = vmul.f32 %v298_v35, %v298_v35  ;;  %v2097_v38 = vmul.f32 %v299_v36, %v299_v36  ;;  %v300_v39 = vld [vmem:[%s10740_s18 + $0x290] sm:$0xff] }
  0x80   : > { %9574 = vmatmul.mubr.msk.f32.gmra.mrb[50].mxu0 %vm410_vm0, %v269_v40  ;;  %9876 = vmatmul.mubr.msk.f32.gmra.mrb[50].mxu1 %vm410_vm0, %v2067_v42  ;;  %v301_v40 = vld [vmem:[%s10740_s18 + $0x298] sm:$0xff] }
  0x81   : > { %9576 = vmatprep.mubr.msk.f32.mxu0 %vm410_vm0, %v270_v41  ;;  %9878 = vmatprep.mubr.msk.f32.mxu1 %vm410_vm0, %v2068_v43  ;;  %v2098_v41 = vmul.f32 %v300_v39, %v300_v39  ;;  %v2099_v42 = vmul.f32 %v301_v40, %v301_v40  ;;  %v302_v43 = vld [vmem:[%s10740_s18 + $0x2a0] sm:$0xff] }
  0x84   : > { %9577 = vmatmul.mubr.msk.f32.gmra.mrb[52].mxu0 %vm410_vm0, %v271_v44  ;;  %9879 = vmatmul.mubr.msk.f32.gmra.mrb[52].mxu1 %vm410_vm0, %v2069_v46  ;;  %v303_v44 = vld [vmem:[%s10740_s18 + $0x2a8] sm:$0xff] }
  0x85   : > { %9579 = vmatprep.mubr.msk.f32.mxu0 %vm410_vm0, %v272_v45  ;;  %9881 = vmatprep.mubr.msk.f32.mxu1 %vm410_vm0, %v2070_v47  ;;  %v2100_v45 = vmul.f32 %v302_v43, %v302_v43  ;;  %v2101_v46 = vmul.f32 %v303_v44, %v303_v44  ;;  %v304_v47 = vld [vmem:[%s10740_s18 + $0x2b0] sm:$0xff] }
  0x88   : > { %9580 = vmatmul.mubr.msk.f32.gmra.mrb[54].mxu0 %vm410_vm0, %v273_v48  ;;  %9882 = vmatmul.mubr.msk.f32.gmra.mrb[54].mxu1 %vm410_vm0, %v2071_v50  ;;  %v305_v48 = vld [vmem:[%s10740_s18 + $0x2b8] sm:$0xff] }
  0x89   : > { %9582 = vmatprep.mubr.msk.f32.mxu0 %vm410_vm0, %v274_v49  ;;  %9884 = vmatprep.mubr.msk.f32.mxu1 %vm410_vm0, %v2072_v51  ;;  %v2102_v49 = vmul.f32 %v304_v47, %v304_v47  ;;  %v2103_v50 = vmul.f32 %v305_v48, %v305_v48  ;;  %v306_v51 = vld [vmem:[%s10740_s18 + $0x2c0] sm:$0xff] }
  0x8c   : > { %9583 = vmatmul.mubr.msk.f32.gmra.mrb[56].mxu0 %vm410_vm0, %v275_v52  ;;  %9885 = vmatmul.mubr.msk.f32.gmra.mrb[56].mxu1 %vm410_vm0, %v2073_v55  ;;  %v307_v52 = vld [vmem:[%s10740_s18 + $0x2c8] sm:$0xff]  ;;  %v308_v55 = vld [vmem:[%s10740_s18 + $0x2d0] sm:$0xff] }
  0x8d   : > { %9585 = vmatprep.mubr.msk.f32.mxu0 %vm410_vm0, %v276_v53  ;;  %9887 = vmatprep.mubr.msk.f32.mxu1 %vm410_vm0, %v2074_v56  ;;  %v2104_v53 = vmul.f32 %v306_v51, %v306_v51  ;;  %v2105_v54 = vmul.f32 %v307_v52, %v307_v52  ;;  %v309_v56 = vld [vmem:[%s10740_s18 + $0x2d8] sm:$0xff] }
  0x90   : > { %9586 = vmatmul.mubr.msk.f32.gmra.mrb[58].mxu0 %vm410_vm0, %v277_v57  ;;  %9888 = vmatmul.mubr.msk.f32.gmra.mrb[58].mxu1 %vm410_vm0, %v2075_v59  ;;  %v2106_v59 = vmul.f32 %v308_v55, %v308_v55 }
  0x91   : > { %9588 = vmatprep.mubr.msk.f32.mxu0 %vm410_vm0, %v278_v58  ;;  %9890 = vmatprep.mubr.msk.f32.mxu1 %vm410_vm0, %v2076_v60  ;;  %v2107_v60 = vmul.f32 %v309_v56, %v309_v56 }
  0x94   : > { %9589 = vmatmul.mubr.msk.f32.gmra.mrb[60].mxu0 %vm410_vm0, %v279_v61  ;;  %9891 = vmatmul.mubr.msk.f32.gmra.mrb[60].mxu1 %vm410_vm0, %v2077_v63 }
  0x95   : > { %9591 = vmatprep.mubr.msk.f32.mxu0 %vm410_vm0, %v280_v62  ;;  %9893 = vmatprep.mubr.msk.f32.mxu1 %vm410_vm0, %v2078_v0 }
  0x98   : > { %9592 = vmatmul.mubr.msk.f32.gmra.mrb[62].mxu0 %vm410_vm0, %v281_v1  ;;  %9894 = vmatmul.mubr.msk.f32.gmra.mrb[62].mxu1 %vm410_vm0, %v2079_v3 }
  0x99   : > { %9594 = vmatprep.mubr.msk.f32.mxu0 %vm410_vm0, %v282_v2  ;;  %9896 = vmatprep.mubr.msk.f32.mxu1 %vm410_vm0, %v2080_v4 }
  0x9c   : > { %9595 = vmatmul.mubr.msk.f32.gmra.mrb[64].mxu0 %vm410_vm0, %v283_v5  ;;  %9897 = vmatmul.mubr.msk.f32.gmra.mrb[64].mxu1 %vm410_vm0, %v2081_v7 }
  0x9d   : > { %9597 = vmatprep.mubr.msk.f32.mxu0 %vm410_vm0, %v284_v6  ;;  %9899 = vmatprep.mubr.msk.f32.mxu1 %vm410_vm0, %v2082_v8 }
  0xa0   : > { %9598 = vmatmul.mubr.msk.f32.gmra.mrb[66].mxu0 %vm410_vm0, %v285_v9  ;;  %9900 = vmatmul.mubr.msk.f32.gmra.mrb[66].mxu1 %vm410_vm0, %v2083_v11 }
  0xa1   : > { %9600 = vmatprep.mubr.msk.f32.mxu0 %vm410_vm0, %v286_v10  ;;  %9902 = vmatprep.mubr.msk.f32.mxu1 %vm410_vm0, %v2084_v12 }
  0xa4   : > { %9601 = vmatmul.mubr.msk.f32.gmra.mrb[68].mxu0 %vm410_vm0, %v287_v13  ;;  %9903 = vmatmul.mubr.msk.f32.gmra.mrb[68].mxu1 %vm410_vm0, %v2085_v15 }
  0xa5   : > { %9603 = vmatprep.mubr.msk.f32.mxu0 %vm410_vm0, %v288_v14  ;;  %9905 = vmatprep.mubr.msk.f32.mxu1 %vm410_vm0, %v2086_v16 }
  0xa8   : > { %9604 = vmatmul.mubr.msk.f32.gmra.mrb[70].mxu0 %vm410_vm0, %v289_v17  ;;  %9906 = vmatmul.mubr.msk.f32.gmra.mrb[70].mxu1 %vm410_vm0, %v2087_v18  ;;  %v310_v17 = vld [vmem:[%s10740_s18 + $0x2e0] sm:$0xff]  ;;  %v311_v18 = vld [vmem:[%s10740_s18 + $0x2e8] sm:$0xff] }
  0xa9   : > { %9606 = vmatprep.mubr.msk.f32.mxu0 %vm410_vm0, %v290_v19  ;;  %9908 = vmatprep.mubr.msk.f32.mxu1 %vm410_vm0, %v2088_v21 }
  0xac   : > { %9607 = vmatmul.mubr.msk.f32.gmra.mrb[72].mxu0 %vm410_vm0, %v291_v20  ;;  %9909 = vmatmul.mubr.msk.f32.gmra.mrb[72].mxu1 %vm410_vm0, %v2089_v22 }
  0xad   : > { %9609 = vmatprep.mubr.msk.f32.mxu0 %vm410_vm0, %v292_v23  ;;  %9911 = vmatprep.mubr.msk.f32.mxu1 %vm410_vm0, %v2090_v25  ;;  %v2108_v23 = vmul.f32 %v310_v17, %v310_v17 }
  0xb0   : > { %9610 = vmatmul.mubr.msk.f32.gmra.mrb[74].mxu0 %vm410_vm0, %v293_v24  ;;  %9912 = vmatmul.mubr.msk.f32.gmra.mrb[74].mxu1 %vm410_vm0, %v2091_v26  ;;  %v2109_v24 = vmul.f32 %v311_v18, %v311_v18 }
  0xb1   : > { %9612 = vmatprep.mubr.msk.f32.mxu0 %vm410_vm0, %v294_v27  ;;  %9914 = vmatprep.mubr.msk.f32.mxu1 %vm410_vm0, %v2092_v29 }
  0xb4   : > { %9613 = vmatmul.mubr.msk.f32.gmra.mrb[76].mxu0 %vm410_vm0, %v295_v28  ;;  %9915 = vmatmul.mubr.msk.f32.gmra.mrb[76].mxu1 %vm410_vm0, %v2093_v30 }
  0xb5   : > { %9615 = vmatprep.mubr.msk.f32.mxu0 %vm410_vm0, %v296_v31  ;;  %9917 = vmatprep.mubr.msk.f32.mxu1 %vm410_vm0, %v2094_v33 }
  0xb8   : > { %9616 = vmatmul.mubr.msk.f32.gmra.mrb[78].mxu0 %vm410_vm0, %v297_v32  ;;  %9918 = vmatmul.mubr.msk.f32.gmra.mrb[78].mxu1 %vm410_vm0, %v2095_v34 }
  0xb9   : > { %9618 = vmatprep.mubr.msk.f32.mxu0 %vm410_vm0, %v298_v35  ;;  %9920 = vmatprep.mubr.msk.f32.mxu1 %vm410_vm0, %v2096_v37 }
  0xbc   : > { %9619 = vmatmul.mubr.msk.f32.gmra.mrb[80].mxu0 %vm410_vm0, %v299_v36  ;;  %9921 = vmatmul.mubr.msk.f32.gmra.mrb[80].mxu1 %vm410_vm0, %v2097_v38 }
  0xbd   : > { %9621 = vmatprep.mubr.msk.f32.mxu0 %vm410_vm0, %v300_v39  ;;  %9923 = vmatprep.mubr.msk.f32.mxu1 %vm410_vm0, %v2098_v41 }
  0xc0   : > { %9622 = vmatmul.mubr.msk.f32.gmra.mrb[82].mxu0 %vm410_vm0, %v301_v40  ;;  %9924 = vmatmul.mubr.msk.f32.gmra.mrb[82].mxu1 %vm410_vm0, %v2099_v42 }
  0xc1   : > { %9624 = vmatprep.mubr.msk.f32.mxu0 %vm410_vm0, %v302_v43  ;;  %9926 = vmatprep.mubr.msk.f32.mxu1 %vm410_vm0, %v2100_v45 }
  0xc4   : > { %9625 = vmatmul.mubr.msk.f32.gmra.mrb[84].mxu0 %vm410_vm0, %v303_v44  ;;  %9927 = vmatmul.mubr.msk.f32.gmra.mrb[84].mxu1 %vm410_vm0, %v2101_v46 }
  0xc5   : > { %9627 = vmatprep.mubr.msk.f32.mxu0 %vm410_vm0, %v304_v47  ;;  %9929 = vmatprep.mubr.msk.f32.mxu1 %vm410_vm0, %v2102_v49 }
  0xc8   : > { %9628 = vmatmul.mubr.msk.f32.gmra.mrb[86].mxu0 %vm410_vm0, %v305_v48  ;;  %9930 = vmatmul.mubr.msk.f32.gmra.mrb[86].mxu1 %vm410_vm0, %v2103_v50 }
  0xc9   : > { %9630 = vmatprep.mubr.msk.f32.mxu0 %vm410_vm0, %v306_v51  ;;  %9932 = vmatprep.mubr.msk.f32.mxu1 %vm410_vm0, %v2104_v53  ;;  %v313_v53 = vld [vmem:[%s10740_s18 + $0x2f8] sm:$0xff] }
  0xcc   : > { %9631 = vmatmul.mubr.msk.f32.gmra.mrb[88].mxu0 %vm410_vm0, %v307_v52  ;;  %9933 = vmatmul.mubr.msk.f32.gmra.mrb[88].mxu1 %vm410_vm0, %v2105_v54  ;;  %v312_v52 = vld [vmem:[%s10740_s18 + $0x2f0] sm:$0xff] }
  0xcd   : > { %9633 = vmatprep.mubr.msk.f32.mxu0 %vm410_vm0, %v308_v55  ;;  %9935 = vmatprep.mubr.msk.f32.mxu1 %vm410_vm0, %v2106_v59  ;;  %v2110_v59 = vmul.f32 %v312_v52, %v312_v52 }
  0xd0   : > { %9634 = vmatmul.mubr.msk.f32.gmra.mrb[90].mxu0 %vm410_vm0, %v309_v56  ;;  %9936 = vmatmul.mubr.msk.f32.gmra.mrb[90].mxu1 %vm410_vm0, %v2107_v60 }
  0xd1   : > { %9636 = vmatprep.mubr.msk.f32.mxu0 %vm410_vm0, %v310_v17  ;;  %9938 = vmatprep.mubr.msk.f32.mxu1 %vm410_vm0, %v2108_v23 }
  0xd4   : > { %9637 = vmatmul.mubr.msk.f32.gmra.mrb[92].mxu0 %vm410_vm0, %v311_v18  ;;  %9939 = vmatmul.mubr.msk.f32.gmra.mrb[92].mxu1 %vm410_vm0, %v2109_v24 }
  0xd5   : > { %9639 = vmatprep.mubr.msk.f32.mxu0 %vm410_vm0, %v312_v52  ;;  %9941 = vmatprep.mubr.msk.f32.mxu1 %vm410_vm0, %v2110_v59 }
  0xd8   : > { %9640 = vmatmul.mubr.msk.f32.gmra.mrb[94].mxu0 %vm410_vm0, %v313_v53 }
  0xef   : > { %v9500_v57 = vpop.f32.mrb[0].mxu0  ;;  %v9802_v58 = vpop.f32.mrb[0].mxu1 }
  0xf0   : > { %v11019_v61 = vmul.f32 0.020408163, %v9500_v57  ;;  %v1057_v62 = vpop.f32.mrb[1].mxu0  ;;  %v4002_v63 = vmul.f32 0.020408163, %v9802_v58  ;;  %v2850_v0 = vpop.f32.mrb[1].mxu1 }
  0xf1   : > { %v11022_v1 = vmul.f32 0.020408163, %v1057_v62  ;;  %v4001_v2 = vmul.f32 0.020408163, %v2850_v0 }
  0xf2   : > { %v4194_v3 = vmul.f32 %v11019_v61, %v11019_v61 }
  0xf3   : > { %v4193_v4 = vmul.f32 %v11022_v1, %v11022_v1  ;;  %v9503_v5 = vpop.f32.mrb[2].mxu0  ;;  %v9805_v6 = vpop.f32.mrb[2].mxu1 }
  0xf4   : > { %v4386_v7 = vsub.f32 %v4002_v63, %v4194_v3  ;;  %v11030_v8 = vmul.f32 0.020408163, %v9503_v5  ;;  %v1067_v9 = vpop.f32.mrb[3].mxu0  ;;  %v4004_v10 = vmul.f32 0.020408163, %v9805_v6  ;;  %v2860_v11 = vpop.f32.mrb[3].mxu1 }
  0xf5   : > { %v4385_v12 = vsub.f32 %v4001_v2, %v4193_v4  ;;  %v11032_v13 = vmul.f32 0.020408163, %v1067_v9  ;;  %v4003_v14 = vmul.f32 0.020408163, %v2860_v11  ;;  %v2111_v2 = vmul.f32 %v313_v53, %v313_v53  ;;  %v5156_v53 = vld [vmem:[%s11072_s21 + $0x18] sm:$0xff] }
  0xf6   : > { %v4578_v15 = vmax.f32 %v4386_v7, 0.0  ;;  %v4196_v16 = vmul.f32 %v11030_v8, %v11030_v8 }
  0xf7   : > { %v4577_v19 = vmax.f32 %v4385_v12, 0.0  ;;  %v4195_v20 = vmul.f32 %v11032_v13, %v11032_v13  ;;  %v9506_v21 = vpop.f32.mrb[4].mxu0  ;;  %v9808_v22 = vpop.f32.mrb[4].mxu1  ;;  %9942 = vmatmul.mubr.msk.f32.gmra.mrb[94].mxu1 %vm410_vm0, %v2111_v2  ;;  %v5537_v2 = vld [vmem:[%s11104_s24] sm:$0xff] }
  0xf8   : > { %v4770_v25 = vadd.f32 1e-05, %v4578_v15  ;;  %v4388_v26 = vsub.f32 %v4004_v10, %v4196_v16  ;;  %v11041_v27 = vmul.f32 0.020408163, %v9506_v21  ;;  %v1077_v28 = vpop.f32.mrb[5].mxu0  ;;  %v2870_v29 = vpop.f32.mrb[5].mxu1 }
  0xf9   : > { %v4769_v30 = vadd.f32 1e-05, %v4577_v19  ;;  %v4387_v31 = vsub.f32 %v4003_v14, %v4195_v20  ;;  %v11044_v32 = vmul.f32 0.020408163, %v1077_v28  ;;  %v4006_v33 = vmul.f32 0.020408163, %v9808_v22 }
  0xfa   : > { %10113 = vrsqrt.f32 %v4770_v25  ;;  %v4580_v34 = vmax.f32 %v4388_v26, 0.0  ;;  %v4198_v35 = vmul.f32 %v11041_v27, %v11041_v27  ;;  %v4005_v36 = vmul.f32 0.020408163, %v2870_v29  ;;  %v5154_v22 = vld [vmem:[%s11072_s21 + $0x8] sm:$0xff]  ;;  %v5153_v28 = vld [vmem:[%s11072_s21] sm:$0xff] }
  0xfb   : > { %10115 = vrsqrt.f32 %v4769_v30  ;;  %v4579_v37 = vmax.f32 %v4387_v31, 0.0  ;;  %v4197_v38 = vmul.f32 %v11044_v32, %v11044_v32  ;;  %v9509_v39 = vpop.f32.mrb[6].mxu0  ;;  %v9811_v40 = vpop.f32.mrb[6].mxu1 }
  0xfc   : > { %v4772_v41 = vadd.f32 1e-05, %v4580_v34  ;;  %v4390_v42 = vsub.f32 %v4006_v33, %v4198_v35  ;;  %v11052_v43 = vmul.f32 0.020408163, %v9509_v39  ;;  %v1087_v44 = vpop.f32.mrb[7].mxu0  ;;  %v2880_v45 = vpop.f32.mrb[7].mxu1 }
  0xfd   : > { %v4389_v46 = vsub.f32 %v4005_v36, %v4197_v38  ;;  %v11054_v47 = vmul.f32 0.020408163, %v1087_v44  ;;  %v4008_v48 = vmul.f32 0.020408163, %v9811_v40  ;;  %v4771_v49 = vadd.f32 1e-05, %v4579_v37 }
  0xfe   : > { %10117 = vrsqrt.f32 %v4772_v41  ;;  %v4200_v50 = vmul.f32 %v11052_v43, %v11052_v43  ;;  %v4007_v51 = vmul.f32 0.020408163, %v2880_v45  ;;  %v4582_v54 = vmax.f32 %v4390_v42, 0.0  ;;  %v314_v33 = vld [vmem:[%s10740_s18 + $0x300] sm:$0xff]  ;;  %v315_v34 = vld [vmem:[%s10740_s18 + $0x308] sm:$0xff] }
  0xff   : > { %v4581_v55 = vmax.f32 %v4389_v46, 0.0  ;;  %v4199_v56 = vmul.f32 %v11054_v47, %v11054_v47  ;;  %v9512_v57 = vpop.f32.mrb[8].mxu0  ;;  %v9814_v58 = vpop.f32.mrb[8].mxu1  ;;  %10119 = vrsqrt.f32 %v4771_v49  ;;  %9642 = vmatprep.mubr.msk.f32.mxu0 %vm410_vm0, %v314_v33 }
 0x100   : > { %v4392_v60 = vsub.f32 %v4008_v48, %v4200_v50  ;;  %v11063_v62 = vmul.f32 0.020408163, %v9512_v57  ;;  %v1097_v63 = vpop.f32.mrb[9].mxu0  ;;  %v2890_v0 = vpop.f32.mrb[9].mxu1  ;;  %v4010_v6 = vmul.f32 0.020408163, %v9814_v58  ;;  %9643 = vmatmul.mubr.msk.f32.gmra.mrb[96].mxu0 %vm410_vm0, %v315_v34 }
 0x101   : > { %v4773_v3 = vadd.f32 1e-05, %v4581_v55  ;;  %v4391_v4 = vsub.f32 %v4007_v51, %v4199_v56  ;;  %v11066_v5 = vmul.f32 0.020408163, %v1097_v63  ;;  %v4009_v9 = vmul.f32 0.020408163, %v2890_v0 }
 0x102   : > { %v4202_v7 = vmul.f32 %v11063_v62, %v11063_v62  ;;  %v4774_v10 = vadd.f32 1e-05, %v4582_v54  ;;  %v4584_v17 = vmax.f32 %v4392_v60, 0.0 }
 0x103   : > { %v4583_v11 = vmax.f32 %v4391_v4, 0.0  ;;  %v4201_v12 = vmul.f32 %v11066_v5, %v11066_v5  ;;  %v9515_v14 = vpop.f32.mrb[10].mxu0  ;;  %v9817_v15 = vpop.f32.mrb[10].mxu1  ;;  %10121 = vrsqrt.f32 %v4773_v3  ;;  %v5538_v4 = vld [vmem:[%s11104_s24 + $0x8] sm:$0xff] }
 0x104   : > { %v10114_v16 = vpop.eup %10113  ;;  %v4394_v18 = vsub.f32 %v4010_v6, %v4202_v7  ;;  %v11080_v19 = vmul.f32 0.020408163, %v9515_v14  ;;  %v1107_v20 = vpop.f32.mrb[11].mxu0  ;;  %v4012_v26 = vmul.f32 0.020408163, %v9817_v15  ;;  %10123 = vrsqrt.f32 %v4774_v10  ;;  %v5155_v14 = vld [vmem:[%s11072_s21 + $0x10] sm:$0xff] }
 0x105   : > { %v2900_v21 = vpop.f32.mrb[11].mxu1  ;;  %v10116_v23 = vpop.eup %10115  ;;  %v4393_v24 = vsub.f32 %v4009_v9, %v4201_v12  ;;  %v11083_v25 = vmul.f32 0.020408163, %v1107_v20  ;;  %v4775_v29 = vadd.f32 1e-05, %v4583_v11  ;;  %v5346_v37 = vmul.f32 %v10114_v16, %v5154_v22 }
 0x106   : > { %v4204_v30 = vmul.f32 %v11080_v19, %v11080_v19  ;;  %v4011_v31 = vmul.f32 0.020408163, %v2900_v21  ;;  %v4776_v41 = vadd.f32 1e-05, %v4584_v17  ;;  %v5345_v48 = vmul.f32 %v10116_v23, %v5153_v28  ;;  %v316_v17 = vld [vmem:[%s10740_s18 + $0x310] sm:$0xff] }
 0x107   : > { %v4585_v35 = vmax.f32 %v4393_v24, 0.0  ;;  %v4203_v36 = vmul.f32 %v11083_v25, %v11083_v25  ;;  %v9518_v38 = vpop.f32.mrb[12].mxu0  ;;  %v9820_v39 = vpop.f32.mrb[12].mxu1  ;;  %v4586_v49 = vmax.f32 %v4394_v18, 0.0  ;;  %6120 = vperm.xlu0 %10111, %v5346_v37   ;;  %v5730_v51 = vmul.f32 %v5346_v37, %v11019_v61  ;;  %v317_v18 = vld [vmem:[%s10740_s18 + $0x318] sm:$0xff]  ;;  %9645 = vmatprep.mubr.msk.f32.mxu0 %vm410_vm0, %v316_v17 }
 0x108   : > { %v10118_v40 = vpop.eup %10117  ;;  %v4396_v42 = vsub.f32 %v4012_v26, %v4204_v30  ;;  %v11093_v44 = vmul.f32 0.020408163, %v9518_v38  ;;  %v1117_v45 = vpop.f32.mrb[13].mxu0  ;;  %10125 = vrsqrt.f32 %v4775_v29  ;;  %v4014_v56 = vmul.f32 0.020408163, %v9820_v39  ;;  %v5157_v26 = vld [vmem:[%s11072_s21 + $0x20] sm:$0xff]  ;;  %9646 = vmatmul.mubr.msk.f32.gmra.mrb[98].mxu0 %vm410_vm0, %v317_v18 }
 0x109   : > { %v2910_v46 = vpop.f32.mrb[13].mxu1  ;;  %v4395_v50 = vsub.f32 %v4011_v31, %v4203_v36  ;;  %v11097_v52 = vmul.f32 0.020408163, %v1117_v45  ;;  %v4777_v54 = vadd.f32 1e-05, %v4585_v35  ;;  %v5348_v0 = vmul.f32 %v10118_v40, %v5156_v53  ;;  %v10120_v9 = vpop.eup %10119  ;;  %v5539_v45 = vld [vmem:[%s11104_s24 + $0x10] sm:$0xff] }
 0x10a   : > { %v4206_v55 = vmul.f32 %v11093_v44, %v11093_v44  ;;  %v4013_v58 = vmul.f32 0.020408163, %v2910_v46  ;;  %v5729_v3 = vmul.f32 %v5345_v48, %v11022_v1  ;;  %10127 = vrsqrt.f32 %v4776_v41 }
 0x10b   : > { %v4587_v57 = vmax.f32 %v4395_v50, 0.0  ;;  %v4205_v61 = vmul.f32 %v11097_v52, %v11097_v52  ;;  %v9521_v59 = vpop.f32.mrb[14].mxu0  ;;  %v9823_v60 = vpop.f32.mrb[14].mxu1  ;;  %v4588_v10 = vmax.f32 %v4396_v42, 0.0  ;;  %6115 = vperm.xlu0 %10111, %v5345_v48   ;;  %v4778_v15 = vadd.f32 1e-05, %v4586_v49  ;;  %6130 = vperm.xlu1 %10112, %v5348_v0  }
 0x10c   : > { %v4398_v63 = vsub.f32 %v4014_v56, %v4206_v55  ;;  %v1127_v6 = vpop.f32.mrb[15].mxu0  ;;  %v2920_v7 = vpop.f32.mrb[15].mxu1  ;;  %v11113_v12 = vmul.f32 0.020408163, %v9521_v59  ;;  %10129 = vrsqrt.f32 %v4777_v54  ;;  %v11117_v1 = vmul.f32 %v5348_v0, %v11030_v8  ;;  %v5158_v42 = vld [vmem:[%s11072_s21 + $0x28] sm:$0xff]  ;;  %v5159_v49 = vld [vmem:[%s11072_s21 + $0x30] sm:$0xff] }
 0x10d   : > { %v4397_v11 = vsub.f32 %v4013_v58, %v4205_v61  ;;  %v4779_v16 = vadd.f32 1e-05, %v4587_v57  ;;  %v10122_v20 = vpop.eup %10121  ;;  %v5921_v21 = vsub.f32 %v5537_v2, %v5729_v3  ;;  %v5922_v22 = vsub.f32 %v5538_v4, %v5730_v51 }
 0x10e   : > { %v4208_v23 = vmul.f32 %v11113_v12, %v11113_v12  ;;  %v11123_v24 = vmul.f32 0.020408163, %v1127_v6  ;;  %v4016_v8 = vmul.f32 0.020408163, %v9823_v60  ;;  %v4015_v31 = vmul.f32 0.020408163, %v2920_v7  ;;  %v10124_v34 = vpop.eup %10123 }
 0x10f   : > { %v9524_v28 = vpop.f32.mrb[16].mxu0  ;;  %v9826_v29 = vpop.f32.mrb[16].mxu1  ;;  %v4589_v30 = vmax.f32 %v4397_v11, 0.0  ;;  %v5347_v33 = vmul.f32 %v10120_v9, %v5155_v14  ;;  %v4780_v35 = vadd.f32 1e-05, %v4588_v10  ;;  %v4590_v36 = vmax.f32 %v4398_v63, 0.0  ;;  %7267 = vperm.xlu0 %10111, %v5921_v21   ;;  %7272 = vperm.xlu1 %10112, %v5922_v22  }
 0x110   : > { %v4207_v37 = vmul.f32 %v11123_v24, %v11123_v24  ;;  %v1137_v38 = vpop.f32.mrb[17].mxu0  ;;  %v2930_v39 = vpop.f32.mrb[17].mxu1  ;;  %v4400_v40 = vsub.f32 %v4016_v8, %v4208_v23  ;;  %v5349_v41 = vmul.f32 %v10122_v20, %v5157_v26  ;;  %v11133_v48 = vmul.f32 0.020408163, %v9524_v28  ;;  %v318_v7 = vld [vmem:[%s10740_s18 + $0x320] sm:$0xff]  ;;  %v319_v9 = vld [vmem:[%s10740_s18 + $0x328] sm:$0xff] }
 0x111   : > { %v5731_v46 = vmul.f32 %v5347_v33, %v11032_v13  ;;  %10131 = vrsqrt.f32 %v4778_v15  ;;  %v11136_v51 = vmul.f32 0.020408163, %v1137_v38  ;;  %v11138_v53 = vmul.f32 0.020408163, %v9826_v29  ;;  %v5540_v14 = vld [vmem:[%s11104_s24 + $0x18] sm:$0xff]  ;;  %9648 = vmatprep.mubr.msk.f32.mxu0 %vm410_vm0, %v318_v7  ;;  %v5161_v8 = vld [vmem:[%s11072_s21 + $0x40] sm:$0xff] }
 0x112   : > { %v4399_v50 = vsub.f32 %v4015_v31, %v4207_v37  ;;  %v10126_v56 = vpop.eup %10125  ;;  %10133 = vrsqrt.f32 %v4779_v16  ;;  %v4781_v57 = vadd.f32 1e-05, %v4589_v30  ;;  %v4210_v61 = vmul.f32 %v11133_v48, %v11133_v48  ;;  %v5160_v21 = vld [vmem:[%s11072_s21 + $0x38] sm:$0xff]  ;;  %9649 = vmatmul.mubr.msk.f32.gmra.mrb[100].mxu0 %vm410_vm0, %v319_v9  ;;  %v5541_v38 = vld [vmem:[%s11104_s24 + $0x20] sm:$0xff] }
 0x113   : > { %v9527_v54 = vpop.f32.mrb[18].mxu0  ;;  %v9829_v55 = vpop.f32.mrb[18].mxu1  ;;  %v4017_v13 = vmul.f32 0.020408163, %v2930_v39  ;;  %10135 = vrsqrt.f32 %v4780_v35  ;;  %v4782_v60 = vadd.f32 1e-05, %v4590_v36  ;;  %6135 = vperm.xlu0 %10111, %v5349_v41   ;;  %v4209_v0 = vmul.f32 %v11136_v51, %v11136_v51  ;;  %6125 = vperm.xlu1 %10112, %v5347_v33  }
 0x114   : > { %v1147_v58 = vpop.f32.mrb[19].mxu0  ;;  %v2940_v59 = vpop.f32.mrb[19].mxu1  ;;  %v4591_v63 = vmax.f32 %v4399_v50, 0.0  ;;  %v5350_v2 = vmul.f32 %v10124_v34, %v5158_v42  ;;  %v5923_v3 = vsub.f32 %v5539_v45, %v5731_v46  ;;  %v4402_v4 = vsub.f32 %v11138_v53, %v4210_v61 }
 0x115   : > { %v11146_v6 = vmul.f32 %v5349_v41, %v11044_v32  ;;  %v10128_v10 = vpop.eup %10127  ;;  %v4401_v11 = vsub.f32 %v4017_v13, %v4209_v0  ;;  %v5351_v15 = vmul.f32 %v10126_v56, %v5159_v49  ;;  %v11151_v16 = vmul.f32 0.020408163, %v9527_v54  ;;  %v5162_v56 = vld [vmem:[%s11072_s21 + $0x48] sm:$0xff] }
 0x116   : > { %v11153_v17 = vmul.f32 0.020408163, %v1147_v58  ;;  %v10130_v18 = vpop.eup %10129  ;;  %10137 = vrsqrt.f32 %v4781_v57  ;;  %v4592_v20 = vmax.f32 %v4400_v40, 0.0  ;;  %v11157_v22 = vmul.f32 0.020408163, %v9829_v55 }
 0x117   : > { %v9530_v32 = vpop.f32.mrb[20].mxu0  ;;  %v9832_v23 = vpop.f32.mrb[20].mxu1  ;;  %v4783_v26 = vadd.f32 1e-05, %v4591_v63  ;;  %7277 = vperm.xlu0 %10111, %v5923_v3   ;;  %v4593_v28 = vmax.f32 %v4401_v11, 0.0  ;;  %v4212_v29 = vmul.f32 %v11151_v16, %v11151_v16  ;;  %10139 = vrsqrt.f32 %v4782_v60  ;;  %6140 = vperm.xlu1 %10112, %v5350_v2   ;;  %v5163_v60 = vld [vmem:[%s11072_s21 + $0x50] sm:$0xff] }
 0x118   : > { %v4211_v30 = vmul.f32 %v11153_v17, %v11153_v17  ;;  %v1157_v31 = vpop.f32.mrb[21].mxu0  ;;  %v2950_v33 = vpop.f32.mrb[21].mxu1  ;;  %v4019_v34 = vmul.f32 0.020408163, %v2940_v59  ;;  %v11166_v35 = vmul.f32 %v5350_v2, %v11041_v27  ;;  %v5924_v36 = vsub.f32 %v5540_v14, %v11117_v1 }
 0x119   : > { %v5352_v37 = vmul.f32 %v10128_v10, %v5160_v21  ;;  %v4404_v39 = vsub.f32 %v11157_v22, %v4212_v29  ;;  %v11172_v40 = vmul.f32 %v5351_v15, %v11054_v47  ;;  %v4784_v45 = vadd.f32 1e-05, %v4592_v20  ;;  %v5542_v20 = vld [vmem:[%s11104_s24 + $0x28] sm:$0xff] }
 0x11a   : > { %v4403_v46 = vsub.f32 %v4019_v34, %v4211_v30  ;;  %v5353_v49 = vmul.f32 %v10130_v18, %v5161_v8  ;;  %v11174_v50 = vmul.f32 0.020408163, %v9530_v32  ;;  %10141 = vrsqrt.f32 %v4783_v26  ;;  %v11203_v18 = vld [vmem:[%s10740_s18 + $0x338] sm:$0xff]  ;;  %v5165_v30 = vld [vmem:[%s11072_s21 + $0x60] sm:$0xff] }
 0x11b   : > { %v9533_v41 = vpop.f32.mrb[22].mxu0  ;;  %v9835_v42 = vpop.f32.mrb[22].mxu1  ;;  %v4594_v1 = vmax.f32 %v4402_v4, 0.0  ;;  %v4785_v55 = vadd.f32 1e-05, %v4593_v28  ;;  %6145 = vperm.xlu0 %10111, %v5351_v15   ;;  %7282 = vperm.xlu1 %10112, %v5924_v36   ;;  %v5925_v0 = vsub.f32 %v5541_v38, %v11146_v6  ;;  %v11190_v3 = vmul.f32 %v5352_v37, %v11052_v43  ;;  %v11200_v15 = vld [vmem:[%s10740_s18 + $0x330] sm:$0xff] }
 0x11c   : > { %v1167_v27 = vpop.f32.mrb[23].mxu0  ;;  %v2960_v53 = vpop.f32.mrb[23].mxu1  ;;  %v11177_v57 = vmul.f32 0.020408163, %v1157_v31  ;;  %v4595_v61 = vmax.f32 %v4403_v46, 0.0  ;;  %v11181_v13 = vmul.f32 %v11174_v50, %v11174_v50  ;;  %10143 = vrsqrt.f32 %v4784_v45  ;;  %17588 = vst [vmem:[#allocation2_spill] sm:$0xff] %v11200_v15  ;;  %9651 = vmatprep.mubr.msk.f32.mxu0 %vm410_vm0, %v11200_v15 }
 0x11d   : > { %v10132_v54 = vpop.eup %10131  ;;  %v11183_v58 = vmul.f32 0.020408163, %v9832_v23  ;;  %v4021_v59 = vmul.f32 0.020408163, %v2950_v33  ;;  %v11197_v11 = vmul.f32 %v5353_v49, %v11066_v5  ;;  %17589 = vst [vmem:[#allocation3_spill] sm:$0xff] %v11203_v18  ;;  %v5164_v32 = vld [vmem:[%s11072_s21 + $0x58] sm:$0xff]  ;;  %10145 = vrsqrt.f32 %v4785_v55  ;;  %9652 = vmatmul.mubr.msk.f32.gmra.mrb[102].mxu0 %vm410_vm0, %v11203_v18 }
 0x11e   : > { %v10134_v47 = vpop.eup %10133  ;;  %v4213_v2 = vmul.f32 %v11177_v57, %v11177_v57  ;;  %v11192_v9 = vmul.f32 %v10132_v54, %v5162_v56  ;;  %v4786_v43 = vadd.f32 1e-05, %v4594_v1  ;;  %v11209_v23 = vmul.f32 0.020408163, %v9533_v41 }
 0x11f   : > { %v10136_v63 = vpop.eup %10135  ;;  %v9536_v4 = vpop.f32.mrb[24].mxu0  ;;  %v4406_v10 = vsub.f32 %v11183_v58, %v11181_v13  ;;  %7287 = vperm.xlu0 %10111, %v5925_v0   ;;  %v11206_v22 = vmul.f32 %v10134_v47, %v5163_v60  ;;  %6150 = vperm.xlu1 %10112, %v5352_v37   ;;  %v4596_v26 = vmax.f32 %v4404_v39, 0.0  ;;  %v4787_v28 = vadd.f32 1e-05, %v4595_v61  ;;  %v5543_v37 = vld [vmem:[%s11104_s24 + $0x30] sm:$0xff]  ;;  %v5166_v47 = vld [vmem:[%s11072_s21 + $0x68] sm:$0xff] }
 0x120   : > { %v9838_v7 = vpop.f32.mrb[24].mxu1  ;;  %v1177_v14 = vpop.f32.mrb[25].mxu0  ;;  %v4405_v21 = vsub.f32 %v4021_v59, %v4213_v2  ;;  %v11213_v29 = vmul.f32 0.020408163, %v1167_v27  ;;  %v4216_v31 = vmul.f32 %v11209_v23, %v11209_v23  ;;  %v4024_v33 = vmul.f32 0.020408163, %v9835_v42 }
 0x121   : > { %v2970_v6 = vpop.f32.mrb[25].mxu1  ;;  %v10138_v5 = vpop.eup %10137  ;;  %v4023_v34 = vmul.f32 0.020408163, %v2960_v53  ;;  %v5926_v41 = vsub.f32 %v5542_v20, %v11166_v35  ;;  %v11226_v45 = vmul.f32 %v11192_v9, %v11063_v62  ;;  %10147 = vrsqrt.f32 %v4786_v43  ;;  %v5167_v61 = vld [vmem:[%s11072_s21 + $0x70] sm:$0xff] }
 0x122   : > { %v4597_v8 = vmax.f32 %v4405_v21, 0.0  ;;  %v10140_v38 = vpop.eup %10139  ;;  %v4215_v39 = vmul.f32 %v11213_v29, %v11213_v29  ;;  %v11228_v42 = vmul.f32 %v10136_v63, %v5164_v32  ;;  %v4408_v53 = vsub.f32 %v4024_v33, %v4216_v31  ;;  %v11263_v32 = vld [vmem:[%s10740_s18 + $0x340] sm:$0xff] }
 0x123   : > { %v9539_v36 = vpop.f32.mrb[26].mxu0  ;;  %v9841_v27 = vpop.f32.mrb[26].mxu1  ;;  %6155 = vperm.xlu0 %10111, %v5353_v49   ;;  %v11232_v35 = vmul.f32 %v11206_v22, %v11083_v25  ;;  %v4788_v1 = vadd.f32 1e-05, %v4596_v26  ;;  %7292 = vperm.xlu1 %10112, %v5926_v41   ;;  %v11234_v56 = vmul.f32 %v10138_v5, %v5165_v30  ;;  %v11237_v62 = vmul.f32 0.020408163, %v9536_v4 }
 0x124   : > { %v1187_v46 = vpop.f32.mrb[27].mxu0  ;;  %v2980_v54 = vpop.f32.mrb[27].mxu1  ;;  %v4407_v55 = vsub.f32 %v4023_v34, %v4215_v39  ;;  %10149 = vrsqrt.f32 %v4787_v28  ;;  %v5927_v49 = vsub.f32 %v5543_v37, %v11172_v40  ;;  %v4789_v58 = vadd.f32 1e-05, %v4597_v8  ;;  %v5544_v40 = vld [vmem:[%s11104_s24 + $0x38] sm:$0xff]  ;;  %17590 = vst [vmem:[#allocation4_spill] sm:$0xff] %v11263_v32  ;;  %9654 = vmatprep.mubr.msk.f32.mxu0 %vm410_vm0, %v11263_v32 }
 0x125   : > { %v10142_v13 = vpop.eup %10141  ;;  %v11241_v25 = vmul.f32 0.020408163, %v1177_v14  ;;  %v4598_v63 = vmax.f32 %v4406_v10, 0.0  ;;  %v11247_v0 = vmul.f32 %v11237_v62, %v11237_v62  ;;  %v11249_v2 = vmul.f32 0.020408163, %v9838_v7  ;;  %v11266_v7 = vld [vmem:[%s10740_s18 + $0x348] sm:$0xff] }
 0x126   : > { %v4025_v4 = vmul.f32 0.020408163, %v2970_v6  ;;  %v4599_v20 = vmax.f32 %v4407_v55, 0.0  ;;  %v11258_v10 = vmul.f32 %v11228_v42, %v11080_v19  ;;  %17591 = vst [vmem:[#allocation5_spill] sm:$0xff] %v11266_v7  ;;  %v10144_v6 = vpop.eup %10143  ;;  %10151 = vrsqrt.f32 %v4788_v1  ;;  %v5545_v5 = vld [vmem:[%s11104_s24 + $0x40] sm:$0xff]  ;;  %v5168_v30 = vld [vmem:[%s11072_s21 + $0x78] sm:$0xff]  ;;  %9655 = vmatmul.mubr.msk.f32.gmra.mrb[104].mxu0 %vm410_vm0, %v11266_v7 }
 0x127   : > { %v9542_v59 = vpop.f32.mrb[28].mxu0  ;;  %v11243_v60 = vpop.f32.mrb[28].mxu1  ;;  %7297 = vperm.xlu0 %10111, %v5927_v49   ;;  %v4217_v14 = vmul.f32 %v11241_v25, %v11241_v25  ;;  %6160 = vperm.xlu1 %10112, %v11192_v9   ;;  %v11270_v26 = vmul.f32 %v10140_v38, %v5166_v47  ;;  %v4410_v28 = vsub.f32 %v11249_v2, %v11247_v0  ;;  %v4600_v8 = vmax.f32 %v4408_v53, 0.0  ;;  %v5169_v9 = vld [vmem:[%s11072_s21 + $0x80] sm:$0xff]  ;;  %v5546_v0 = vld [vmem:[%s11104_s24 + $0x48] sm:$0xff] }
 0x128   : > { %v11251_v43 = vpop.f32.mrb[29].mxu0  ;;  %v11260_v21 = vpop.f32.mrb[29].mxu1  ;;  %v11277_v19 = vmul.f32 %v11234_v56, %v11097_v52  ;;  %v11281_v33 = vmul.f32 %v10142_v13, %v5167_v61  ;;  %v11283_v34 = vmul.f32 0.020408163, %v9539_v36  ;;  %v4790_v52 = vadd.f32 1e-05, %v4598_v63 }
 0x129   : > { %v4409_v31 = vsub.f32 %v4025_v4, %v4217_v14  ;;  %v10146_v37 = vpop.eup %10145  ;;  %10153 = vrsqrt.f32 %v4789_v58  ;;  %v5928_v39 = vsub.f32 %v5544_v40, %v11190_v3  ;;  %v11293_v53 = vmul.f32 0.020408163, %v1187_v46  ;;  %v5549_v32 = vld [vmem:[%s11104_s24 + $0x60] sm:$0xff] }
 0x12a   : > { %v4791_v55 = vadd.f32 1e-05, %v4599_v20  ;;  %v4220_v47 = vmul.f32 %v11283_v34, %v11283_v34  ;;  %v4028_v61 = vmul.f32 0.020408163, %v9841_v27  ;;  %v4027_v13 = vmul.f32 0.020408163, %v2980_v54 }
 0x12b   : > { %v11286_v38 = vpop.f32.mrb[30].mxu0  ;;  %v11288_v41 = vpop.f32.mrb[30].mxu1  ;;  %6165 = vperm.xlu0 %10111, %v11206_v22   ;;  %7302 = vperm.xlu1 %10112, %v5928_v39   ;;  %v5929_v49 = vsub.f32 %v5545_v5, %v11197_v11  ;;  %v4601_v58 = vmax.f32 %v4409_v31, 0.0  ;;  %v4219_v3 = vmul.f32 %v11293_v53, %v11293_v53  ;;  %v11307_v46 = vmul.f32 %v11270_v26, %v11093_v44  ;;  %v11329_v5 = vld [vmem:[%s10740_s18 + $0x350] sm:$0xff]  ;;  %v5170_v31 = vld [vmem:[%s11072_s21 + $0x88] sm:$0xff] }
 0x12c   : > { %v11295_v1 = vpop.f32.mrb[31].mxu0  ;;  %v11297_v36 = vpop.f32.mrb[31].mxu1  ;;  %v4792_v63 = vadd.f32 1e-05, %v4600_v8  ;;  %v11310_v2 = vmul.f32 %v10144_v6, %v5168_v30  ;;  %v4412_v27 = vsub.f32 %v4028_v61, %v4220_v47  ;;  %v11314_v11 = vmul.f32 %v11281_v33, %v11123_v24  ;;  %17592 = vst [vmem:[#allocation6_spill] sm:$0xff] %v11329_v5  ;;  %v11332_v30 = vld [vmem:[%s10740_s18 + $0x358] sm:$0xff]  ;;  %9657 = vmatprep.mubr.msk.f32.mxu0 %vm410_vm0, %v11329_v5 }
 0x12d   : > { %v10148_v22 = vpop.eup %10147  ;;  %10155 = vrsqrt.f32 %v4790_v52  ;;  %v4411_v44 = vsub.f32 %v4027_v13, %v4219_v3  ;;  %v11320_v40 = vmul.f32 %v10146_v37, %v5169_v9  ;;  %v11322_v20 = vmul.f32 0.020408163, %v9542_v59  ;;  %17593 = vst [vmem:[#allocation7_spill] sm:$0xff] %v11332_v30  ;;  %v5171_v9 = vld [vmem:[%s11072_s21 + $0x90] sm:$0xff]  ;;  %9658 = vmatmul.mubr.msk.f32.gmra.mrb[106].mxu0 %vm410_vm0, %v11332_v30 }
 0x12e   : > { %v10150_v24 = vpop.eup %10149  ;;  %10157 = vrsqrt.f32 %v4791_v55  ;;  %v4602_v8 = vmax.f32 %v4410_v28, 0.0  ;;  %v11336_v52 = vmul.f32 0.020408163, %v11251_v43  ;;  %v4793_v59 = vadd.f32 1e-05, %v4601_v58  ;;  %v5547_v28 = vld [vmem:[%s11104_s24 + $0x50] sm:$0xff] }
 0x12f   : > { %v11316_v54 = vpop.f32.mrb[32].mxu0  ;;  %v11318_v4 = vpop.f32.mrb[32].mxu1  ;;  %7307 = vperm.xlu0 %10111, %v5929_v49   ;;  %6170 = vperm.xlu1 %10112, %v11228_v42   ;;  %v4222_v37 = vmul.f32 %v11322_v20, %v11322_v20  ;;  %v4030_v39 = vmul.f32 0.020408163, %v11243_v60  ;;  %v4029_v47 = vmul.f32 0.020408163, %v11260_v21  ;;  %10159 = vrsqrt.f32 %v4792_v63 }
 0x130   : > { %v11324_v14 = vpop.f32.mrb[33].mxu0  ;;  %v11326_v6 = vpop.f32.mrb[33].mxu1  ;;  %v5930_v43 = vsub.f32 %v5546_v0, %v11226_v45  ;;  %v4221_v55 = vmul.f32 %v11336_v52, %v11336_v52  ;;  %v11354_v42 = vmul.f32 %v11310_v2, %v11113_v12  ;;  %v4603_v21 = vmax.f32 %v4411_v44, 0.0 }
 0x131   : > { %v10152_v60 = vpop.eup %10151  ;;  %v11360_v49 = vmul.f32 %v10148_v22, %v5170_v31  ;;  %v4414_v58 = vsub.f32 %v4030_v39, %v4222_v37  ;;  %v11364_v45 = vmul.f32 %v11320_v40, %v11136_v51  ;;  %v4604_v63 = vmax.f32 %v4412_v27, 0.0  ;;  %v5548_v37 = vld [vmem:[%s11104_s24 + $0x58] sm:$0xff] }
 0x132   : > { %v4413_v0 = vsub.f32 %v4029_v47, %v4221_v55  ;;  %v11371_v30 = vmul.f32 %v10150_v24, %v5171_v9  ;;  %v11374_v22 = vmul.f32 0.020408163, %v11286_v38  ;;  %v5931_v31 = vsub.f32 %v5547_v28, %v11232_v35  ;;  %v5172_v39 = vld [vmem:[%s11072_s21 + $0x98] sm:$0xff]  ;;  %v11407_v28 = vld [vmem:[%s10740_s18 + $0x368] sm:$0xff] }
 0x133   : > { %v11356_v61 = vpop.f32.mrb[34].mxu0  ;;  %v11358_v13 = vpop.f32.mrb[34].mxu1  ;;  %6175 = vperm.xlu0 %10111, %v11234_v56   ;;  %7312 = vperm.xlu1 %10112, %v5930_v43   ;;  %v4794_v51 = vadd.f32 1e-05, %v4602_v8  ;;  %10161 = vrsqrt.f32 %v4793_v59  ;;  %v11380_v5 = vmul.f32 0.020408163, %v11295_v1  ;;  %v11397_v1 = vmul.f32 %v11360_v49, %v11133_v48 }
 0x134   : > { %v11366_v3 = vpop.f32.mrb[35].mxu0  ;;  %v11368_v12 = vpop.f32.mrb[35].mxu1  ;;  %v5173_v56 = vld [vmem:[%s11072_s21 + $0xa0] sm:$0xff]  ;;  %v4605_v27 = vmax.f32 %v4413_v0, 0.0  ;;  %v11385_v24 = vmul.f32 %v11374_v22, %v11374_v22  ;;  %v11388_v38 = vmul.f32 0.020408163, %v11288_v41  ;;  %v11409_v55 = vmul.f32 %v10152_v60, %v5172_v39 }
 0x135   : > { %v10154_v44 = vpop.eup %10153  ;;  %v4031_v35 = vmul.f32 0.020408163, %v11297_v36  ;;  %v4795_v9 = vadd.f32 1e-05, %v4603_v21  ;;  %v4223_v59 = vmul.f32 %v11380_v5, %v11380_v5  ;;  %v11404_v41 = vld [vmem:[%s10740_s18 + $0x360] sm:$0xff]  ;;  %17595 = vst [vmem:[#allocation9_spill] sm:$0xff] %v11407_v28  ;;  %v11415_v48 = vmul.f32 %v11371_v30, %v11153_v17 }
 0x136   : > { %17594 = vst [vmem:[#allocation8_spill] sm:$0xff] %v11404_v41  ;;  %v4796_v36 = vadd.f32 1e-05, %v4604_v63  ;;  %v4416_v21 = vsub.f32 %v11388_v38, %v11385_v24  ;;  %9660 = vmatprep.mubr.msk.f32.mxu0 %vm410_vm0, %v11404_v41  ;;  %v11423_v60 = vmul.f32 %v10154_v44, %v5173_v56  ;;  %v5174_v39 = vld [vmem:[%s11072_s21 + $0xa8] sm:$0xff]  ;;  %v11427_v24 = vmul.f32 0.020408163, %v11316_v54 }
 0x137   : > { %v11391_v8 = vpop.f32.mrb[36].mxu0  ;;  %v11401_v43 = vpop.f32.mrb[36].mxu1  ;;  %7317 = vperm.xlu0 %10111, %v5931_v31   ;;  %6180 = vperm.xlu1 %10112, %v11270_v26   ;;  %v4606_v31 = vmax.f32 %v4414_v58, 0.0  ;;  %v4415_v63 = vsub.f32 %v4031_v35, %v4223_v59  ;;  %10163 = vrsqrt.f32 %v4794_v51  ;;  %v5932_v38 = vsub.f32 %v5548_v37, %v11258_v10  ;;  %v5175_v51 = vld [vmem:[%s11072_s21 + $0xb0] sm:$0xff] }
 0x138   : > { %v11399_v47 = vpop.f32.mrb[37].mxu0  ;;  %v11417_v0 = vpop.f32.mrb[37].mxu1  ;;  %17596 = vst [vmem:[#allocation10_spill] sm:$0xff] %v11427_v24  ;;  %9661 = vmatmul.mubr.msk.f32.gmra.mrb[108].mxu0 %vm410_vm0, %v11407_v28  ;;  %v4797_v41 = vadd.f32 1e-05, %v4605_v27  ;;  %10165 = vrsqrt.f32 %v4795_v9  ;;  %v4226_v54 = vmul.f32 %v11427_v24, %v11427_v24  ;;  %v11452_v9 = vmul.f32 %v11409_v55, %v11151_v16 }
 0x139   : > { %v10156_v7 = vpop.eup %10155  ;;  %v11433_v26 = vmul.f32 0.020408163, %v11324_v14  ;;  %v4034_v44 = vmul.f32 0.020408163, %v11318_v4  ;;  %v4033_v56 = vmul.f32 0.020408163, %v11326_v6  ;;  %v5933_v14 = vsub.f32 %v5549_v32, %v11277_v19 }
 0x13a   : > { %v10158_v17 = vpop.eup %10157  ;;  %10167 = vrsqrt.f32 %v4796_v36  ;;  %v4607_v6 = vmax.f32 %v4415_v63, 0.0  ;;  %v11456_v59 = vmul.f32 %v10156_v7, %v5174_v39  ;;  %v11461_v32 = vmul.f32 %v11423_v60, %v11177_v57  ;;  %v5550_v19 = vld [vmem:[%s11104_s24 + $0x68] sm:$0xff]  ;;  %v5177_v57 = vld [vmem:[%s11072_s21 + $0xc0] sm:$0xff] }
 0x13b   : > { %v11435_v58 = vpop.f32.mrb[38].mxu0  ;;  %v11437_v35 = vpop.f32.mrb[38].mxu1  ;;  %6185 = vperm.xlu0 %10111, %v11281_v33   ;;  %v4225_v27 = vmul.f32 %v11433_v26, %v11433_v26  ;;  %7322 = vperm.xlu1 %10112, %v5932_v38   ;;  %v4418_v28 = vsub.f32 %v4034_v44, %v4226_v54  ;;  %v5176_v33 = vld [vmem:[%s11072_s21 + $0xb8] sm:$0xff]  ;;  %v4798_v36 = vadd.f32 1e-05, %v4606_v31  ;;  %v11464_v15 = vmul.f32 %v10158_v17, %v5175_v51  ;;  %v11482_v17 = vld [vmem:[%s10740_s18 + $0x370] sm:$0xff] }
 0x13c   : > { %v11444_v10 = vpop.f32.mrb[39].mxu0  ;;  %v10160_v37 = vpop.eup %10159  ;;  %v11467_v16 = vmul.f32 0.020408163, %v11356_v61  ;;  %10169 = vrsqrt.f32 %v4797_v41  ;;  %v11474_v39 = vmul.f32 0.020408163, %v11366_v3  ;;  %17599 = vst [vmem:[#allocation13_spill] sm:$0xff] %v11482_v17  ;;  %9663 = vmatprep.mubr.msk.f32.mxu0 %vm410_vm0, %v11482_v17 }
 0x13d   : > { %v11454_v4 = vpop.f32.mrb[39].mxu1  ;;  %v4417_v18 = vsub.f32 %v4033_v56, %v4225_v27  ;;  %v10162_v63 = vpop.eup %10161  ;;  %v4608_v61 = vmax.f32 %v4416_v21, 0.0  ;;  %v4036_v56 = vmul.f32 0.020408163, %v11358_v13  ;;  %v11488_v51 = vmul.f32 0.020408163, %v11368_v12 }
 0x13e   : > { %17597 = vst [vmem:[#allocation11_spill] sm:$0xff] %v11467_v16  ;;  %17598 = vst [vmem:[#allocation12_spill] sm:$0xff] %v11474_v39  ;;  %v4228_v44 = vmul.f32 %v11467_v16, %v11467_v16  ;;  %v11493_v3 = vld [vmem:[%s10740_s18 + $0x378] sm:$0xff]  ;;  %v5551_v41 = vld [vmem:[%s11104_s24 + $0x70] sm:$0xff]  ;;  %v4799_v27 = vadd.f32 1e-05, %v4607_v6  ;;  %v4227_v21 = vmul.f32 %v11474_v39, %v11474_v39  ;;  %v11505_v12 = vmul.f32 %v10160_v37, %v5176_v33 }
 0x13f   : > { %v11469_v38 = vpop.f32.mrb[40].mxu0  ;;  %v11471_v7 = vpop.f32.mrb[40].mxu1  ;;  %7327 = vperm.xlu0 %10111, %v5933_v14   ;;  %17600 = vst [vmem:[#allocation14_spill] sm:$0xff] %v11493_v3  ;;  %6190 = vperm.xlu1 %10112, %v11310_v2   ;;  %v4610_v24 = vmax.f32 %v4418_v28, 0.0  ;;  %v11501_v14 = vmul.f32 %v11456_v59, %v11174_v50  ;;  %v4609_v13 = vmax.f32 %v4417_v18, 0.0  ;;  %v11509_v2 = vmul.f32 %v11464_v15, %v11213_v29 }
 0x140   : > { %v11477_v54 = vpop.f32.mrb[41].mxu0  ;;  %v11479_v31 = vpop.f32.mrb[41].mxu1  ;;  %9664 = vmatmul.mubr.msk.f32.gmra.mrb[110].mxu0 %vm410_vm0, %v11493_v3  ;;  %v4420_v17 = vsub.f32 %v4036_v56, %v4228_v44  ;;  %v5934_v50 = vsub.f32 %v5550_v19, %v11307_v46  ;;  %v4419_v16 = vsub.f32 %v11488_v51, %v4227_v21  ;;  %v11517_v39 = vmul.f32 %v10162_v63, %v5177_v57  ;;  %v5178_v46 = vld [vmem:[%s11072_s21 + $0xc8] sm:$0xff]  ;;  %v5179_v63 = vld [vmem:[%s11072_s21 + $0xd0] sm:$0xff] }
 0x141   : > { %v11520_v18 = vmul.f32 0.020408163, %v11391_v8  ;;  %v10164_v29 = vpop.eup %10163  ;;  %v5935_v44 = vsub.f32 %v5551_v41, %v11314_v11  ;;  %10171 = vrsqrt.f32 %v4798_v36  ;;  %v4800_v56 = vadd.f32 1e-05, %v4608_v61  ;;  %v5552_v36 = vld [vmem:[%s11104_s24 + $0x78] sm:$0xff] }
 0x142   : > { %v11530_v19 = vmul.f32 0.020408163, %v11399_v47  ;;  %v10166_v57 = vpop.eup %10165  ;;  %v4802_v8 = vadd.f32 1e-05, %v4610_v24  ;;  %v4038_v21 = vmul.f32 0.020408163, %v11401_v43  ;;  %10173 = vrsqrt.f32 %v4799_v27 }
 0x143   : > { %v11511_v28 = vpop.f32.mrb[42].mxu0  ;;  %v11513_v6 = vpop.f32.mrb[42].mxu1  ;;  %17601 = vst [vmem:[#allocation15_spill] sm:$0xff] %v11520_v18  ;;  %6195 = vperm.xlu0 %10111, %v11320_v40   ;;  %7332 = vperm.xlu1 %10112, %v5934_v50   ;;  %v4230_v51 = vmul.f32 %v11520_v18, %v11520_v18  ;;  %v4037_v40 = vmul.f32 0.020408163, %v11417_v0  ;;  %v11542_v41 = vmul.f32 %v11505_v12, %v11209_v23  ;;  %v4612_v43 = vmax.f32 %v4420_v17, 0.0 }
 0x144   : > { %v11522_v37 = vpop.f32.mrb[43].mxu0  ;;  %v11524_v33 = vpop.f32.mrb[43].mxu1  ;;  %17602 = vst [vmem:[#allocation16_spill] sm:$0xff] %v11530_v19  ;;  %v4801_v61 = vadd.f32 1e-05, %v4609_v13  ;;  %v4229_v47 = vmul.f32 %v11530_v19, %v11530_v19  ;;  %v11548_v3 = vmul.f32 %v10164_v29, %v5178_v46  ;;  %v11552_v27 = vmul.f32 %v11517_v39, %v11241_v25  ;;  %v11559_v23 = vld [vmem:[%s10740_s18 + $0x380] sm:$0xff] }
 0x145   : > { %v10168_v11 = vpop.eup %10167  ;;  %v4422_v0 = vsub.f32 %v4038_v21, %v4230_v51  ;;  %17603 = vst [vmem:[#allocation17_spill] sm:$0xff] %v11559_v23  ;;  %v11562_v19 = vld [vmem:[%s10740_s18 + $0x388] sm:$0xff]  ;;  %10175 = vrsqrt.f32 %v4800_v56  ;;  %v11564_v29 = vmul.f32 %v10166_v57, %v5179_v63  ;;  %v11567_v46 = vmul.f32 0.020408163, %v11435_v58  ;;  %9666 = vmatprep.mubr.msk.f32.mxu0 %vm410_vm0, %v11559_v23  ;;  %v5180_v21 = vld [vmem:[%s11072_s21 + $0xd8] sm:$0xff]  ;;  %v5181_v56 = vld [vmem:[%s11072_s21 + $0xe0] sm:$0xff] }
 0x146   : > { %17604 = vst [vmem:[#allocation18_spill] sm:$0xff] %v11562_v19  ;;  %v4421_v17 = vsub.f32 %v4037_v40, %v4229_v47  ;;  %v10170_v25 = vpop.eup %10169  ;;  %v5936_v51 = vsub.f32 %v5552_v36, %v11354_v42  ;;  %10177 = vrsqrt.f32 %v4802_v8  ;;  %9667 = vmatmul.mubr.msk.f32.gmra.mrb[112].mxu0 %vm410_vm0, %v11562_v19  ;;  %v4611_v63 = vmax.f32 %v4419_v16, 0.0  ;;  %v5553_v42 = vld [vmem:[%s11104_s24 + $0x80] sm:$0xff]  ;;  %v5554_v23 = vld [vmem:[%s11104_s24 + $0x88] sm:$0xff] }
 0x147   : > { %v11544_v24 = vpop.f32.mrb[44].mxu0  ;;  %v11546_v50 = vpop.f32.mrb[44].mxu1  ;;  %7337 = vperm.xlu0 %10111, %v5935_v44   ;;  %17605 = vst [vmem:[#allocation19_spill] sm:$0xff] %v11567_v46  ;;  %6200 = vperm.xlu1 %10112, %v11360_v49   ;;  %v11575_v44 = vmul.f32 0.020408163, %v11444_v10  ;;  %v4232_v58 = vmul.f32 %v11567_v46, %v11567_v46  ;;  %10179 = vrsqrt.f32 %v4801_v61  ;;  %v11591_v16 = vmul.f32 %v11548_v3, %v11237_v62 }
 0x148   : > { %v11554_v13 = vpop.f32.mrb[45].mxu0  ;;  %v11556_v18 = vpop.f32.mrb[45].mxu1  ;;  %v4040_v57 = vmul.f32 0.020408163, %v11437_v35  ;;  %v4039_v40 = vmul.f32 0.020408163, %v11454_v4  ;;  %v11598_v4 = vmul.f32 %v10168_v11, %v5180_v21  ;;  %v11602_v61 = vmul.f32 %v11564_v29, %v11293_v53 }
 0x149   : > { %17606 = vst [vmem:[#allocation20_spill] sm:$0xff] %v11575_v44  ;;  %v4804_v8 = vadd.f32 1e-05, %v4612_v43  ;;  %v4231_v10 = vmul.f32 %v11575_v44, %v11575_v44  ;;  %17607 = vst [vmem:[#allocation21_spill] sm:$0xff] %v11591_v16  ;;  %v4614_v35 = vmax.f32 %v4422_v0, 0.0  ;;  %v4613_v62 = vmax.f32 %v4421_v17, 0.0 }
 0x14a   : > { %v4424_v19 = vsub.f32 %v4040_v57, %v4232_v58  ;;  %v11607_v46 = vmul.f32 %v10170_v25, %v5181_v56  ;;  %v5182_v44 = vld [vmem:[%s11072_s21 + $0xe8] sm:$0xff]  ;;  %v5937_v0 = vsub.f32 %v5553_v42, %v11364_v45  ;;  %v4803_v21 = vadd.f32 1e-05, %v4611_v63  ;;  %v5555_v58 = vld [vmem:[%s11104_s24 + $0x90] sm:$0xff] }
 0x14b   : > { %v11584_v49 = vpop.f32.mrb[46].mxu0  ;;  %v11595_v47 = vpop.f32.mrb[46].mxu1  ;;  %6205 = vperm.xlu0 %10111, %v11371_v30   ;;  %7342 = vperm.xlu1 %10112, %v5936_v51   ;;  %v4423_v16 = vsub.f32 %v4039_v40, %v4231_v10  ;;  %v11611_v30 = vmul.f32 0.020408163, %v11469_v38  ;;  %v11615_v53 = vmul.f32 0.020408163, %v11477_v54  ;;  %v5938_v63 = vsub.f32 %v5554_v23, %v11397_v1 }
 0x14c   : > { %v11593_v36 = vpop.f32.mrb[47].mxu0  ;;  %v11604_v43 = vpop.f32.mrb[47].mxu1  ;;  %v11626_v38 = vmul.f32 0.020408163, %v11471_v7  ;;  %v11629_v56 = vmul.f32 0.020408163, %v11479_v31  ;;  %v11639_v7 = vmul.f32 %v11598_v4, %v11283_v34  ;;  %10181 = vrsqrt.f32 %v4803_v21 }
 0x14d   : > { %17608 = vst [vmem:[#allocation22_spill] sm:$0xff] %v11611_v30  ;;  %v10172_v11 = vpop.eup %10171  ;;  %17609 = vst [vmem:[#allocation23_spill] sm:$0xff] %v11615_v53  ;;  %v11623_v25 = vmul.f32 %v11611_v30, %v11611_v30  ;;  %v4806_v57 = vadd.f32 1e-05, %v4614_v35  ;;  %v4233_v40 = vmul.f32 %v11615_v53, %v11615_v53  ;;  %v11644_v31 = vld [vmem:[%s10740_s18 + $0x390] sm:$0xff]  ;;  %v11647_v10 = vld [vmem:[%s10740_s18 + $0x398] sm:$0xff]  ;;  %v11657_v30 = vmul.f32 %v11607_v46, %v11336_v52 }
 0x14e   : > { %v10174_v54 = vpop.eup %10173  ;;  %17610 = vst [vmem:[#allocation24_spill] sm:$0xff] %v11639_v7  ;;  %17611 = vst [vmem:[#allocation25_spill] sm:$0xff] %v11644_v31  ;;  %v11650_v1 = vmul.f32 %v10172_v11, %v5182_v44  ;;  %v5183_v35 = vld [vmem:[%s11072_s21 + $0xf0] sm:$0xff]  ;;  %9669 = vmatprep.mubr.msk.f32.mxu0 %vm410_vm0, %v11644_v31  ;;  %v4616_v7 = vmax.f32 %v4424_v19, 0.0  ;;  %v11664_v44 = vmul.f32 0.020408163, %v11511_v28  ;;  %10183 = vrsqrt.f32 %v4804_v8 }
 0x14f   : > { %v11617_v51 = vpop.f32.mrb[48].mxu0  ;;  %v11619_v17 = vpop.f32.mrb[48].mxu1  ;;  %7347 = vperm.xlu0 %10111, %v5937_v0   ;;  %17612 = vst [vmem:[#allocation26_spill] sm:$0xff] %v11647_v10  ;;  %6210 = vperm.xlu1 %10112, %v11409_v55   ;;  %v4805_v0 = vadd.f32 1e-05, %v4613_v62  ;;  %v4426_v23 = vsub.f32 %v11626_v38, %v11623_v25  ;;  %17613 = vst [vmem:[#allocation27_spill] sm:$0xff] %v11657_v30  ;;  %v4425_v53 = vsub.f32 %v11629_v56, %v4233_v40 }
 0x150   : > { %v11631_v45 = vpop.f32.mrb[49].mxu0  ;;  %v11641_v42 = vpop.f32.mrb[49].mxu1  ;;  %v5184_v55 = vld [vmem:[%s11072_s21 + $0xf8] sm:$0xff]  ;;  %17614 = vst [vmem:[#allocation28_spill] sm:$0xff] %v11664_v44  ;;  %9670 = vmatmul.mubr.msk.f32.gmra.mrb[114].mxu0 %vm410_vm0, %v11647_v10  ;;  %v5939_v25 = vsub.f32 %v5555_v58, %v11415_v48  ;;  %v4615_v21 = vmax.f32 %v4423_v16, 0.0  ;;  %v11681_v56 = vmul.f32 %v10174_v54, %v5183_v35  ;;  %v11685_v48 = vmul.f32 %v11664_v44, %v11664_v44 }
 0x151   : > { %v10176_v34 = vpop.eup %10175  ;;  %v11674_v19 = vmul.f32 0.020408163, %v11522_v37  ;;  %v11688_v8 = vmul.f32 0.020408163, %v11513_v6  ;;  %v11691_v37 = vmul.f32 0.020408163, %v11524_v33  ;;  %10185 = vrsqrt.f32 %v4806_v57 }
 0x152   : > { %v10178_v52 = vpop.eup %10177  ;;  %v11693_v58 = vmul.f32 %v10176_v34, %v5184_v55  ;;  %v11701_v54 = vmul.f32 %v11650_v1, %v11322_v20  ;;  %v5556_v40 = vld [vmem:[%s11104_s24 + $0x98] sm:$0xff]  ;;  %v4808_v6 = vadd.f32 1e-05, %v4616_v7  ;;  %v10497_v57 = vld [vmem:[%s10740_s18 + $0x300] sm:$0xff]  ;;  %v10498_v34 = vld [vmem:[%s10740_s18 + $0x308] sm:$0xff]  ;;  %10187 = vrsqrt.f32 %v4805_v0 }
 0x153   : > { %v11666_v62 = vpop.f32.mrb[50].mxu0  ;;  %v11668_v11 = vpop.f32.mrb[50].mxu1  ;;  %6215 = vperm.xlu0 %10111, %v11423_v60   ;;  %7352 = vperm.xlu1 %10112, %v5938_v63   ;;  %v11697_v60 = vmul.f32 %v11674_v19, %v11674_v19  ;;  %v4428_v33 = vsub.f32 %v11688_v8, %v11685_v48  ;;  %v5185_v63 = vld [vmem:[%s11072_s21 + $0x100] sm:$0xff]  ;;  %v2112_v35 = vmul.f32 %v10497_v57, %v10497_v57  ;;  %v4807_v20 = vadd.f32 1e-05, %v4615_v21  ;;  %v5186_v7 = vld [vmem:[%s11072_s21 + $0x108] sm:$0xff] }
 0x154   : > { %v11676_v38 = vpop.f32.mrb[51].mxu0  ;;  %v11678_v28 = vpop.f32.mrb[51].mxu1  ;;  %17615 = vst [vmem:[#allocation29_spill] sm:$0xff] %v11701_v54  ;;  %v2113_v55 = vmul.f32 %v10498_v34, %v10498_v34  ;;  %v11721_v8 = vld [vmem:[%s10740_s18 + $0x3a0] sm:$0xff]  ;;  %v4618_v34 = vmax.f32 %v4426_v23, 0.0  ;;  %v4617_v44 = vmax.f32 %v4425_v53, 0.0  ;;  %v11727_v0 = vmul.f32 %v11681_v56, %v11380_v5 }
 0x155   : > { %v10180_v16 = vpop.eup %10179  ;;  %v4427_v54 = vsub.f32 %v11691_v37, %v11697_v60  ;;  %17616 = vst [vmem:[#allocation30_spill] sm:$0xff] %v11721_v8  ;;  %v5557_v57 = vld [vmem:[%s11104_s24 + $0xa0] sm:$0xff]  ;;  %9944 = vmatprep.mubr.msk.f32.mxu1 %vm410_vm0, %v2112_v35  ;;  %v11730_v21 = vmul.f32 0.020408163, %v11544_v24  ;;  %v11733_v37 = vld [vmem:[%s10740_s18 + $0x3a8] sm:$0xff]  ;;  %v11747_v5 = vmul.f32 %v11693_v58, %v11374_v22  ;;  %10189 = vrsqrt.f32 %v4808_v6  ;;  %9672 = vmatprep.mubr.msk.f32.mxu0 %vm410_vm0, %v11721_v8  ;;  %v10499_v35 = vld [vmem:[%s10740_s18 + $0x310] sm:$0xff] }
 0x156   : > { %17617 = vst [vmem:[#allocation31_spill] sm:$0xff] %v11727_v0  ;;  %17619 = vst [vmem:[#allocation33_spill] sm:$0xff] %v11733_v37  ;;  %v11736_v60 = vmul.f32 %v10180_v16, %v5185_v63  ;;  %9945 = vmatmul.mubr.msk.f32.gmra.mrb[96].mxu1 %vm410_vm0, %v2113_v55  ;;  %v11740_v23 = vmul.f32 0.020408163, %v11554_v13  ;;  %v11743_v53 = vmul.f32 0.020408163, %v11546_v50  ;;  %v11749_v24 = vmul.f32 %v10178_v52, %v5186_v7  ;;  %v10182_v63 = vpop.eup %10181 }
 0x157   : > { %v11709_v10 = vpop.f32.mrb[52].mxu0  ;;  %v11711_v31 = vpop.f32.mrb[52].mxu1  ;;  %7357 = vperm.xlu0 %10111, %v5939_v25   ;;  %17618 = vst [vmem:[#allocation32_spill] sm:$0xff] %v11730_v21  ;;  %6220 = vperm.xlu1 %10112, %v11456_v59   ;;  %17620 = vst [vmem:[#allocation34_spill] sm:$0xff] %v11747_v5  ;;  %v11753_v59 = vmul.f32 %v11730_v21, %v11730_v21  ;;  %v11756_v25 = vmul.f32 0.020408163, %v11556_v18  ;;  %v5940_v22 = vsub.f32 %v5556_v40, %v11452_v9 }
 0x158   : > { %v11716_v30 = vpop.f32.mrb[53].mxu0  ;;  %v11718_v48 = vpop.f32.mrb[53].mxu1  ;;  %17621 = vst [vmem:[#allocation35_spill] sm:$0xff] %v11749_v24  ;;  %v5941_v52 = vsub.f32 %v5557_v57, %v11461_v32  ;;  %10191 = vrsqrt.f32 %v4807_v20  ;;  %v11768_v16 = vmul.f32 %v11740_v23, %v11740_v23  ;;  %9673 = vmatmul.mubr.msk.f32.gmra.mrb[116].mxu0 %vm410_vm0, %v11733_v37  ;;  %v4810_v9 = vadd.f32 1e-05, %v4618_v34  ;;  %v5187_v40 = vld [vmem:[%s11072_s21 + $0x110] sm:$0xff] }
 0x159   : > { %v4430_v32 = vsub.f32 %v11743_v53, %v11753_v59  ;;  %v2114_v55 = vmul.f32 %v10499_v35, %v10499_v35  ;;  %v10500_v20 = vld [vmem:[%s10740_s18 + $0x318] sm:$0xff]  ;;  %v10184_v57 = vpop.eup %10183  ;;  %v5558_v8 = vld [vmem:[%s11104_s24 + $0xa8] sm:$0xff]  ;;  %v4809_v5 = vadd.f32 1e-05, %v4617_v44  ;;  %v4620_v0 = vmax.f32 %v4428_v33, 0.0  ;;  %v17625_v44 = vld [vmem:[#allocation10_spill] sm:$0xff] }
 0x15a   : > { %v2115_v7 = vmul.f32 %v10500_v20, %v10500_v20  ;;  %v4429_v37 = vsub.f32 %v11756_v25, %v11768_v16  ;;  %v5188_v21 = vld [vmem:[%s11072_s21 + $0x118] sm:$0xff]  ;;  %v4619_v34 = vmax.f32 %v4427_v54, 0.0  ;;  %v11792_v53 = vmul.f32 0.020408163, %v11584_v49  ;;  %v11826_v35 = vld [vmem:[%s10740_s18 + $0x3b0] sm:$0xff] }
 0x15b   : > { %v11758_v13 = vpop.f32.mrb[54].mxu0  ;;  %v11760_v50 = vpop.f32.mrb[54].mxu1  ;;  %6225 = vperm.xlu0 %10111, %v11464_v15   ;;  %7362 = vperm.xlu1 %10112, %v5940_v22   ;;  %v11788_v15 = vmul.f32 %v11736_v60, %v11433_v26  ;;  %v11795_v59 = vmul.f32 0.020408163, %v11593_v36  ;;  %v11799_v33 = vmul.f32 %v11749_v24, %v17625_v44  ;;  %v11803_v54 = vmul.f32 %v10182_v63, %v5187_v40  ;;  %v11834_v20 = vld [vmem:[%s11104_s24 + $0xb8] sm:$0xff] }
 0x15c   : > { %v11770_v18 = vpop.f32.mrb[55].mxu0  ;;  %v11772_v6 = vpop.f32.mrb[55].mxu1  ;;  %9947 = vmatprep.mubr.msk.f32.mxu1 %vm410_vm0, %v2114_v55  ;;  %17623 = vst [vmem:[#allocation37_spill] sm:$0xff] %v11792_v53  ;;  %v11807_v49 = vmul.f32 0.020408163, %v11595_v47  ;;  %v5942_v16 = vsub.f32 %v5558_v8, %v11501_v14  ;;  %v11817_v63 = vmul.f32 %v11792_v53, %v11792_v53  ;;  %17628 = vst [vmem:[#allocation40_spill] sm:$0xff] %v11826_v35  ;;  %10193 = vrsqrt.f32 %v4809_v5 }
 0x15d   : > { %17622 = vst [vmem:[#allocation36_spill] sm:$0xff] %v11788_v15  ;;  %17624 = vst [vmem:[#allocation38_spill] sm:$0xff] %v11795_v59  ;;  %v10186_v26 = vpop.eup %10185  ;;  %9948 = vmatmul.mubr.msk.f32.gmra.mrb[98].mxu1 %vm410_vm0, %v2115_v7  ;;  %v11810_v36 = vmul.f32 0.020408163, %v11604_v43  ;;  %v11821_v40 = vmul.f32 %v11795_v59, %v11795_v59  ;;  %v11829_v43 = vld [vmem:[%s10740_s18 + $0x3b8] sm:$0xff]  ;;  %v11836_v14 = vmul.f32 %v10184_v57, %v5188_v21  ;;  %v5189_v8 = vld [vmem:[%s11072_s21 + $0x120] sm:$0xff]  ;;  %9675 = vmatprep.mubr.msk.f32.mxu0 %vm410_vm0, %v11826_v35 }
 0x15e   : > { %17626 = vst [vmem:[#allocation10_spill] sm:$0xff] %v11799_v33  ;;  %17627 = vst [vmem:[#allocation39_spill] sm:$0xff] %v11803_v54  ;;  %v10188_v55 = vpop.eup %10187  ;;  %v10501_v7 = vld [vmem:[%s10740_s18 + $0x320] sm:$0xff]  ;;  %v10502_v33 = vld [vmem:[%s10740_s18 + $0x328] sm:$0xff]  ;;  %v4812_v53 = vadd.f32 1e-05, %v4620_v0  ;;  %9676 = vmatmul.mubr.msk.f32.gmra.mrb[118].mxu0 %vm410_vm0, %v11829_v43  ;;  %10195 = vrsqrt.f32 %v4810_v9 }
 0x15f   : > { %v11801_v25 = vpop.f32.mrb[56].mxu0  ;;  %7367 = vperm.xlu0 %10111, %v5941_v52   ;;  %v11823_v47 = vpop.f32.mrb[56].mxu1  ;;  %17629 = vst [vmem:[#allocation41_spill] sm:$0xff] %v11829_v43  ;;  %6230 = vperm.xlu1 %10112, %v11505_v12   ;;  %v5559_v52 = vld [vmem:[%s11104_s24 + $0xb0] sm:$0xff]  ;;  %17630 = vst [vmem:[#allocation42_spill] sm:$0xff] %v11836_v14  ;;  %v2116_v44 = vmul.f32 %v10501_v7, %v10501_v7  ;;  %v2117_v15 = vmul.f32 %v10502_v33, %v10502_v33  ;;  %v4622_v9 = vmax.f32 %v4430_v32, 0.0 }
 0x160   : > { %v11812_v22 = vpop.f32.mrb[57].mxu0  ;;  %v11841_v24 = vpop.f32.mrb[57].mxu1  ;;  %v4811_v59 = vadd.f32 1e-05, %v4619_v34  ;;  %v4431_v5 = vsub.f32 %v11810_v36, %v11821_v40  ;;  %v17631_v33 = vld [vmem:[#allocation12_spill] sm:$0xff]  ;;  %v11871_v43 = vmul.f32 %v10188_v55, %v5189_v8  ;;  %v4621_v35 = vmax.f32 %v4429_v37, 0.0 }
 0x161   : > { %9950 = vmatprep.mubr.msk.f32.mxu1 %vm410_vm0, %v2116_v44  ;;  %v11858_v0 = vmul.f32 %v11803_v54, %v17631_v33  ;;  %v11861_v34 = vmul.f32 0.020408163, %v11617_v51  ;;  %v11864_v36 = vmul.f32 0.020408163, %v11631_v45  ;;  %v10190_v12 = vpop.eup %10189  ;;  %v5190_v44 = vld [vmem:[%s11072_s21 + $0x128] sm:$0xff]  ;;  %v17636_v55 = vld [vmem:[#allocation2_spill] sm:$0xff] }
 0x162   : > { %9951 = vmatmul.mubr.msk.f32.gmra.mrb[100].mxu1 %vm410_vm0, %v2117_v15  ;;  %v11876_v51 = vmul.f32 0.020408163, %v11619_v17  ;;  %v4049_v45 = vmul.f32 0.020408163, %v11641_v42  ;;  %v10192_v33 = vpop.eup %10191  ;;  %v17634_v32 = vld [vmem:[#allocation11_spill] sm:$0xff]  ;;  %v5943_v17 = vsub.f32 %v5559_v52, %v11509_v2  ;;  %v5944_v42 = vsub.f32 %v11834_v20, %v11542_v41  ;;  %v11897_v54 = vld [vmem:[%s11104_s24 + $0xc0] sm:$0xff] }
 0x163   : > { %v11849_v21 = vpop.f32.mrb[58].mxu0  ;;  %v11851_v57 = vpop.f32.mrb[58].mxu1  ;;  %17632 = vst [vmem:[#allocation12_spill] sm:$0xff] %v11858_v0  ;;  %17633 = vst [vmem:[#allocation43_spill] sm:$0xff] %v11861_v34  ;;  %6235 = vperm.xlu0 %10111, %v11517_v39   ;;  %7372 = vperm.xlu1 %10112, %v5942_v16   ;;  %v4242_v0 = vmul.f32 %v11861_v34, %v11861_v34  ;;  %v4241_v39 = vmul.f32 %v11864_v36, %v11864_v36  ;;  %v5191_v2 = vld [vmem:[%s11072_s21 + $0x130] sm:$0xff]  ;;  %v17639_v52 = vld [vmem:[#allocation3_spill] sm:$0xff]  ;;  %10197 = vrsqrt.f32 %v4811_v59 }
 0x164   : > { %v11866_v40 = vpop.f32.mrb[59].mxu0  ;;  %v11868_v7 = vpop.f32.mrb[59].mxu1  ;;  %v11885_v15 = vmul.f32 %v11836_v14, %v17634_v32  ;;  %v2118_v16 = vmul.f32 %v17636_v55, %v17636_v55  ;;  %v11899_v34 = vmul.f32 %v10186_v26, %v5190_v44  ;;  %v2119_v41 = vmul.f32 %v17639_v52, %v17639_v52  ;;  %v11910_v14 = vld [vmem:[%s10740_s18 + $0x3c0] sm:$0xff]  ;;  %v5192_v26 = vld [vmem:[%s11072_s21 + $0x138] sm:$0xff]  ;;  %v17641_v44 = vld [vmem:[#allocation16_spill] sm:$0xff] }
 0x165   : > { %v4434_v32 = vsub.f32 %v11876_v51, %v4242_v0  ;;  %17640 = vst [vmem:[#allocation3_spill] sm:$0xff] %v11910_v14  ;;  %v11916_v0 = vmul.f32 %v11871_v43, %v17641_v44  ;;  %v11919_v51 = vmul.f32 0.020408163, %v11666_v62  ;;  %10199 = vrsqrt.f32 %v4812_v53  ;;  %9678 = vmatprep.mubr.msk.f32.mxu0 %vm410_vm0, %v11910_v14  ;;  %v17649_v44 = vld [vmem:[#allocation4_spill] sm:$0xff]  ;;  %v17650_v14 = vld [vmem:[#allocation5_spill] sm:$0xff] }
 0x166   : > { %17635 = vst [vmem:[#allocation11_spill] sm:$0xff] %v11885_v15  ;;  %17638 = vst [vmem:[#allocation44_spill] sm:$0xff] %v11899_v34  ;;  %v4433_v15 = vsub.f32 %v4049_v45, %v4241_v39  ;;  %9953 = vmatprep.mubr.msk.f32.mxu1 %vm410_vm0, %v2118_v16  ;;  %v11922_v45 = vld [vmem:[%s10740_s18 + $0x3c8] sm:$0xff]  ;;  %v4813_v39 = vadd.f32 1e-05, %v4621_v35  ;;  %v4623_v52 = vmax.f32 %v4431_v5, 0.0  ;;  %v5945_v5 = vsub.f32 %v11897_v54, %v11552_v27 }
 0x167   : > { %v11892_v37 = vpop.f32.mrb[60].mxu0  ;;  %v11894_v8 = vpop.f32.mrb[60].mxu1  ;;  %7377 = vperm.xlu0 %10111, %v5943_v17   ;;  %17642 = vst [vmem:[#allocation16_spill] sm:$0xff] %v11916_v0  ;;  %17643 = vst [vmem:[#allocation45_spill] sm:$0xff] %v11922_v45  ;;  %6240 = vperm.xlu1 %10112, %v11548_v3   ;;  %v11927_v59 = vmul.f32 0.020408163, %v11676_v38  ;;  %v11933_v17 = vmul.f32 %v11919_v51, %v11919_v51  ;;  %v17648_v27 = vsub.f32 %v11807_v49, %v11817_v63 }
 0x168   : > { %17637 = vst [vmem:[#allocation2_spill] sm:$0xff] %v11894_v8  ;;  %v11905_v20 = vpop.f32.mrb[61].mxu0  ;;  %v11907_v55 = vpop.f32.mrb[61].mxu1  ;;  %v4814_v8 = vadd.f32 1e-05, %v4622_v9  ;;  %9954 = vmatmul.mubr.msk.f32.gmra.mrb[102].mxu1 %vm410_vm0, %v2119_v41  ;;  %v11929_v9 = vmul.f32 %v10192_v33, %v5191_v2  ;;  %v11949_v33 = vmul.f32 %v10190_v12, %v5192_v26  ;;  %v17646_v16 = vld [vmem:[#allocation15_spill] sm:$0xff]  ;;  %9679 = vmatmul.mubr.msk.f32.gmra.mrb[120].mxu0 %vm410_vm0, %v11922_v45  ;;  %10201 = vrsqrt.f32 %v4813_v39 }
 0x169   : > { %v11936_v62 = vmul.f32 0.020408163, %v11668_v11  ;;  %v11939_v3 = vmul.f32 0.020408163, %v11678_v28  ;;  %v10194_v38 = vpop.eup %10193  ;;  %v11953_v11 = vmul.f32 %v11927_v59, %v11927_v59  ;;  %v11957_v28 = vmul.f32 %v11899_v34, %v17646_v16  ;;  %v5193_v26 = vld [vmem:[%s11072_s21 + $0x140] sm:$0xff]  ;;  %v5194_v63 = vld [vmem:[%s11072_s21 + $0x148] sm:$0xff] }
 0x16a   : > { %17644 = vst [vmem:[#allocation46_spill] sm:$0xff] %v11929_v9  ;;  %17645 = vst [vmem:[#allocation47_spill] sm:$0xff] %v11949_v33  ;;  %v4624_v54 = vmax.f32 %v17648_v27, 0.0  ;;  %v2120_v16 = vmul.f32 %v17649_v44, %v17649_v44  ;;  %v2121_v34 = vmul.f32 %v17650_v14, %v17650_v14  ;;  %v4815_v45 = vadd.f32 1e-05, %v4623_v52  ;;  %v5562_v27 = vld [vmem:[%s11104_s24 + $0xc8] sm:$0xff] }
 0x16b   : > { %v11941_v53 = vpop.f32.mrb[62].mxu0  ;;  %v11943_v35 = vpop.f32.mrb[62].mxu1  ;;  %17647 = vst [vmem:[#allocation15_spill] sm:$0xff] %v11957_v28  ;;  %6245 = vperm.xlu0 %10111, %v11564_v29   ;;  %7382 = vperm.xlu1 %10112, %v5944_v42   ;;  %v4625_v29 = vmax.f32 %v4433_v15, 0.0  ;;  %v4435_v49 = vsub.f32 %v11939_v3, %v11953_v11  ;;  %10203 = vrsqrt.f32 %v4814_v8  ;;  %v4626_v12 = vmax.f32 %v4434_v32, 0.0  ;;  %v17651_v0 = vld [vmem:[#allocation20_spill] sm:$0xff] }
 0x16c   : > { %v11959_v2 = vpop.f32.mrb[63].mxu0  ;;  %v11961_v41 = vpop.f32.mrb[63].mxu1  ;;  %9956 = vmatprep.mubr.msk.f32.mxu1 %vm410_vm0, %v2120_v16  ;;  %v11983_v44 = vmul.f32 %v11929_v9, %v17651_v0  ;;  %v11986_v14 = vmul.f32 0.020408163, %v11709_v10  ;;  %v11993_v39 = vld [vmem:[%s11104_s24 + $0xd0] sm:$0xff]  ;;  %v11995_v52 = vmul.f32 %v10194_v38, %v5193_v26  ;;  %v17655_v10 = vld [vmem:[#allocation19_spill] sm:$0xff]  ;;  %10205 = vrsqrt.f32 %v4815_v45 }
 0x16d   : > { %v10196_v28 = vpop.eup %10195  ;;  %9957 = vmatmul.mubr.msk.f32.gmra.mrb[104].mxu1 %vm410_vm0, %v2121_v34  ;;  %v11999_v8 = vmul.f32 0.020408163, %v11716_v30  ;;  %v12002_v32 = vmul.f32 0.020408163, %v11711_v31  ;;  %v12006_v0 = vmul.f32 %v11949_v33, %v17655_v10  ;;  %v4816_v11 = vadd.f32 1e-05, %v4624_v54 }
 0x16e   : > { %17652 = vst [vmem:[#allocation4_spill] sm:$0xff] %v11983_v44  ;;  %17653 = vst [vmem:[#allocation5_spill] sm:$0xff] %v11986_v14  ;;  %v12010_v38 = vmul.f32 %v10196_v28, %v5194_v63  ;;  %v12014_v34 = vmul.f32 %v11986_v14, %v11986_v14  ;;  %v12017_v30 = vmul.f32 0.020408163, %v11718_v48  ;;  %v12022_v26 = vld [vmem:[%s10740_s18 + $0x3d0] sm:$0xff]  ;;  %v17659_v16 = vld [vmem:[#allocation21_spill] sm:$0xff]  ;;  %v10198_v48 = vpop.eup %10197 }
 0x16f   : > { %v11988_v42 = vpop.f32.mrb[64].mxu0  ;;  %v11990_v15 = vpop.f32.mrb[64].mxu1  ;;  %17654 = vst [vmem:[#allocation20_spill] sm:$0xff] %v11995_v52  ;;  %17656 = vst [vmem:[#allocation19_spill] sm:$0xff] %v12006_v0  ;;  %7387 = vperm.xlu0 %10111, %v5945_v5   ;;  %6250 = vperm.xlu1 %10112, %v11598_v4   ;;  %v5946_v10 = vsub.f32 %v5562_v27, %v17659_v16  ;;  %v4817_v5 = vadd.f32 1e-05, %v4625_v29  ;;  %v12028_v28 = vmul.f32 %v11999_v8, %v11999_v8 }
 0x170   : > { %v12008_v3 = vpop.f32.mrb[65].mxu0  ;;  %17657 = vst [vmem:[#allocation48_spill] sm:$0xff] %v12010_v38  ;;  %v12019_v31 = vpop.f32.mrb[65].mxu1  ;;  %17658 = vst [vmem:[#allocation49_spill] sm:$0xff] %v12022_v26  ;;  %9681 = vmatprep.mubr.msk.f32.mxu0 %vm410_vm0, %v12022_v26  ;;  %v12033_v54 = vld [vmem:[%s10740_s18 + $0x3d8] sm:$0xff]  ;;  %v5195_v9 = vld [vmem:[%s11072_s21 + $0x150] sm:$0xff]  ;;  %10207 = vrsqrt.f32 %v4816_v11 }
 0x171   : > { %17660 = vst [vmem:[#allocation21_spill] sm:$0xff] %v12033_v54  ;;  %v4818_v63 = vadd.f32 1e-05, %v4626_v12  ;;  %v17661_v0 = vld [vmem:[#allocation6_spill] sm:$0xff]  ;;  %v17662_v29 = vld [vmem:[#allocation7_spill] sm:$0xff]  ;;  %9682 = vmatmul.mubr.msk.f32.gmra.mrb[122].mxu0 %vm410_vm0, %v12033_v54  ;;  %v10200_v26 = vpop.eup %10199  ;;  %v5947_v12 = vsub.f32 %v11993_v39, %v11602_v61  ;;  %v4437_v33 = vsub.f32 %v12017_v30, %v12028_v28  ;;  %v5196_v54 = vld [vmem:[%s11072_s21 + $0x158] sm:$0xff]  ;;  %10209 = vrsqrt.f32 %v4817_v5 }
 0x172   : > { %v2122_v4 = vmul.f32 %v17661_v0, %v17661_v0  ;;  %v2123_v27 = vmul.f32 %v17662_v29, %v17662_v29  ;;  %v17664_v14 = vld [vmem:[#allocation23_spill] sm:$0xff]  ;;  %v12064_v61 = vmul.f32 0.020408163, %v11758_v13  ;;  %v12067_v45 = vmul.f32 0.020408163, %v11770_v18  ;;  %v17667_v39 = vld [vmem:[#allocation22_spill] sm:$0xff]  ;;  %v10202_v5 = vpop.eup %10201 }
 0x173   : > { %v12042_v16 = vpop.f32.mrb[66].mxu0  ;;  %v12044_v44 = vpop.f32.mrb[66].mxu1  ;;  %v12054_v0 = vmul.f32 %v11995_v52, %v17664_v14  ;;  %6255 = vperm.xlu0 %10111, %v11607_v46   ;;  %v12071_v14 = vmul.f32 %v12010_v38, %v17667_v39  ;;  %7392 = vperm.xlu1 %10112, %v5946_v10   ;;  %v12073_v30 = vmul.f32 %v10198_v48, %v5195_v9  ;;  %v12077_v46 = vmul.f32 0.020408163, %v11760_v50  ;;  %v5564_v18 = vld [vmem:[%s11104_s24 + $0xd8] sm:$0xff]  ;;  %v12107_v52 = vld [vmem:[%s10740_s18 + $0x3e0] sm:$0xff] }
 0x174   : > { %17663 = vst [vmem:[#allocation6_spill] sm:$0xff] %v12042_v16  ;;  %v12056_v29 = vpop.f32.mrb[67].mxu0  ;;  %v12058_v16 = vpop.f32.mrb[67].mxu1  ;;  %9959 = vmatprep.mubr.msk.f32.mxu1 %vm410_vm0, %v2122_v4  ;;  %17666 = vst [vmem:[#allocation23_spill] sm:$0xff] %v12064_v61  ;;  %v12080_v13 = vmul.f32 0.020408163, %v11772_v6  ;;  %10211 = vrsqrt.f32 %v4818_v63  ;;  %v12085_v28 = vmul.f32 %v12064_v61, %v12064_v61  ;;  %v12089_v9 = vmul.f32 %v12067_v45, %v12067_v45 }
 0x175   : > { %17665 = vst [vmem:[#allocation7_spill] sm:$0xff] %v12054_v0  ;;  %17668 = vst [vmem:[#allocation22_spill] sm:$0xff] %v12071_v14  ;;  %9960 = vmatmul.mubr.msk.f32.gmra.mrb[106].mxu1 %vm410_vm0, %v2123_v27  ;;  %v4627_v11 = vmax.f32 %v4435_v49, 0.0  ;;  %v12095_v48 = vmul.f32 %v10200_v26, %v5196_v54  ;;  %v5197_v6 = vld [vmem:[%s11072_s21 + $0x160] sm:$0xff]  ;;  %v17671_v4 = vld [vmem:[#allocation8_spill] sm:$0xff]  ;;  %v10204_v0 = vpop.eup %10203  ;;  %v17676_v26 = vsub.f32 %v11936_v62, %v11933_v17  ;;  %9684 = vmatprep.mubr.msk.f32.mxu0 %vm410_vm0, %v12107_v52 }
 0x176   : > { %17669 = vst [vmem:[#allocation50_spill] sm:$0xff] %v12073_v30  ;;  %v2124_v49 = vmul.f32 %v17671_v4, %v17671_v4  ;;  %v17672_v63 = vld [vmem:[#allocation9_spill] sm:$0xff]  ;;  %v12110_v14 = vld [vmem:[%s10740_s18 + $0x3e8] sm:$0xff]  ;;  %v17677_v61 = vld [vmem:[#allocation24_spill] sm:$0xff]  ;;  %v12127_v17 = vmul.f32 %v12073_v30, %v11674_v19  ;;  %v12130_v62 = vmul.f32 0.020408163, %v11801_v25 }
 0x177   : > { %v12091_v10 = vpop.f32.mrb[68].mxu0  ;;  %v12093_v50 = vpop.f32.mrb[68].mxu1  ;;  %17670 = vst [vmem:[#allocation51_spill] sm:$0xff] %v12095_v48  ;;  %v2125_v27 = vmul.f32 %v17672_v63, %v17672_v63  ;;  %17674 = vst [vmem:[#allocation9_spill] sm:$0xff] %v12107_v52  ;;  %7397 = vperm.xlu0 %10111, %v5947_v12   ;;  %v4628_v54 = vmax.f32 %v17676_v26, 0.0  ;;  %6260 = vperm.xlu1 %10112, %v11650_v1   ;;  %v5198_v12 = vld [vmem:[%s11072_s21 + $0x168] sm:$0xff]  ;;  %v12135_v63 = vmul.f32 %v10202_v5, %v5197_v6 }
 0x178   : > { %v12102_v39 = vpop.f32.mrb[69].mxu0  ;;  %v12104_v38 = vpop.f32.mrb[69].mxu1  ;;  %17675 = vst [vmem:[#allocation52_spill] sm:$0xff] %v12110_v14  ;;  %9962 = vmatprep.mubr.msk.f32.mxu1 %vm410_vm0, %v2124_v49  ;;  %17678 = vst [vmem:[#allocation24_spill] sm:$0xff] %v12130_v62  ;;  %v12133_v26 = vmul.f32 0.020408163, %v11812_v22  ;;  %9685 = vmatmul.mubr.msk.f32.gmra.mrb[124].mxu0 %vm410_vm0, %v12110_v14  ;;  %v12149_v22 = vmul.f32 %v12130_v62, %v12130_v62  ;;  %v17683_v49 = vsub.f32 %v12002_v32, %v12014_v34 }
 0x179   : > { %17673 = vst [vmem:[#allocation8_spill] sm:$0xff] %v12104_v38  ;;  %v5948_v38 = vsub.f32 %v5564_v18, %v17677_v61  ;;  %v4819_v4 = vadd.f32 1e-05, %v4627_v11  ;;  %17679 = vst [vmem:[#allocation53_spill] sm:$0xff] %v12135_v63  ;;  %9963 = vmatmul.mubr.msk.f32.gmra.mrb[108].mxu1 %vm410_vm0, %v2125_v27  ;;  %v12139_v1 = vmul.f32 0.020408163, %v11823_v47 }
 0x17a   : > { %v12142_v61 = vmul.f32 0.020408163, %v11841_v24  ;;  %v5565_v19 = vld [vmem:[%s11104_s24 + $0xe0] sm:$0xff]  ;;  %v4629_v25 = vmax.f32 %v4437_v33, 0.0  ;;  %v12153_v18 = vmul.f32 %v12133_v26, %v12133_v26  ;;  %v17680_v11 = vld [vmem:[#allocation28_spill] sm:$0xff]  ;;  %v12165_v33 = vld [vmem:[%s11104_s24 + $0xe8] sm:$0xff] }
 0x17b   : > { %v12157_v47 = vmul.f32 %v12095_v48, %v17680_v11  ;;  %v12159_v24 = vpop.f32.mrb[70].mxu0  ;;  %v12161_v5 = vpop.f32.mrb[70].mxu1  ;;  %6265 = vperm.xlu0 %10111, %v11681_v56   ;;  %v4820_v6 = vadd.f32 1e-05, %v4628_v54  ;;  %v4630_v27 = vmax.f32 %v17683_v49, 0.0  ;;  %v17684_v30 = vld [vmem:[#allocation13_spill] sm:$0xff]  ;;  %7402 = vperm.xlu1 %10112, %v5948_v38   ;;  %v12176_v56 = vmul.f32 %v10204_v0, %v5198_v12 }
 0x17c   : > { %17682 = vst [vmem:[#allocation54_spill] sm:$0xff] %v12161_v5  ;;  %v2126_v14 = vmul.f32 %v17684_v30, %v17684_v30  ;;  %v12172_v52 = vpop.f32.mrb[71].mxu0  ;;  %v12174_v11 = vpop.f32.mrb[71].mxu1  ;;  %v5199_v34 = vld [vmem:[%s11072_s21 + $0x170] sm:$0xff]  ;;  %v17687_v49 = vld [vmem:[#allocation14_spill] sm:$0xff]  ;;  %v17688_v62 = vld [vmem:[#allocation27_spill] sm:$0xff]  ;;  %10213 = vrsqrt.f32 %v4819_v4  ;;  %v12190_v38 = vmul.f32 %v12135_v63, %v11740_v23 }
 0x17d   : > { %17681 = vst [vmem:[#allocation28_spill] sm:$0xff] %v12157_v47  ;;  %17685 = vst [vmem:[#allocation13_spill] sm:$0xff] %v12174_v11  ;;  %v10206_v48 = vpop.eup %10205  ;;  %v2127_v30 = vmul.f32 %v17687_v49, %v17687_v49  ;;  %v5949_v5 = vsub.f32 %v5565_v19, %v17688_v62  ;;  %v5200_v11 = vld [vmem:[%s11072_s21 + $0x178] sm:$0xff]  ;;  %v12193_v0 = vmul.f32 0.020408163, %v11849_v21  ;;  %v5201_v12 = vld [vmem:[%s11072_s21 + $0x180] sm:$0xff]  ;;  %10215 = vrsqrt.f32 %v4820_v6 }
 0x17e   : > { %17686 = vst [vmem:[#allocation55_spill] sm:$0xff] %v12176_v56  ;;  %v10208_v47 = vpop.eup %10207  ;;  %9965 = vmatprep.mubr.msk.f32.mxu1 %vm410_vm0, %v2126_v14  ;;  %17689 = vst [vmem:[#allocation14_spill] sm:$0xff] %v12190_v38  ;;  %v5202_v54 = vld [vmem:[%s11072_s21 + $0x188] sm:$0xff]  ;;  %v17693_v4 = vld [vmem:[#allocation29_spill] sm:$0xff]  ;;  %v4821_v19 = vadd.f32 1e-05, %v4629_v25 }
 0x17f   : > { %17690 = vst [vmem:[#allocation27_spill] sm:$0xff] %v12193_v0  ;;  %v12197_v32 = vpop.f32.mrb[72].mxu0  ;;  %v12199_v49 = vpop.f32.mrb[72].mxu1  ;;  %v5950_v14 = vsub.f32 %v12165_v33, %v17693_v4  ;;  %9966 = vmatmul.mubr.msk.f32.gmra.mrb[110].mxu1 %vm410_vm0, %v2127_v30  ;;  %v12205_v23 = vmul.f32 0.020408163, %v11866_v40  ;;  %7407 = vperm.xlu0 %10111, %v5949_v5   ;;  %v12224_v40 = vld [vmem:[%s10740_s18 + $0x3f0] sm:$0xff] }
 0x180   : > { %17691 = vst [vmem:[#allocation56_spill] sm:$0xff] %v12197_v32  ;;  %17692 = vst [vmem:[#allocation57_spill] sm:$0xff] %v12199_v49  ;;  %v10210_v62 = vpop.eup %10209  ;;  %v12207_v21 = vpop.f32.mrb[73].mxu0  ;;  %v12211_v32 = vmul.f32 %v10206_v48, %v5199_v34  ;;  %v12215_v49 = vmul.f32 %v12193_v0, %v12193_v0  ;;  %v12218_v33 = vmul.f32 0.020408163, %v11851_v57  ;;  %v12227_v30 = vld [vmem:[%s10740_s18 + $0x3f8] sm:$0xff]  ;;  %6270 = vperm.xlu1 %10112, %v11693_v58   ;;  %9687 = vmatprep.mubr.msk.f32.mxu0 %vm410_vm0, %v12224_v40 }
 0x181   : > { %v12209_v63 = vpop.f32.mrb[73].mxu1  ;;  %v10212_v38 = vpop.eup %10211  ;;  %v12221_v25 = vmul.f32 0.020408163, %v11868_v7  ;;  %17695 = vst [vmem:[#allocation58_spill] sm:$0xff] %v12224_v40  ;;  %v4822_v48 = vadd.f32 1e-05, %v4630_v27  ;;  %v12232_v5 = vmul.f32 %v12205_v23, %v12205_v23  ;;  %v12242_v4 = vmul.f32 %v10210_v62, %v5201_v12  ;;  %9688 = vmatmul.mubr.msk.f32.gmra.mrb[126].mxu0 %vm410_vm0, %v12227_v30 }
 0x182   : > { %17694 = vst [vmem:[#allocation29_spill] sm:$0xff] %v12211_v32  ;;  %v17696_v34 = vld [vmem:[#allocation32_spill] sm:$0xff]  ;;  %v17699_v58 = vld [vmem:[#allocation17_spill] sm:$0xff]  ;;  %v17700_v27 = vld [vmem:[#allocation18_spill] sm:$0xff]  ;;  %v17702_v40 = vsub.f32 %v12080_v13, %v12089_v9  ;;  %v12259_v12 = vmul.f32 %v10208_v47, %v5200_v11  ;;  %10217 = vrsqrt.f32 %v4821_v19  ;;  %v12293_v19 = vmul.f32 0.020408163, %v11892_v37 }
 0x183   : > { %v12236_v57 = vmul.f32 %v12176_v56, %v17696_v34  ;;  %17698 = vst [vmem:[#allocation59_spill] sm:$0xff] %v12242_v4  ;;  %v2128_v6 = vmul.f32 %v17699_v58, %v17699_v58  ;;  %v2129_v0 = vmul.f32 %v17700_v27, %v17700_v27  ;;  %v12250_v34 = vpop.f32.mrb[74].mxu0  ;;  %v12253_v56 = vld [vmem:[%s10740_s18 + $0x400] sm:$0xff]  ;;  %v12263_v58 = vmul.f32 %v10212_v38, %v5202_v54  ;;  %v12282_v11 = vpop.f32.mrb[74].mxu1 }
 0x184   : > { %17701 = vst [vmem:[#allocation17_spill] sm:$0xff] %v12250_v34  ;;  %v4631_v7 = vmax.f32 %v17702_v40, 0.0  ;;  %17703 = vst [vmem:[#allocation18_spill] sm:$0xff] %v12259_v12  ;;  %9690 = vmatprep.mubr.msk.f32.mxu0 %vm410_vm0, %v12253_v56  ;;  %v12267_v27 = vpop.f32.mrb[75].mxu0  ;;  %v12270_v34 = vld [vmem:[%s10740_s18 + $0x408] sm:$0xff]  ;;  %6275 = vperm.xlu0 %10111, %v11736_v60   ;;  %v12275_v13 = vmul.f32 %v12242_v4, %v11864_v36  ;;  %v17708_v9 = vld [vmem:[#allocation38_spill] sm:$0xff]  ;;  %v17710_v54 = vsub.f32 %v12077_v46, %v12085_v28 }
 0x185   : > { %17697 = vst [vmem:[#allocation32_spill] sm:$0xff] %v12236_v57  ;;  %v5567_v57 = vld [vmem:[%s11104_s24 + $0xf0] sm:$0xff]  ;;  %17704 = vst [vmem:[#allocation60_spill] sm:$0xff] %v12263_v58  ;;  %9968 = vmatprep.mubr.msk.f32.mxu1 %vm410_vm0, %v2128_v6  ;;  %v12280_v47 = vmul.f32 %v12211_v32, %v17708_v9  ;;  %7412 = vperm.xlu1 %10112, %v5950_v14   ;;  %v17711_v60 = vld [vmem:[#allocation43_spill] sm:$0xff]  ;;  %v12296_v40 = vmul.f32 0.020408163, %v11905_v20  ;;  %10219 = vrsqrt.f32 %v4822_v48 }
 0x186   : > { %17705 = vst [vmem:[#allocation61_spill] sm:$0xff] %v12267_v27  ;;  %17706 = vst [vmem:[#allocation62_spill] sm:$0xff] %v12270_v34  ;;  %v4632_v38 = vmax.f32 %v17710_v54, 0.0  ;;  %9969 = vmatmul.mubr.msk.f32.gmra.mrb[112].mxu1 %vm410_vm0, %v2129_v0  ;;  %v12290_v36 = vmul.f32 %v12263_v58, %v17711_v60  ;;  %v17714_v6 = vld [vmem:[#allocation31_spill] sm:$0xff]  ;;  %v5568_v9 = vld [vmem:[%s11104_s24 + $0xf8] sm:$0xff]  ;;  %9691 = vmatmul.mubr.msk.f32.gmra.mrb[128].mxu0 %vm410_vm0, %v12270_v34  ;;  %v6121_v37 = vpop.permute.xlu0 %6120  ;;  %v17721_v4 = vsub.f32 %v12142_v61, %v12153_v18 }
 0x187   : > { %17707 = vst [vmem:[#allocation63_spill] sm:$0xff] %v12275_v13  ;;  %17709 = vst [vmem:[#allocation38_spill] sm:$0xff] %v12282_v11  ;;  %v5951_v14 = vsub.f32 %v5567_v57, %v17714_v6  ;;  %v12301_v62 = vld [vmem:[%s11104_s24 + $0x100] sm:$0xff]  ;;  %v12307_v0 = vmul.f32 0.020408163, %v11907_v55  ;;  %v12312_v20 = vld [vmem:[%s11104_s24 + $0x108] sm:$0xff]  ;;  %v12316_v57 = vmul.f32 %v12293_v19, %v12293_v19  ;;  %v12320_v48 = vmul.f32 %v12296_v40, %v12296_v40 }
 0x188   : > { %17712 = vst [vmem:[#allocation43_spill] sm:$0xff] %v12290_v36  ;;  %17713 = vst [vmem:[#allocation64_spill] sm:$0xff] %v12293_v19  ;;  %v17715_v46 = vld [vmem:[#allocation2_spill] sm:$0xff]  ;;  %v4823_v54 = vadd.f32 1e-05, %v4631_v7  ;;  %v17716_v60 = vld [vmem:[#allocation37_spill] sm:$0xff]  ;;  %v10214_v7 = vpop.eup %10213 }
 0x189   : > { %v12304_v28 = vmul.f32 0.020408163, %v17715_v46  ;;  %v12324_v6 = vmul.f32 %v12259_v12, %v17716_v60  ;;  %v12326_v55 = vpop.f32.mrb[75].mxu1  ;;  %v12329_v46 = vld [vmem:[%s10740_s18 + $0x410] sm:$0xff]  ;;  %v12332_v58 = vld [vmem:[%s10740_s18 + $0x418] sm:$0xff]  ;;  %7417 = vperm.xlu0 %10111, %v5951_v14   ;;  %v4633_v32 = vmax.f32 %v17721_v4, 0.0 }
 0x18a   : > { %17718 = vst [vmem:[#allocation2_spill] sm:$0xff] %v12326_v55  ;;  %17719 = vst [vmem:[#allocation37_spill] sm:$0xff] %v12329_v46  ;;  %v5203_v36 = vld [vmem:[%s11072_s21 + $0x190] sm:$0xff]  ;;  %v17722_v13 = vld [vmem:[#allocation25_spill] sm:$0xff]  ;;  %9693 = vmatprep.mubr.msk.f32.mxu0 %vm410_vm0, %v12329_v46  ;;  %v4824_v11 = vadd.f32 1e-05, %v4632_v38  ;;  %v6116_v14 = vpop.permute.xlu0 %6115  ;;  %10221 = vrsqrt.f32 %v4823_v54 }
 0x18b   : > { %17717 = vst [vmem:[#allocation31_spill] sm:$0xff] %v12324_v6  ;;  %17720 = vst [vmem:[#allocation65_spill] sm:$0xff] %v12332_v58  ;;  %v2130_v19 = vmul.f32 %v17722_v13, %v17722_v13  ;;  %v17723_v60 = vld [vmem:[#allocation35_spill] sm:$0xff]  ;;  %v17724_v12 = vld [vmem:[#allocation34_spill] sm:$0xff]  ;;  %v12359_v38 = vmul.f32 0.020408163, %v11941_v53  ;;  %9694 = vmatmul.mubr.msk.f32.gmra.mrb[130].mxu0 %vm410_vm0, %v12332_v58  ;;  %v12368_v13 = vmul.f32 %v10214_v7, %v5203_v36  ;;  %v12382_v58 = vpop.permute.xlu1 %6130 }
 0x18c   : > { %6280 = vperm.xlu1 %10112, %v17723_v60   ;;  %v5952_v55 = vsub.f32 %v5568_v9, %v17724_v12  ;;  %v17725_v18 = vld [vmem:[#allocation36_spill] sm:$0xff]  ;;  %v17726_v34 = vld [vmem:[#allocation10_spill] sm:$0xff]  ;;  %v12363_v9 = vpop.f32.mrb[76].mxu0  ;;  %v5204_v61 = vld [vmem:[%s11072_s21 + $0x198] sm:$0xff]  ;;  %v17735_v36 = vsub.f32 %v12139_v1, %v12149_v22  ;;  %v4825_v7 = vadd.f32 1e-05, %v4633_v32  ;;  %10223 = vrsqrt.f32 %v4824_v11 }
 0x18d   : > { %v5953_v4 = vsub.f32 %v12301_v62, %v17725_v18  ;;  %v12353_v46 = vld [vmem:[%s11104_s24 + $0x110] sm:$0xff]  ;;  %v17727_v60 = vld [vmem:[#allocation26_spill] sm:$0xff]  ;;  %9971 = vmatprep.mubr.msk.f32.mxu1 %vm410_vm0, %v2130_v19  ;;  %17728 = vst [vmem:[#allocation25_spill] sm:$0xff] %v12359_v38  ;;  %17729 = vst [vmem:[#allocation35_spill] sm:$0xff] %v12363_v9  ;;  %v10216_v18 = vpop.eup %10215  ;;  %v12375_v19 = vmul.f32 0.020408163, %v11943_v35  ;;  %v12391_v35 = vmul.f32 %v12359_v38, %v12359_v38 }
 0x18e   : > { %v2131_v12 = vmul.f32 %v17727_v60, %v17727_v60  ;;  %v12366_v62 = vld [vmem:[%s10740_s18 + $0x420] sm:$0xff]  ;;  %17731 = vst [vmem:[#allocation36_spill] sm:$0xff] %v12368_v13  ;;  %v12372_v60 = vmul.f32 0.020408163, %v11959_v2  ;;  %v12380_v53 = vld [vmem:[%s10740_s18 + $0x428] sm:$0xff]  ;;  %v4634_v54 = vmax.f32 %v17735_v36, 0.0  ;;  %v17738_v1 = vsub.f32 %v12221_v25, %v12232_v5 }
 0x18f   : > { %17730 = vst [vmem:[#allocation34_spill] sm:$0xff] %v12366_v62  ;;  %9696 = vmatprep.mubr.msk.f32.mxu0 %vm410_vm0, %v12366_v62  ;;  %17733 = vst [vmem:[#allocation26_spill] sm:$0xff] %v12380_v53  ;;  %v17734_v9 = vld [vmem:[#allocation39_spill] sm:$0xff]  ;;  %v12394_v2 = vmul.f32 0.020408163, %v11961_v41  ;;  %v12396_v62 = vpop.f32.mrb[77].mxu0  ;;  %v12428_v27 = vmul.f32 %v10216_v18, %v5204_v61  ;;  %v7273_v6 = vpop.permute.xlu1 %7272  ;;  %10225 = vrsqrt.f32 %v4825_v7 }
 0x190   : > { %17732 = vst [vmem:[#allocation10_spill] sm:$0xff] %v12372_v60  ;;  %6285 = vperm.xlu0 %10111, %v17734_v9   ;;  %9972 = vmatmul.mubr.msk.f32.gmra.mrb[114].mxu1 %vm410_vm0, %v2131_v12  ;;  %17736 = vst [vmem:[#allocation39_spill] sm:$0xff] %v12396_v62  ;;  %v17737_v9 = vld [vmem:[#allocation12_spill] sm:$0xff]  ;;  %v4635_v22 = vmax.f32 %v17738_v1, 0.0  ;;  %v12405_v32 = vmul.f32 %v12372_v60, %v12372_v60  ;;  %v12407_v41 = vpop.f32.mrb[76].mxu1  ;;  %v10218_v12 = vpop.eup %10217  ;;  %v10503_v36 = vld [vmem:[%s10740_s18] sm:$0xff] }
 0x191   : > { %7422 = vperm.xlu1 %10112, %v5952_v55   ;;  %17739 = vst [vmem:[#allocation12_spill] sm:$0xff] %v12407_v41  ;;  %v7073_v55 = vmul.f32 %v10503_v36, %v6116_v14  ;;  %v17740_v38 = vld [vmem:[#allocation30_spill] sm:$0xff]  ;;  %v17741_v62 = vld [vmem:[#allocation33_spill] sm:$0xff]  ;;  %9697 = vmatmul.mubr.msk.f32.gmra.mrb[132].mxu0 %vm410_vm0, %v12380_v53  ;;  %v10504_v5 = vld [vmem:[%s10740_s18 + $0x8] sm:$0xff]  ;;  %v7268_v14 = vpop.permute.xlu0 %7267  ;;  %v10220_v53 = vpop.eup %10219  ;;  %v4826_v61 = vadd.f32 1e-05, %v4634_v54 }
 0x192   : > { %v2132_v11 = vmul.f32 %v17740_v38, %v17740_v38  ;;  %v2133_v25 = vmul.f32 %v17741_v62, %v17741_v62  ;;  %v7074_v1 = vmul.f32 %v10504_v5, %v6121_v37  ;;  %v12426_v36 = vld [vmem:[%s11104_s24 + $0x118] sm:$0xff]  ;;  %17742 = vst [vmem:[#allocation30_spill] sm:$0xff] %v12428_v27  ;;  %v5205_v62 = vld [vmem:[%s11072_s21 + $0x1a0] sm:$0xff]  ;;  %v12435_v37 = vmul.f32 %v12368_v13, %v11927_v59  ;;  %v12437_v5 = vpop.f32.mrb[77].mxu1  ;;  %v12440_v41 = vld [vmem:[%s10740_s18 + $0x430] sm:$0xff] }
 0x193   : > { %17744 = vst [vmem:[#allocation66_spill] sm:$0xff] %v12437_v5  ;;  %v8225_v60 = vadd.f32 %v7268_v14, %v7073_v55  ;;  %v5206_v18 = vld [vmem:[%s11072_s21 + $0x1a8] sm:$0xff]  ;;  %v12445_v38 = vmul.f32 0.020408163, %v11988_v42  ;;  %v12448_v59 = vld [vmem:[%s10740_s18 + $0x438] sm:$0xff]  ;;  %v12452_v5 = vld [vmem:[%s11104_s24 + $0x120] sm:$0xff]  ;;  %v17747_v55 = vsub.f32 %v12218_v33, %v12215_v49  ;;  %9699 = vmatprep.mubr.msk.f32.mxu0 %vm410_vm0, %v12440_v41  ;;  %10227 = vrsqrt.f32 %v4826_v61 }
 0x194   : > { %17743 = vst [vmem:[#allocation33_spill] sm:$0xff] %v12435_v37  ;;  %7427 = vperm.xlu0 %10111, %v5953_v4   ;;  %9974 = vmatprep.mubr.msk.f32.mxu1 %vm410_vm0, %v2132_v11  ;;  %v8226_v13 = vadd.f32 %v7273_v6, %v7074_v1  ;;  %v17746_v37 = vld [vmem:[#allocation42_spill] sm:$0xff]  ;;  %v4827_v54 = vadd.f32 1e-05, %v4635_v22  ;;  %v12459_v7 = vmul.f32 0.020408163, %v12008_v3  ;;  %v12466_v6 = vmul.f32 %v10218_v12, %v5205_v62  ;;  %v6126_v1 = vpop.permute.xlu1 %6125  ;;  %v10222_v14 = vpop.eup %10221 }
 0x195   : > { %17745 = vst [vmem:[#allocation67_spill] sm:$0xff] %v12445_v38  ;;  %6290 = vperm.xlu1 %10112, %v17746_v37   ;;  %v4636_v4 = vmax.f32 %v17747_v55, 0.0  ;;  %9975 = vmatmul.mubr.msk.f32.gmra.mrb[116].mxu1 %vm410_vm0, %v2133_v25  ;;  %8417 = vst.msk [vmem:[%s12423_s27] sm:$0xff] %vm410_vm0, %v8225_v60  ;;  %v12464_v42 = vld [vmem:[%s11104_s24 + $0x128] sm:$0xff]  ;;  %v12470_v11 = vmul.f32 %v12445_v38, %v12445_v38  ;;  %v12473_v49 = vmul.f32 0.020408163, %v11990_v15  ;;  %v12482_v3 = vpop.permute.xlu0 %6135 }
 0x196   : > { %17748 = vst [vmem:[#allocation42_spill] sm:$0xff] %v12466_v6  ;;  %v12476_v33 = vmul.f32 0.020408163, %v12019_v31  ;;  %8418 = vst.msk [vmem:[%s12423_s27 + $0x8] sm:$0xff] %vm410_vm0, %v8226_v13  ;;  %v17749_v60 = vld [vmem:[#allocation11_spill] sm:$0xff]  ;;  %v12486_v12 = vmul.f32 %v10220_v53, %v5206_v18  ;;  %v12490_v15 = vmul.f32 %v12459_v7, %v12459_v7  ;;  %v12494_v31 = vmul.f32 %v12428_v27, %v11919_v51  ;;  %v12498_v13 = vpop.f32.mrb[78].mxu0 }
 0x197   : > { %9700 = vmatmul.mubr.msk.f32.gmra.mrb[134].mxu0 %vm410_vm0, %v12448_v59  ;;  %17752 = vst [vmem:[#allocation69_spill] sm:$0xff] %v12498_v13  ;;  %v12501_v25 = vld [vmem:[%s10740_s18 + $0x440] sm:$0xff]  ;;  %v17754_v53 = vld [vmem:[#allocation16_spill] sm:$0xff]  ;;  %v17755_v62 = vsub.f32 %v12307_v0, %v12320_v48  ;;  %v12518_v22 = vld [vmem:[%s10740_s18 + $0x448] sm:$0xff]  ;;  %v17758_v0 = vsub.f32 %v12312_v20, %v17726_v34  ;;  %v4828_v37 = vadd.f32 1e-05, %v4636_v4  ;;  %10229 = vrsqrt.f32 %v4827_v54 }
 0x198   : > { %17750 = vst [vmem:[#allocation11_spill] sm:$0xff] %v12486_v12  ;;  %17751 = vst [vmem:[#allocation68_spill] sm:$0xff] %v12494_v31  ;;  %6295 = vperm.xlu0 %10111, %v11871_v43   ;;  %v17756_v18 = vld [vmem:[#allocation40_spill] sm:$0xff]  ;;  %9702 = vmatprep.mubr.msk.f32.mxu0 %vm410_vm0, %v12501_v25  ;;  %v12515_v43 = vpop.f32.mrb[79].mxu0  ;;  %v17759_v48 = vld [vmem:[#allocation15_spill] sm:$0xff]  ;;  %v12528_v31 = vpop.f32.mrb[78].mxu1  ;;  %v12543_v4 = vmul.f32 %v12466_v6, %v11999_v8 }
 0x199   : > { %17753 = vst [vmem:[#allocation70_spill] sm:$0xff] %v12501_v25  ;;  %v4637_v51 = vmax.f32 %v17755_v62, 0.0  ;;  %v2134_v55 = vmul.f32 %v17756_v18, %v17756_v18  ;;  %17757 = vst [vmem:[#allocation16_spill] sm:$0xff] %v12515_v43  ;;  %7432 = vperm.xlu1 %10112, %v17758_v0   ;;  %v5207_v27 = vld [vmem:[%s11072_s21 + $0x1b0] sm:$0xff]  ;;  %v12535_v13 = vld [vmem:[%s11104_s24 + $0x138] sm:$0xff]  ;;  %v10224_v0 = vpop.eup %10223  ;;  %v7278_v62 = vpop.permute.xlu0 %7277  ;;  %10231 = vrsqrt.f32 %v4828_v37 }
 0x19a   : > { %17760 = vst [vmem:[#allocation40_spill] sm:$0xff] %v12528_v31  ;;  %v10505_v38 = vld [vmem:[%s10740_s18 + $0x10] sm:$0xff]  ;;  %v17761_v34 = vld [vmem:[#allocation41_spill] sm:$0xff]  ;;  %17762 = vst [vmem:[#allocation15_spill] sm:$0xff] %v12543_v4  ;;  %v12560_v8 = vpop.f32.mrb[79].mxu1  ;;  %v12562_v6 = vpop.permute.xlu1 %6140 }
 0x19b   : > { %v7075_v43 = vmul.f32 %v10505_v38, %v6126_v1  ;;  %v12532_v25 = vld [vmem:[%s11104_s24 + $0x130] sm:$0xff]  ;;  %v2135_v20 = vmul.f32 %v17761_v34, %v17761_v34  ;;  %9977 = vmatprep.mubr.msk.f32.mxu1 %vm410_vm0, %v2134_v55  ;;  %v5208_v61 = vld [vmem:[%s11072_s21 + $0x1b8] sm:$0xff]  ;;  %v17763_v38 = vsub.f32 %v12304_v28, %v12316_v57  ;;  %v17764_v18 = vld [vmem:[#allocation6_spill] sm:$0xff]  ;;  %v12552_v34 = vmul.f32 0.020408163, %v12056_v29  ;;  %9703 = vmatmul.mubr.msk.f32.gmra.mrb[136].mxu0 %vm410_vm0, %v12518_v22 }
 0x19c   : > { %v12549_v54 = vmul.f32 0.020408163, %v17764_v18  ;;  %v17767_v55 = vld [vmem:[#allocation5_spill] sm:$0xff]  ;;  %v17769_v57 = vsub.f32 %v12353_v46, %v17737_v9  ;;  %v4829_v29 = vadd.f32 1e-05, %v4637_v51  ;;  %v12567_v18 = vmul.f32 %v10222_v14, %v5207_v27 }
 0x19d   : > { %v4638_v1 = vmax.f32 %v17763_v38, 0.0  ;;  %17766 = vst [vmem:[#allocation6_spill] sm:$0xff] %v12552_v34  ;;  %v12556_v31 = vmul.f32 %v12486_v12, %v17767_v55  ;;  %v8227_v28 = vadd.f32 %v7278_v62, %v7075_v43  ;;  %9978 = vmatmul.mubr.msk.f32.gmra.mrb[118].mxu1 %vm410_vm0, %v2135_v20  ;;  %v12571_v38 = vmul.f32 0.020408163, %v12044_v44  ;;  %v12574_v55 = vld [vmem:[%s10740_s18 + $0x450] sm:$0xff]  ;;  %v12577_v12 = vld [vmem:[%s10740_s18 + $0x458] sm:$0xff]  ;;  %v10226_v44 = vpop.eup %10225  ;;  %v12603_v62 = vpop.permute.xlu0 %6145 }
 0x19e   : > { %17765 = vst [vmem:[#allocation41_spill] sm:$0xff] %v12549_v54  ;;  %7437 = vperm.xlu0 %10111, %v17769_v57   ;;  %17770 = vst [vmem:[#allocation71_spill] sm:$0xff] %v12567_v18  ;;  %v17774_v43 = vld [vmem:[#allocation4_spill] sm:$0xff]  ;;  %v12584_v46 = vmul.f32 %v12549_v54, %v12549_v54  ;;  %v12588_v27 = vmul.f32 %v12552_v34, %v12552_v34  ;;  %9705 = vmatprep.mubr.msk.f32.mxu0 %vm410_vm0, %v12574_v55  ;;  %v10506_v9 = vld [vmem:[%s10740_s18 + $0x18] sm:$0xff]  ;;  %v12599_v20 = vmul.f32 0.020408163, %v12058_v16 }
 0x19f   : > { %17768 = vst [vmem:[#allocation5_spill] sm:$0xff] %v12556_v31  ;;  %17771 = vst [vmem:[#allocation72_spill] sm:$0xff] %v12574_v55  ;;  %v17773_v31 = vld [vmem:[#allocation44_spill] sm:$0xff]  ;;  %v7076_v14 = vmul.f32 %v10506_v9, %v12382_v58  ;;  %v12601_v57 = vpop.f32.mrb[80].mxu0  ;;  %v12605_v54 = vmul.f32 %v10224_v0, %v5208_v61  ;;  %v17778_v9 = vld [vmem:[#allocation3_spill] sm:$0xff]  ;;  %9706 = vmatmul.mubr.msk.f32.gmra.mrb[138].mxu0 %vm410_vm0, %v12577_v12  ;;  %10233 = vrsqrt.f32 %v4829_v29  ;;  %v12631_v34 = vpop.f32.mrb[80].mxu1 }
 0x1a0   : > { %17772 = vst [vmem:[#allocation73_spill] sm:$0xff] %v12577_v12  ;;  %6300 = vperm.xlu1 %10112, %v17773_v31   ;;  %8419 = vst.msk [vmem:[%s12423_s27 + $0x10] sm:$0xff] %vm410_vm0, %v8227_v28  ;;  %v17775_v31 = vld [vmem:[#allocation19_spill] sm:$0xff]  ;;  %v2136_v28 = vmul.f32 %v17778_v9, %v17778_v9  ;;  %v17779_v4 = vld [vmem:[#allocation45_spill] sm:$0xff]  ;;  %v12618_v51 = vpop.f32.mrb[81].mxu0  ;;  %v17784_v55 = vsub.f32 %v12426_v36, %v17749_v60  ;;  %v17785_v29 = vsub.f32 %v12394_v2, %v12405_v32 }
 0x1a1   : > { %17776 = vst [vmem:[#allocation44_spill] sm:$0xff] %v12601_v57  ;;  %17777 = vst [vmem:[#allocation4_spill] sm:$0xff] %v12605_v54  ;;  %v2137_v37 = vmul.f32 %v17779_v4, %v17779_v4  ;;  %v12616_v16 = vld [vmem:[%s10740_s18 + $0x460] sm:$0xff]  ;;  %v7283_v57 = vpop.permute.xlu1 %7282  ;;  %v4830_v0 = vadd.f32 1e-05, %v4638_v1  ;;  %v12626_v4 = vmul.f32 %v12567_v18, %v12067_v45  ;;  %v12629_v12 = vld [vmem:[%s10740_s18 + $0x468] sm:$0xff] }
 0x1a2   : > { %17780 = vst [vmem:[#allocation19_spill] sm:$0xff] %v12618_v51  ;;  %v17781_v61 = vld [vmem:[#allocation46_spill] sm:$0xff]  ;;  %17783 = vst [vmem:[#allocation45_spill] sm:$0xff] %v12629_v12  ;;  %v8228_v51 = vadd.f32 %v7283_v57, %v7076_v14  ;;  %9980 = vmatprep.mubr.msk.f32.mxu1 %vm410_vm0, %v2136_v28  ;;  %v12644_v45 = vmul.f32 0.020408163, %v12091_v10  ;;  %v12652_v60 = vld [vmem:[%s11104_s24 + $0x148] sm:$0xff]  ;;  %9708 = vmatprep.mubr.msk.f32.mxu0 %vm410_vm0, %v12616_v16 }
 0x1a3   : > { %6305 = vperm.xlu0 %10111, %v17781_v61   ;;  %v5209_v58 = vld [vmem:[%s11072_s21 + $0x1c0] sm:$0xff]  ;;  %17782 = vst [vmem:[#allocation3_spill] sm:$0xff] %v12626_v4  ;;  %v4639_v61 = vmax.f32 %v17785_v29, 0.0  ;;  %v12647_v9 = vmul.f32 0.020408163, %v12102_v39  ;;  %9981 = vmatmul.mubr.msk.f32.gmra.mrb[120].mxu1 %vm410_vm0, %v2137_v37  ;;  %v17789_v10 = vld [vmem:[#allocation8_spill] sm:$0xff]  ;;  %v10228_v39 = vpop.eup %10227  ;;  %10235 = vrsqrt.f32 %v4830_v0  ;;  %v17804_v0 = vsub.f32 %v12476_v33, %v12490_v15 }
 0x1a4   : > { %7442 = vperm.xlu1 %10112, %v17784_v55   ;;  %v12637_v1 = vld [vmem:[%s11104_s24 + $0x140] sm:$0xff]  ;;  %17786 = vst [vmem:[#allocation46_spill] sm:$0xff] %v12644_v45  ;;  %v17788_v55 = vsub.f32 %v12375_v19, %v12391_v35  ;;  %v12659_v32 = vmul.f32 0.020408163, %v12093_v50  ;;  %v12662_v57 = vmul.f32 0.020408163, %v17789_v10  ;;  %v12668_v28 = vmul.f32 %v10226_v44, %v5209_v58  ;;  %9709 = vmatmul.mubr.msk.f32.gmra.mrb[140].mxu0 %vm410_vm0, %v12629_v12  ;;  %v10230_v58 = vpop.eup %10229 }
 0x1a5   : > { %17787 = vst [vmem:[#allocation74_spill] sm:$0xff] %v12647_v9  ;;  %v10507_v14 = vld [vmem:[%s10740_s18 + $0x20] sm:$0xff]  ;;  %8420 = vst.msk [vmem:[%s12423_s27 + $0x18] sm:$0xff] %vm410_vm0, %v8228_v51  ;;  %v5210_v19 = vld [vmem:[%s11072_s21 + $0x1c8] sm:$0xff]  ;;  %v12673_v35 = vmul.f32 %v12644_v45, %v12644_v45  ;;  %v12677_v50 = vmul.f32 %v12647_v9, %v12647_v9  ;;  %v12685_v51 = vpop.f32.mrb[81].mxu1  ;;  %v17795_v10 = vsub.f32 %v12452_v5, %v17754_v53 }
 0x1a6   : > { %v7077_v36 = vmul.f32 %v10507_v14, %v12482_v3  ;;  %v4640_v2 = vmax.f32 %v17788_v55, 0.0  ;;  %v7288_v3 = vpop.permute.xlu0 %7287  ;;  %17790 = vst [vmem:[#allocation8_spill] sm:$0xff] %v12668_v28  ;;  %v17791_v37 = vld [vmem:[#allocation23_spill] sm:$0xff]  ;;  %17793 = vst [vmem:[#allocation75_spill] sm:$0xff] %v12685_v51  ;;  %v12688_v44 = vld [vmem:[%s10740_s18 + $0x470] sm:$0xff]  ;;  %v12690_v14 = vpop.permute.xlu1 %6150  ;;  %v12719_v9 = vmul.f32 %v10228_v39, %v5210_v19  ;;  %v12740_v19 = vmul.f32 %v12668_v28, %v12133_v26 }
 0x1a7   : > { %v12681_v29 = vmul.f32 %v12605_v54, %v17791_v37  ;;  %17794 = vst [vmem:[#allocation76_spill] sm:$0xff] %v12688_v44  ;;  %7447 = vperm.xlu0 %10111, %v17795_v10   ;;  %v17796_v18 = vld [vmem:[#allocation7_spill] sm:$0xff]  ;;  %v17797_v54 = vld [vmem:[#allocation49_spill] sm:$0xff]  ;;  %9711 = vmatprep.mubr.msk.f32.mxu0 %vm410_vm0, %v12688_v44  ;;  %v12708_v53 = vld [vmem:[%s11104_s24 + $0x150] sm:$0xff]  ;;  %v12725_v10 = vpop.f32.mrb[82].mxu0 }
 0x1a8   : > { %v8229_v55 = vadd.f32 %v7288_v3, %v7077_v36  ;;  %v12702_v45 = vld [vmem:[%s10740_s18 + $0x478] sm:$0xff]  ;;  %v17799_v4 = vld [vmem:[#allocation47_spill] sm:$0xff]  ;;  %v17800_v36 = vld [vmem:[#allocation22_spill] sm:$0xff]  ;;  %v4831_v3 = vadd.f32 1e-05, %v4639_v61  ;;  %17801 = vst [vmem:[#allocation49_spill] sm:$0xff] %v12719_v9 }
 0x1a9   : > { %17792 = vst [vmem:[#allocation23_spill] sm:$0xff] %v12681_v29  ;;  %v2138_v29 = vmul.f32 %v17797_v54, %v17797_v54  ;;  %17798 = vst [vmem:[#allocation7_spill] sm:$0xff] %v12702_v45  ;;  %6310 = vperm.xlu1 %10112, %v17799_v4   ;;  %v12717_v37 = vld [vmem:[%s11104_s24 + $0x158] sm:$0xff]  ;;  %v4832_v4 = vadd.f32 1e-05, %v4640_v2  ;;  %v5211_v5 = vld [vmem:[%s11072_s21 + $0x1d0] sm:$0xff]  ;;  %9712 = vmatmul.mubr.msk.f32.gmra.mrb[142].mxu0 %vm410_vm0, %v12702_v45 }
 0x1aa   : > { %8421 = vst.msk [vmem:[%s12423_s27 + $0x20] sm:$0xff] %vm410_vm0, %v8229_v55  ;;  %v17802_v44 = vld [vmem:[#allocation21_spill] sm:$0xff]  ;;  %17803 = vst [vmem:[#allocation47_spill] sm:$0xff] %v12725_v10  ;;  %v12728_v12 = vld [vmem:[%s10740_s18 + $0x480] sm:$0xff]  ;;  %v12732_v51 = vpop.permute.xlu0 %6155  ;;  %v4641_v2 = vmax.f32 %v17804_v0, 0.0  ;;  %v7293_v10 = vpop.permute.xlu1 %7292  ;;  %10237 = vrsqrt.f32 %v4831_v3  ;;  %v12771_v15 = vmul.f32 %v10230_v58, %v5211_v5 }
 0x1ab   : > { %v2139_v61 = vmul.f32 %v17802_v44, %v17802_v44  ;;  %9983 = vmatprep.mubr.msk.f32.mxu1 %vm410_vm0, %v2138_v29  ;;  %v10508_v54 = vld [vmem:[%s10740_s18 + $0x28] sm:$0xff]  ;;  %v5212_v39 = vld [vmem:[%s11072_s21 + $0x1d8] sm:$0xff]  ;;  %17805 = vst [vmem:[#allocation22_spill] sm:$0xff] %v12740_v19  ;;  %v12743_v29 = vmul.f32 0.020408163, %v12159_v24  ;;  %v12747_v44 = vpop.f32.mrb[83].mxu0  ;;  %9714 = vmatprep.mubr.msk.f32.mxu0 %vm410_vm0, %v12728_v12  ;;  %10239 = vrsqrt.f32 %v4832_v4 }
 0x1ac   : > { %v7078_v55 = vmul.f32 %v10508_v54, %v12562_v6  ;;  %17807 = vst [vmem:[#allocation77_spill] sm:$0xff] %v12747_v44  ;;  %v12750_v6 = vld [vmem:[%s10740_s18 + $0x488] sm:$0xff]  ;;  %v10232_v54 = vpop.eup %10231  ;;  %v17808_v33 = vld [vmem:[#allocation20_spill] sm:$0xff]  ;;  %v12757_v26 = vmul.f32 0.020408163, %v12172_v52  ;;  %v17810_v24 = vld [vmem:[#allocation54_spill] sm:$0xff]  ;;  %v17812_v44 = vsub.f32 %v12464_v42, %v17759_v48 }
 0x1ad   : > { %17806 = vst [vmem:[#allocation21_spill] sm:$0xff] %v12743_v29  ;;  %6315 = vperm.xlu0 %10111, %v17808_v33   ;;  %9984 = vmatmul.mubr.msk.f32.gmra.mrb[122].mxu1 %vm410_vm0, %v2139_v61  ;;  %v12760_v0 = vmul.f32 0.020408163, %v17810_v24  ;;  %v17811_v28 = vld [vmem:[#allocation13_spill] sm:$0xff]  ;;  %v17813_v33 = vsub.f32 %v12473_v49, %v12470_v11  ;;  %17814 = vst [vmem:[#allocation54_spill] sm:$0xff] %v12771_v15  ;;  %v12775_v52 = vpop.f32.mrb[82].mxu1  ;;  %v12781_v42 = vmul.f32 %v12743_v29, %v12743_v29 }
 0x1ae   : > { %17809 = vst [vmem:[#allocation20_spill] sm:$0xff] %v12757_v26  ;;  %v12763_v19 = vmul.f32 0.020408163, %v17811_v28  ;;  %v8230_v45 = vadd.f32 %v7293_v10, %v7078_v55  ;;  %7452 = vperm.xlu1 %10112, %v17812_v44   ;;  %v10234_v28 = vpop.eup %10233  ;;  %v10509_v24 = vld [vmem:[%s10740_s18 + $0x30] sm:$0xff]  ;;  %v12785_v11 = vmul.f32 %v12757_v26, %v12757_v26  ;;  %v7298_v58 = vpop.permute.xlu0 %7297  ;;  %v12795_v3 = vmul.f32 %v10232_v54, %v5212_v39  ;;  %v17819_v55 = vld [vmem:[#allocation9_spill] sm:$0xff] }
 0x1af   : > { %v4642_v61 = vmax.f32 %v17813_v33, 0.0  ;;  %v7079_v10 = vmul.f32 %v10509_v24, %v12603_v62  ;;  %v17815_v49 = vld [vmem:[#allocation24_spill] sm:$0xff]  ;;  %v2140_v44 = vmul.f32 %v17819_v55, %v17819_v55  ;;  %9715 = vmatmul.mubr.msk.f32.gmra.mrb[144].mxu0 %vm410_vm0, %v12750_v6  ;;  %v17822_v39 = vsub.f32 %v12532_v25, %v17774_v43  ;;  %v12821_v29 = vld [vmem:[%s10740_s18 + $0x498] sm:$0xff]  ;;  %v12828_v25 = vld [vmem:[%s11104_s24 + $0x168] sm:$0xff] }
 0x1b0   : > { %v12789_v48 = vmul.f32 %v12719_v9, %v17815_v49  ;;  %8422 = vst.msk [vmem:[%s12423_s27 + $0x28] sm:$0xff] %vm410_vm0, %v8230_v45  ;;  %v17817_v5 = vld [vmem:[#allocation28_spill] sm:$0xff]  ;;  %17818 = vst [vmem:[#allocation24_spill] sm:$0xff] %v12795_v3  ;;  %v12803_v49 = vpop.f32.mrb[83].mxu1  ;;  %v12808_v9 = vpop.permute.xlu1 %6160  ;;  %v4833_v54 = vadd.f32 1e-05, %v4641_v2  ;;  %v17825_v43 = vsub.f32 %v12599_v20, %v12588_v27 }
 0x1b1   : > { %v17820_v33 = vld [vmem:[#allocation52_spill] sm:$0xff]  ;;  %v8231_v62 = vadd.f32 %v7298_v58, %v7079_v10  ;;  %7457 = vperm.xlu0 %10111, %v17822_v39   ;;  %17823 = vst [vmem:[#allocation9_spill] sm:$0xff] %v12821_v29  ;;  %v12825_v58 = vld [vmem:[%s11104_s24 + $0x160] sm:$0xff]  ;;  %9986 = vmatprep.mubr.msk.f32.mxu1 %vm410_vm0, %v2140_v44  ;;  %v12836_v39 = vmul.f32 %v12771_v15, %v12205_v23  ;;  %v4834_v4 = vadd.f32 1e-05, %v4642_v61  ;;  %v17830_v20 = vld [vmem:[#allocation57_spill] sm:$0xff] }
 0x1b2   : > { %17816 = vst [vmem:[#allocation13_spill] sm:$0xff] %v12789_v48  ;;  %v2141_v24 = vmul.f32 %v17820_v33, %v17820_v33  ;;  %v12806_v45 = vld [vmem:[%s10740_s18 + $0x490] sm:$0xff]  ;;  %v5213_v48 = vld [vmem:[%s11072_s21 + $0x1e0] sm:$0xff]  ;;  %v4643_v2 = vmax.f32 %v17825_v43, 0.0  ;;  %v12847_v27 = vmul.f32 0.020408163, %v12207_v21  ;;  %v12852_v23 = vpop.permute.xlu0 %6165  ;;  %10241 = vrsqrt.f32 %v4833_v54 }
 0x1b3   : > { %17821 = vst [vmem:[#allocation28_spill] sm:$0xff] %v12806_v45  ;;  %9717 = vmatprep.mubr.msk.f32.mxu0 %vm410_vm0, %v12806_v45  ;;  %v17824_v10 = vld [vmem:[#allocation48_spill] sm:$0xff]  ;;  %17826 = vst [vmem:[#allocation52_spill] sm:$0xff] %v12836_v39  ;;  %v12850_v44 = vmul.f32 0.020408163, %v17830_v20  ;;  %v12872_v43 = vld [vmem:[%s10740_s18 + $0x4a0] sm:$0xff]  ;;  %v17840_v54 = vsub.f32 %v12535_v13, %v17775_v31  ;;  %10243 = vrsqrt.f32 %v4834_v4  ;;  %v17847_v4 = vsub.f32 %v12637_v1, %v17796_v18 }
 0x1b4   : > { %6320 = vperm.xlu1 %10112, %v17824_v10   ;;  %v17827_v55 = vld [vmem:[#allocation56_spill] sm:$0xff]  ;;  %v10510_v10 = vld [vmem:[%s10740_s18 + $0x38] sm:$0xff]  ;;  %8423 = vst.msk [vmem:[%s12423_s27 + $0x30] sm:$0xff] %vm410_vm0, %v8231_v62  ;;  %9987 = vmatmul.mubr.msk.f32.gmra.mrb[124].mxu1 %vm410_vm0, %v2141_v24  ;;  %v12861_v61 = vmul.f32 0.020408163, %v12209_v63  ;;  %v17832_v62 = vld [vmem:[#allocation27_spill] sm:$0xff]  ;;  %v12886_v39 = vmul.f32 %v12847_v27, %v12847_v27 }
 0x1b5   : > { %v12839_v33 = vmul.f32 0.020408163, %v17827_v55  ;;  %v7080_v26 = vmul.f32 %v10510_v10, %v12690_v14  ;;  %17829 = vst [vmem:[#allocation56_spill] sm:$0xff] %v12847_v27  ;;  %v12854_v55 = vmul.f32 %v10234_v28, %v5213_v48  ;;  %v12865_v21 = vmul.f32 %v12795_v3, %v17832_v62  ;;  %9718 = vmatmul.mubr.msk.f32.gmra.mrb[146].mxu0 %vm410_vm0, %v12821_v29  ;;  %v12869_v24 = vpop.f32.mrb[84].mxu0  ;;  %v10236_v28 = vpop.eup %10235  ;;  %v17835_v10 = vld [vmem:[#allocation50_spill] sm:$0xff]  ;;  %v12878_v15 = vld [vmem:[%s11104_s24 + $0x170] sm:$0xff] }
 0x1b6   : > { %17834 = vst [vmem:[#allocation78_spill] sm:$0xff] %v12872_v43  ;;  %v7303_v48 = vpop.permute.xlu1 %7302  ;;  %6325 = vperm.xlu0 %10111, %v17835_v10   ;;  %v17836_v20 = vld [vmem:[#allocation14_spill] sm:$0xff]  ;;  %v17837_v62 = vsub.f32 %v12571_v38, %v12584_v46  ;;  %9720 = vmatprep.mubr.msk.f32.mxu0 %vm410_vm0, %v12872_v43  ;;  %v12890_v10 = vpop.f32.mrb[85].mxu0  ;;  %v12893_v63 = vld [vmem:[%s10740_s18 + $0x4a8] sm:$0xff]  ;;  %v17841_v38 = vld [vmem:[#allocation32_spill] sm:$0xff] }
 0x1b7   : > { %17828 = vst [vmem:[#allocation48_spill] sm:$0xff] %v12839_v33  ;;  %17831 = vst [vmem:[#allocation57_spill] sm:$0xff] %v12854_v55  ;;  %v12858_v14 = vmul.f32 %v12839_v33, %v12839_v33  ;;  %v8232_v33 = vadd.f32 %v7303_v48, %v7080_v26  ;;  %v12902_v29 = vpop.f32.mrb[84].mxu1  ;;  %v10511_v43 = vld [vmem:[%s10740_s18 + $0x40] sm:$0xff]  ;;  %v12907_v45 = vld [vmem:[%s11104_s24 + $0x178] sm:$0xff]  ;;  %v10238_v48 = vpop.eup %10237  ;;  %v12923_v46 = vmul.f32 %v12854_v55, %v12296_v40 }
 0x1b8   : > { %17833 = vst [vmem:[#allocation27_spill] sm:$0xff] %v12865_v21  ;;  %v4644_v3 = vmax.f32 %v17837_v62, 0.0  ;;  %v5214_v21 = vld [vmem:[%s11072_s21 + $0x1e8] sm:$0xff]  ;;  %17838 = vst [vmem:[#allocation50_spill] sm:$0xff] %v12890_v10  ;;  %7462 = vperm.xlu1 %10112, %v17840_v54   ;;  %v4835_v62 = vadd.f32 1e-05, %v4643_v2  ;;  %v7081_v10 = vmul.f32 %v10511_v43, %v12732_v51  ;;  %v2143_v2 = vmul.f32 %v12227_v30, %v12227_v30  ;;  %v7308_v54 = vpop.permute.xlu0 %7307 }
 0x1b9   : > { %17839 = vst [vmem:[#allocation14_spill] sm:$0xff] %v12893_v63  ;;  %v17842_v13 = vld [vmem:[#allocation58_spill] sm:$0xff]  ;;  %8424 = vst.msk [vmem:[%s12423_s27 + $0x38] sm:$0xff] %vm410_vm0, %v8232_v33  ;;  %v12919_v43 = vmul.f32 %v10236_v28, %v5214_v21  ;;  %9721 = vmatmul.mubr.msk.f32.gmra.mrb[148].mxu0 %vm410_vm0, %v12893_v63  ;;  %v12927_v30 = vpop.f32.mrb[85].mxu1  ;;  %v5215_v28 = vld [vmem:[%s11072_s21 + $0x1f0] sm:$0xff]  ;;  %v2144_v26 = vmul.f32 %v12253_v56, %v12253_v56 }
 0x1ba   : > { %v2142_v31 = vmul.f32 %v17842_v13, %v17842_v13  ;;  %17844 = vst [vmem:[#allocation58_spill] sm:$0xff] %v12923_v46  ;;  %17845 = vst [vmem:[#allocation79_spill] sm:$0xff] %v12927_v30  ;;  %v12930_v13 = vld [vmem:[%s10740_s18 + $0x4b0] sm:$0xff]  ;;  %v12932_v33 = vpop.permute.xlu1 %6170  ;;  %v8233_v27 = vadd.f32 %v7308_v54, %v7081_v10  ;;  %7467 = vperm.xlu0 %10111, %v17847_v4   ;;  %v4836_v21 = vadd.f32 1e-05, %v4644_v3  ;;  %v17848_v40 = vld [vmem:[#allocation17_spill] sm:$0xff]  ;;  %10245 = vrsqrt.f32 %v4835_v62 }
 0x1bb   : > { %17843 = vst [vmem:[#allocation32_spill] sm:$0xff] %v12919_v43  ;;  %17846 = vst [vmem:[#allocation80_spill] sm:$0xff] %v12930_v13  ;;  %v12940_v51 = vmul.f32 0.020408163, %v17848_v40  ;;  %v12945_v46 = vld [vmem:[%s10740_s18 + $0x4b8] sm:$0xff]  ;;  %v17851_v55 = vld [vmem:[#allocation51_spill] sm:$0xff]  ;;  %v17853_v3 = vsub.f32 %v12662_v57, %v12677_v50  ;;  %9723 = vmatprep.mubr.msk.f32.mxu0 %vm410_vm0, %v12930_v13 }
 0x1bc   : > { %9989 = vmatprep.mubr.msk.f32.mxu1 %vm410_vm0, %v2142_v31  ;;  %17850 = vst [vmem:[#allocation81_spill] sm:$0xff] %v12945_v46  ;;  %6330 = vperm.xlu1 %10112, %v17851_v55   ;;  %v17852_v10 = vld [vmem:[#allocation31_spill] sm:$0xff]  ;;  %v12951_v1 = vld [vmem:[%s11104_s24 + $0x180] sm:$0xff]  ;;  %v17854_v54 = vld [vmem:[#allocation61_spill] sm:$0xff]  ;;  %10247 = vrsqrt.f32 %v4836_v21  ;;  %v17870_v21 = vsub.f32 %v12652_v60, %v17800_v36 }
 0x1bd   : > { %17849 = vst [vmem:[#allocation17_spill] sm:$0xff] %v12940_v51  ;;  %v4645_v31 = vmax.f32 %v17853_v3, 0.0  ;;  %9990 = vmatmul.mubr.msk.f32.gmra.mrb[126].mxu1 %vm410_vm0, %v2143_v2  ;;  %v12958_v56 = vmul.f32 0.020408163, %v17854_v54  ;;  %v10512_v4 = vld [vmem:[%s10740_s18 + $0x48] sm:$0xff]  ;;  %8425 = vst.msk [vmem:[%s12423_s27 + $0x40] sm:$0xff] %vm410_vm0, %v8233_v27  ;;  %v12966_v40 = vmul.f32 %v12940_v51, %v12940_v51  ;;  %v10240_v27 = vpop.eup %10239  ;;  %v12981_v3 = vpop.permute.xlu0 %6175  ;;  %v12983_v54 = vmul.f32 %v10238_v48, %v5215_v28 }
 0x1be   : > { %v7082_v55 = vmul.f32 %v10512_v4, %v12808_v9  ;;  %v17856_v62 = vld [vmem:[#allocation62_spill] sm:$0xff]  ;;  %9992 = vmatprep.mubr.msk.f32.mxu1 %vm410_vm0, %v2144_v26  ;;  %v12976_v2 = vpop.f32.mrb[86].mxu0  ;;  %v5216_v4 = vld [vmem:[%s11072_s21 + $0x1f8] sm:$0xff]  ;;  %v17862_v51 = vld [vmem:[#allocation64_spill] sm:$0xff]  ;;  %9724 = vmatmul.mubr.msk.f32.gmra.mrb[150].mxu0 %vm410_vm0, %v12945_v46  ;;  %v7313_v63 = vpop.permute.xlu1 %7312 }
 0x1bf   : > { %17855 = vst [vmem:[#allocation51_spill] sm:$0xff] %v12958_v56  ;;  %v2145_v18 = vmul.f32 %v17856_v62, %v17856_v62  ;;  %v17857_v57 = vld [vmem:[#allocation38_spill] sm:$0xff]  ;;  %17858 = vst [vmem:[#allocation31_spill] sm:$0xff] %v12976_v2  ;;  %v12988_v62 = vmul.f32 %v12958_v56, %v12958_v56  ;;  %v12995_v13 = vmul.f32 %v12919_v43, %v17862_v51  ;;  %v12999_v2 = vpop.f32.mrb[87].mxu0  ;;  %v17865_v48 = vld [vmem:[#allocation53_spill] sm:$0xff]  ;;  %v10242_v51 = vpop.eup %10241 }
 0x1c0   : > { %v12971_v50 = vmul.f32 0.020408163, %v17857_v57  ;;  %v12979_v9 = vld [vmem:[%s10740_s18 + $0x4c0] sm:$0xff]  ;;  %17860 = vst [vmem:[#allocation62_spill] sm:$0xff] %v12983_v54  ;;  %6335 = vperm.xlu0 %10111, %v17865_v48   ;;  %v17866_v28 = vld [vmem:[#allocation63_spill] sm:$0xff]  ;;  %v13014_v48 = vpop.f32.mrb[86].mxu1  ;;  %v8234_v43 = vadd.f32 %v7313_v63, %v7082_v55  ;;  %7472 = vperm.xlu1 %10112, %v17870_v21   ;;  %v13030_v63 = vmul.f32 %v10240_v27, %v5216_v4 }
 0x1c1   : > { %17859 = vst [vmem:[#allocation61_spill] sm:$0xff] %v12979_v9  ;;  %v17861_v57 = vld [vmem:[#allocation2_spill] sm:$0xff]  ;;  %17863 = vst [vmem:[#allocation38_spill] sm:$0xff] %v12995_v13  ;;  %9726 = vmatprep.mubr.msk.f32.mxu0 %vm410_vm0, %v12979_v9  ;;  %v13012_v13 = vld [vmem:[%s10740_s18 + $0x4c8] sm:$0xff]  ;;  %v4837_v56 = vadd.f32 1e-05, %v4645_v31  ;;  %9993 = vmatmul.mubr.msk.f32.gmra.mrb[128].mxu1 %vm410_vm0, %v2145_v18  ;;  %v7318_v18 = vpop.permute.xlu0 %7317 }
 0x1c2   : > { %v12991_v26 = vmul.f32 0.020408163, %v17861_v57  ;;  %17864 = vst [vmem:[#allocation2_spill] sm:$0xff] %v12999_v2  ;;  %v17867_v57 = vsub.f32 %v12659_v32, %v12673_v35  ;;  %17868 = vst [vmem:[#allocation64_spill] sm:$0xff] %v13012_v13  ;;  %v17871_v35 = vld [vmem:[#allocation35_spill] sm:$0xff]  ;;  %v10513_v9 = vld [vmem:[%s10740_s18 + $0x50] sm:$0xff]  ;;  %9727 = vmatmul.mubr.msk.f32.gmra.mrb[152].mxu0 %vm410_vm0, %v13012_v13 }
 0x1c3   : > { %17869 = vst [vmem:[#allocation53_spill] sm:$0xff] %v13014_v48  ;;  %v7083_v46 = vmul.f32 %v10513_v9, %v12852_v23  ;;  %v13028_v48 = vld [vmem:[%s11104_s24 + $0x188] sm:$0xff]  ;;  %17873 = vst [vmem:[#allocation35_spill] sm:$0xff] %v13030_v63  ;;  %v5217_v60 = vld [vmem:[%s11072_s21 + $0x200] sm:$0xff]  ;;  %10249 = vrsqrt.f32 %v4837_v56 }
 0x1c4   : > { %v4646_v30 = vmax.f32 %v17867_v57, 0.0  ;;  %v13023_v57 = vmul.f32 0.020408163, %v17871_v35  ;;  %v17874_v36 = vld [vmem:[#allocation37_spill] sm:$0xff]  ;;  %8426 = vst.msk [vmem:[%s12423_s27 + $0x48] sm:$0xff] %vm410_vm0, %v8234_v43  ;;  %v17876_v35 = vsub.f32 %v12763_v19, %v12785_v11  ;;  %v17877_v23 = vld [vmem:[#allocation10_spill] sm:$0xff]  ;;  %v13059_v19 = vpop.permute.xlu1 %6180 }
 0x1c5   : > { %v2146_v31 = vmul.f32 %v17874_v36, %v17874_v36  ;;  %v17875_v55 = vld [vmem:[#allocation65_spill] sm:$0xff]  ;;  %v13044_v9 = vmul.f32 %v12983_v54, %v17877_v23  ;;  %v17879_v4 = vld [vmem:[#allocation34_spill] sm:$0xff]  ;;  %v13054_v43 = vpop.f32.mrb[87].mxu1  ;;  %v8235_v11 = vadd.f32 %v7318_v18, %v7083_v46  ;;  %v17884_v54 = vld [vmem:[#allocation39_spill] sm:$0xff] }
 0x1c6   : > { %17872 = vst [vmem:[#allocation63_spill] sm:$0xff] %v13023_v57  ;;  %v2147_v21 = vmul.f32 %v17875_v55, %v17875_v55  ;;  %v4647_v32 = vmax.f32 %v17876_v35, 0.0  ;;  %v13048_v27 = vmul.f32 %v13023_v57, %v13023_v57  ;;  %v2148_v36 = vmul.f32 %v17879_v4, %v17879_v4  ;;  %17880 = vst [vmem:[#allocation65_spill] sm:$0xff] %v13054_v43  ;;  %v13057_v55 = vld [vmem:[%s10740_s18 + $0x4d0] sm:$0xff]  ;;  %v13072_v13 = vld [vmem:[%s10740_s18 + $0x4d8] sm:$0xff]  ;;  %v10244_v43 = vpop.eup %10243 }
 0x1c7   : > { %17878 = vst [vmem:[#allocation37_spill] sm:$0xff] %v13044_v9  ;;  %17881 = vst [vmem:[#allocation10_spill] sm:$0xff] %v13057_v55  ;;  %v17882_v35 = vsub.f32 %v12708_v53, %v12127_v17  ;;  %v4838_v23 = vadd.f32 1e-05, %v4646_v30  ;;  %v17883_v4 = vsub.f32 %v12760_v0, %v12781_v42  ;;  %9995 = vmatprep.mubr.msk.f32.mxu1 %vm410_vm0, %v2146_v31  ;;  %v13069_v57 = vmul.f32 0.020408163, %v17884_v54 }
 0x1c8   : > { %17886 = vst [vmem:[#allocation39_spill] sm:$0xff] %v13072_v13  ;;  %v17887_v2 = vld [vmem:[#allocation55_spill] sm:$0xff]  ;;  %v13077_v53 = vmul.f32 %v10242_v51, %v5217_v60  ;;  %9996 = vmatmul.mubr.msk.f32.gmra.mrb[130].mxu1 %vm410_vm0, %v2147_v21  ;;  %v17890_v42 = vld [vmem:[#allocation26_spill] sm:$0xff]  ;;  %v17891_v31 = vld [vmem:[#allocation12_spill] sm:$0xff]  ;;  %9729 = vmatprep.mubr.msk.f32.mxu0 %vm410_vm0, %v13057_v55  ;;  %v17898_v55 = vsub.f32 %v12717_v37, %v17817_v5 }
 0x1c9   : > { %7477 = vperm.xlu0 %10111, %v17882_v35   ;;  %v4648_v9 = vmax.f32 %v17883_v4, 0.0  ;;  %17885 = vst [vmem:[#allocation34_spill] sm:$0xff] %v13069_v57  ;;  %6340 = vperm.xlu1 %10112, %v17887_v2   ;;  %v17888_v46 = vld [vmem:[#allocation43_spill] sm:$0xff]  ;;  %v2149_v30 = vmul.f32 %v17890_v42, %v17890_v42  ;;  %v13084_v54 = vmul.f32 0.020408163, %v17891_v31  ;;  %8427 = vst.msk [vmem:[%s12423_s27 + $0x50] sm:$0xff] %vm410_vm0, %v8235_v11  ;;  %v10246_v11 = vpop.eup %10245  ;;  %v13106_v42 = vpop.permute.xlu0 %6185  ;;  %10251 = vrsqrt.f32 %v4838_v23 }
 0x1ca   : > { %17889 = vst [vmem:[#allocation55_spill] sm:$0xff] %v13077_v53  ;;  %v5218_v0 = vld [vmem:[%s11072_s21 + $0x208] sm:$0xff]  ;;  %v13090_v2 = vmul.f32 %v13069_v57, %v13069_v57  ;;  %9998 = vmatprep.mubr.msk.f32.mxu1 %vm410_vm0, %v2148_v36  ;;  %v17892_v51 = vld [vmem:[#allocation66_spill] sm:$0xff]  ;;  %v17893_v21 = vld [vmem:[#allocation25_spill] sm:$0xff]  ;;  %v13102_v35 = vpop.f32.mrb[88].mxu0  ;;  %9730 = vmatmul.mubr.msk.f32.gmra.mrb[154].mxu0 %vm410_vm0, %v13072_v13  ;;  %v13128_v57 = vpop.f32.mrb[88].mxu1  ;;  %v13141_v23 = vmul.f32 %v13077_v53, %v12459_v7 }
 0x1cb   : > { %v13094_v60 = vmul.f32 0.020408163, %v17892_v51  ;;  %v13098_v18 = vmul.f32 %v13030_v63, %v17893_v21  ;;  %v10514_v56 = vld [vmem:[%s10740_s18 + $0x58] sm:$0xff]  ;;  %v4839_v36 = vadd.f32 1e-05, %v4647_v32  ;;  %v2150_v51 = vmul.f32 %v12440_v41, %v12440_v41  ;;  %v13115_v21 = vld [vmem:[%s10740_s18 + $0x4e0] sm:$0xff] }
 0x1cc   : > { %v7084_v4 = vmul.f32 %v10514_v56, %v12932_v33  ;;  %v13117_v17 = vpop.f32.mrb[89].mxu0  ;;  %v17895_v63 = vld [vmem:[#allocation29_spill] sm:$0xff]  ;;  %v4840_v33 = vadd.f32 1e-05, %v4648_v9  ;;  %v13120_v32 = vmul.f32 %v10244_v43, %v5218_v0  ;;  %v5219_v41 = vld [vmem:[%s11072_s21 + $0x210] sm:$0xff]  ;;  %v13126_v31 = vld [vmem:[%s10740_s18 + $0x4e8] sm:$0xff]  ;;  %9999 = vmatmul.mubr.msk.f32.gmra.mrb[132].mxu1 %vm410_vm0, %v2149_v30  ;;  %v2151_v43 = vmul.f32 %v12448_v59, %v12448_v59  ;;  %v10248_v0 = vpop.eup %10247  ;;  %9732 = vmatprep.mubr.msk.f32.mxu0 %vm410_vm0, %v13115_v21 }
 0x1cd   : > { %17894 = vst [vmem:[#allocation43_spill] sm:$0xff] %v13098_v18  ;;  %v7323_v18 = vpop.permute.xlu1 %7322  ;;  %6345 = vperm.xlu0 %10111, %v17895_v63   ;;  %17897 = vst [vmem:[#allocation12_spill] sm:$0xff] %v13126_v31  ;;  %7482 = vperm.xlu1 %10112, %v17898_v55   ;;  %v17899_v63 = vsub.f32 %v12861_v61, %v12886_v39  ;;  %v13146_v37 = vld [vmem:[%s11104_s24 + $0x190] sm:$0xff]  ;;  %v17901_v5 = vld [vmem:[#allocation69_spill] sm:$0xff]  ;;  %v7328_v7 = vpop.permute.xlu0 %7327  ;;  %10253 = vrsqrt.f32 %v4839_v36 }
 0x1ce   : > { %17896 = vst [vmem:[#allocation26_spill] sm:$0xff] %v13120_v32  ;;  %v8236_v13 = vadd.f32 %v7323_v18, %v7084_v4  ;;  %17900 = vst [vmem:[#allocation66_spill] sm:$0xff] %v13141_v23  ;;  %v10515_v18 = vld [vmem:[%s10740_s18 + $0x60] sm:$0xff]  ;;  %10001 = vmatprep.mubr.msk.f32.mxu1 %vm410_vm0, %v2150_v51  ;;  %v13150_v39 = vmul.f32 0.020408163, %v17901_v5  ;;  %v17904_v59 = vld [vmem:[#allocation16_spill] sm:$0xff]  ;;  %v17906_v51 = vsub.f32 %v12850_v44, %v12858_v14  ;;  %9733 = vmatmul.mubr.msk.f32.gmra.mrb[156].mxu0 %vm410_vm0, %v13126_v31 }
 0x1cf   : > { %v4649_v9 = vmax.f32 %v17899_v63, 0.0  ;;  %v7085_v4 = vmul.f32 %v10515_v18, %v12981_v3  ;;  %v17903_v61 = vld [vmem:[#allocation70_spill] sm:$0xff]  ;;  %v13155_v30 = vmul.f32 0.020408163, %v17904_v59  ;;  %v13162_v3 = vld [vmem:[%s11104_s24 + $0x198] sm:$0xff]  ;;  %v13167_v18 = vmul.f32 %v10246_v11, %v5219_v41  ;;  %v17908_v5 = vld [vmem:[#allocation40_spill] sm:$0xff] }
 0x1d0   : > { %17902 = vst [vmem:[#allocation25_spill] sm:$0xff] %v13150_v39  ;;  %v2152_v55 = vmul.f32 %v17903_v61, %v17903_v61  ;;  %8428 = vst.msk [vmem:[%s12423_s27 + $0x58] sm:$0xff] %vm410_vm0, %v8236_v13  ;;  %v4650_v63 = vmax.f32 %v17906_v51, 0.0  ;;  %v13170_v61 = vmul.f32 0.020408163, %v17908_v5  ;;  %v13174_v59 = vpop.f32.mrb[89].mxu1  ;;  %v17910_v44 = vsub.f32 %v12825_v58, %v17836_v20  ;;  %10002 = vmatmul.mubr.msk.f32.gmra.mrb[134].mxu1 %vm410_vm0, %v2151_v43 }
 0x1d1   : > { %17905 = vst [vmem:[#allocation29_spill] sm:$0xff] %v13155_v30  ;;  %17907 = vst [vmem:[#allocation69_spill] sm:$0xff] %v13167_v18  ;;  %v13177_v13 = vld [vmem:[%s10740_s18 + $0x4f0] sm:$0xff]  ;;  %v13179_v56 = vpop.permute.xlu1 %6190  ;;  %v8237_v36 = vadd.f32 %v7328_v7, %v7085_v4  ;;  %v13186_v14 = vmul.f32 %v13150_v39, %v13150_v39  ;;  %v13190_v11 = vmul.f32 %v13155_v30, %v13155_v30  ;;  %v13195_v41 = vld [vmem:[%s10740_s18 + $0x4f8] sm:$0xff]  ;;  %v4841_v4 = vadd.f32 1e-05, %v4649_v9  ;;  %v13227_v53 = vpop.permute.xlu0 %6195 }
 0x1d2   : > { %17909 = vst [vmem:[#allocation70_spill] sm:$0xff] %v13177_v13  ;;  %7487 = vperm.xlu0 %10111, %v17910_v44   ;;  %9735 = vmatprep.mubr.msk.f32.mxu0 %vm410_vm0, %v13177_v13  ;;  %17911 = vst [vmem:[#allocation16_spill] sm:$0xff] %v13195_v41  ;;  %v17912_v51 = vld [vmem:[#allocation18_spill] sm:$0xff]  ;;  %v5220_v58 = vld [vmem:[%s11072_s21 + $0x218] sm:$0xff]  ;;  %v2153_v20 = vmul.f32 %v12518_v22, %v12518_v22  ;;  %v13203_v7 = vmul.f32 0.020408163, %v12560_v8  ;;  %10255 = vrsqrt.f32 %v4840_v33 }
 0x1d3   : > { %6350 = vperm.xlu1 %10112, %v17912_v51   ;;  %v17913_v5 = vld [vmem:[#allocation67_spill] sm:$0xff]  ;;  %8429 = vst.msk [vmem:[%s12423_s27 + $0x60] sm:$0xff] %vm410_vm0, %v8237_v36  ;;  %v17915_v23 = vld [vmem:[#allocation33_spill] sm:$0xff]  ;;  %v17916_v51 = vld [vmem:[#allocation68_spill] sm:$0xff]  ;;  %10004 = vmatprep.mubr.msk.f32.mxu1 %vm410_vm0, %v2152_v55  ;;  %v13220_v39 = vpop.f32.mrb[90].mxu0  ;;  %v13239_v33 = vmul.f32 %v10248_v0, %v5220_v58  ;;  %10257 = vrsqrt.f32 %v4841_v4  ;;  %v2156_v4 = vmul.f32 %v12616_v16, %v12616_v16 }
 0x1d4   : > { %v13207_v44 = vmul.f32 %v13120_v32, %v17913_v5  ;;  %v17917_v22 = vld [vmem:[#allocation72_spill] sm:$0xff]  ;;  %v13223_v5 = vld [vmem:[%s10740_s18 + $0x500] sm:$0xff]  ;;  %v10516_v36 = vld [vmem:[%s10740_s18 + $0x68] sm:$0xff]  ;;  %v4842_v9 = vadd.f32 1e-05, %v4650_v63  ;;  %9736 = vmatmul.mubr.msk.f32.gmra.mrb[158].mxu0 %vm410_vm0, %v13195_v41  ;;  %v13233_v55 = vpop.f32.mrb[91].mxu0  ;;  %10005 = vmatmul.mubr.msk.f32.gmra.mrb[136].mxu1 %vm410_vm0, %v2153_v20 }
 0x1d5   : > { %v2154_v8 = vmul.f32 %v17917_v22, %v17917_v22  ;;  %17918 = vst [vmem:[#allocation18_spill] sm:$0xff] %v13223_v5  ;;  %17919 = vst [vmem:[#allocation67_spill] sm:$0xff] %v13233_v55  ;;  %v10250_v22 = vpop.eup %10249  ;;  %v7333_v32 = vpop.permute.xlu1 %7332  ;;  %v17920_v30 = vld [vmem:[#allocation59_spill] sm:$0xff]  ;;  %v5221_v63 = vld [vmem:[%s11072_s21 + $0x220] sm:$0xff]  ;;  %9738 = vmatprep.mubr.msk.f32.mxu0 %vm410_vm0, %v13223_v5 }
 0x1d6   : > { %17914 = vst [vmem:[#allocation40_spill] sm:$0xff] %v13207_v44  ;;  %v7086_v44 = vmul.f32 %v10516_v36, %v13059_v19  ;;  %6355 = vperm.xlu0 %10111, %v17920_v30   ;;  %v17921_v19 = vsub.f32 %v12991_v26, %v12988_v62  ;;  %17922 = vst [vmem:[#allocation33_spill] sm:$0xff] %v13239_v33  ;;  %v17923_v13 = vld [vmem:[#allocation6_spill] sm:$0xff]  ;;  %v17925_v31 = vld [vmem:[#allocation44_spill] sm:$0xff]  ;;  %v13254_v30 = vpop.f32.mrb[90].mxu1  ;;  %v17928_v26 = vsub.f32 %v12828_v25, %v17841_v38  ;;  %v7338_v20 = vpop.permute.xlu0 %7337 }
 0x1d7   : > { %v13244_v43 = vmul.f32 %v13167_v18, %v17923_v13  ;;  %v13247_v41 = vmul.f32 0.020408163, %v17925_v31  ;;  %v13252_v55 = vld [vmem:[%s10740_s18 + $0x508] sm:$0xff]  ;;  %v13260_v0 = vld [vmem:[%s11104_s24 + $0x1a0] sm:$0xff]  ;;  %v17929_v31 = vld [vmem:[#allocation73_spill] sm:$0xff]  ;;  %10007 = vmatprep.mubr.msk.f32.mxu1 %vm410_vm0, %v2154_v8  ;;  %10259 = vrsqrt.f32 %v4842_v9 }
 0x1d8   : > { %v4651_v36 = vmax.f32 %v17921_v19, 0.0  ;;  %17927 = vst [vmem:[#allocation59_spill] sm:$0xff] %v13252_v55  ;;  %v8238_v62 = vadd.f32 %v7333_v32, %v7086_v44  ;;  %7492 = vperm.xlu1 %10112, %v17928_v26   ;;  %v2155_v13 = vmul.f32 %v17929_v31, %v17929_v31  ;;  %v17930_v58 = vld [vmem:[#allocation19_spill] sm:$0xff]  ;;  %v10517_v18 = vld [vmem:[%s10740_s18 + $0x70] sm:$0xff]  ;;  %v17932_v32 = vsub.f32 %v12971_v50, %v12966_v40  ;;  %v17937_v31 = vld [vmem:[#allocation41_spill] sm:$0xff] }
 0x1d9   : > { %17924 = vst [vmem:[#allocation68_spill] sm:$0xff] %v13244_v43  ;;  %17926 = vst [vmem:[#allocation72_spill] sm:$0xff] %v13247_v41  ;;  %v13266_v19 = vmul.f32 0.020408163, %v17930_v58  ;;  %v10252_v43 = vpop.eup %10251  ;;  %v7087_v5 = vmul.f32 %v10517_v18, %v13106_v42  ;;  %v13276_v38 = vmul.f32 %v13247_v41, %v13247_v41  ;;  %v13282_v44 = vmul.f32 %v10250_v22, %v5221_v63  ;;  %v17934_v42 = vld [vmem:[#allocation75_spill] sm:$0xff]  ;;  %v13296_v16 = vpop.permute.xlu1 %6200 }
 0x1da   : > { %v4652_v25 = vmax.f32 %v17932_v32, 0.0  ;;  %8430 = vst.msk [vmem:[%s12423_s27 + $0x68] sm:$0xff] %vm410_vm0, %v8238_v62  ;;  %v13289_v50 = vmul.f32 0.020408163, %v12631_v34  ;;  %v13292_v18 = vmul.f32 0.020408163, %v17934_v42  ;;  %9739 = vmatmul.mubr.msk.f32.gmra.mrb[160].mxu0 %vm410_vm0, %v13252_v55  ;;  %v17935_v22 = vsub.f32 %v12878_v15, %v12280_v47  ;;  %10008 = vmatmul.mubr.msk.f32.gmra.mrb[138].mxu1 %vm410_vm0, %v2155_v13 }
 0x1db   : > { %17931 = vst [vmem:[#allocation6_spill] sm:$0xff] %v13266_v19  ;;  %17933 = vst [vmem:[#allocation44_spill] sm:$0xff] %v13282_v44  ;;  %v13286_v40 = vmul.f32 %v13266_v19, %v13266_v19  ;;  %v8239_v8 = vadd.f32 %v7338_v20, %v7087_v5  ;;  %v17936_v63 = vld [vmem:[#allocation15_spill] sm:$0xff]  ;;  %v4843_v62 = vadd.f32 1e-05, %v4651_v36  ;;  %v13306_v58 = vmul.f32 %v13239_v33, %v17937_v31  ;;  %v13308_v32 = vpop.f32.mrb[91].mxu1  ;;  %v10254_v5 = vpop.eup %10253 }
 0x1dc   : > { %7497 = vperm.xlu0 %10111, %v17935_v22   ;;  %v5222_v26 = vld [vmem:[%s11072_s21 + $0x228] sm:$0xff]  ;;  %v13311_v42 = vld [vmem:[%s10740_s18 + $0x510] sm:$0xff]  ;;  %v17941_v47 = vld [vmem:[#allocation45_spill] sm:$0xff]  ;;  %v17943_v13 = vsub.f32 %v13094_v60, %v13090_v2  ;;  %10010 = vmatprep.mubr.msk.f32.mxu1 %vm410_vm0, %v2156_v4  ;;  %v13333_v22 = vpop.f32.mrb[92].mxu0 }
 0x1dd   : > { %17938 = vst [vmem:[#allocation73_spill] sm:$0xff] %v13306_v58  ;;  %17939 = vst [vmem:[#allocation19_spill] sm:$0xff] %v13311_v42  ;;  %v17940_v20 = vld [vmem:[#allocation60_spill] sm:$0xff]  ;;  %v2157_v15 = vmul.f32 %v17941_v47, %v17941_v47  ;;  %v13323_v34 = vld [vmem:[%s10740_s18 + $0x518] sm:$0xff]  ;;  %v13339_v9 = vmul.f32 %v10252_v43, %v5222_v26  ;;  %9741 = vmatprep.mubr.msk.f32.mxu0 %vm410_vm0, %v13311_v42  ;;  %10261 = vrsqrt.f32 %v4843_v62  ;;  %v13371_v42 = vpop.f32.mrb[92].mxu1 }
 0x1de   : > { %6360 = vperm.xlu1 %10112, %v17940_v20   ;;  %v5223_v31 = vld [vmem:[%s11072_s21 + $0x230] sm:$0xff]  ;;  %17942 = vst [vmem:[#allocation75_spill] sm:$0xff] %v13323_v34  ;;  %8431 = vst.msk [vmem:[%s12423_s27 + $0x70] sm:$0xff] %vm410_vm0, %v8239_v8  ;;  %v4844_v20 = vadd.f32 1e-05, %v4652_v25  ;;  %v4653_v58 = vmax.f32 %v17943_v13, 0.0  ;;  %v13337_v8 = vpop.permute.xlu0 %6205  ;;  %9742 = vmatmul.mubr.msk.f32.gmra.mrb[162].mxu0 %vm410_vm0, %v13323_v34  ;;  %v17957_v62 = vsub.f32 %v13084_v54, %v13048_v27 }
 0x1df   : > { %v17944_v47 = vld [vmem:[#allocation76_spill] sm:$0xff]  ;;  %v10518_v33 = vld [vmem:[%s10740_s18 + $0x78] sm:$0xff]  ;;  %17945 = vst [vmem:[#allocation15_spill] sm:$0xff] %v13339_v9  ;;  %v17946_v25 = vld [vmem:[#allocation74_spill] sm:$0xff]  ;;  %10011 = vmatmul.mubr.msk.f32.gmra.mrb[140].mxu1 %vm410_vm0, %v2157_v15  ;;  %v2160_v34 = vmul.f32 %v12728_v12, %v12728_v12  ;;  %v13400_v27 = vmul.f32 0.020408163, %v12775_v52 }
 0x1e0   : > { %v2158_v36 = vmul.f32 %v17944_v47, %v17944_v47  ;;  %v7088_v41 = vmul.f32 %v10518_v33, %v13179_v56  ;;  %v13343_v2 = vmul.f32 %v13282_v44, %v17946_v25  ;;  %v17948_v60 = vld [vmem:[#allocation47_spill] sm:$0xff]  ;;  %v13351_v13 = vld [vmem:[%s10740_s18 + $0x520] sm:$0xff]  ;;  %v13353_v47 = vpop.f32.mrb[93].mxu0  ;;  %v7343_v33 = vpop.permute.xlu1 %7342  ;;  %v17951_v43 = vld [vmem:[#allocation36_spill] sm:$0xff]  ;;  %v13403_v12 = vmul.f32 0.020408163, %v12803_v49 }
 0x1e1   : > { %v13346_v4 = vmul.f32 0.020408163, %v17948_v60  ;;  %17950 = vst [vmem:[#allocation45_spill] sm:$0xff] %v13351_v13  ;;  %v10519_v19 = vld [vmem:[%s10740_s18 + $0x80] sm:$0xff]  ;;  %6365 = vperm.xlu0 %10111, %v17951_v43   ;;  %v13359_v26 = vld [vmem:[%s11104_s24 + $0x1a8] sm:$0xff]  ;;  %v13362_v25 = vld [vmem:[%s11104_s24 + $0x1b0] sm:$0xff]  ;;  %v13364_v60 = vmul.f32 %v10254_v5, %v5223_v31  ;;  %v17956_v43 = vsub.f32 %v12907_v45, %v17852_v10  ;;  %9744 = vmatprep.mubr.msk.f32.mxu0 %vm410_vm0, %v13351_v13  ;;  %10263 = vrsqrt.f32 %v4844_v20 }
 0x1e2   : > { %17947 = vst [vmem:[#allocation41_spill] sm:$0xff] %v13343_v2  ;;  %v7089_v56 = vmul.f32 %v10519_v19, %v13227_v53  ;;  %v17953_v2 = vld [vmem:[#allocation77_spill] sm:$0xff]  ;;  %17955 = vst [vmem:[#allocation47_spill] sm:$0xff] %v13371_v42  ;;  %v10256_v53 = vpop.eup %10255  ;;  %v8240_v19 = vadd.f32 %v7343_v33, %v7088_v41  ;;  %v4654_v5 = vmax.f32 %v17957_v62, 0.0  ;;  %v17958_v31 = vld [vmem:[#allocation7_spill] sm:$0xff]  ;;  %10013 = vmatprep.mubr.msk.f32.mxu1 %vm410_vm0, %v2158_v36  ;;  %v7348_v15 = vpop.permute.xlu0 %7347 }
 0x1e3   : > { %17949 = vst [vmem:[#allocation60_spill] sm:$0xff] %v13346_v4  ;;  %17952 = vst [vmem:[#allocation76_spill] sm:$0xff] %v13364_v60  ;;  %v13367_v44 = vmul.f32 0.020408163, %v17953_v2  ;;  %7502 = vperm.xlu1 %10112, %v17956_v43   ;;  %v2159_v2 = vmul.f32 %v17958_v31, %v17958_v31  ;;  %v13385_v55 = vld [vmem:[%s10740_s18 + $0x528] sm:$0xff]  ;;  %v13388_v41 = vld [vmem:[%s11104_s24 + $0x1b8] sm:$0xff]  ;;  %v13393_v45 = vmul.f32 %v13346_v4, %v13346_v4  ;;  %v10258_v54 = vpop.eup %10257 }
 0x1e4   : > { %17959 = vst [vmem:[#allocation36_spill] sm:$0xff] %v13385_v55  ;;  %8432 = vst.msk [vmem:[%s12423_s27 + $0x78] sm:$0xff] %vm410_vm0, %v8240_v19  ;;  %v17960_v36 = vld [vmem:[#allocation5_spill] sm:$0xff]  ;;  %v17961_v43 = vld [vmem:[#allocation3_spill] sm:$0xff]  ;;  %v4845_v31 = vadd.f32 1e-05, %v4653_v58  ;;  %v13423_v19 = vpop.permute.xlu1 %6210  ;;  %v8241_v42 = vadd.f32 %v7348_v15, %v7089_v56  ;;  %v17965_v33 = vsub.f32 %v12951_v1, %v17866_v28  ;;  %v17966_v58 = vsub.f32 %v13203_v7, %v13190_v11 }
 0x1e5   : > { %17954 = vst [vmem:[#allocation74_spill] sm:$0xff] %v13367_v44  ;;  %v13397_v10 = vmul.f32 %v13367_v44, %v13367_v44  ;;  %v5224_v4 = vld [vmem:[%s11072_s21 + $0x238] sm:$0xff]  ;;  %v17962_v52 = vld [vmem:[#allocation46_spill] sm:$0xff]  ;;  %v13418_v44 = vpop.f32.mrb[93].mxu1  ;;  %v13421_v13 = vld [vmem:[%s10740_s18 + $0x530] sm:$0xff]  ;;  %9745 = vmatmul.mubr.msk.f32.gmra.mrb[164].mxu0 %vm410_vm0, %v13385_v55  ;;  %10014 = vmatmul.mubr.msk.f32.gmra.mrb[142].mxu1 %vm410_vm0, %v2159_v2  ;;  %v2161_v28 = vmul.f32 %v12750_v6, %v12750_v6 }
 0x1e6   : > { %v13416_v49 = vmul.f32 %v13339_v9, %v17962_v52  ;;  %17964 = vst [vmem:[#allocation7_spill] sm:$0xff] %v13421_v13  ;;  %7507 = vperm.xlu0 %10111, %v17965_v33   ;;  %v4655_v62 = vmax.f32 %v17966_v58, 0.0  ;;  %v17967_v9 = vld [vmem:[#allocation30_spill] sm:$0xff]  ;;  %v17968_v56 = vld [vmem:[#allocation23_spill] sm:$0xff]  ;;  %v13445_v7 = vmul.f32 0.020408163, %v12869_v24  ;;  %v13452_v33 = vmul.f32 %v10256_v53, %v5224_v4  ;;  %10016 = vmatprep.mubr.msk.f32.mxu1 %vm410_vm0, %v2160_v34  ;;  %v13467_v53 = vpop.permute.xlu0 %6215 }
 0x1e7   : > { %6370 = vperm.xlu1 %10112, %v17967_v9   ;;  %v5225_v11 = vld [vmem:[%s11072_s21 + $0x240] sm:$0xff]  ;;  %v13448_v15 = vld [vmem:[%s10740_s18 + $0x538] sm:$0xff]  ;;  %8433 = vst.msk [vmem:[%s12423_s27 + $0x80] sm:$0xff] %vm410_vm0, %v8241_v42  ;;  %v4846_v9 = vadd.f32 1e-05, %v4654_v5  ;;  %v17972_v20 = vld [vmem:[#allocation28_spill] sm:$0xff]  ;;  %9747 = vmatprep.mubr.msk.f32.mxu0 %vm410_vm0, %v13421_v13  ;;  %10265 = vrsqrt.f32 %v4845_v31 }
 0x1e8   : > { %17963 = vst [vmem:[#allocation77_spill] sm:$0xff] %v13416_v49  ;;  %17969 = vst [vmem:[#allocation5_spill] sm:$0xff] %v13445_v7  ;;  %v2162_v2 = vmul.f32 %v17972_v20, %v17972_v20  ;;  %v17973_v58 = vld [vmem:[#allocation20_spill] sm:$0xff]  ;;  %v13463_v24 = vpop.f32.mrb[94].mxu0  ;;  %v10520_v42 = vld [vmem:[%s10740_s18 + $0x88] sm:$0xff]  ;;  %v13471_v34 = vmul.f32 %v13445_v7, %v13445_v7  ;;  %v10260_v49 = vpop.eup %10259  ;;  %v13491_v7 = vmul.f32 %v10258_v54, %v5225_v11 }
 0x1e9   : > { %17970 = vst [vmem:[#allocation3_spill] sm:$0xff] %v13448_v15  ;;  %17971 = vst [vmem:[#allocation46_spill] sm:$0xff] %v13452_v33  ;;  %v13459_v6 = vmul.f32 %v13364_v60, %v17973_v58  ;;  %v7090_v4 = vmul.f32 %v10520_v42, %v13296_v16  ;;  %v17976_v5 = vld [vmem:[#allocation50_spill] sm:$0xff]  ;;  %v13479_v1 = vpop.f32.mrb[95].mxu0  ;;  %v7353_v52 = vpop.permute.xlu1 %7352  ;;  %v13486_v31 = vld [vmem:[%s11104_s24 + $0x1c8] sm:$0xff]  ;;  %v17981_v42 = vsub.f32 %v13170_v61, %v13186_v14  ;;  %9748 = vmatmul.mubr.msk.f32.gmra.mrb[166].mxu0 %vm410_vm0, %v13448_v15 }
 0x1ea   : > { %17975 = vst [vmem:[#allocation23_spill] sm:$0xff] %v13463_v24  ;;  %v13474_v20 = vmul.f32 0.020408163, %v17976_v5  ;;  %v13477_v58 = vld [vmem:[%s10740_s18 + $0x540] sm:$0xff]  ;;  %17979 = vst [vmem:[#allocation50_spill] sm:$0xff] %v13479_v1  ;;  %v17983_v13 = vld [vmem:[#allocation9_spill] sm:$0xff]  ;;  %v17984_v24 = vsub.f32 %v13028_v48, %v17888_v46  ;;  %10017 = vmatmul.mubr.msk.f32.gmra.mrb[144].mxu1 %vm410_vm0, %v2161_v28  ;;  %v10262_v11 = vpop.eup %10261  ;;  %v17986_v48 = vsub.f32 %v13292_v18, %v13286_v40  ;;  %10267 = vrsqrt.f32 %v4846_v9 }
 0x1eb   : > { %17974 = vst [vmem:[#allocation30_spill] sm:$0xff] %v13459_v6  ;;  %17978 = vst [vmem:[#allocation20_spill] sm:$0xff] %v13477_v58  ;;  %v17980_v6 = vld [vmem:[#allocation42_spill] sm:$0xff]  ;;  %v4656_v60 = vmax.f32 %v17981_v42, 0.0  ;;  %v4847_v5 = vadd.f32 1e-05, %v4655_v62  ;;  %v2163_v55 = vmul.f32 %v17983_v13, %v17983_v13  ;;  %10019 = vmatprep.mubr.msk.f32.mxu1 %vm410_vm0, %v2162_v2  ;;  %9750 = vmatprep.mubr.msk.f32.mxu0 %vm410_vm0, %v13477_v58 }
 0x1ec   : > { %17977 = vst [vmem:[#allocation28_spill] sm:$0xff] %v13474_v20  ;;  %6375 = vperm.xlu0 %10111, %v17980_v6   ;;  %v13483_v16 = vld [vmem:[%s11104_s24 + $0x1c0] sm:$0xff]  ;;  %17982 = vst [vmem:[#allocation42_spill] sm:$0xff] %v13491_v7  ;;  %v13497_v1 = vpop.f32.mrb[94].mxu1  ;;  %v8242_v6 = vadd.f32 %v7353_v52, %v7090_v4  ;;  %7512 = vperm.xlu1 %10112, %v17984_v24   ;;  %v5226_v61 = vld [vmem:[%s11072_s21 + $0x248] sm:$0xff]  ;;  %v13506_v14 = vmul.f32 %v13474_v20, %v13474_v20  ;;  %v4657_v46 = vmax.f32 %v17986_v48, 0.0 }
 0x1ed   : > { %v13509_v13 = vmul.f32 0.020408163, %v12902_v29  ;;  %v17985_v54 = vld [vmem:[#allocation79_spill] sm:$0xff]  ;;  %v10521_v52 = vld [vmem:[%s10740_s18 + $0x90] sm:$0xff]  ;;  %v17987_v28 = vld [vmem:[#allocation78_spill] sm:$0xff]  ;;  %v17993_v40 = vsub.f32 %v13146_v37, %v17915_v23  ;;  %v13548_v2 = vmul.f32 %v10260_v49, %v5226_v61  ;;  %10269 = vrsqrt.f32 %v4847_v5 }
 0x1ee   : > { %v13512_v62 = vmul.f32 0.020408163, %v17985_v54  ;;  %v7091_v4 = vmul.f32 %v10521_v52, %v13337_v8  ;;  %v2164_v24 = vmul.f32 %v17987_v28, %v17987_v28  ;;  %v17988_v42 = vld [vmem:[#allocation21_spill] sm:$0xff]  ;;  %8434 = vst.msk [vmem:[%s12423_s27 + $0x88] sm:$0xff] %vm410_vm0, %v8242_v6  ;;  %v7358_v8 = vpop.permute.xlu0 %7357  ;;  %v17990_v54 = vld [vmem:[#allocation22_spill] sm:$0xff]  ;;  %v13539_v28 = vld [vmem:[%s10740_s18 + $0x548] sm:$0xff]  ;;  %10020 = vmatmul.mubr.msk.f32.gmra.mrb[146].mxu1 %vm410_vm0, %v2163_v55  ;;  %v18002_v61 = vsub.f32 %v13289_v50, %v13276_v38 }
 0x1ef   : > { %v13524_v29 = vmul.f32 %v13452_v33, %v17988_v42  ;;  %v17991_v18 = vld [vmem:[#allocation13_spill] sm:$0xff]  ;;  %17992 = vst [vmem:[#allocation79_spill] sm:$0xff] %v13539_v28  ;;  %v13541_v42 = vpop.f32.mrb[95].mxu1  ;;  %17994 = vst [vmem:[#allocation78_spill] sm:$0xff] %v13548_v2  ;;  %v5227_v33 = vld [vmem:[%s11072_s21 + $0x250] sm:$0xff]  ;;  %9751 = vmatmul.mubr.msk.f32.gmra.mrb[168].mxu0 %vm410_vm0, %v13539_v28 }
 0x1f0   : > { %v8243_v6 = vadd.f32 %v7358_v8, %v7091_v4  ;;  %7517 = vperm.xlu0 %10111, %v17993_v40   ;;  %v17995_v52 = vld [vmem:[#allocation56_spill] sm:$0xff]  ;;  %v17998_v58 = vld [vmem:[#allocation11_spill] sm:$0xff]  ;;  %v4848_v15 = vadd.f32 1e-05, %v4656_v60  ;;  %v17999_v23 = vld [vmem:[#allocation14_spill] sm:$0xff]  ;;  %v4658_v4 = vmax.f32 %v18002_v61, 0.0  ;;  %10022 = vmatprep.mubr.msk.f32.mxu1 %vm410_vm0, %v2164_v24  ;;  %v13587_v24 = vmul.f32 %v10262_v11, %v5227_v33 }
 0x1f1   : > { %17989 = vst [vmem:[#allocation9_spill] sm:$0xff] %v13524_v29  ;;  %v13543_v29 = vpop.permute.xlu1 %6220  ;;  %v13553_v20 = vmul.f32 %v13491_v7, %v17995_v52  ;;  %v13556_v48 = vld [vmem:[%s10740_s18 + $0x550] sm:$0xff]  ;;  %6380 = vperm.xlu1 %10112, %v17998_v58   ;;  %v2165_v37 = vmul.f32 %v17999_v23, %v17999_v23  ;;  %v18000_v49 = vld [vmem:[#allocation31_spill] sm:$0xff]  ;;  %v4849_v8 = vadd.f32 1e-05, %v4657_v46  ;;  %v18004_v55 = vld [vmem:[#allocation2_spill] sm:$0xff]  ;;  %v10264_v52 = vpop.eup %10263  ;;  %v18009_v33 = vsub.f32 %v13400_v27, %v13393_v45 }
 0x1f2   : > { %17997 = vst [vmem:[#allocation22_spill] sm:$0xff] %v13556_v48  ;;  %v13563_v9 = vmul.f32 0.020408163, %v18000_v49  ;;  %8435 = vst.msk [vmem:[%s12423_s27 + $0x90] sm:$0xff] %vm410_vm0, %v8243_v6  ;;  %v18003_v60 = vld [vmem:[#allocation80_spill] sm:$0xff]  ;;  %v13578_v40 = vpop.f32.mrb[96].mxu0  ;;  %v13582_v50 = vpop.permute.xlu0 %6225  ;;  %9753 = vmatprep.mubr.msk.f32.mxu0 %vm410_vm0, %v13556_v48  ;;  %v18014_v27 = vsub.f32 %v13162_v3, %v17916_v51  ;;  %10271 = vrsqrt.f32 %v4848_v15 }
 0x1f3   : > { %17996 = vst [vmem:[#allocation21_spill] sm:$0xff] %v13553_v20  ;;  %v2166_v58 = vmul.f32 %v18003_v60, %v18003_v60  ;;  %v13574_v5 = vmul.f32 0.020408163, %v18004_v55  ;;  %18005 = vst [vmem:[#allocation56_spill] sm:$0xff] %v13578_v40  ;;  %v10522_v6 = vld [vmem:[%s10740_s18 + $0x98] sm:$0xff]  ;;  %v13585_v46 = vld [vmem:[%s11104_s24 + $0x1d0] sm:$0xff]  ;;  %v10266_v28 = vpop.eup %10265  ;;  %10023 = vmatmul.mubr.msk.f32.gmra.mrb[148].mxu1 %vm410_vm0, %v2165_v37  ;;  %10273 = vrsqrt.f32 %v4849_v8 }
 0x1f4   : > { %18001 = vst [vmem:[#allocation13_spill] sm:$0xff] %v13563_v9  ;;  %v7092_v38 = vmul.f32 %v10522_v6, %v13423_v19  ;;  %18006 = vst [vmem:[#allocation11_spill] sm:$0xff] %v13587_v24  ;;  %v13591_v23 = vmul.f32 %v13563_v9, %v13563_v9  ;;  %v18007_v49 = vld [vmem:[#allocation53_spill] sm:$0xff]  ;;  %v18008_v19 = vld [vmem:[#allocation71_spill] sm:$0xff]  ;;  %v4660_v11 = vmax.f32 %v18009_v33, 0.0  ;;  %v18015_v33 = vsub.f32 %v13403_v12, %v13397_v10 }
 0x1f5   : > { %v13594_v61 = vmul.f32 0.020408163, %v18007_v49  ;;  %v13599_v60 = vld [vmem:[%s10740_s18 + $0x558] sm:$0xff]  ;;  %v7363_v55 = vpop.permute.xlu1 %7362  ;;  %6385 = vperm.xlu0 %10111, %v18008_v19   ;;  %v13608_v20 = vmul.f32 %v13574_v5, %v13574_v5  ;;  %v18011_v7 = vld [vmem:[#allocation48_spill] sm:$0xff]  ;;  %v13618_v48 = vld [vmem:[%s10740_s18 + $0x560] sm:$0xff]  ;;  %v13620_v19 = vpop.f32.mrb[97].mxu0  ;;  %7522 = vperm.xlu1 %10112, %v18014_v27  }
 0x1f6   : > { %v5228_v6 = vld [vmem:[%s11072_s21 + $0x258] sm:$0xff]  ;;  %v13615_v9 = vmul.f32 %v13548_v2, %v18011_v7  ;;  %18013 = vst [vmem:[#allocation31_spill] sm:$0xff] %v13620_v19  ;;  %v8244_v45 = vadd.f32 %v7363_v55, %v7092_v38  ;;  %v10523_v19 = vld [vmem:[%s10740_s18 + $0xa0] sm:$0xff]  ;;  %10025 = vmatprep.mubr.msk.f32.mxu1 %vm410_vm0, %v2166_v58  ;;  %9754 = vmatmul.mubr.msk.f32.gmra.mrb[170].mxu0 %vm410_vm0, %v13599_v60  ;;  %v7368_v12 = vpop.permute.xlu0 %7367  ;;  %v18018_v37 = vld [vmem:[#allocation52_spill] sm:$0xff]  ;;  %v4850_v15 = vadd.f32 1e-05, %v4658_v4  ;;  %v10268_v4 = vpop.eup %10267 }
 0x1f7   : > { %v18010_v49 = vld [vmem:[#allocation65_spill] sm:$0xff]  ;;  %v7093_v38 = vmul.f32 %v10523_v19, %v13467_v53  ;;  %v13649_v58 = vmul.f32 %v10264_v52, %v5228_v6  ;;  %v18020_v19 = vld [vmem:[#allocation51_spill] sm:$0xff]  ;;  %9756 = vmatprep.mubr.msk.f32.mxu0 %vm410_vm0, %v13618_v48  ;;  %v5229_v52 = vld [vmem:[%s11072_s21 + $0x260] sm:$0xff]  ;;  %v13667_v6 = vmul.f32 0.020408163, %v13102_v35 }
 0x1f8   : > { %v13611_v40 = vmul.f32 0.020408163, %v18010_v49  ;;  %18012 = vst [vmem:[#allocation14_spill] sm:$0xff] %v13615_v9  ;;  %v4659_v49 = vmax.f32 %v18015_v33, 0.0  ;;  %v18016_v7 = vld [vmem:[#allocation81_spill] sm:$0xff]  ;;  %8436 = vst.msk [vmem:[%s12423_s27 + $0x98] sm:$0xff] %vm410_vm0, %v8244_v45  ;;  %v13653_v27 = vmul.f32 %v13587_v24, %v18020_v19  ;;  %10275 = vrsqrt.f32 %v4850_v15 }
 0x1f9   : > { %v2167_v9 = vmul.f32 %v18016_v7, %v18016_v7  ;;  %v18017_v3 = vld [vmem:[#allocation61_spill] sm:$0xff]  ;;  %18019 = vst [vmem:[#allocation80_spill] sm:$0xff] %v13649_v58  ;;  %v13658_v33 = vld [vmem:[%s10740_s18 + $0x568] sm:$0xff]  ;;  %v13660_v45 = vpop.permute.xlu1 %6230  ;;  %v8245_v7 = vadd.f32 %v7368_v12, %v7093_v38  ;;  %18023 = vst [vmem:[#allocation53_spill] sm:$0xff] %v13667_v6  ;;  %v4852_v10 = vadd.f32 1e-05, %v4660_v11 }
 0x1fa   : > { %v2168_v51 = vmul.f32 %v18017_v3, %v18017_v3  ;;  %v13647_v53 = vld [vmem:[%s11104_s24 + $0x1d8] sm:$0xff]  ;;  %18021 = vst [vmem:[#allocation2_spill] sm:$0xff] %v13653_v27  ;;  %v18022_v3 = vsub.f32 %v13260_v0, %v17936_v63  ;;  %v13670_v19 = vld [vmem:[%s10740_s18 + $0x570] sm:$0xff]  ;;  %v4851_v2 = vadd.f32 1e-05, %v4659_v49  ;;  %v10524_v8 = vld [vmem:[%s10740_s18 + $0xa8] sm:$0xff]  ;;  %9757 = vmatmul.mubr.msk.f32.gmra.mrb[172].mxu0 %vm410_vm0, %v13658_v33 }
 0x1fb   : > { %v18024_v55 = vld [vmem:[#allocation4_spill] sm:$0xff]  ;;  %10026 = vmatmul.mubr.msk.f32.gmra.mrb[150].mxu1 %vm410_vm0, %v2167_v9  ;;  %v13677_v63 = vmul.f32 0.020408163, %v13117_v17  ;;  %v7094_v35 = vmul.f32 %v10524_v8, %v13543_v29  ;;  %8437 = vst.msk [vmem:[%s12423_s27 + $0xa0] sm:$0xff] %vm410_vm0, %v8245_v7  ;;  %v18026_v11 = vld [vmem:[#allocation10_spill] sm:$0xff]  ;;  %v13688_v9 = vmul.f32 %v13667_v6, %v13667_v6  ;;  %v13695_v17 = vpop.f32.mrb[98].mxu0  ;;  %v10270_v29 = vpop.eup %10269  ;;  %9759 = vmatprep.mubr.msk.f32.mxu0 %vm410_vm0, %v13670_v19  ;;  %10277 = vrsqrt.f32 %v4852_v10 }
 0x1fc   : > { %7527 = vperm.xlu0 %10111, %v18022_v3   ;;  %6390 = vperm.xlu1 %10112, %v18024_v55   ;;  %v18025_v38 = vld [vmem:[#allocation64_spill] sm:$0xff]  ;;  %v2170_v49 = vmul.f32 %v18026_v11, %v18026_v11  ;;  %v13691_v12 = vmul.f32 0.020408163, %v13128_v57  ;;  %18027 = vst [vmem:[#allocation71_spill] sm:$0xff] %v13695_v17  ;;  %v13697_v55 = vpop.permute.xlu0 %6235  ;;  %v5230_v7 = vld [vmem:[%s11072_s21 + $0x268] sm:$0xff]  ;;  %v18028_v57 = vld [vmem:[#allocation17_spill] sm:$0xff]  ;;  %10279 = vrsqrt.f32 %v4851_v2 }
 0x1fd   : > { %v2169_v0 = vmul.f32 %v18025_v38, %v18025_v38  ;;  %10028 = vmatprep.mubr.msk.f32.mxu1 %vm410_vm0, %v2168_v51  ;;  %v13699_v51 = vmul.f32 %v10266_v28, %v5229_v52  ;;  %v13704_v3 = vmul.f32 %v13677_v63, %v13677_v63  ;;  %v4089_v38 = vmul.f32 0.020408163, %v13174_v59  ;;  %v13714_v11 = vld [vmem:[%s10740_s18 + $0x578] sm:$0xff]  ;;  %v13716_v27 = vpop.f32.mrb[99].mxu0  ;;  %v7373_v28 = vpop.permute.xlu1 %7372  ;;  %v18031_v52 = vld [vmem:[#allocation8_spill] sm:$0xff]  ;;  %v18032_v17 = vld [vmem:[#allocation27_spill] sm:$0xff] }
 0x1fe   : > { %v13709_v8 = vmul.f32 %v13649_v58, %v18028_v57  ;;  %18030 = vst [vmem:[#allocation48_spill] sm:$0xff] %v13716_v27  ;;  %v18033_v59 = vsub.f32 %v13509_v13, %v13471_v34  ;;  %v13727_v58 = vld [vmem:[%s10740_s18 + $0x580] sm:$0xff]  ;;  %v8246_v6 = vadd.f32 %v7373_v28, %v7094_v35  ;;  %v18034_v27 = vsub.f32 %v13359_v26, %v17960_v36  ;;  %v5231_v36 = vld [vmem:[%s11072_s21 + $0x270] sm:$0xff] }
 0x1ff   : > { %10029 = vmatmul.mubr.msk.f32.gmra.mrb[152].mxu1 %vm410_vm0, %v2169_v0  ;;  %v4473_v34 = vsub.f32 %v4089_v38, %v13704_v3  ;;  %v13737_v13 = vmul.f32 0.020408163, %v13220_v39  ;;  %v13742_v35 = vmul.f32 %v10268_v4, %v5230_v7  ;;  %v2172_v26 = vmul.f32 %v13115_v21, %v13115_v21  ;;  %9760 = vmatmul.mubr.msk.f32.gmra.mrb[174].mxu0 %vm410_vm0, %v13714_v11  ;;  %v13765_v4 = vld [vmem:[%s10740_s18 + $0x588] sm:$0xff]  ;;  %v13779_v28 = vld [vmem:[%s10740_s18 + $0x590] sm:$0xff] }
 0x200   : > { %18029 = vst [vmem:[#allocation65_spill] sm:$0xff] %v13709_v8  ;;  %6395 = vperm.xlu0 %10111, %v18031_v52   ;;  %v4662_v57 = vmax.f32 %v18033_v59, 0.0  ;;  %7532 = vperm.xlu1 %10112, %v18034_v27   ;;  %v18035_v52 = vld [vmem:[#allocation39_spill] sm:$0xff]  ;;  %v10525_v59 = vld [vmem:[%s10740_s18 + $0xb0] sm:$0xff]  ;;  %8438 = vst.msk [vmem:[%s12423_s27 + $0xa8] sm:$0xff] %vm410_vm0, %v8246_v6  ;;  %v7378_v39 = vpop.permute.xlu0 %7377  ;;  %v18050_v8 = vsub.f32 %v13388_v41, %v17968_v56 }
 0x201   : > { %v2171_v15 = vmul.f32 %v18035_v52, %v18035_v52  ;;  %v7095_v24 = vmul.f32 %v10525_v59, %v13582_v50  ;;  %10031 = vmatprep.mubr.msk.f32.mxu1 %vm410_vm0, %v2170_v49  ;;  %v18036_v50 = vsub.f32 %v13512_v62, %v13506_v14  ;;  %v18037_v27 = vld [vmem:[#allocation34_spill] sm:$0xff]  ;;  %v13760_v21 = vmul.f32 %v13737_v13, %v13737_v13  ;;  %v13767_v6 = vpop.permute.xlu1 %6240  ;;  %v18041_v3 = vld [vmem:[#allocation67_spill] sm:$0xff]  ;;  %v10272_v52 = vpop.eup %10271  ;;  %v18042_v59 = vld [vmem:[#allocation49_spill] sm:$0xff] }
 0x202   : > { %v13756_v0 = vmul.f32 %v13699_v51, %v18037_v27  ;;  %9762 = vmatprep.mubr.msk.f32.mxu0 %vm410_vm0, %v13727_v58  ;;  %v18039_v14 = vsub.f32 %v13362_v25, %v17961_v43  ;;  %v4854_v62 = vadd.f32 1e-05, %v4662_v57  ;;  %v18040_v49 = vsub.f32 %v13594_v61, %v13591_v23  ;;  %v18044_v43 = vld [vmem:[#allocation12_spill] sm:$0xff]  ;;  %v13810_v27 = vpop.f32.mrb[100].mxu0 }
 0x203   : > { %v4661_v10 = vmax.f32 %v18036_v50, 0.0  ;;  %v8247_v2 = vadd.f32 %v7378_v39, %v7095_v24  ;;  %v13776_v38 = vmul.f32 0.020408163, %v18041_v3  ;;  %v18043_v24 = vsub.f32 %v13611_v40, %v13608_v20  ;;  %10032 = vmatmul.mubr.msk.f32.gmra.mrb[154].mxu1 %vm410_vm0, %v2171_v15  ;;  %v10274_v39 = vpop.eup %10273  ;;  %v18045_v50 = vld [vmem:[#allocation70_spill] sm:$0xff]  ;;  %v5232_v40 = vld [vmem:[%s11072_s21 + $0x278] sm:$0xff]  ;;  %9763 = vmatmul.mubr.msk.f32.gmra.mrb[176].mxu0 %vm410_vm0, %v13765_v4 }
 0x204   : > { %18038 = vst [vmem:[#allocation81_spill] sm:$0xff] %v13756_v0  ;;  %7537 = vperm.xlu0 %10111, %v18039_v14   ;;  %v4664_v7 = vmax.f32 %v18040_v49, 0.0  ;;  %6400 = vperm.xlu1 %10112, %v18042_v59   ;;  %v2173_v57 = vmul.f32 %v18044_v43, %v18044_v43  ;;  %v13788_v23 = vmul.f32 %v10270_v29, %v5231_v36  ;;  %v13791_v61 = vmul.f32 0.020408163, %v13254_v30  ;;  %v18046_v36 = vld [vmem:[#allocation63_spill] sm:$0xff]  ;;  %v13814_v14 = vpop.permute.xlu0 %6245  ;;  %v13821_v59 = vld [vmem:[%s10740_s18 + $0x598] sm:$0xff] }
 0x205   : > { %v4663_v25 = vmax.f32 %v18043_v24, 0.0  ;;  %8439 = vst.msk [vmem:[%s12423_s27 + $0xb0] sm:$0xff] %vm410_vm0, %v8247_v2  ;;  %10034 = vmatprep.mubr.msk.f32.mxu1 %vm410_vm0, %v2172_v26  ;;  %v2174_v20 = vmul.f32 %v18045_v50, %v18045_v50  ;;  %v13801_v15 = vmul.f32 %v13776_v38, %v13776_v38  ;;  %v4091_v29 = vmul.f32 0.020408163, %v13308_v32  ;;  %v10526_v26 = vld [vmem:[%s10740_s18 + $0xb8] sm:$0xff]  ;;  %9765 = vmatprep.mubr.msk.f32.mxu0 %vm410_vm0, %v13779_v28  ;;  %v13823_v24 = vpop.f32.mrb[101].mxu0  ;;  %v7383_v43 = vpop.permute.xlu1 %7382 }
 0x206   : > { %v13806_v30 = vmul.f32 %v13742_v35, %v18046_v36  ;;  %v7096_v2 = vmul.f32 %v10526_v26, %v13660_v45  ;;  %v4853_v49 = vadd.f32 1e-05, %v4661_v10  ;;  %v4665_v3 = vmax.f32 %v4473_v34, 0.0  ;;  %v18048_v50 = vld [vmem:[#allocation54_spill] sm:$0xff]  ;;  %v18049_v36 = vld [vmem:[#allocation16_spill] sm:$0xff] }
 0x207   : > { %10281 = vrsqrt.f32 %v4854_v62  ;;  %v4856_v45 = vadd.f32 1e-05, %v4664_v7  ;;  %v2175_v34 = vmul.f32 %v18049_v36, %v18049_v36  ;;  %v4475_v10 = vsub.f32 %v4091_v29, %v13801_v15  ;;  %v13830_v26 = vld [vmem:[%s10740_s18 + $0x5a0] sm:$0xff]  ;;  %10035 = vmatmul.mubr.msk.f32.gmra.mrb[156].mxu1 %vm410_vm0, %v2173_v57  ;;  %v18052_v7 = vld [vmem:[#allocation29_spill] sm:$0xff]  ;;  %v10276_v15 = vpop.eup %10275  ;;  %9766 = vmatmul.mubr.msk.f32.gmra.mrb[178].mxu0 %vm410_vm0, %v13821_v59 }
 0x208   : > { %18047 = vst [vmem:[#allocation61_spill] sm:$0xff] %v13806_v30  ;;  %6405 = vperm.xlu0 %10111, %v18048_v50   ;;  %v8248_v32 = vadd.f32 %v7383_v43, %v7096_v2  ;;  %7542 = vperm.xlu1 %10112, %v18050_v8   ;;  %v4855_v30 = vadd.f32 1e-05, %v4663_v25  ;;  %v13836_v0 = vmul.f32 %v10272_v52, %v5232_v40  ;;  %v5233_v62 = vld [vmem:[%s11072_s21 + $0x280] sm:$0xff]  ;;  %v13849_v56 = vmul.f32 0.020408163, %v13333_v22  ;;  %v7388_v52 = vpop.permute.xlu0 %7387 }
 0x209   : > { %v13841_v50 = vmul.f32 %v13788_v23, %v18052_v7  ;;  %v10527_v29 = vld [vmem:[%s10740_s18 + $0xc0] sm:$0xff]  ;;  %10037 = vmatprep.mubr.msk.f32.mxu1 %vm410_vm0, %v2174_v20  ;;  %v13852_v8 = vmul.f32 0.020408163, %v13353_v47  ;;  %10283 = vrsqrt.f32 %v4853_v49  ;;  %v4857_v57 = vadd.f32 1e-05, %v4665_v3  ;;  %v18056_v20 = vld [vmem:[#allocation47_spill] sm:$0xff]  ;;  %9768 = vmatprep.mubr.msk.f32.mxu0 %vm410_vm0, %v13830_v26  ;;  %v13869_v47 = vpop.eup %10277 }
 0x20a   : > { %18051 = vst [vmem:[#allocation52_spill] sm:$0xff] %v13836_v0  ;;  %v7097_v36 = vmul.f32 %v10527_v29, %v13697_v55  ;;  %v18054_v2 = vld [vmem:[#allocation18_spill] sm:$0xff]  ;;  %8440 = vst.msk [vmem:[%s12423_s27 + $0xb8] sm:$0xff] %vm410_vm0, %v8248_v32  ;;  %v18055_v55 = vsub.f32 %v13691_v12, %v13688_v9  ;;  %v13862_v40 = vmul.f32 0.020408163, %v18056_v20  ;;  %v13867_v22 = vld [vmem:[%s10740_s18 + $0x5a8] sm:$0xff]  ;;  %v13871_v32 = vpop.permute.xlu1 %6250  ;;  %v18057_v9 = vsub.f32 %v13483_v16, %v17990_v54  ;;  %v10280_v29 = vpop.eup %10279 }
 0x20b   : > { %18053 = vst [vmem:[#allocation51_spill] sm:$0xff] %v13841_v50  ;;  %v2176_v41 = vmul.f32 %v18054_v2, %v18054_v2  ;;  %v13876_v12 = vmul.f32 %v10274_v39, %v5233_v62  ;;  %v4286_v3 = vmul.f32 %v13849_v56, %v13849_v56  ;;  %v4285_v43 = vmul.f32 %v13852_v8, %v13852_v8  ;;  %v13883_v7 = vld [vmem:[%s10740_s18 + $0x5b0] sm:$0xff]  ;;  %v5234_v54 = vld [vmem:[%s11072_s21 + $0x288] sm:$0xff]  ;;  %v18061_v62 = vld [vmem:[#allocation25_spill] sm:$0xff] }
 0x20c   : > { %v4666_v25 = vmax.f32 %v18055_v55, 0.0  ;;  %v8249_v49 = vadd.f32 %v7388_v52, %v7097_v36  ;;  %7547 = vperm.xlu0 %10111, %v18057_v9   ;;  %v18059_v2 = vld [vmem:[#allocation24_spill] sm:$0xff]  ;;  %10285 = vrsqrt.f32 %v4856_v45  ;;  %10038 = vmatmul.mubr.msk.f32.gmra.mrb[158].mxu1 %vm410_vm0, %v2175_v34  ;;  %v18060_v36 = vld [vmem:[#allocation59_spill] sm:$0xff]  ;;  %v4093_v39 = vmul.f32 0.020408163, %v13418_v44 }
 0x20d   : > { %18058 = vst [vmem:[#allocation4_spill] sm:$0xff] %v13876_v12  ;;  %6410 = vperm.xlu1 %10112, %v18059_v2   ;;  %v2177_v16 = vmul.f32 %v18060_v36, %v18060_v36  ;;  %v13893_v52 = vmul.f32 %v13836_v0, %v18061_v62  ;;  %10287 = vrsqrt.f32 %v4855_v30  ;;  %10040 = vmatprep.mubr.msk.f32.mxu1 %vm410_vm0, %v2176_v41  ;;  %v4667_v45 = vmax.f32 %v4475_v10, 0.0  ;;  %v18063_v34 = vld [vmem:[#allocation19_spill] sm:$0xff]  ;;  %v13905_v2 = vpop.permute.xlu0 %6255  ;;  %v5235_v36 = vld [vmem:[%s11072_s21 + $0x290] sm:$0xff]  ;;  %v13911_v10 = vld [vmem:[%s10740_s18 + $0x5b8] sm:$0xff] }
 0x20e   : > { %8441 = vst.msk [vmem:[%s12423_s27 + $0xc0] sm:$0xff] %vm410_vm0, %v8249_v49  ;;  %v2178_v55 = vmul.f32 %v18063_v34, %v18063_v34  ;;  %v4478_v20 = vsub.f32 %v13862_v40, %v4286_v3  ;;  %9769 = vmatmul.mubr.msk.f32.gmra.mrb[180].mxu0 %vm410_vm0, %v13867_v22  ;;  %v10528_v44 = vld [vmem:[%s10740_s18 + $0xc8] sm:$0xff]  ;;  %v4858_v49 = vadd.f32 1e-05, %v4666_v25  ;;  %10289 = vrsqrt.f32 %v4857_v57  ;;  %v10529_v41 = vld [vmem:[%s10740_s18 + $0xd0] sm:$0xff]  ;;  %v7393_v3 = vpop.permute.xlu1 %7392  ;;  %v18064_v62 = vld [vmem:[#allocation57_spill] sm:$0xff] }
 0x20f   : > { %18062 = vst [vmem:[#allocation64_spill] sm:$0xff] %v13893_v52  ;;  %v7098_v9 = vmul.f32 %v10528_v44, %v13767_v6  ;;  %v4477_v30 = vsub.f32 %v4093_v39, %v4285_v43  ;;  %9771 = vmatprep.mubr.msk.f32.mxu0 %vm410_vm0, %v13883_v7  ;;  %v7099_v40 = vmul.f32 %v10529_v41, %v13814_v14  ;;  %v18065_v6 = vld [vmem:[#allocation6_spill] sm:$0xff]  ;;  %v18067_v25 = vld [vmem:[#allocation23_spill] sm:$0xff]  ;;  %v13925_v43 = vpop.f32.mrb[102].mxu0 }
 0x210   : > { %6415 = vperm.xlu0 %10111, %v18064_v62   ;;  %v13916_v34 = vmul.f32 %v10276_v15, %v5234_v54  ;;  %v13920_v44 = vmul.f32 %v13876_v12, %v18065_v6  ;;  %v13923_v57 = vmul.f32 0.020408163, %v18067_v25  ;;  %v13928_v39 = vld [vmem:[%s10740_s18 + $0x5c0] sm:$0xff]  ;;  %v18068_v14 = vsub.f32 %v13486_v31, %v17991_v18  ;;  %10041 = vmatmul.mubr.msk.f32.gmra.mrb[160].mxu1 %vm410_vm0, %v2177_v16  ;;  %v18070_v41 = vld [vmem:[#allocation75_spill] sm:$0xff]  ;;  %v18072_v31 = vld [vmem:[#allocation45_spill] sm:$0xff] }
 0x211   : > { %v8250_v52 = vadd.f32 %v7393_v3, %v7098_v9  ;;  %v18069_v15 = vsub.f32 %v13791_v61, %v13760_v21  ;;  %v2179_v62 = vmul.f32 %v18070_v41, %v18070_v41  ;;  %v18071_v6 = vld [vmem:[#allocation50_spill] sm:$0xff]  ;;  %v13944_v9 = vpop.eup %10281  ;;  %v4859_v3 = vadd.f32 1e-05, %v4667_v45  ;;  %10043 = vmatprep.mubr.msk.f32.mxu1 %vm410_vm0, %v2178_v55  ;;  %v7398_v16 = vpop.permute.xlu0 %7397  ;;  %v5236_v45 = vld [vmem:[%s11072_s21 + $0x298] sm:$0xff]  ;;  %v18077_v12 = vld [vmem:[#allocation32_spill] sm:$0xff] }
 0x212   : > { %18066 = vst [vmem:[#allocation10_spill] sm:$0xff] %v13920_v44  ;;  %7552 = vperm.xlu1 %10112, %v18068_v14   ;;  %v13940_v25 = vmul.f32 0.020408163, %v18071_v6  ;;  %v13942_v44 = vpop.f32.mrb[103].mxu0  ;;  %v2180_v18 = vmul.f32 %v18072_v31, %v18072_v31  ;;  %v13949_v21 = vmul.f32 %v10280_v29, %v5235_v36  ;;  %v4288_v61 = vmul.f32 %v13923_v57, %v13923_v57  ;;  %v13964_v36 = vpop.permute.xlu1 %6260  ;;  %v18075_v6 = vld [vmem:[#allocation72_spill] sm:$0xff]  ;;  %v5597_v0 = vld [vmem:[%s11104_s24 + $0x1e0] sm:$0xff] }
 0x213   : > { %v4668_v54 = vmax.f32 %v18069_v15, 0.0  ;;  %9772 = vmatmul.mubr.msk.f32.gmra.mrb[182].mxu0 %vm410_vm0, %v13911_v10  ;;  %8442 = vst.msk [vmem:[%s12423_s27 + $0xc8] sm:$0xff] %vm410_vm0, %v8250_v52  ;;  %v4669_v14 = vmax.f32 %v4477_v30, 0.0  ;;  %v4096_v15 = vmul.f32 0.020408163, %v13497_v1  ;;  %v8251_v41 = vadd.f32 %v7398_v16, %v7099_v40  ;;  %v10284_v31 = vpop.eup %10283  ;;  %v18078_v40 = vld [vmem:[#allocation36_spill] sm:$0xff] }
 0x214   : > { %18073 = vst [vmem:[#allocation17_spill] sm:$0xff] %v13949_v21  ;;  %v4287_v55 = vmul.f32 %v13940_v25, %v13940_v25  ;;  %v4095_v29 = vmul.f32 0.020408163, %v13541_v42  ;;  %9774 = vmatprep.mubr.msk.f32.mxu0 %vm410_vm0, %v13928_v39  ;;  %v18074_v52 = vsub.f32 %v13585_v46, %v18018_v37  ;;  %10291 = vrsqrt.f32 %v4858_v49  ;;  %v13974_v42 = vld [vmem:[%s10740_s18 + $0x5c8] sm:$0xff]  ;;  %10044 = vmatmul.mubr.msk.f32.gmra.mrb[162].mxu1 %vm410_vm0, %v2179_v62  ;;  %v13983_v16 = vld [vmem:[%s10740_s18 + $0x5d0] sm:$0xff] }
 0x215   : > { %v4670_v30 = vmax.f32 %v4478_v20, 0.0  ;;  %v13971_v1 = vmul.f32 %v13916_v34, %v18075_v6  ;;  %v4860_v50 = vadd.f32 1e-05, %v4668_v54  ;;  %v2181_v46 = vmul.f32 %v18078_v40, %v18078_v40  ;;  %v5237_v20 = vld [vmem:[%s11072_s21 + $0x2a0] sm:$0xff]  ;;  %8443 = vst.msk [vmem:[%s12423_s27 + $0xd0] sm:$0xff] %vm410_vm0, %v8251_v41  ;;  %10046 = vmatprep.mubr.msk.f32.mxu1 %vm410_vm0, %v2180_v18 }
 0x216   : > { %7557 = vperm.xlu0 %10111, %v18074_v52   ;;  %6420 = vperm.xlu1 %10112, %v18077_v12   ;;  %v4480_v37 = vsub.f32 %v4096_v15, %v4288_v61  ;;  %v4479_v49 = vsub.f32 %v4095_v29, %v4287_v55  ;;  %v10530_v52 = vld [vmem:[%s10740_s18 + $0xd8] sm:$0xff]  ;;  %10293 = vrsqrt.f32 %v4859_v3  ;;  %v18079_v12 = vld [vmem:[#allocation7_spill] sm:$0xff]  ;;  %v13993_v62 = vmul.f32 %v13869_v47, %v5236_v45  ;;  %v10286_v61 = vpop.eup %10285  ;;  %v13995_v55 = vpop.permute.xlu0 %6265  ;;  %v18082_v47 = vld [vmem:[#allocation62_spill] sm:$0xff] }
 0x217   : > { %18076 = vst [vmem:[#allocation8_spill] sm:$0xff] %v13971_v1  ;;  %v7100_v6 = vmul.f32 %v10530_v52, %v13871_v32  ;;  %v2182_v54 = vmul.f32 %v18079_v12, %v18079_v12  ;;  %v4861_v15 = vadd.f32 1e-05, %v4669_v14  ;;  %v5238_v1 = vld [vmem:[%s11072_s21 + $0x2a8] sm:$0xff]  ;;  %v18080_v32 = vld [vmem:[#allocation74_spill] sm:$0xff]  ;;  %9775 = vmatmul.mubr.msk.f32.gmra.mrb[184].mxu0 %vm410_vm0, %v13974_v42  ;;  %v10288_v3 = vpop.eup %10287  ;;  %v7403_v18 = vpop.permute.xlu1 %7402  ;;  %10295 = vrsqrt.f32 %v4860_v50 }
 0x218   : > { %v4672_v29 = vmax.f32 %v4480_v37, 0.0  ;;  %v4671_v40 = vmax.f32 %v4479_v49, 0.0  ;;  %v14000_v41 = vmul.f32 %v13949_v21, %v18080_v32  ;;  %v18083_v45 = vld [vmem:[#allocation58_spill] sm:$0xff]  ;;  %v4862_v14 = vadd.f32 1e-05, %v4670_v30  ;;  %9777 = vmatprep.mubr.msk.f32.mxu0 %vm410_vm0, %v13983_v16  ;;  %v14011_v49 = vld [vmem:[%s10740_s18 + $0x5d8] sm:$0xff]  ;;  %v10290_v12 = vpop.eup %10289  ;;  %10047 = vmatmul.mubr.msk.f32.gmra.mrb[164].mxu1 %vm410_vm0, %v2181_v46 }
 0x219   : > { %v5981_v52 = vsub.f32 %v5597_v0, %v18083_v45  ;;  %v14006_v37 = vmul.f32 %v10284_v31, %v5237_v20  ;;  %v8252_v32 = vadd.f32 %v7403_v18, %v7100_v6  ;;  %v5239_v31 = vld [vmem:[%s11072_s21 + $0x2b0] sm:$0xff]  ;;  %v14020_v20 = vpop.f32.mrb[104].mxu0  ;;  %v14023_v45 = vld [vmem:[%s10740_s18 + $0x5e0] sm:$0xff]  ;;  %10049 = vmatprep.mubr.msk.f32.mxu1 %vm410_vm0, %v2182_v54  ;;  %v14031_v50 = vmul.f32 %v13944_v9, %v5238_v1  ;;  %v5598_v54 = vld [vmem:[%s11104_s24 + $0x1e8] sm:$0xff] }
 0x21a   : > { %18081 = vst [vmem:[#allocation27_spill] sm:$0xff] %v14000_v41  ;;  %6425 = vperm.xlu0 %10111, %v18082_v47   ;;  %v18084_v41 = vsub.f32 %v13647_v53, %v18032_v17  ;;  %v18085_v47 = vld [vmem:[#allocation3_spill] sm:$0xff]  ;;  %v4863_v30 = vadd.f32 1e-05, %v4671_v40  ;;  %v10531_v21 = vld [vmem:[%s10740_s18 + $0xe0] sm:$0xff]  ;;  %v18086_v53 = vld [vmem:[#allocation20_spill] sm:$0xff]  ;;  %v7408_v18 = vpop.permute.xlu0 %7407  ;;  %10297 = vrsqrt.f32 %v4861_v15 }
 0x21b   : > { %v2183_v0 = vmul.f32 %v18085_v47, %v18085_v47  ;;  %v7101_v6 = vmul.f32 %v10531_v21, %v13905_v2  ;;  %v2184_v17 = vmul.f32 %v18086_v53, %v18086_v53  ;;  %18087 = vst [vmem:[#allocation39_spill] sm:$0xff] %v14031_v50  ;;  %v18088_v46 = vld [vmem:[#allocation60_spill] sm:$0xff]  ;;  %8444 = vst.msk [vmem:[%s12423_s27 + $0xd8] sm:$0xff] %vm410_vm0, %v8252_v32  ;;  %v4864_v2 = vadd.f32 1e-05, %v4672_v29  ;;  %v5240_v21 = vld [vmem:[%s11072_s21 + $0x2b8] sm:$0xff]  ;;  %v14044_v9 = vpop.permute.xlu1 %6270 }
 0x21c   : > { %7562 = vperm.xlu1 %10112, %v18084_v41   ;;  %v14035_v40 = vmul.f32 %v13993_v62, %v18088_v46  ;;  %v14037_v41 = vpop.f32.mrb[105].mxu0  ;;  %9778 = vmatmul.mubr.msk.f32.gmra.mrb[186].mxu0 %vm410_vm0, %v14011_v49  ;;  %10299 = vrsqrt.f32 %v4862_v14  ;;  %v14047_v47 = vmul.f32 %v10288_v3, %v5239_v31  ;;  %v18091_v53 = vld [vmem:[#allocation28_spill] sm:$0xff]  ;;  %v14056_v29 = vld [vmem:[%s10740_s18 + $0x5e8] sm:$0xff]  ;;  %v5241_v3 = vld [vmem:[%s11072_s21 + $0x2c0] sm:$0xff] }
 0x21d   : > { %v8253_v1 = vadd.f32 %v7408_v18, %v7101_v6  ;;  %v14051_v15 = vmul.f32 %v14006_v37, %v18091_v53  ;;  %9780 = vmatprep.mubr.msk.f32.mxu0 %vm410_vm0, %v14023_v45  ;;  %v18093_v32 = vld [vmem:[#allocation35_spill] sm:$0xff]  ;;  %10050 = vmatmul.mubr.msk.f32.gmra.mrb[166].mxu1 %vm410_vm0, %v2183_v0  ;;  %10301 = vrsqrt.f32 %v4863_v30  ;;  %v5599_v31 = vld [vmem:[%s11104_s24 + $0x1f0] sm:$0xff]  ;;  %v18095_v46 = vld [vmem:[#allocation22_spill] sm:$0xff]  ;;  %v14069_v53 = vmul.f32 %v10286_v61, %v5240_v21 }
 0x21e   : > { %18089 = vst [vmem:[#allocation34_spill] sm:$0xff] %v14035_v40  ;;  %7567 = vperm.xlu0 %10111, %v5981_v52   ;;  %18090 = vst [vmem:[#allocation67_spill] sm:$0xff] %v14047_v47  ;;  %v18094_v6 = vld [vmem:[#allocation79_spill] sm:$0xff]  ;;  %v10292_v14 = vpop.eup %10291  ;;  %10052 = vmatprep.mubr.msk.f32.mxu1 %vm410_vm0, %v2184_v17  ;;  %v2186_v18 = vmul.f32 %v18095_v46, %v18095_v46  ;;  %v18099_v40 = vld [vmem:[#allocation38_spill] sm:$0xff]  ;;  %10303 = vrsqrt.f32 %v4864_v2 }
 0x21f   : > { %18092 = vst [vmem:[#allocation49_spill] sm:$0xff] %v14051_v15  ;;  %v2185_v52 = vmul.f32 %v18094_v6, %v18094_v6  ;;  %8445 = vst.msk [vmem:[%s12423_s27 + $0xe0] sm:$0xff] %vm410_vm0, %v8253_v1  ;;  %v10532_v15 = vld [vmem:[%s10740_s18 + $0xe8] sm:$0xff]  ;;  %v14077_v6 = vpop.permute.xlu0 %6275  ;;  %v5982_v1 = vsub.f32 %v5598_v54, %v18099_v40  ;;  %v7413_v21 = vpop.permute.xlu1 %7412  ;;  %v18103_v54 = vld [vmem:[#allocation37_spill] sm:$0xff] }
 0x220   : > { %6430 = vperm.xlu1 %10112, %v18093_v32   ;;  %18096 = vst [vmem:[#allocation12_spill] sm:$0xff] %v14069_v53  ;;  %v18097_v32 = vld [vmem:[#allocation5_spill] sm:$0xff]  ;;  %v7102_v30 = vmul.f32 %v10532_v15, %v13964_v36  ;;  %v5242_v17 = vld [vmem:[%s11072_s21 + $0x2c8] sm:$0xff]  ;;  %9781 = vmatmul.mubr.msk.f32.gmra.mrb[188].mxu0 %vm410_vm0, %v14056_v29  ;;  %v10294_v61 = vpop.eup %10293  ;;  %v14088_v36 = vmul.f32 %v14047_v47, %v13574_v5  ;;  %v14091_v15 = vld [vmem:[%s10740_s18 + $0x5f0] sm:$0xff]  ;;  %v14093_v40 = vpop.f32.mrb[106].mxu0 }
 0x221   : > { %v14073_v0 = vmul.f32 %v14031_v50, %v18097_v32  ;;  %v18100_v46 = vld [vmem:[#allocation55_spill] sm:$0xff]  ;;  %v14084_v32 = vmul.f32 %v10290_v12, %v5241_v3  ;;  %10053 = vmatmul.mubr.msk.f32.gmra.mrb[168].mxu1 %vm410_vm0, %v2185_v52  ;;  %v2187_v12 = vmul.f32 %v13599_v60, %v13599_v60  ;;  %v5243_v3 = vld [vmem:[%s11072_s21 + $0x2d0] sm:$0xff]  ;;  %v10296_v60 = vpop.eup %10295  ;;  %9783 = vmatprep.mubr.msk.f32.mxu0 %vm410_vm0, %v14091_v15 }
 0x222   : > { %6435 = vperm.xlu0 %10111, %v18100_v46   ;;  %18102 = vst [vmem:[#allocation54_spill] sm:$0xff] %v14088_v36  ;;  %v8254_v2 = vadd.f32 %v7413_v21, %v7102_v30  ;;  %v14100_v46 = vpop.f32.mrb[107].mxu0  ;;  %v10533_v5 = vld [vmem:[%s10740_s18 + $0xf0] sm:$0xff]  ;;  %10055 = vmatprep.mubr.msk.f32.mxu1 %vm410_vm0, %v2186_v18  ;;  %v2188_v30 = vmul.f32 %v13618_v48, %v13618_v48  ;;  %v18110_v47 = vld [vmem:[#allocation43_spill] sm:$0xff] }
 0x223   : > { %18098 = vst [vmem:[#allocation70_spill] sm:$0xff] %v14073_v0  ;;  %18101 = vst [vmem:[#allocation63_spill] sm:$0xff] %v14084_v32  ;;  %v5983_v0 = vsub.f32 %v5599_v31, %v18103_v54  ;;  %v7103_v36 = vmul.f32 %v10533_v5, %v13995_v55  ;;  %v18104_v31 = vld [vmem:[#allocation13_spill] sm:$0xff]  ;;  %v7418_v21 = vpop.permute.xlu0 %7417  ;;  %v14118_v55 = vpop.permute.xlu1 %6280  ;;  %v14121_v18 = vmul.f32 %v10294_v61, %v5243_v3  ;;  %v5247_v50 = vld [vmem:[%s11072_s21 + $0x2f0] sm:$0xff] }
 0x224   : > { %7572 = vperm.xlu1 %10112, %v5982_v1   ;;  %v14107_v1 = vmul.f32 %v10292_v14, %v5242_v17  ;;  %v14111_v52 = vmul.f32 %v14069_v53, %v18104_v31  ;;  %8446 = vst.msk [vmem:[%s12423_s27 + $0xe8] sm:$0xff] %vm410_vm0, %v8254_v2  ;;  %v5244_v54 = vld [vmem:[%s11072_s21 + $0x2d8] sm:$0xff]  ;;  %v14125_v17 = vmul.f32 %v14084_v32, %v13677_v63  ;;  %v10298_v5 = vpop.eup %10297  ;;  %v18107_v31 = vld [vmem:[#allocation26_spill] sm:$0xff] }
 0x225   : > { %v8255_v48 = vadd.f32 %v7418_v21, %v7103_v36  ;;  %v5600_v14 = vld [vmem:[%s11104_s24 + $0x1f8] sm:$0xff]  ;;  %10056 = vmatmul.mubr.msk.f32.gmra.mrb[170].mxu1 %vm410_vm0, %v2187_v12  ;;  %v5245_v36 = vld [vmem:[%s11072_s21 + $0x2e0] sm:$0xff]  ;;  %v2190_v63 = vmul.f32 %v13670_v19, %v13670_v19  ;;  %v14141_v3 = vmul.f32 %v10296_v60, %v5244_v54 }
 0x226   : > { %18105 = vst [vmem:[#allocation16_spill] sm:$0xff] %v14111_v52  ;;  %7577 = vperm.xlu0 %10111, %v5983_v0   ;;  %18106 = vst [vmem:[#allocation29_spill] sm:$0xff] %v14125_v17  ;;  %v14128_v2 = vld [vmem:[%s10740_s18 + $0x5f8] sm:$0xff]  ;;  %v5601_v52 = vld [vmem:[%s11104_s24 + $0x200] sm:$0xff]  ;;  %v2189_v0 = vmul.f32 %v13658_v33, %v13658_v33  ;;  %v10300_v61 = vpop.eup %10299  ;;  %10058 = vmatprep.mubr.msk.f32.mxu1 %vm410_vm0, %v2188_v30 }
 0x227   : > { %8447 = vst.msk [vmem:[%s12423_s27 + $0xf0] sm:$0xff] %vm410_vm0, %v8255_v48  ;;  %v18108_v21 = vld [vmem:[#allocation53_spill] sm:$0xff]  ;;  %v5246_v17 = vld [vmem:[%s11072_s21 + $0x2e8] sm:$0xff]  ;;  %v10302_v12 = vpop.eup %10301  ;;  %v6286_v53 = vpop.permute.xlu0 %6285  ;;  %v5984_v48 = vsub.f32 %v5600_v14, %v18110_v47  ;;  %9784 = vmatmul.mubr.msk.f32.gmra.mrb[190].mxu0 %vm410_vm0, %v14128_v2  ;;  %v18112_v60 = vld [vmem:[#allocation66_spill] sm:$0xff]  ;;  %v2191_v14 = vmul.f32 %v13714_v11, %v13714_v11 }
 0x228   : > { %6440 = vperm.xlu1 %10112, %v18107_v31   ;;  %v14145_v31 = vmul.f32 %v14107_v1, %v18108_v21  ;;  %v10534_v32 = vld [vmem:[%s10740_s18 + $0xf8] sm:$0xff]  ;;  %v7423_v19 = vpop.permute.xlu1 %7422  ;;  %v5985_v54 = vsub.f32 %v5601_v52, %v18112_v60  ;;  %v14156_v21 = vmul.f32 %v10298_v5, %v5245_v36  ;;  %v10304_v47 = vpop.eup %10303  ;;  %v10535_v36 = vld [vmem:[%s10740_s18 + $0x100] sm:$0xff]  ;;  %v10536_v60 = vld [vmem:[%s10740_s18 + $0x108] sm:$0xff] }
 0x229   : > { %v7104_v33 = vmul.f32 %v10534_v32, %v14044_v9  ;;  %v18111_v30 = vld [vmem:[#allocation69_spill] sm:$0xff]  ;;  %v14162_v9 = vpop.f32.mrb[108].mxu0  ;;  %10059 = vmatmul.mubr.msk.f32.gmra.mrb[172].mxu1 %vm410_vm0, %v2189_v0  ;;  %v14179_v0 = vmul.f32 %v14141_v3, %v13737_v13  ;;  %v2193_v13 = vmul.f32 %v13765_v4, %v13765_v4 }
 0x22a   : > { %18109 = vst [vmem:[#allocation18_spill] sm:$0xff] %v14145_v31  ;;  %6445 = vperm.xlu0 %10111, %v18111_v30   ;;  %v14160_v31 = vmul.f32 %v14121_v18, %v13776_v38  ;;  %v14167_v30 = vmul.f32 %v10300_v61, %v5246_v17  ;;  %v5248_v52 = vld [vmem:[%s11072_s21 + $0x2f8] sm:$0xff]  ;;  %v14170_v5 = vpop.f32.mrb[109].mxu0  ;;  %v7105_v38 = vmul.f32 %v10535_v36, %v14077_v6  ;;  %v5602_v6 = vld [vmem:[%s11104_s24 + $0x208] sm:$0xff]  ;;  %v18120_v36 = vld [vmem:[#allocation44_spill] sm:$0xff] }
 0x22b   : > { %v8256_v32 = vadd.f32 %v7423_v19, %v7104_v33  ;;  %10061 = vmatprep.mubr.msk.f32.mxu1 %vm410_vm0, %v2190_v63  ;;  %v2192_v33 = vmul.f32 %v13727_v58, %v13727_v58  ;;  %v7428_v11 = vpop.permute.xlu0 %7427  ;;  %v14186_v63 = vmul.f32 %v10304_v47, %v5248_v52  ;;  %v14190_v58 = vmul.f32 %v14156_v21, %v13852_v8  ;;  %v18115_v19 = vld [vmem:[#allocation33_spill] sm:$0xff]  ;;  %v18118_v47 = vld [vmem:[#allocation40_spill] sm:$0xff] }
 0x22c   : > { %7582 = vperm.xlu1 %10112, %v5984_v48   ;;  %v14181_v48 = vmul.f32 %v10302_v12, %v5247_v50  ;;  %v6291_v17 = vpop.permute.xlu1 %6290  ;;  %v8257_v61 = vadd.f32 %v7428_v11, %v7105_v38  ;;  %v14198_v50 = vmul.f32 %v14167_v30, %v13849_v56  ;;  %v2194_v12 = vmul.f32 %v13779_v28, %v13779_v28  ;;  %v5603_v56 = vld [vmem:[%s11104_s24 + $0x210] sm:$0xff]  ;;  %v14218_v28 = vpop.f32.mrb[110].mxu0 }
 0x22d   : > { %8448 = vst.msk [vmem:[%s12423_s27 + $0xf8] sm:$0xff] %vm410_vm0, %v8256_v32  ;;  %18113 = vst [vmem:[#allocation47_spill] sm:$0xff] %v14186_v63  ;;  %10062 = vmatmul.mubr.msk.f32.gmra.mrb[174].mxu1 %vm410_vm0, %v2191_v14  ;;  %v5986_v32 = vsub.f32 %v5602_v6, %v18118_v47  ;;  %v14215_v14 = vmul.f32 %v14186_v63, %v13923_v57  ;;  %v14223_v38 = vpop.f32.mrb[111].mxu0  ;;  %v18121_v57 = vld [vmem:[#allocation68_spill] sm:$0xff]  ;;  %v2196_v6 = vmul.f32 %v13830_v26, %v13830_v26 }
 0x22e   : > { %7587 = vperm.xlu0 %10111, %v5985_v54   ;;  %18114 = vst [vmem:[#allocation24_spill] sm:$0xff] %v14190_v58  ;;  %18116 = vst [vmem:[#allocation59_spill] sm:$0xff] %v14198_v50  ;;  %10064 = vmatprep.mubr.msk.f32.mxu1 %vm410_vm0, %v2192_v33  ;;  %v14207_v8 = vmul.f32 %v14181_v48, %v13940_v25  ;;  %v7106_v54 = vmul.f32 %v10536_v60, %v14118_v55  ;;  %v10537_v33 = vld [vmem:[%s10740_s18 + $0x110] sm:$0xff]  ;;  %v5249_v50 = vld [vmem:[%s11072_s21 + $0x300] sm:$0xff] }
 0x22f   : > { %8449 = vst.msk [vmem:[%s12423_s27 + $0x100] sm:$0xff] %vm410_vm0, %v8257_v61  ;;  %v6296_v4 = vpop.permute.xlu0 %6295  ;;  %18119 = vst [vmem:[#allocation19_spill] sm:$0xff] %v14215_v14  ;;  %v2195_v55 = vmul.f32 %v13821_v59, %v13821_v59  ;;  %v7107_v11 = vmul.f32 %v10537_v33, %v6286_v53  ;;  %v5987_v61 = vsub.f32 %v5603_v56, %v18121_v57  ;;  %v5604_v59 = vld [vmem:[%s11104_s24 + $0x218] sm:$0xff]  ;;  %v14246_v33 = vpop.f32.mrb[112].mxu0 }
 0x230   : > { %6450 = vperm.xlu1 %10112, %v18115_v19   ;;  %18117 = vst [vmem:[#allocation25_spill] sm:$0xff] %v14207_v8  ;;  %v7433_v52 = vpop.permute.xlu1 %7432  ;;  %v2197_v53 = vmul.f32 %v13867_v22, %v13867_v22  ;;  %v2198_v26 = vmul.f32 %v13883_v7, %v13883_v7  ;;  %v18123_v56 = vld [vmem:[#allocation73_spill] sm:$0xff]  ;;  %v2199_v7 = vmul.f32 %v13911_v10, %v13911_v10  ;;  %v5606_v10 = vld [vmem:[%s11104_s24 + $0x228] sm:$0xff] }
 0x231   : > { %v8258_v25 = vadd.f32 %v7433_v52, %v7106_v54  ;;  %10065 = vmatmul.mubr.msk.f32.gmra.mrb[176].mxu1 %vm410_vm0, %v2193_v13  ;;  %v18122_v54 = vld [vmem:[#allocation15_spill] sm:$0xff]  ;;  %v5988_v52 = vsub.f32 %v5604_v59, %v18123_v56  ;;  %v18127_v56 = vld [vmem:[#allocation77_spill] sm:$0xff] }
 0x232   : > { %6455 = vperm.xlu0 %10111, %v18120_v36   ;;  %10067 = vmatprep.mubr.msk.f32.mxu1 %vm410_vm0, %v2194_v12  ;;  %v10538_v12 = vld [vmem:[%s10740_s18 + $0x118] sm:$0xff]  ;;  %v5605_v36 = vld [vmem:[%s11104_s24 + $0x220] sm:$0xff] }
 0x233   : > { %8450 = vst.msk [vmem:[%s12423_s27 + $0x108] sm:$0xff] %vm410_vm0, %v8258_v25  ;;  %v7438_v19 = vpop.permute.xlu0 %7437  ;;  %v7108_v47 = vmul.f32 %v10538_v12, %v6291_v17  ;;  %v14251_v17 = vpop.f32.mrb[113].mxu0 }
 0x234   : > { %7592 = vperm.xlu1 %10112, %v5986_v32   ;;  %v6301_v13 = vpop.permute.xlu1 %6300  ;;  %v8259_v60 = vadd.f32 %v7438_v19, %v7107_v11  ;;  %v10539_v11 = vld [vmem:[%s10740_s18 + $0x120] sm:$0xff]  ;;  %v2200_v19 = vmul.f32 %v13928_v39, %v13928_v39  ;;  %v2202_v39 = vmul.f32 %v13983_v16, %v13983_v16  ;;  %v10541_v16 = vld [vmem:[%s10740_s18 + $0x130] sm:$0xff] }
 0x235   : > { %10068 = vmatmul.mubr.msk.f32.gmra.mrb[178].mxu1 %vm410_vm0, %v2195_v55  ;;  %v18124_v55 = vld [vmem:[#allocation76_spill] sm:$0xff]  ;;  %v7109_v57 = vmul.f32 %v10539_v11, %v6296_v4  ;;  %v2201_v4 = vmul.f32 %v13974_v42, %v13974_v42  ;;  %v2203_v42 = vmul.f32 %v14011_v49, %v14011_v49  ;;  %v18129_v11 = vld [vmem:[#allocation30_spill] sm:$0xff] }
 0x236   : > { %7597 = vperm.xlu0 %10111, %v5987_v61   ;;  %8451 = vst.msk [vmem:[%s12423_s27 + $0x110] sm:$0xff] %vm410_vm0, %v8259_v60  ;;  %10070 = vmatprep.mubr.msk.f32.mxu1 %vm410_vm0, %v2196_v6  ;;  %v18125_v61 = vld [vmem:[#allocation41_spill] sm:$0xff] }
 0x237   : > { %v6306_v32 = vpop.permute.xlu0 %6305  ;;  %v5989_v6 = vsub.f32 %v5605_v36, %v18125_v61  ;;  %v5607_v36 = vld [vmem:[%s11104_s24 + $0x230] sm:$0xff]  ;;  %v2204_v61 = vmul.f32 %v14023_v45, %v14023_v45  ;;  %v2205_v45 = vmul.f32 %v14056_v29, %v14056_v29 }
 0x238   : > { %6460 = vperm.xlu1 %10112, %v18122_v54   ;;  %v7443_v25 = vpop.permute.xlu1 %7442 }
 0x239   : > { %v8260_v22 = vadd.f32 %v7443_v25, %v7108_v47  ;;  %10071 = vmatmul.mubr.msk.f32.gmra.mrb[180].mxu1 %vm410_vm0, %v2197_v53  ;;  %v18126_v53 = vld [vmem:[#allocation46_spill] sm:$0xff] }
 0x23a   : > { %6465 = vperm.xlu0 %10111, %v18124_v55   ;;  %10073 = vmatprep.mubr.msk.f32.mxu1 %vm410_vm0, %v2198_v26  ;;  %v10540_v26 = vld [vmem:[%s10740_s18 + $0x128] sm:$0xff]  ;;  %v18128_v55 = vld [vmem:[#allocation42_spill] sm:$0xff] }
 0x23b   : > { %8452 = vst.msk [vmem:[%s12423_s27 + $0x118] sm:$0xff] %vm410_vm0, %v8260_v22  ;;  %v7448_v60 = vpop.permute.xlu0 %7447  ;;  %v7110_v12 = vmul.f32 %v10540_v26, %v6301_v13  ;;  %v7111_v13 = vmul.f32 %v10541_v16, %v6306_v32  ;;  %v2206_v26 = vmul.f32 %v14091_v15, %v14091_v15  ;;  %v18134_v16 = vld [vmem:[#allocation11_spill] sm:$0xff] }
 0x23c   : > { %7602 = vperm.xlu1 %10112, %v5988_v52   ;;  %v6311_v59 = vpop.permute.xlu1 %6310  ;;  %v8261_v54 = vadd.f32 %v7448_v60, %v7109_v57  ;;  %v5990_v52 = vsub.f32 %v5606_v10, %v18127_v56  ;;  %v5991_v57 = vsub.f32 %v5607_v36, %v18129_v11  ;;  %v18130_v60 = vld [vmem:[#allocation56_spill] sm:$0xff]  ;;  %v5608_v10 = vld [vmem:[%s11104_s24 + $0x238] sm:$0xff] }
 0x23d   : > { %10074 = vmatmul.mubr.msk.f32.gmra.mrb[182].mxu1 %vm410_vm0, %v2199_v7  ;;  %v14277_v7 = vpop.f32.mrb[114].mxu0  ;;  %v14289_v49 = vmul.f32 0.020408163, %v18130_v60  ;;  %v18133_v36 = vld [vmem:[#allocation9_spill] sm:$0xff]  ;;  %v10543_v60 = vld [vmem:[%s10740_s18 + $0x140] sm:$0xff] }
 0x23e   : > { %7607 = vperm.xlu0 %10111, %v5989_v6   ;;  %8453 = vst.msk [vmem:[%s12423_s27 + $0x120] sm:$0xff] %vm410_vm0, %v8261_v54  ;;  %10076 = vmatprep.mubr.msk.f32.mxu1 %vm410_vm0, %v2200_v19  ;;  %v14284_v6 = vpop.f32.mrb[115].mxu0 }
 0x23f   : > { %v6316_v47 = vpop.permute.xlu0 %6315 }
 0x240   : > { %6470 = vperm.xlu1 %10112, %v18126_v53   ;;  %v7453_v25 = vpop.permute.xlu1 %7452  ;;  %v18131_v53 = vld [vmem:[#allocation31_spill] sm:$0xff] }
 0x241   : > { %v8262_v22 = vadd.f32 %v7453_v25, %v7110_v12  ;;  %10077 = vmatmul.mubr.msk.f32.gmra.mrb[184].mxu1 %vm410_vm0, %v2201_v4  ;;  %v14293_v4 = vmul.f32 0.020408163, %v18131_v53  ;;  %v10542_v12 = vld [vmem:[%s10740_s18 + $0x138] sm:$0xff]  ;;  %v5992_v25 = vsub.f32 %v5608_v10, %v18133_v36  ;;  %v14324_v36 = vpop.f32.mrb[116].mxu0 }
 0x242   : > { %6475 = vperm.xlu0 %10111, %v18128_v55   ;;  %10079 = vmatprep.mubr.msk.f32.mxu1 %vm410_vm0, %v2202_v39  ;;  %v18132_v39 = vld [vmem:[#allocation78_spill] sm:$0xff]  ;;  %v7112_v56 = vmul.f32 %v10542_v12, %v6311_v59  ;;  %v18136_v10 = vld [vmem:[#allocation21_spill] sm:$0xff]  ;;  %v18137_v12 = vld [vmem:[#allocation48_spill] sm:$0xff] }
 0x243   : > { %8454 = vst.msk [vmem:[%s12423_s27 + $0x128] sm:$0xff] %vm410_vm0, %v8262_v22  ;;  %v7458_v19 = vpop.permute.xlu0 %7457  ;;  %v5609_v55 = vld [vmem:[%s11104_s24 + $0x240] sm:$0xff]  ;;  %v4290_v22 = vmul.f32 %v14289_v49, %v14289_v49  ;;  %v4289_v29 = vmul.f32 %v14293_v4, %v14293_v4 }
 0x244   : > { %7612 = vperm.xlu1 %10112, %v5990_v52   ;;  %v6321_v54 = vpop.permute.xlu1 %6320  ;;  %v8263_v32 = vadd.f32 %v7458_v19, %v7111_v13  ;;  %v9946_v13 = vpop.f32.mrb[96].mxu1  ;;  %v2207_v19 = vmul.f32 %v14128_v2, %v14128_v2  ;;  %v5993_v53 = vsub.f32 %v5609_v55, %v18136_v10  ;;  %v5610_v55 = vld [vmem:[%s11104_s24 + $0x248] sm:$0xff] }
 0x245   : > { %10080 = vmatmul.mubr.msk.f32.gmra.mrb[186].mxu1 %vm410_vm0, %v2203_v42  ;;  %v4098_v15 = vmul.f32 0.020408163, %v9946_v13  ;;  %v3330_v59 = vpop.f32.mrb[97].mxu1  ;;  %v18138_v13 = vld [vmem:[#allocation80_spill] sm:$0xff] }
 0x246   : > { %7617 = vperm.xlu0 %10111, %v5991_v57   ;;  %8455 = vst.msk [vmem:[%s12423_s27 + $0x130] sm:$0xff] %vm410_vm0, %v8263_v32  ;;  %10082 = vmatprep.mubr.msk.f32.mxu1 %vm410_vm0, %v2204_v61  ;;  %v18135_v57 = vld [vmem:[#allocation71_spill] sm:$0xff]  ;;  %v7113_v32 = vmul.f32 %v10543_v60, %v6316_v47  ;;  %v9949_v60 = vpop.f32.mrb[98].mxu1 }
 0x247   : > { %v6326_v52 = vpop.permute.xlu0 %6325  ;;  %v14313_v61 = vmul.f32 0.020408163, %v18135_v57 }
 0x248   : > { %6480 = vperm.xlu1 %10112, %v18132_v39   ;;  %v7463_v42 = vpop.permute.xlu1 %7462  ;;  %v4097_v39 = vmul.f32 0.020408163, %v3330_v59  ;;  %v5611_v59 = vld [vmem:[%s11104_s24 + $0x250] sm:$0xff] }
 0x249   : > { %v8264_v11 = vadd.f32 %v7463_v42, %v7112_v56  ;;  %10083 = vmatmul.mubr.msk.f32.gmra.mrb[188].mxu1 %vm410_vm0, %v2205_v45  ;;  %v14321_v56 = vmul.f32 0.020408163, %v18137_v12  ;;  %v14328_v42 = vpop.f32.mrb[117].mxu0  ;;  %v4292_v57 = vmul.f32 %v14313_v61, %v14313_v61 }
 0x24a   : > { %6485 = vperm.xlu0 %10111, %v18134_v16   ;;  %10085 = vmatprep.mubr.msk.f32.mxu1 %vm410_vm0, %v2206_v26  ;;  %v4481_v16 = vsub.f32 %v4097_v39, %v4289_v29  ;;  %v14346_v29 = vmul.f32 0.020408163, %v13823_v24  ;;  %v18139_v39 = vld [vmem:[#allocation14_spill] sm:$0xff] }
 0x24b   : > { %8456 = vst.msk [vmem:[%s12423_s27 + $0x138] sm:$0xff] %vm410_vm0, %v8264_v11  ;;  %v7468_v45 = vpop.permute.xlu0 %7467  ;;  %v14338_v11 = vmul.f32 0.020408163, %v13810_v27  ;;  %v5994_v27 = vsub.f32 %v5610_v55, %v18139_v39  ;;  %v14356_v55 = vpop.f32.mrb[118].mxu0 }
 0x24c   : > { %7622 = vperm.xlu1 %10112, %v5992_v25   ;;  %v4482_v25 = vsub.f32 %v4098_v15, %v4290_v22  ;;  %v14330_v2 = vpop.permute.xlu1 %6330  ;;  %v8265_v47 = vadd.f32 %v7468_v45, %v7113_v32  ;;  %v4673_v22 = vmax.f32 %v4481_v16, 0.0  ;;  %v4291_v15 = vmul.f32 %v14321_v56, %v14321_v56  ;;  %v10544_v32 = vld [vmem:[%s10740_s18 + $0x148] sm:$0xff] }
 0x24d   : > { %10086 = vmatmul.mubr.msk.f32.gmra.mrb[190].mxu1 %vm410_vm0, %v2207_v19  ;;  %v7114_v10 = vmul.f32 %v10544_v32, %v6321_v54  ;;  %v4100_v45 = vmul.f32 0.020408163, %v9949_v60  ;;  %v3340_v19 = vpop.f32.mrb[99].mxu1  ;;  %v4294_v32 = vmul.f32 %v14338_v11, %v14338_v11 }
 0x24e   : > { %7627 = vperm.xlu0 %10111, %v5993_v53   ;;  %v4674_v26 = vmax.f32 %v4482_v25, 0.0  ;;  %8457 = vst.msk [vmem:[%s12423_s27 + $0x140] sm:$0xff] %vm410_vm0, %v8265_v47  ;;  %v18140_v47 = vld [vmem:[#allocation2_spill] sm:$0xff]  ;;  %v4099_v24 = vmul.f32 0.020408163, %v3340_v19 }
 0x24f   : > { %v14349_v53 = vpop.permute.xlu0 %6335  ;;  %v5995_v16 = vsub.f32 %v5611_v59, %v18140_v47  ;;  %v4484_v54 = vsub.f32 %v4100_v45, %v4292_v57  ;;  %v14362_v59 = vpop.f32.mrb[119].mxu0  ;;  %v5612_v57 = vld [vmem:[%s11104_s24 + $0x258] sm:$0xff] }
 0x250   : > { %6490 = vperm.xlu1 %10112, %v18138_v13   ;;  %v4866_v12 = vadd.f32 1e-05, %v4674_v26  ;;  %v7473_v25 = vpop.permute.xlu1 %7472  ;;  %v4865_v13 = vadd.f32 1e-05, %v4673_v22  ;;  %v10545_v26 = vld [vmem:[%s10740_s18 + $0x150] sm:$0xff]  ;;  %v4483_v39 = vsub.f32 %v4099_v24, %v4291_v15  ;;  %v18141_v24 = vld [vmem:[#allocation65_spill] sm:$0xff] }
 0x251   : > { %v8266_v14 = vadd.f32 %v7473_v25, %v7114_v10  ;;  %v7115_v60 = vmul.f32 %v10545_v26, %v6326_v52  ;;  %v4676_v10 = vmax.f32 %v4484_v54, 0.0  ;;  %v14372_v25 = vmul.f32 0.020408163, %v13942_v44  ;;  %v14407_v63 = vpop.f32.mrb[120].mxu0 }
 0x252   : > { %6495 = vperm.xlu0 %10111, %v13699_v51   ;;  %10305 = vrsqrt.f32 %v4866_v12  ;;  %v14360_v51 = vmul.f32 0.020408163, %v13925_v43  ;;  %v9952_v12 = vpop.f32.mrb[100].mxu1  ;;  %v4675_v43 = vmax.f32 %v4483_v39, 0.0  ;;  %v5996_v54 = vsub.f32 %v5612_v57, %v18141_v24  ;;  %v10546_v39 = vld [vmem:[%s10740_s18 + $0x158] sm:$0xff] }
 0x253   : > { %10307 = vrsqrt.f32 %v4865_v13  ;;  %8458 = vst.msk [vmem:[%s12423_s27 + $0x148] sm:$0xff] %vm410_vm0, %v8266_v14  ;;  %v7478_v22 = vpop.permute.xlu0 %7477  ;;  %v4102_v15 = vmul.f32 0.020408163, %v9952_v12  ;;  %v3350_v19 = vpop.f32.mrb[101].mxu1  ;;  %v5613_v14 = vld [vmem:[%s11104_s24 + $0x260] sm:$0xff]  ;;  %v7116_v44 = vmul.f32 %v10546_v39, %v14330_v2 }
 0x254   : > { %7632 = vperm.xlu1 %10112, %v5994_v27   ;;  %v4293_v27 = vmul.f32 %v14346_v29, %v14346_v29  ;;  %v14369_v45 = vpop.permute.xlu1 %6340  ;;  %v8267_v52 = vadd.f32 %v7478_v22, %v7115_v60  ;;  %v4868_v47 = vadd.f32 1e-05, %v4676_v10  ;;  %v4101_v13 = vmul.f32 0.020408163, %v3350_v19  ;;  %v9955_v19 = vpop.f32.mrb[102].mxu1 }
 0x255   : > { %v4867_v26 = vadd.f32 1e-05, %v4675_v43  ;;  %v4486_v60 = vsub.f32 %v4102_v15, %v4294_v32  ;;  %v14389_v12 = vmul.f32 0.020408163, %v14020_v20  ;;  %v18142_v32 = vld [vmem:[#allocation81_spill] sm:$0xff]  ;;  %v14394_v43 = vld [vmem:[%s11104_s24 + $0x270] sm:$0xff]  ;;  %v4295_v15 = vmul.f32 %v14372_v25, %v14372_v25 }
 0x256   : > { %7637 = vperm.xlu0 %10111, %v5995_v16   ;;  %8459 = vst.msk [vmem:[%s12423_s27 + $0x150] sm:$0xff] %vm410_vm0, %v8267_v52  ;;  %v4296_v16 = vmul.f32 %v14360_v51, %v14360_v51  ;;  %10309 = vrsqrt.f32 %v4868_v47  ;;  %v4485_v10 = vsub.f32 %v4101_v13, %v4293_v27  ;;  %v5997_v52 = vsub.f32 %v5613_v14, %v18142_v32  ;;  %v5250_v27 = vld [vmem:[%s11072_s21 + $0x308] sm:$0xff]  ;;  %v3360_v24 = vpop.f32.mrb[103].mxu1  ;;  %v10547_v14 = vld [vmem:[%s10740_s18 + $0x160] sm:$0xff] }
 0x257   : > { %v14383_v22 = vpop.permute.xlu0 %6345  ;;  %10311 = vrsqrt.f32 %v4867_v26  ;;  %v4678_v2 = vmax.f32 %v4486_v60, 0.0  ;;  %v4104_v13 = vmul.f32 0.020408163, %v9955_v19  ;;  %v7117_v39 = vmul.f32 %v10547_v14, %v14349_v53  ;;  %v18143_v26 = vld [vmem:[#allocation61_spill] sm:$0xff] }
 0x258   : > { %6500 = vperm.xlu1 %10112, %v13742_v35   ;;  %v14386_v35 = vld [vmem:[%s11104_s24 + $0x268] sm:$0xff]  ;;  %v7483_v57 = vpop.permute.xlu1 %7482  ;;  %v4677_v20 = vmax.f32 %v4485_v10, 0.0  ;;  %v4103_v8 = vmul.f32 0.020408163, %v3360_v24  ;;  %v4298_v53 = vmul.f32 %v14389_v12, %v14389_v12 }
 0x259   : > { %v8268_v47 = vadd.f32 %v7483_v57, %v7116_v44  ;;  %v5998_v60 = vsub.f32 %v14386_v35, %v18143_v26  ;;  %v4870_v32 = vadd.f32 1e-05, %v4678_v2  ;;  %v18144_v44 = vld [vmem:[#allocation51_spill] sm:$0xff]  ;;  %v4488_v57 = vsub.f32 %v4104_v13, %v4296_v16  ;;  %v14415_v35 = vpop.f32.mrb[121].mxu0  ;;  %v18146_v26 = vld [vmem:[#allocation52_spill] sm:$0xff]  ;;  %v14423_v16 = vld [vmem:[%s11104_s24 + $0x278] sm:$0xff] }
 0x25a   : > { %6505 = vperm.xlu0 %10111, %v13788_v23   ;;  %v14400_v23 = vmul.f32 0.020408163, %v14037_v41  ;;  %v4869_v10 = vadd.f32 1e-05, %v4677_v20 }
 0x25b   : > { %8460 = vst.msk [vmem:[%s12423_s27 + $0x158] sm:$0xff] %vm410_vm0, %v8268_v47  ;;  %10313 = vrsqrt.f32 %v4870_v32  ;;  %v4487_v47 = vsub.f32 %v4103_v8, %v4295_v15  ;;  %v4680_v20 = vmax.f32 %v4488_v57, 0.0  ;;  %v14432_v8 = vmul.f32 0.020408163, %v14093_v40  ;;  %v5251_v15 = vld [vmem:[%s11072_s21 + $0x310] sm:$0xff]  ;;  %v10548_v32 = vld [vmem:[%s10740_s18 + $0x168] sm:$0xff] }
 0x25c   : > { %7642 = vperm.xlu1 %10112, %v5996_v54   ;;  %v10306_v58 = vpop.eup %10305  ;;  %v7488_v54 = vpop.permute.xlu0 %7487  ;;  %10315 = vrsqrt.f32 %v4869_v10  ;;  %v4297_v13 = vmul.f32 %v14400_v23, %v14400_v23 }
 0x25d   : > { %v10308_v2 = vpop.eup %10307  ;;  %v14417_v19 = vpop.permute.xlu1 %6350  ;;  %v8269_v24 = vadd.f32 %v7488_v54, %v7117_v39  ;;  %v14419_v14 = vmul.f32 %v10306_v58, %v5250_v27  ;;  %v14435_v58 = vmul.f32 0.020408163, %v14100_v46  ;;  %v7118_v54 = vmul.f32 %v10548_v32, %v14369_v45 }
 0x25e   : > { %7647 = vperm.xlu0 %10111, %v5997_v52   ;;  %v14427_v41 = vmul.f32 %v10308_v2, %v5249_v50  ;;  %v4679_v52 = vmax.f32 %v4487_v47, 0.0  ;;  %v9958_v39 = vpop.f32.mrb[104].mxu1  ;;  %v4872_v10 = vadd.f32 1e-05, %v4680_v20  ;;  %v18150_v47 = vld [vmem:[#allocation4_spill] sm:$0xff] }
 0x25f   : > { %18145 = vst [vmem:[#allocation57_spill] sm:$0xff] %v14419_v14  ;;  %8461 = vst.msk [vmem:[%s12423_s27 + $0x160] sm:$0xff] %vm410_vm0, %v8269_v24  ;;  %v14440_v27 = vmul.f32 %v14419_v14, %v14289_v49  ;;  %v4106_v57 = vmul.f32 0.020408163, %v9958_v39  ;;  %v3370_v2 = vpop.f32.mrb[105].mxu1  ;;  %v5252_v24 = vld [vmem:[%s11072_s21 + $0x318] sm:$0xff] }
 0x260   : > { %6510 = vperm.xlu1 %10112, %v18146_v26   ;;  %18147 = vst [vmem:[#allocation6_spill] sm:$0xff] %v14427_v41  ;;  %v14444_v50 = vpop.permute.xlu0 %6355  ;;  %v14449_v40 = vmul.f32 %v14427_v41, %v14293_v4  ;;  %v18151_v49 = vld [vmem:[#allocation64_spill] sm:$0xff]  ;;  %v4105_v45 = vmul.f32 0.020408163, %v3370_v2  ;;  %v14455_v32 = vmul.f32 0.020408163, %v14162_v9  ;;  %v10310_v20 = vpop.eup %10309  ;;  %10317 = vrsqrt.f32 %v4872_v10 }
 0x261   : > { %18148 = vst [vmem:[#allocation23_spill] sm:$0xff] %v14440_v27  ;;  %v7493_v46 = vpop.permute.xlu1 %7492  ;;  %v6000_v26 = vsub.f32 %v14423_v16, %v18151_v49  ;;  %v4871_v27 = vadd.f32 1e-05, %v4679_v52  ;;  %v4490_v4 = vsub.f32 %v4106_v57, %v4298_v53  ;;  %v14460_v14 = vpop.f32.mrb[122].mxu0  ;;  %v10549_v41 = vld [vmem:[%s10740_s18 + $0x170] sm:$0xff]  ;;  %v14465_v52 = vld [vmem:[%s11104_s24 + $0x280] sm:$0xff]  ;;  %v14467_v2 = vmul.f32 %v10310_v20, %v5252_v24 }
 0x262   : > { %18149 = vst [vmem:[#allocation75_spill] sm:$0xff] %v14449_v40  ;;  %6515 = vperm.xlu0 %10111, %v18150_v47   ;;  %v8270_v39 = vadd.f32 %v7493_v46, %v7118_v54  ;;  %v14458_v40 = vmul.f32 0.020408163, %v14170_v5  ;;  %v10312_v47 = vpop.eup %10311  ;;  %v7119_v16 = vmul.f32 %v10549_v41, %v14383_v22  ;;  %v4489_v9 = vsub.f32 %v4105_v45, %v4297_v13  ;;  %v14469_v54 = vpop.f32.mrb[123].mxu0  ;;  %v14474_v5 = vld [vmem:[%s11104_s24 + $0x288] sm:$0xff] }
 0x263   : > { %10319 = vrsqrt.f32 %v4871_v27  ;;  %v4682_v53 = vmax.f32 %v4490_v4, 0.0  ;;  %v4300_v10 = vmul.f32 %v14432_v8, %v14432_v8  ;;  %v4299_v22 = vmul.f32 %v14435_v58, %v14435_v58  ;;  %v9961_v46 = vpop.f32.mrb[106].mxu1  ;;  %v5254_v45 = vld [vmem:[%s11072_s21 + $0x328] sm:$0xff] }
 0x264   : > { %7652 = vperm.xlu1 %10112, %v5998_v60   ;;  %8462 = vst.msk [vmem:[%s12423_s27 + $0x168] sm:$0xff] %vm410_vm0, %v8270_v39  ;;  %v7498_v60 = vpop.permute.xlu0 %7497  ;;  %v14480_v41 = vmul.f32 %v10312_v47, %v5251_v15  ;;  %v18152_v57 = vsub.f32 %v14394_v43, %v18144_v44  ;;  %v4681_v24 = vmax.f32 %v4489_v9, 0.0  ;;  %v14488_v49 = vmul.f32 0.020408163, %v14218_v28  ;;  %v18154_v15 = vld [vmem:[#allocation10_spill] sm:$0xff]  ;;  %v3380_v43 = vpop.f32.mrb[107].mxu1 }
 0x265   : > { %v14482_v13 = vpop.permute.xlu1 %6360  ;;  %v8271_v27 = vadd.f32 %v7498_v60, %v7119_v16  ;;  %v14493_v20 = vmul.f32 %v14467_v2, %v14313_v61  ;;  %v6001_v39 = vsub.f32 %v14465_v52, %v18154_v15  ;;  %v4874_v4 = vadd.f32 1e-05, %v4682_v53  ;;  %v5253_v44 = vld [vmem:[%s11072_s21 + $0x320] sm:$0xff]  ;;  %v10314_v28 = vpop.eup %10313  ;;  %v18156_v9 = vld [vmem:[#allocation8_spill] sm:$0xff]  ;;  %v10550_v53 = vld [vmem:[%s10740_s18 + $0x178] sm:$0xff] }
 0x266   : > { %7657 = vperm.xlu0 %10111, %v18152_v57   ;;  %v4108_v47 = vmul.f32 0.020408163, %v9961_v46  ;;  %v14501_v16 = vmul.f32 %v14480_v41, %v14321_v56  ;;  %v4873_v60 = vadd.f32 1e-05, %v4681_v24  ;;  %v4107_v57 = vmul.f32 0.020408163, %v3380_v43  ;;  %v10316_v52 = vpop.eup %10315 }
 0x267   : > { %18153 = vst [vmem:[#allocation50_spill] sm:$0xff] %v14493_v20  ;;  %8463 = vst.msk [vmem:[%s12423_s27 + $0x170] sm:$0xff] %vm410_vm0, %v8271_v27  ;;  %v7120_v46 = vmul.f32 %v10550_v53, %v14417_v19  ;;  %10321 = vrsqrt.f32 %v4874_v4  ;;  %v14514_v20 = vmul.f32 %v10314_v28, %v5254_v45  ;;  %v14519_v43 = vmul.f32 %v10316_v52, %v5253_v44  ;;  %v9964_v45 = vpop.f32.mrb[108].mxu1  ;;  %v5256_v4 = vld [vmem:[%s11072_s21 + $0x338] sm:$0xff]  ;;  %v5255_v52 = vld [vmem:[%s11072_s21 + $0x330] sm:$0xff] }
 0x268   : > { %6520 = vperm.xlu1 %10112, %v13916_v34   ;;  %18155 = vst [vmem:[#allocation45_spill] sm:$0xff] %v14501_v16  ;;  %v14508_v34 = vmul.f32 0.020408163, %v14223_v38  ;;  %v14512_v15 = vpop.permute.xlu0 %6365  ;;  %v4492_v56 = vsub.f32 %v4108_v47, %v4300_v10  ;;  %v18157_v16 = vld [vmem:[#allocation17_spill] sm:$0xff]  ;;  %10323 = vrsqrt.f32 %v4873_v60  ;;  %v4491_v24 = vsub.f32 %v4107_v57, %v4299_v22  ;;  %v14528_v22 = vpop.f32.mrb[124].mxu0 }
 0x269   : > { %v7503_v27 = vpop.permute.xlu1 %7502  ;;  %v4302_v38 = vmul.f32 %v14455_v32, %v14455_v32  ;;  %v4301_v10 = vmul.f32 %v14458_v40, %v14458_v40  ;;  %v14526_v47 = vmul.f32 %v14514_v20, %v14338_v11  ;;  %18159 = vst [vmem:[#allocation32_spill] sm:$0xff] %v14528_v22  ;;  %v4110_v60 = vmul.f32 0.020408163, %v9964_v45  ;;  %v3390_v57 = vpop.f32.mrb[109].mxu1 }
 0x26a   : > { %6525 = vperm.xlu0 %10111, %v18157_v16   ;;  %v8272_v19 = vadd.f32 %v7503_v27, %v7120_v46  ;;  %v4684_v53 = vmax.f32 %v4492_v56, 0.0  ;;  %v10551_v16 = vld [vmem:[%s10740_s18 + $0x180] sm:$0xff]  ;;  %v4683_v44 = vmax.f32 %v4491_v24, 0.0  ;;  %v10318_v46 = vpop.eup %10317  ;;  %v4109_v27 = vmul.f32 0.020408163, %v3390_v57  ;;  %v14543_v24 = vpop.f32.mrb[125].mxu0 }
 0x26b   : > { %18158 = vst [vmem:[#allocation72_spill] sm:$0xff] %v14526_v47  ;;  %v7121_v28 = vmul.f32 %v10551_v16, %v14444_v50  ;;  %v4304_v61 = vmul.f32 %v14488_v49, %v14488_v49  ;;  %v4303_v50 = vmul.f32 %v14508_v34, %v14508_v34  ;;  %18161 = vst [vmem:[#allocation7_spill] sm:$0xff] %v14543_v24 }
 0x26c   : > { %7662 = vperm.xlu1 %10112, %v6000_v26   ;;  %v14535_v26 = vmul.f32 %v14519_v43, %v14346_v29  ;;  %8464 = vst.msk [vmem:[%s12423_s27 + $0x178] sm:$0xff] %vm410_vm0, %v8272_v19  ;;  %v7508_v56 = vpop.permute.xlu0 %7507  ;;  %v4876_v11 = vadd.f32 1e-05, %v4684_v53  ;;  %v4875_v22 = vadd.f32 1e-05, %v4683_v44  ;;  %v4494_v19 = vsub.f32 %v4110_v60, %v4302_v38  ;;  %v5619_v53 = vld [vmem:[%s11104_s24 + $0x290] sm:$0xff] }
 0x26d   : > { %v10320_v45 = vpop.eup %10319  ;;  %v14545_v16 = vpop.permute.xlu1 %6370  ;;  %v8273_v29 = vadd.f32 %v7508_v56, %v7121_v28  ;;  %v14547_v47 = vmul.f32 %v10318_v46, %v5256_v4  ;;  %v4493_v57 = vsub.f32 %v4109_v27, %v4301_v10  ;;  %v14559_v38 = vmul.f32 0.020408163, %v14251_v17  ;;  %v10552_v4 = vld [vmem:[%s10740_s18 + $0x188] sm:$0xff] }
 0x26e   : > { %18160 = vst [vmem:[#allocation36_spill] sm:$0xff] %v14535_v26  ;;  %7667 = vperm.xlu0 %10111, %v6001_v39   ;;  %10325 = vrsqrt.f32 %v4876_v11  ;;  %v14552_v26 = vmul.f32 0.020408163, %v14246_v33  ;;  %v14554_v24 = vmul.f32 %v10320_v45, %v5255_v52  ;;  %v4686_v39 = vmax.f32 %v4494_v19, 0.0  ;;  %v9967_v28 = vpop.f32.mrb[110].mxu1  ;;  %v5258_v46 = vld [vmem:[%s11072_s21 + $0x348] sm:$0xff] }
 0x26f   : > { %8465 = vst.msk [vmem:[%s12423_s27 + $0x180] sm:$0xff] %vm410_vm0, %v8273_v29  ;;  %10327 = vrsqrt.f32 %v4875_v22  ;;  %v7122_v10 = vmul.f32 %v10552_v4, %v14482_v13  ;;  %v4685_v44 = vmax.f32 %v4493_v57, 0.0  ;;  %v4112_v60 = vmul.f32 0.020408163, %v9967_v28  ;;  %v3400_v52 = vpop.f32.mrb[111].mxu1  ;;  %v18162_v56 = vld [vmem:[#allocation27_spill] sm:$0xff] }
 0x270   : > { %6530 = vperm.xlu1 %10112, %v13993_v62   ;;  %v14563_v62 = vmul.f32 %v14547_v47, %v14360_v51  ;;  %v14567_v33 = vpop.permute.xlu0 %6375  ;;  %v14572_v22 = vmul.f32 %v14554_v24, %v14372_v25  ;;  %v6003_v51 = vsub.f32 %v5619_v53, %v18162_v56  ;;  %v4878_v11 = vadd.f32 1e-05, %v4686_v39  ;;  %v5257_v13 = vld [vmem:[%s11072_s21 + $0x340] sm:$0xff]  ;;  %v14582_v4 = vpop.f32.mrb[126].mxu0  ;;  %v10553_v53 = vld [vmem:[%s10740_s18 + $0x190] sm:$0xff] }
 0x271   : > { %v7513_v17 = vpop.permute.xlu1 %7512  ;;  %v4111_v27 = vmul.f32 0.020408163, %v3400_v52  ;;  %v10322_v45 = vpop.eup %10321  ;;  %v18163_v19 = vsub.f32 %v14474_v5, %v18156_v9  ;;  %v4877_v57 = vadd.f32 1e-05, %v4685_v44  ;;  %v4496_v28 = vsub.f32 %v4112_v60, %v4304_v61  ;;  %18164 = vst [vmem:[#allocation74_spill] sm:$0xff] %v14582_v4  ;;  %v5620_v9 = vld [vmem:[%s11104_s24 + $0x298] sm:$0xff] }
 0x272   : > { %6535 = vperm.xlu0 %10111, %v14006_v37   ;;  %v8274_v29 = vadd.f32 %v7513_v17, %v7122_v10  ;;  %v4306_v25 = vmul.f32 %v14552_v26, %v14552_v26  ;;  %v10324_v37 = vpop.eup %10323  ;;  %v7123_v39 = vmul.f32 %v10553_v53, %v14512_v15  ;;  %10329 = vrsqrt.f32 %v4878_v11  ;;  %v14588_v10 = vpop.f32.mrb[127].mxu0 }
 0x273   : > { %v4495_v52 = vsub.f32 %v4111_v27, %v4303_v50  ;;  %v14586_v56 = vmul.f32 %v10322_v45, %v5258_v46  ;;  %18165 = vst [vmem:[#allocation62_spill] sm:$0xff] %v14588_v10  ;;  %10331 = vrsqrt.f32 %v4877_v57  ;;  %v4688_v61 = vmax.f32 %v4496_v28, 0.0  ;;  %v5621_v46 = vld [vmem:[%s11104_s24 + $0x2a0] sm:$0xff]  ;;  %v9970_v11 = vpop.f32.mrb[112].mxu1  ;;  %v5260_v45 = vld [vmem:[%s11072_s21 + $0x358] sm:$0xff] }
 0x274   : > { %7672 = vperm.xlu1 %10112, %v18163_v19   ;;  %8466 = vst.msk [vmem:[%s12423_s27 + $0x188] sm:$0xff] %vm410_vm0, %v8274_v29  ;;  %v7518_v5 = vpop.permute.xlu0 %7517  ;;  %v4305_v44 = vmul.f32 %v14559_v38, %v14559_v38  ;;  %v14595_v60 = vmul.f32 %v10324_v37, %v5257_v13  ;;  %v14601_v27 = vmul.f32 0.020408163, %v14277_v7  ;;  %v18167_v13 = vld [vmem:[#allocation39_spill] sm:$0xff]  ;;  %v4114_v57 = vmul.f32 0.020408163, %v9970_v11 }
 0x275   : > { %v14597_v15 = vpop.permute.xlu1 %6380  ;;  %v8275_v50 = vadd.f32 %v7518_v5, %v7123_v39  ;;  %v4687_v17 = vmax.f32 %v4495_v52, 0.0  ;;  %v14606_v29 = vmul.f32 %v14586_v56, %v14389_v12  ;;  %v4880_v19 = vadd.f32 1e-05, %v4688_v61  ;;  %v3410_v28 = vpop.f32.mrb[113].mxu1  ;;  %v18169_v7 = vld [vmem:[#allocation34_spill] sm:$0xff]  ;;  %v5259_v5 = vld [vmem:[%s11072_s21 + $0x350] sm:$0xff] }
 0x276   : > { %7677 = vperm.xlu0 %10111, %v6003_v51   ;;  %v14611_v51 = vmul.f32 %v14595_v60, %v14400_v23  ;;  %v14613_v37 = vpop.f32.mrb[128].mxu0  ;;  %v6004_v53 = vsub.f32 %v5620_v9, %v18169_v7  ;;  %v4113_v52 = vmul.f32 0.020408163, %v3410_v28  ;;  %v4498_v23 = vsub.f32 %v4114_v57, %v4306_v25  ;;  %v18172_v28 = vld [vmem:[#allocation49_spill] sm:$0xff] }
 0x277   : > { %18166 = vst [vmem:[#allocation58_spill] sm:$0xff] %v14606_v29  ;;  %18168 = vst [vmem:[#allocation3_spill] sm:$0xff] %v14613_v37  ;;  %v4879_v39 = vadd.f32 1e-05, %v4687_v17  ;;  %v14619_v12 = vpop.f32.mrb[129].mxu0  ;;  %10333 = vrsqrt.f32 %v4880_v19  ;;  %v18171_v17 = vld [vmem:[#allocation67_spill] sm:$0xff]  ;;  %v6005_v7 = vsub.f32 %v5621_v46, %v18172_v28 }
 0x278   : > { %6540 = vperm.xlu1 %10112, %v18167_v13   ;;  %8467 = vst.msk [vmem:[%s12423_s27 + $0x190] sm:$0xff] %vm410_vm0, %v8275_v50  ;;  %18170 = vst [vmem:[#allocation20_spill] sm:$0xff] %v14619_v12  ;;  %v10326_v10 = vpop.eup %10325  ;;  %v10554_v13 = vld [vmem:[%s10740_s18 + $0x198] sm:$0xff]  ;;  %v14623_v11 = vpop.permute.xlu0 %6385  ;;  %v14626_v37 = vmul.f32 0.020408163, %v14284_v6  ;;  %v4497_v12 = vsub.f32 %v4113_v52, %v4305_v44  ;;  %v4690_v19 = vmax.f32 %v4498_v23, 0.0  ;;  %v4308_v6 = vmul.f32 %v14601_v27, %v14601_v27 }
 0x279   : > { %v7124_v61 = vmul.f32 %v10554_v13, %v14545_v16  ;;  %v10328_v50 = vpop.eup %10327  ;;  %v7523_v9 = vpop.permute.xlu1 %7522  ;;  %10335 = vrsqrt.f32 %v4879_v39  ;;  %v14630_v16 = vmul.f32 %v10326_v10, %v5260_v45  ;;  %v5622_v46 = vld [vmem:[%s11104_s24 + $0x2a8] sm:$0xff]  ;;  %v14642_v44 = vmul.f32 0.020408163, %v14324_v36  ;;  %v5261_v36 = vld [vmem:[%s11072_s21 + $0x360] sm:$0xff] }
 0x27a   : > { %6545 = vperm.xlu0 %10111, %v18171_v17   ;;  %v14634_v25 = vmul.f32 %v10328_v50, %v5259_v5  ;;  %v14636_v57 = vpop.f32.mrb[130].mxu0  ;;  %v10555_v17 = vld [vmem:[%s10740_s18 + $0x1a0] sm:$0xff]  ;;  %v4689_v39 = vmax.f32 %v4497_v12, 0.0  ;;  %v5262_v10 = vld [vmem:[%s11072_s21 + $0x368] sm:$0xff]  ;;  %v4882_v5 = vadd.f32 1e-05, %v4690_v19 }
 0x27b   : > { %v8276_v13 = vadd.f32 %v7523_v9, %v7124_v61  ;;  %18173 = vst [vmem:[#allocation60_spill] sm:$0xff] %v14636_v57  ;;  %v7125_v4 = vmul.f32 %v10555_v17, %v14567_v33  ;;  %v14647_v45 = vmul.f32 %v14630_v16, %v14432_v8  ;;  %v4307_v33 = vmul.f32 %v14626_v37, %v14626_v37  ;;  %v9973_v61 = vpop.f32.mrb[114].mxu1 }
 0x27c   : > { %7682 = vperm.xlu1 %10112, %v6004_v53   ;;  %v14649_v53 = vpop.f32.mrb[131].mxu0  ;;  %v7528_v52 = vpop.permute.xlu0 %7527  ;;  %v14656_v12 = vmul.f32 0.020408163, %v14328_v42  ;;  %v14661_v8 = vmul.f32 %v14634_v25, %v14435_v58  ;;  %v4881_v28 = vadd.f32 1e-05, %v4689_v39  ;;  %v5623_v42 = vld [vmem:[%s11104_s24 + $0x2b0] sm:$0xff]  ;;  %10337 = vrsqrt.f32 %v4882_v5 }
 0x27d   : > { %18174 = vst [vmem:[#allocation28_spill] sm:$0xff] %v14647_v45  ;;  %18175 = vst [vmem:[#allocation35_spill] sm:$0xff] %v14649_v53  ;;  %v10330_v23 = vpop.eup %10329  ;;  %v14663_v50 = vpop.permute.xlu1 %6390  ;;  %v8277_v9 = vadd.f32 %v7528_v52, %v7125_v4  ;;  %v18177_v53 = vld [vmem:[#allocation12_spill] sm:$0xff] }
 0x27e   : > { %8468 = vst.msk [vmem:[%s12423_s27 + $0x198] sm:$0xff] %vm410_vm0, %v8276_v13  ;;  %18176 = vst [vmem:[#allocation79_spill] sm:$0xff] %v14661_v8  ;;  %7687 = vperm.xlu0 %10111, %v6005_v7   ;;  %v4116_v13 = vmul.f32 0.020408163, %v9973_v61  ;;  %v3420_v19 = vpop.f32.mrb[115].mxu1  ;;  %v10332_v17 = vpop.eup %10331  ;;  %v14667_v57 = vmul.f32 %v10330_v23, %v5262_v10  ;;  %v18180_v8 = vld [vmem:[#allocation70_spill] sm:$0xff]  ;;  %10339 = vrsqrt.f32 %v4881_v28  ;;  %v4310_v23 = vmul.f32 %v14642_v44, %v14642_v44 }
 0x27f   : > { %v4115_v45 = vmul.f32 0.020408163, %v3420_v19  ;;  %v14669_v58 = vpop.f32.mrb[132].mxu0  ;;  %8469 = vst.msk [vmem:[%s12423_s27 + $0x1a0] sm:$0xff] %vm410_vm0, %v8277_v9  ;;  %v6006_v4 = vsub.f32 %v5622_v46, %v18180_v8  ;;  %v14674_v39 = vmul.f32 %v10332_v17, %v5261_v36  ;;  %v5264_v19 = vld [vmem:[%s11072_s21 + $0x378] sm:$0xff]  ;;  %v18183_v8 = vld [vmem:[#allocation63_spill] sm:$0xff] }
 0x280   : > { %6550 = vperm.xlu1 %10112, %v18177_v53   ;;  %18178 = vst [vmem:[#allocation22_spill] sm:$0xff] %v14667_v57  ;;  %18179 = vst [vmem:[#allocation5_spill] sm:$0xff] %v14669_v58  ;;  %v4500_v7 = vsub.f32 %v4116_v13, %v4308_v6  ;;  %v14676_v52 = vpop.f32.mrb[133].mxu0  ;;  %v10556_v53 = vld [vmem:[%s10740_s18 + $0x1a8] sm:$0xff]  ;;  %v14680_v5 = vpop.permute.xlu0 %6395  ;;  %v14687_v46 = vmul.f32 %v14667_v57, %v14455_v32  ;;  %v18184_v36 = vld [vmem:[#allocation54_spill] sm:$0xff] }
 0x281   : > { %18181 = vst [vmem:[#allocation38_spill] sm:$0xff] %v14676_v52  ;;  %v7126_v61 = vmul.f32 %v10556_v53, %v14597_v15  ;;  %v4499_v10 = vsub.f32 %v4115_v45, %v4307_v33  ;;  %v7533_v6 = vpop.permute.xlu1 %7532  ;;  %v6007_v9 = vsub.f32 %v5623_v42, %v18184_v36  ;;  %v4309_v15 = vmul.f32 %v14656_v12, %v14656_v12  ;;  %v9976_v13 = vpop.f32.mrb[116].mxu1  ;;  %v5263_v45 = vld [vmem:[%s11072_s21 + $0x370] sm:$0xff] }
 0x282   : > { %18182 = vst [vmem:[#allocation55_spill] sm:$0xff] %v14687_v46  ;;  %6555 = vperm.xlu0 %10111, %v18183_v8   ;;  %v4692_v28 = vmax.f32 %v4500_v7, 0.0  ;;  %v14696_v33 = vmul.f32 %v14674_v39, %v14458_v40  ;;  %v10334_v17 = vpop.eup %10333  ;;  %v4118_v46 = vmul.f32 0.020408163, %v9976_v13  ;;  %v3430_v8 = vpop.f32.mrb[117].mxu1  ;;  %v10557_v36 = vld [vmem:[%s10740_s18 + $0x1b0] sm:$0xff] }
 0x283   : > { %v8278_v32 = vadd.f32 %v7533_v6, %v7126_v61  ;;  %v4691_v53 = vmax.f32 %v4499_v10, 0.0  ;;  %v14699_v42 = vmul.f32 0.020408163, %v14356_v55  ;;  %v10336_v7 = vpop.eup %10335  ;;  %v7127_v52 = vmul.f32 %v10557_v36, %v14623_v11  ;;  %v14705_v40 = vpop.f32.mrb[134].mxu0  ;;  %v5624_v61 = vld [vmem:[%s11104_s24 + $0x2b8] sm:$0xff] }
 0x284   : > { %7692 = vperm.xlu1 %10112, %v6006_v4   ;;  %v4884_v57 = vadd.f32 1e-05, %v4692_v28  ;;  %v4117_v58 = vmul.f32 0.020408163, %v3430_v8  ;;  %v14703_v29 = vmul.f32 %v10334_v17, %v5264_v19  ;;  %v7538_v4 = vpop.permute.xlu0 %7537  ;;  %v4502_v6 = vsub.f32 %v4118_v46, %v4310_v23  ;;  %v14715_v11 = vpop.f32.mrb[135].mxu0  ;;  %v5266_v46 = vld [vmem:[%s11072_s21 + $0x388] sm:$0xff] }
 0x285   : > { %8470 = vst.msk [vmem:[%s12423_s27 + $0x1a8] sm:$0xff] %vm410_vm0, %v8278_v32  ;;  %v4883_v10 = vadd.f32 1e-05, %v4691_v53  ;;  %v14711_v55 = vmul.f32 0.020408163, %v14362_v59  ;;  %v14713_v13 = vmul.f32 %v10336_v7, %v5263_v45  ;;  %v14717_v19 = vpop.permute.xlu1 %6400  ;;  %v8279_v28 = vadd.f32 %v7538_v4, %v7127_v52  ;;  %v5625_v59 = vld [vmem:[%s11104_s24 + $0x2c0] sm:$0xff] }
 0x286   : > { %18185 = vst [vmem:[#allocation37_spill] sm:$0xff] %v14703_v29  ;;  %7697 = vperm.xlu0 %10111, %v6007_v9   ;;  %10341 = vrsqrt.f32 %v4884_v57  ;;  %v4501_v17 = vsub.f32 %v4117_v58, %v4309_v15  ;;  %v14721_v32 = vmul.f32 %v14703_v29, %v14488_v49  ;;  %v4694_v23 = vmax.f32 %v4502_v6, 0.0  ;;  %v18188_v52 = vld [vmem:[#allocation16_spill] sm:$0xff]  ;;  %v14739_v15 = vpop.f32.mrb[136].mxu0  ;;  %v10338_v53 = vpop.eup %10337  ;;  %v10558_v8 = vld [vmem:[%s10740_s18 + $0x1b8] sm:$0xff] }
 0x287   : > { %18186 = vst [vmem:[#allocation13_spill] sm:$0xff] %v14713_v13  ;;  %10343 = vrsqrt.f32 %v4883_v10  ;;  %v14728_v45 = vmul.f32 %v14713_v13, %v14508_v34  ;;  %8471 = vst.msk [vmem:[%s12423_s27 + $0x1b0] sm:$0xff] %vm410_vm0, %v8279_v28  ;;  %v6008_v57 = vsub.f32 %v5624_v61, %v18188_v52  ;;  %v4312_v9 = vmul.f32 %v14699_v42, %v14699_v42  ;;  %v9979_v61 = vpop.f32.mrb[118].mxu1  ;;  %v18190_v28 = vld [vmem:[#allocation29_spill] sm:$0xff]  ;;  %v10559_v13 = vld [vmem:[%s10740_s18 + $0x1c0] sm:$0xff] }
 0x288   : > { %6560 = vperm.xlu1 %10112, %v14107_v1   ;;  %v4693_v58 = vmax.f32 %v4501_v17, 0.0  ;;  %v14736_v49 = vmul.f32 0.020408163, %v14407_v63  ;;  %v5265_v1 = vld [vmem:[%s11072_s21 + $0x380] sm:$0xff]  ;;  %18189 = vst [vmem:[#allocation53_spill] sm:$0xff] %v14739_v15  ;;  %v7128_v7 = vmul.f32 %v10558_v8, %v14663_v50  ;;  %v14743_v34 = vpop.permute.xlu0 %6405  ;;  %v4311_v4 = vmul.f32 %v14711_v55, %v14711_v55  ;;  %v10340_v63 = vpop.eup %10339 }
 0x289   : > { %18187 = vst [vmem:[#allocation26_spill] sm:$0xff] %v14728_v45  ;;  %v4886_v36 = vadd.f32 1e-05, %v4694_v23  ;;  %v14748_v10 = vmul.f32 0.020408163, %v14415_v35  ;;  %v7543_v6 = vpop.permute.xlu1 %7542  ;;  %v6009_v17 = vsub.f32 %v5625_v59, %v18190_v28  ;;  %v3440_v8 = vpop.f32.mrb[119].mxu1  ;;  %v14752_v23 = vmul.f32 %v10338_v53, %v5266_v46 }
 0x28a   : > { %6565 = vperm.xlu0 %10111, %v14121_v18   ;;  %v4885_v52 = vadd.f32 1e-05, %v4693_v58  ;;  %v4120_v50 = vmul.f32 0.020408163, %v9979_v61  ;;  %v8280_v29 = vadd.f32 %v7543_v6, %v7128_v7  ;;  %v4119_v15 = vmul.f32 0.020408163, %v3440_v8 }
 0x28b   : > { %18191 = vst [vmem:[#allocation43_spill] sm:$0xff] %v14752_v23  ;;  %10345 = vrsqrt.f32 %v4886_v36  ;;  %v14754_v45 = vmul.f32 %v10340_v63, %v5265_v1  ;;  %v14756_v35 = vpop.f32.mrb[137].mxu0  ;;  %v7129_v18 = vmul.f32 %v10559_v13, %v14680_v5  ;;  %v14762_v46 = vmul.f32 %v14752_v23, %v14552_v26  ;;  %v5626_v1 = vld [vmem:[%s11104_s24 + $0x2c8] sm:$0xff]  ;;  %v5627_v26 = vld [vmem:[%s11104_s24 + $0x2d0] sm:$0xff]  ;;  %v5268_v63 = vld [vmem:[%s11072_s21 + $0x398] sm:$0xff] }
 0x28c   : > { %7702 = vperm.xlu1 %10112, %v6008_v57   ;;  %10347 = vrsqrt.f32 %v4885_v52  ;;  %v4504_v59 = vsub.f32 %v4120_v50, %v4312_v9  ;;  %v14764_v58 = vpop.f32.mrb[138].mxu0  ;;  %8472 = vst.msk [vmem:[%s12423_s27 + $0x1b8] sm:$0xff] %vm410_vm0, %v8280_v29  ;;  %v7548_v57 = vpop.permute.xlu0 %7547  ;;  %v4503_v53 = vsub.f32 %v4119_v15, %v4311_v4  ;;  %v4314_v61 = vmul.f32 %v14736_v49, %v14736_v49  ;;  %v5267_v29 = vld [vmem:[%s11072_s21 + $0x390] sm:$0xff]  ;;  %v18195_v52 = vld [vmem:[#allocation18_spill] sm:$0xff] }
 0x28d   : > { %18192 = vst [vmem:[#allocation69_spill] sm:$0xff] %v14754_v45  ;;  %18193 = vst [vmem:[#allocation66_spill] sm:$0xff] %v14762_v46  ;;  %v14771_v7 = vmul.f32 %v14754_v45, %v14559_v38  ;;  %v14773_v5 = vpop.f32.mrb[139].mxu0  ;;  %v14775_v13 = vpop.permute.xlu1 %6410  ;;  %v8281_v9 = vadd.f32 %v7548_v57, %v7129_v18  ;;  %v4313_v38 = vmul.f32 %v14748_v10, %v14748_v10  ;;  %v14786_v6 = vmul.f32 0.020408163, %v14460_v14  ;;  %v18315_v46 = vld [vmem:[#allocation37_spill] sm:$0xff] }
 0x28e   : > { %18194 = vst [vmem:[#allocation33_spill] sm:$0xff] %v14773_v5  ;;  %7707 = vperm.xlu0 %10111, %v6009_v17   ;;  %v4696_v36 = vmax.f32 %v4504_v59, 0.0  ;;  %v4695_v15 = vmax.f32 %v4503_v53, 0.0  ;;  %v9982_v4 = vpop.f32.mrb[120].mxu1  ;;  %v14789_v28 = vmul.f32 0.020408163, %v14469_v54  ;;  %v6010_v50 = vsub.f32 %v5626_v1, %v18195_v52 }
 0x28f   : > { %8473 = vst.msk [vmem:[%s12423_s27 + $0x1c0] sm:$0xff] %vm410_vm0, %v8281_v9  ;;  %v4122_v18 = vmul.f32 0.020408163, %v9982_v4  ;;  %v3450_v59 = vpop.f32.mrb[121].mxu1  ;;  %v10560_v53 = vld [vmem:[%s10740_s18 + $0x1c8] sm:$0xff]  ;;  %v6011_v1 = vsub.f32 %v5627_v26, %v14160_v31 }
 0x290   : > { %6570 = vperm.xlu1 %10112, %v14141_v3   ;;  %v10342_v17 = vpop.eup %10341  ;;  %v4888_v8 = vadd.f32 1e-05, %v4696_v36  ;;  %v14794_v3 = vpop.f32.mrb[140].mxu0  ;;  %v7130_v23 = vmul.f32 %v10560_v53, %v14717_v19  ;;  %v4887_v45 = vadd.f32 1e-05, %v4695_v15 }
 0x291   : > { %v10344_v57 = vpop.eup %10343  ;;  %v14798_v14 = vpop.permute.xlu0 %6415  ;;  %v4121_v54 = vmul.f32 0.020408163, %v3450_v59  ;;  %v14800_v5 = vmul.f32 %v10342_v17, %v5268_v63  ;;  %v4506_v36 = vsub.f32 %v4122_v18, %v4314_v61  ;;  %v5270_v63 = vld [vmem:[%s11072_s21 + $0x3a8] sm:$0xff]  ;;  %v4316_v61 = vmul.f32 %v14786_v6, %v14786_v6 }
 0x292   : > { %v7553_v9 = vpop.permute.xlu1 %7552  ;;  %6575 = vperm.xlu0 %10111, %v14156_v21   ;;  %10349 = vrsqrt.f32 %v4888_v8  ;;  %v14804_v4 = vmul.f32 %v10344_v57, %v5267_v29  ;;  %v14806_v19 = vpop.f32.mrb[141].mxu0  ;;  %v10561_v21 = vld [vmem:[%s10740_s18 + $0x1d0] sm:$0xff]  ;;  %v5269_v29 = vld [vmem:[%s11072_s21 + $0x3a0] sm:$0xff] }
 0x293   : > { %18196 = vst [vmem:[#allocation40_spill] sm:$0xff] %v14800_v5  ;;  %v8282_v52 = vadd.f32 %v7553_v9, %v7130_v23  ;;  %10351 = vrsqrt.f32 %v4887_v45  ;;  %v4505_v15 = vsub.f32 %v4121_v54, %v4313_v38  ;;  %v14811_v17 = vmul.f32 %v14800_v5, %v14601_v27  ;;  %v5628_v27 = vld [vmem:[%s11104_s24 + $0x2d8] sm:$0xff]  ;;  %v9985_v18 = vpop.f32.mrb[122].mxu1 }
 0x294   : > { %7712 = vperm.xlu1 %10112, %v6010_v50   ;;  %v7131_v31 = vmul.f32 %v10561_v21, %v14743_v34  ;;  %v4698_v26 = vmax.f32 %v4506_v36, 0.0  ;;  %v14820_v23 = vmul.f32 %v14804_v4, %v14626_v37  ;;  %v14822_v50 = vpop.f32.mrb[142].mxu0  ;;  %v4315_v34 = vmul.f32 %v14789_v28, %v14789_v28  ;;  %v3460_v9 = vpop.f32.mrb[123].mxu1 }
 0x295   : > { %v10346_v45 = vpop.eup %10345  ;;  %8474 = vst.msk [vmem:[%s12423_s27 + $0x1c8] sm:$0xff] %vm410_vm0, %v8282_v52  ;;  %v7558_v38 = vpop.permute.xlu0 %7557  ;;  %v4697_v8 = vmax.f32 %v4505_v15, 0.0  ;;  %v4124_v54 = vmul.f32 0.020408163, %v9985_v18  ;;  %v4123_v15 = vmul.f32 0.020408163, %v3460_v9 }
 0x296   : > { %v10348_v59 = vpop.eup %10347  ;;  %v6421_v57 = vpop.permute.xlu1 %6420  ;;  %v8283_v53 = vadd.f32 %v7558_v38, %v7131_v31  ;;  %7717 = vperm.xlu0 %10111, %v6011_v1   ;;  %v4890_v37 = vadd.f32 1e-05, %v4698_v26  ;;  %v14829_v36 = vmul.f32 %v10346_v45, %v5270_v63  ;;  %v6012_v1 = vsub.f32 %v5628_v27, %v14179_v0  ;;  %v5629_v38 = vld [vmem:[%s11104_s24 + $0x2e0] sm:$0xff] }
 0x297   : > { %v4889_v52 = vadd.f32 1e-05, %v4697_v8  ;;  %v14832_v21 = vmul.f32 %v10348_v59, %v5269_v29  ;;  %v14834_v5 = vpop.f32.mrb[143].mxu0  ;;  %v4508_v31 = vsub.f32 %v4124_v54, %v4316_v61  ;;  %v4507_v8 = vsub.f32 %v4123_v15, %v4315_v34  ;;  %v10563_v34 = vld [vmem:[%s10740_s18 + $0x1e0] sm:$0xff] }
 0x298   : > { %18197 = vst [vmem:[#allocation44_spill] sm:$0xff] %v14829_v36  ;;  %6580 = vperm.xlu1 %10112, %v14167_v30   ;;  %8475 = vst.msk [vmem:[%s12423_s27 + $0x1d0] sm:$0xff] %vm410_vm0, %v8283_v53  ;;  %10353 = vrsqrt.f32 %v4890_v37  ;;  %v14841_v26 = vmul.f32 %v14829_v36, %v14642_v44  ;;  %v14843_v63 = vpop.f32.mrb[144].mxu0  ;;  %v10562_v30 = vld [vmem:[%s10740_s18 + $0x1d8] sm:$0xff]  ;;  %v5271_v53 = vld [vmem:[%s11072_s21 + $0x3b0] sm:$0xff]  ;;  %v7133_v54 = vmul.f32 %v10563_v34, %v14798_v14 }
 0x299   : > { %18198 = vst [vmem:[#allocation68_spill] sm:$0xff] %v14832_v21  ;;  %v7132_v29 = vmul.f32 %v10562_v30, %v14775_v13  ;;  %v6426_v45 = vpop.permute.xlu0 %6425  ;;  %10355 = vrsqrt.f32 %v4889_v52  ;;  %v14850_v0 = vmul.f32 %v14832_v21, %v14656_v12  ;;  %v14852_v61 = vpop.f32.mrb[145].mxu0  ;;  %v5272_v44 = vld [vmem:[%s11072_s21 + $0x3b8] sm:$0xff]  ;;  %v4699_v59 = vmax.f32 %v4507_v8, 0.0  ;;  %v18201_v12 = vld [vmem:[#allocation24_spill] sm:$0xff]  ;;  %v5630_v14 = vld [vmem:[%s11104_s24 + $0x2e8] sm:$0xff] }
 0x29a   : > { %18199 = vst [vmem:[#allocation15_spill] sm:$0xff] %v14841_v26  ;;  %18200 = vst [vmem:[#allocation73_spill] sm:$0xff] %v14852_v61  ;;  %6585 = vperm.xlu0 %10111, %v14181_v48   ;;  %v14856_v13 = vpop.f32.mrb[124].mxu1  ;;  %v6013_v9 = vsub.f32 %v5629_v38, %v18201_v12  ;;  %v4700_v52 = vmax.f32 %v4508_v31, 0.0  ;;  %v14864_v30 = vpop.f32.mrb[146].mxu0  ;;  %v18206_v34 = vld [vmem:[#allocation47_spill] sm:$0xff] }
 0x29b   : > { %v7563_v27 = vpop.permute.xlu1 %7562  ;;  %v14862_v15 = vpop.f32.mrb[125].mxu1  ;;  %18202 = vst [vmem:[#allocation76_spill] sm:$0xff] %v14864_v30  ;;  %v18221_v30 = vld [vmem:[#allocation75_spill] sm:$0xff]  ;;  %v18230_v61 = vld [vmem:[#allocation45_spill] sm:$0xff]  ;;  %v15323_v26 = vld [vmem:[%s11104_s24 + $0x3b0] sm:$0xff] }
 0x29c   : > { %v8284_v18 = vadd.f32 %v7563_v27, %v7132_v29  ;;  %7722 = vperm.xlu1 %10112, %v6012_v1   ;;  %v10350_v37 = vpop.eup %10349  ;;  %v4891_v29 = vadd.f32 1e-05, %v4699_v59  ;;  %v14873_v38 = vpop.f32.mrb[147].mxu0  ;;  %v5274_v59 = vld [vmem:[%s11072_s21 + $0x3c8] sm:$0xff] }
 0x29d   : > { %v10352_v48 = vpop.eup %10351  ;;  %v7568_v1 = vpop.permute.xlu0 %7567  ;;  %v14868_v8 = vmul.f32 %v10350_v37, %v5272_v44  ;;  %18205 = vst [vmem:[#allocation77_spill] sm:$0xff] %v14873_v38  ;;  %v4892_v44 = vadd.f32 1e-05, %v4700_v52 }
 0x29e   : > { %8476 = vst.msk [vmem:[%s12423_s27 + $0x1d8] sm:$0xff] %vm410_vm0, %v8284_v18  ;;  %v8285_v36 = vadd.f32 %v7568_v1, %v7133_v54  ;;  %7727 = vperm.xlu0 %10111, %v6013_v9   ;;  %v14871_v31 = vmul.f32 %v10352_v48, %v5271_v53  ;;  %10357 = vrsqrt.f32 %v4891_v29  ;;  %v14887_v54 = vpop.f32.mrb[148].mxu0  ;;  %v10564_v53 = vld [vmem:[%s10740_s18 + $0x1e8] sm:$0xff]  ;;  %v5631_v29 = vld [vmem:[%s11104_s24 + $0x2f0] sm:$0xff]  ;;  %v14896_v21 = vpop.f32.mrb[126].mxu1 }
 0x29f   : > { %18203 = vst [vmem:[#allocation41_spill] sm:$0xff] %v14868_v8  ;;  %v6431_v27 = vpop.permute.xlu1 %6430  ;;  %v14878_v18 = vmul.f32 %v14868_v8, %v14699_v42  ;;  %18207 = vst [vmem:[#allocation42_spill] sm:$0xff] %v14887_v54  ;;  %v7134_v12 = vmul.f32 %v10564_v53, %v6421_v57  ;;  %v18208_v48 = vld [vmem:[#allocation59_spill] sm:$0xff]  ;;  %v14893_v42 = vpop.f32.mrb[149].mxu0  ;;  %v18210_v8 = vld [vmem:[#allocation6_spill] sm:$0xff]  ;;  %10359 = vrsqrt.f32 %v4892_v44 }
 0x2a0   : > { %18204 = vst [vmem:[#allocation46_spill] sm:$0xff] %v14871_v31  ;;  %6590 = vperm.xlu1 %10112, %v18206_v34   ;;  %8477 = vst.msk [vmem:[%s12423_s27 + $0x1e0] sm:$0xff] %vm410_vm0, %v8285_v36  ;;  %v14885_v37 = vmul.f32 %v14871_v31, %v14711_v55  ;;  %v6014_v1 = vsub.f32 %v5630_v14, %v18208_v48  ;;  %v5273_v34 = vld [vmem:[%s11072_s21 + $0x3c0] sm:$0xff]  ;;  %v14898_v54 = vpop.f32.mrb[127].mxu1  ;;  %v10565_v14 = vld [vmem:[%s10740_s18 + $0x1f0] sm:$0xff] }
 0x2a1   : > { %v6436_v9 = vpop.permute.xlu0 %6435  ;;  %18209 = vst [vmem:[#allocation30_spill] sm:$0xff] %v14893_v42  ;;  %v7135_v53 = vmul.f32 %v10565_v14, %v6426_v45  ;;  %v18212_v48 = vld [vmem:[#allocation25_spill] sm:$0xff] }
 0x2a2   : > { %v10354_v36 = vpop.eup %10353  ;;  %6595 = vperm.xlu0 %10111, %v18210_v8   ;;  %v6015_v38 = vsub.f32 %v5631_v29, %v18212_v48  ;;  %v14906_v8 = vpop.f32.mrb[150].mxu0  ;;  %v5632_v44 = vld [vmem:[%s11104_s24 + $0x2f8] sm:$0xff] }
 0x2a3   : > { %v7573_v52 = vpop.permute.xlu1 %7572  ;;  %v10356_v55 = vpop.eup %10355  ;;  %v14900_v57 = vmul.f32 %v10354_v36, %v5274_v59  ;;  %18214 = vst [vmem:[#allocation78_spill] sm:$0xff] %v14906_v8 }
 0x2a4   : > { %v8286_v31 = vadd.f32 %v7573_v52, %v7134_v12  ;;  %7732 = vperm.xlu1 %10112, %v6014_v1   ;;  %v14904_v42 = vmul.f32 %v10356_v55, %v5273_v34  ;;  %v14914_v59 = vpop.f32.mrb[151].mxu0  ;;  %v14917_v36 = vpop.f32.mrb[128].mxu1  ;;  %v5275_v55 = vld [vmem:[%s11072_s21 + $0x3d0] sm:$0xff] }
 0x2a5   : > { %18211 = vst [vmem:[#allocation56_spill] sm:$0xff] %v14900_v57  ;;  %v7578_v12 = vpop.permute.xlu0 %7577  ;;  %v14912_v1 = vmul.f32 %v14900_v57, %v14736_v49  ;;  %18215 = vst [vmem:[#allocation9_spill] sm:$0xff] %v14914_v59  ;;  %v14924_v52 = vpop.f32.mrb[129].mxu1  ;;  %v5633_v59 = vld [vmem:[%s11104_s24 + $0x300] sm:$0xff] }
 0x2a6   : > { %18213 = vst [vmem:[#allocation31_spill] sm:$0xff] %v14904_v42  ;;  %8478 = vst.msk [vmem:[%s12423_s27 + $0x1e8] sm:$0xff] %vm410_vm0, %v8286_v31  ;;  %v8287_v29 = vadd.f32 %v7578_v12, %v7135_v53  ;;  %7737 = vperm.xlu0 %10111, %v6015_v38   ;;  %v14921_v34 = vmul.f32 %v14904_v42, %v14748_v10  ;;  %v18216_v31 = vld [vmem:[#allocation57_spill] sm:$0xff]  ;;  %v14929_v49 = vpop.f32.mrb[152].mxu0  ;;  %v18218_v12 = vld [vmem:[#allocation19_spill] sm:$0xff] }
 0x2a7   : > { %v6441_v45 = vpop.permute.xlu1 %6440  ;;  %18217 = vst [vmem:[#allocation11_spill] sm:$0xff] %v14929_v49  ;;  %v10566_v53 = vld [vmem:[%s10740_s18 + $0x1f8] sm:$0xff]  ;;  %v6016_v57 = vsub.f32 %v5632_v44, %v18218_v12  ;;  %v14934_v10 = vpop.f32.mrb[153].mxu0  ;;  %v6017_v44 = vsub.f32 %v5633_v59, %v18221_v30 }
 0x2a8   : > { %6600 = vperm.xlu1 %10112, %v18216_v31   ;;  %8479 = vst.msk [vmem:[%s12423_s27 + $0x1f0] sm:$0xff] %vm410_vm0, %v8287_v29  ;;  %v10358_v14 = vpop.eup %10357  ;;  %v7136_v38 = vmul.f32 %v10566_v53, %v6431_v27  ;;  %18219 = vst [vmem:[#allocation71_spill] sm:$0xff] %v14934_v10  ;;  %v14937_v31 = vpop.f32.mrb[130].mxu1  ;;  %v10567_v27 = vld [vmem:[%s10740_s18 + $0x200] sm:$0xff]  ;;  %v5276_v30 = vld [vmem:[%s11072_s21 + $0x3d8] sm:$0xff] }
 0x2a9   : > { %v6446_v48 = vpop.permute.xlu0 %6445  ;;  %v14939_v8 = vmul.f32 %v10358_v14, %v5275_v55  ;;  %v14941_v49 = vpop.f32.mrb[131].mxu1  ;;  %v7137_v53 = vmul.f32 %v10567_v27, %v6436_v9  ;;  %v5634_v9 = vld [vmem:[%s11104_s24 + $0x308] sm:$0xff] }
 0x2aa   : > { %6605 = vperm.xlu0 %10111, %v14480_v41   ;;  %v14945_v12 = vpop.f32.mrb[154].mxu0  ;;  %v14956_v27 = vpop.f32.mrb[132].mxu1 }
 0x2ab   : > { %v7583_v42 = vpop.permute.xlu1 %7582  ;;  %18220 = vst [vmem:[#allocation21_spill] sm:$0xff] %v14939_v8  ;;  %18222 = vst [vmem:[#allocation48_spill] sm:$0xff] %v14945_v12  ;;  %v14951_v55 = vmul.f32 %v14939_v8, %v14789_v28  ;;  %v14960_v59 = vpop.f32.mrb[133].mxu1  ;;  %v18226_v12 = vld [vmem:[#allocation23_spill] sm:$0xff] }
 0x2ac   : > { %v8288_v29 = vadd.f32 %v7583_v42, %v7136_v38  ;;  %7742 = vperm.xlu1 %10112, %v6016_v57   ;;  %v14953_v42 = vpop.f32.mrb[155].mxu0  ;;  %v10360_v57 = vpop.eup %10359 }
 0x2ad   : > { %v7588_v41 = vpop.permute.xlu0 %7587  ;;  %18223 = vst [vmem:[#allocation80_spill] sm:$0xff] %v14951_v55  ;;  %18224 = vst [vmem:[#allocation14_spill] sm:$0xff] %v14953_v42  ;;  %v14964_v28 = vpop.f32.mrb[156].mxu0 }
 0x2ae   : > { %8480 = vst.msk [vmem:[%s12423_s27 + $0x1f8] sm:$0xff] %vm410_vm0, %v8288_v29  ;;  %v8289_v38 = vadd.f32 %v7588_v41, %v7137_v53  ;;  %7747 = vperm.xlu0 %10111, %v6017_v44   ;;  %18225 = vst [vmem:[#allocation2_spill] sm:$0xff] %v14964_v28  ;;  %v10568_v29 = vld [vmem:[%s10740_s18 + $0x208] sm:$0xff]  ;;  %v6018_v53 = vsub.f32 %v5634_v9, %v18226_v12  ;;  %v5635_v44 = vld [vmem:[%s11104_s24 + $0x310] sm:$0xff]  ;;  %v14969_v41 = vmul.f32 %v10360_v57, %v5276_v30  ;;  %v14971_v10 = vpop.f32.mrb[157].mxu0 }
 0x2af   : > { %v6451_v14 = vpop.permute.xlu1 %6450  ;;  %v7138_v42 = vmul.f32 %v10568_v29, %v6441_v45  ;;  %18228 = vst [vmem:[#allocation81_spill] sm:$0xff] %v14971_v10  ;;  %v10569_v45 = vld [vmem:[%s10740_s18 + $0x210] sm:$0xff]  ;;  %v6019_v12 = vsub.f32 %v5635_v44, %v18230_v61  ;;  %v14980_v57 = vpop.f32.mrb[158].mxu0 }
 0x2b0   : > { %6610 = vperm.xlu1 %10112, %v14467_v2   ;;  %8481 = vst.msk [vmem:[%s12423_s27 + $0x200] sm:$0xff] %vm410_vm0, %v8289_v38  ;;  %18227 = vst [vmem:[#allocation65_spill] sm:$0xff] %v14969_v41  ;;  %v14974_v2 = vpop.f32.mrb[134].mxu1  ;;  %v7139_v29 = vmul.f32 %v10569_v45, %v6446_v48 }
 0x2b1   : > { %v6456_v8 = vpop.permute.xlu0 %6455  ;;  %v14976_v28 = vpop.f32.mrb[135].mxu1  ;;  %18231 = vst [vmem:[#allocation51_spill] sm:$0xff] %v14980_v57 }
 0x2b2   : > { %6615 = vperm.xlu0 %10111, %v14519_v43   ;;  %18229 = vst [vmem:[#allocation61_spill] sm:$0xff] %v14976_v28  ;;  %v14986_v43 = vmul.f32 %v14969_v41, %v14786_v6  ;;  %v14991_v48 = vpop.f32.mrb[136].mxu1  ;;  %v10570_v6 = vld [vmem:[%s10740_s18 + $0x218] sm:$0xff] }
 0x2b3   : > { %v7593_v55 = vpop.permute.xlu1 %7592  ;;  %18234 = vst [vmem:[#allocation64_spill] sm:$0xff] %v14991_v48  ;;  %v14994_v61 = vpop.f32.mrb[137].mxu1 }
 0x2b4   : > { %v8290_v38 = vadd.f32 %v7593_v55, %v7138_v42  ;;  %7752 = vperm.xlu1 %10112, %v6018_v53   ;;  %18232 = vst [vmem:[#allocation52_spill] sm:$0xff] %v14986_v43  ;;  %v14988_v55 = vpop.f32.mrb[159].mxu0  ;;  %v5636_v53 = vld [vmem:[%s11104_s24 + $0x318] sm:$0xff]  ;;  %18235 = vst [vmem:[#allocation10_spill] sm:$0xff] %v14994_v61  ;;  %v5638_v43 = vld [vmem:[%s11104_s24 + $0x328] sm:$0xff] }
 0x2b5   : > { %v7598_v9 = vpop.permute.xlu0 %7597  ;;  %18233 = vst [vmem:[#allocation4_spill] sm:$0xff] %v14988_v55  ;;  %v14998_v44 = vpop.f32.mrb[160].mxu0  ;;  %v18237_v55 = vld [vmem:[#allocation50_spill] sm:$0xff]  ;;  %v18299_v61 = vld [vmem:[#allocation13_spill] sm:$0xff] }
 0x2b6   : > { %8482 = vst.msk [vmem:[%s12423_s27 + $0x208] sm:$0xff] %vm410_vm0, %v8290_v38  ;;  %v8291_v30 = vadd.f32 %v7598_v9, %v7139_v29  ;;  %7757 = vperm.xlu0 %10111, %v6019_v12   ;;  %18236 = vst [vmem:[#allocation8_spill] sm:$0xff] %v14998_v44  ;;  %v7140_v38 = vmul.f32 %v10570_v6, %v6451_v14  ;;  %v6020_v57 = vsub.f32 %v5636_v53, %v18237_v55  ;;  %v5637_v29 = vld [vmem:[%s11104_s24 + $0x320] sm:$0xff]  ;;  %v15003_v12 = vpop.f32.mrb[161].mxu0  ;;  %v18241_v6 = vld [vmem:[#allocation36_spill] sm:$0xff] }
 0x2b7   : > { %v6461_v42 = vpop.permute.xlu1 %6460  ;;  %18238 = vst [vmem:[#allocation17_spill] sm:$0xff] %v15003_v12  ;;  %v10571_v44 = vld [vmem:[%s10740_s18 + $0x220] sm:$0xff]  ;;  %v6021_v41 = vsub.f32 %v5637_v29, %v18241_v6  ;;  %v15014_v53 = vpop.f32.mrb[162].mxu0 }
 0x2b8   : > { %6620 = vperm.xlu1 %10112, %v14514_v20   ;;  %8483 = vst.msk [vmem:[%s12423_s27 + $0x210] sm:$0xff] %vm410_vm0, %v8291_v30  ;;  %v15006_v20 = vpop.f32.mrb[138].mxu1  ;;  %v7141_v14 = vmul.f32 %v10571_v44, %v6456_v8  ;;  %18242 = vst [vmem:[#allocation34_spill] sm:$0xff] %v15014_v53  ;;  %v15022_v8 = vpop.f32.mrb[163].mxu0 }
 0x2b9   : > { %v6466_v45 = vpop.permute.xlu0 %6465  ;;  %18239 = vst [vmem:[#allocation27_spill] sm:$0xff] %v15006_v20  ;;  %v15008_v30 = vpop.f32.mrb[139].mxu1  ;;  %18245 = vst [vmem:[#allocation12_spill] sm:$0xff] %v15022_v8  ;;  %v4126_v20 = vmul.f32 0.020408163, %v14856_v13 }
 0x2ba   : > { %6625 = vperm.xlu0 %10111, %v14554_v24   ;;  %18240 = vst [vmem:[#allocation39_spill] sm:$0xff] %v15008_v30 }
 0x2bb   : > { %v7603_v9 = vpop.permute.xlu1 %7602 }
 0x2bc   : > { %v8292_v10 = vadd.f32 %v7603_v9, %v7140_v38  ;;  %7762 = vperm.xlu1 %10112, %v6020_v57   ;;  %v15017_v38 = vpop.f32.mrb[140].mxu1  ;;  %v18246_v9 = vld [vmem:[#allocation72_spill] sm:$0xff] }
 0x2bd   : > { %v7608_v55 = vpop.permute.xlu0 %7607  ;;  %18243 = vst [vmem:[#allocation67_spill] sm:$0xff] %v15017_v38  ;;  %v15020_v57 = vpop.f32.mrb[141].mxu1  ;;  %v6022_v6 = vsub.f32 %v5638_v43, %v18246_v9  ;;  %v18286_v38 = vld [vmem:[#allocation5_spill] sm:$0xff] }
 0x2be   : > { %8484 = vst.msk [vmem:[%s12423_s27 + $0x218] sm:$0xff] %vm410_vm0, %v8292_v10  ;;  %v8293_v24 = vadd.f32 %v7608_v55, %v7141_v14  ;;  %7767 = vperm.xlu0 %10111, %v6021_v41   ;;  %18244 = vst [vmem:[#allocation49_spill] sm:$0xff] %v15020_v57  ;;  %v10572_v10 = vld [vmem:[%s10740_s18 + $0x228] sm:$0xff]  ;;  %v5639_v14 = vld [vmem:[%s11104_s24 + $0x330] sm:$0xff]  ;;  %v15029_v41 = vpop.f32.mrb[164].mxu0 }
 0x2bf   : > { %v6471_v12 = vpop.permute.xlu1 %6470  ;;  %v7142_v44 = vmul.f32 %v10572_v10, %v6461_v42  ;;  %18247 = vst [vmem:[#allocation70_spill] sm:$0xff] %v15029_v41  ;;  %v10573_v42 = vld [vmem:[%s10740_s18 + $0x230] sm:$0xff]  ;;  %v6023_v43 = vsub.f32 %v5639_v14, %v14572_v22  ;;  %v10574_v22 = vld [vmem:[%s10740_s18 + $0x238] sm:$0xff] }
 0x2c0   : > { %6630 = vperm.xlu1 %10112, %v14547_v47   ;;  %8485 = vst.msk [vmem:[%s12423_s27 + $0x220] sm:$0xff] %vm410_vm0, %v8293_v24  ;;  %v15032_v47 = vpop.f32.mrb[142].mxu1  ;;  %v15036_v24 = vpop.f32.mrb[165].mxu0  ;;  %v7143_v10 = vmul.f32 %v10573_v42, %v6466_v45 }
 0x2c1   : > { %v6476_v29 = vpop.permute.xlu0 %6475  ;;  %18248 = vst [vmem:[#allocation63_spill] sm:$0xff] %v15032_v47  ;;  %v15034_v8 = vpop.f32.mrb[143].mxu1  ;;  %18250 = vst [vmem:[#allocation16_spill] sm:$0xff] %v15036_v24 }
 0x2c2   : > { %6635 = vperm.xlu0 %10111, %v14595_v60   ;;  %18249 = vst [vmem:[#allocation54_spill] sm:$0xff] %v15034_v8  ;;  %v15042_v41 = vpop.f32.mrb[166].mxu0 }
 0x2c3   : > { %v7613_v55 = vpop.permute.xlu1 %7612  ;;  %18251 = vst [vmem:[#allocation29_spill] sm:$0xff] %v15042_v41  ;;  %v15050_v45 = vpop.f32.mrb[167].mxu0 }
 0x2c4   : > { %v8294_v53 = vadd.f32 %v7613_v55, %v7142_v44  ;;  %7772 = vperm.xlu1 %10112, %v6022_v6   ;;  %v5640_v44 = vld [vmem:[%s11104_s24 + $0x338] sm:$0xff]  ;;  %v15045_v6 = vpop.f32.mrb[144].mxu1  ;;  %18254 = vst [vmem:[#allocation47_spill] sm:$0xff] %v15050_v45  ;;  %v15062_v45 = vpop.f32.mrb[168].mxu0 }
 0x2c5   : > { %v7618_v9 = vpop.permute.xlu0 %7617  ;;  %18252 = vst [vmem:[#allocation18_spill] sm:$0xff] %v15045_v6  ;;  %v15048_v55 = vpop.f32.mrb[145].mxu1  ;;  %v6024_v42 = vsub.f32 %v5640_v44, %v14563_v62  ;;  %18257 = vst [vmem:[#allocation25_spill] sm:$0xff] %v15062_v45  ;;  %v18279_v6 = vld [vmem:[#allocation79_spill] sm:$0xff] }
 0x2c6   : > { %8486 = vst.msk [vmem:[%s12423_s27 + $0x228] sm:$0xff] %vm410_vm0, %v8294_v53  ;;  %v8295_v47 = vadd.f32 %v7618_v9, %v7143_v10  ;;  %7777 = vperm.xlu0 %10111, %v6023_v43   ;;  %18253 = vst [vmem:[#allocation24_spill] sm:$0xff] %v15048_v55  ;;  %v7144_v53 = vmul.f32 %v10574_v22, %v6471_v12  ;;  %v5641_v10 = vld [vmem:[%s11104_s24 + $0x340] sm:$0xff]  ;;  %v15058_v9 = vpop.f32.mrb[146].mxu1  ;;  %v15066_v62 = vpop.f32.mrb[169].mxu0  ;;  %v10577_v55 = vld [vmem:[%s10740_s18 + $0x250] sm:$0xff] }
 0x2c7   : > { %v6481_v60 = vpop.permute.xlu1 %6480  ;;  %18255 = vst [vmem:[#allocation59_spill] sm:$0xff] %v15058_v9  ;;  %v15060_v41 = vpop.f32.mrb[147].mxu1  ;;  %v6025_v12 = vsub.f32 %v5641_v10, %v14611_v51  ;;  %18258 = vst [vmem:[#allocation57_spill] sm:$0xff] %v15066_v62  ;;  %v18262_v10 = vld [vmem:[#allocation32_spill] sm:$0xff] }
 0x2c8   : > { %6640 = vperm.xlu1 %10112, %v14586_v56   ;;  %8487 = vst.msk [vmem:[%s12423_s27 + $0x230] sm:$0xff] %vm410_vm0, %v8295_v47  ;;  %18256 = vst [vmem:[#allocation6_spill] sm:$0xff] %v15060_v41  ;;  %v10575_v47 = vld [vmem:[%s10740_s18 + $0x240] sm:$0xff] }
 0x2c9   : > { %v6486_v14 = vpop.permute.xlu0 %6485  ;;  %v7145_v24 = vmul.f32 %v10575_v47, %v6476_v29  ;;  %v15078_v51 = vpop.f32.mrb[170].mxu0 }
 0x2ca   : > { %6645 = vperm.xlu0 %10111, %v14634_v25   ;;  %18261 = vst [vmem:[#allocation23_spill] sm:$0xff] %v15078_v51 }
 0x2cb   : > { %v7623_v43 = vpop.permute.xlu1 %7622 }
 0x2cc   : > { %v8296_v56 = vadd.f32 %v7623_v43, %v7144_v53  ;;  %7782 = vperm.xlu1 %10112, %v6024_v42   ;;  %v5642_v53 = vld [vmem:[%s11104_s24 + $0x348] sm:$0xff]  ;;  %v15073_v42 = vpop.f32.mrb[148].mxu1  ;;  %v15083_v43 = vmul.f32 0.020408163, %v18262_v10 }
 0x2cd   : > { %v7628_v44 = vpop.permute.xlu0 %7627  ;;  %18259 = vst [vmem:[#allocation19_spill] sm:$0xff] %v15073_v42  ;;  %v15076_v29 = vpop.f32.mrb[149].mxu1  ;;  %v18268_v42 = vld [vmem:[#allocation74_spill] sm:$0xff] }
 0x2ce   : > { %8488 = vst.msk [vmem:[%s12423_s27 + $0x238] sm:$0xff] %vm410_vm0, %v8296_v56  ;;  %v8297_v22 = vadd.f32 %v7628_v44, %v7145_v24  ;;  %7787 = vperm.xlu0 %10111, %v6025_v12   ;;  %18260 = vst [vmem:[#allocation75_spill] sm:$0xff] %v15076_v29  ;;  %v18264_v56 = vld [vmem:[#allocation7_spill] sm:$0xff]  ;;  %v15088_v24 = vpop.f32.mrb[171].mxu0  ;;  %v5643_v29 = vld [vmem:[%s11104_s24 + $0x350] sm:$0xff] }
 0x2cf   : > { %v15070_v25 = vpop.permute.xlu1 %6490  ;;  %18263 = vst [vmem:[#allocation45_spill] sm:$0xff] %v15083_v43  ;;  %v15086_v47 = vmul.f32 0.020408163, %v18264_v56  ;;  %18266 = vst [vmem:[#allocation36_spill] sm:$0xff] %v15088_v24  ;;  %v10576_v12 = vld [vmem:[%s10740_s18 + $0x248] sm:$0xff]  ;;  %v5644_v56 = vld [vmem:[%s11104_s24 + $0x358] sm:$0xff]  ;;  %v6027_v8 = vsub.f32 %v5643_v29, %v18279_v6 }
 0x2d0   : > { %6650 = vperm.xlu1 %10112, %v14630_v16   ;;  %8489 = vst.msk [vmem:[%s12423_s27 + $0x240] sm:$0xff] %vm410_vm0, %v8297_v22  ;;  %v7146_v44 = vmul.f32 %v10576_v12, %v6481_v60  ;;  %v18267_v16 = vld [vmem:[#allocation58_spill] sm:$0xff]  ;;  %v15096_v51 = vmul.f32 0.020408163, %v18268_v42  ;;  %v15103_v24 = vpop.f32.mrb[150].mxu1  ;;  %v18273_v12 = vld [vmem:[#allocation3_spill] sm:$0xff] }
 0x2d1   : > { %18265 = vst [vmem:[#allocation50_spill] sm:$0xff] %v15086_v47  ;;  %v15091_v45 = vpop.permute.xlu0 %6495  ;;  %v6026_v62 = vsub.f32 %v5642_v53, %v18267_v16  ;;  %v18270_v22 = vld [vmem:[#allocation62_spill] sm:$0xff]  ;;  %18272 = vst [vmem:[#allocation7_spill] sm:$0xff] %v15103_v24  ;;  %v15106_v53 = vmul.f32 0.020408163, %v18273_v12  ;;  %v18275_v16 = vld [vmem:[#allocation20_spill] sm:$0xff]  ;;  %v15119_v24 = vmul.f32 %v15083_v43, %v15083_v43  ;;  %v4317_v6 = vmul.f32 %v15086_v47, %v15086_v47 }
 0x2d2   : > { %18269 = vst [vmem:[#allocation72_spill] sm:$0xff] %v15096_v51  ;;  %v15099_v41 = vmul.f32 0.020408163, %v18270_v22  ;;  %6655 = vperm.xlu0 %10111, %v14674_v39   ;;  %v15109_v42 = vmul.f32 0.020408163, %v18275_v16  ;;  %v15111_v22 = vpop.f32.mrb[151].mxu1  ;;  %v7147_v39 = vmul.f32 %v10577_v55, %v6486_v14  ;;  %v15142_v29 = vmul.f32 %v15096_v51, %v15096_v51 }
 0x2d3   : > { %v7633_v10 = vpop.permute.xlu1 %7632  ;;  %18274 = vst [vmem:[#allocation58_spill] sm:$0xff] %v15106_v53  ;;  %18277 = vst [vmem:[#allocation62_spill] sm:$0xff] %v15111_v22  ;;  %v15113_v9 = vpop.f32.mrb[172].mxu0  ;;  %v15129_v16 = vld [vmem:[%s11104_s24 + $0x360] sm:$0xff]  ;;  %v4125_v55 = vmul.f32 0.020408163, %v14862_v15 }
 0x2d4   : > { %18271 = vst [vmem:[#allocation32_spill] sm:$0xff] %v15099_v41  ;;  %v8298_v60 = vadd.f32 %v7633_v10, %v7146_v44  ;;  %7792 = vperm.xlu1 %10112, %v6026_v62   ;;  %18276 = vst [vmem:[#allocation74_spill] sm:$0xff] %v15109_v42  ;;  %v18280_v62 = vld [vmem:[#allocation60_spill] sm:$0xff]  ;;  %v15124_v10 = vpop.f32.mrb[173].mxu0  ;;  %v15138_v14 = vld [vmem:[%s11104_s24 + $0x378] sm:$0xff]  ;;  %v15160_v30 = vpop.f32.mrb[152].mxu1  ;;  %v6029_v13 = vsub.f32 %v15129_v16, %v14696_v33 }
 0x2d5   : > { %18278 = vst [vmem:[#allocation3_spill] sm:$0xff] %v15113_v9  ;;  %v15122_v44 = vmul.f32 0.020408163, %v18280_v62  ;;  %18282 = vst [vmem:[#allocation79_spill] sm:$0xff] %v15124_v10  ;;  %v7638_v12 = vpop.permute.xlu0 %7637  ;;  %v15132_v9 = vld [vmem:[%s11104_s24 + $0x368] sm:$0xff]  ;;  %v15146_v62 = vmul.f32 %v15099_v41, %v15099_v41  ;;  %v18283_v10 = vld [vmem:[#allocation28_spill] sm:$0xff]  ;;  %v4509_v33 = vsub.f32 %v4125_v55, %v4317_v6 }
 0x2d6   : > { %8490 = vst.msk [vmem:[%s12423_s27 + $0x248] sm:$0xff] %vm410_vm0, %v8298_v60  ;;  %v8299_v43 = vadd.f32 %v7638_v12, %v7147_v39  ;;  %7797 = vperm.xlu0 %10111, %v6027_v8   ;;  %v6028_v22 = vsub.f32 %v5644_v56, %v18283_v10  ;;  %v15152_v47 = vld [vmem:[%s11104_s24 + $0x370] sm:$0xff]  ;;  %v18284_v15 = vld [vmem:[#allocation35_spill] sm:$0xff]  ;;  %v15158_v51 = vmul.f32 0.020408163, %v18286_v38  ;;  %v18289_v41 = vld [vmem:[#allocation22_spill] sm:$0xff]  ;;  %v15166_v8 = vmul.f32 %v15106_v53, %v15106_v53 }
 0x2d7   : > { %18281 = vst [vmem:[#allocation20_spill] sm:$0xff] %v15122_v44  ;;  %v15148_v60 = vpop.permute.xlu1 %6500  ;;  %v15155_v57 = vmul.f32 0.020408163, %v18284_v15  ;;  %18288 = vst [vmem:[#allocation35_spill] sm:$0xff] %v15160_v30  ;;  %v15170_v56 = vmul.f32 %v15109_v42, %v15109_v42  ;;  %v18290_v39 = vld [vmem:[#allocation38_spill] sm:$0xff]  ;;  %v15175_v38 = vpop.f32.mrb[153].mxu1 }
 0x2d8   : > { %18287 = vst [vmem:[#allocation28_spill] sm:$0xff] %v15158_v51  ;;  %6660 = vperm.xlu1 %10112, %v18289_v41   ;;  %v15173_v10 = vmul.f32 0.020408163, %v18290_v39  ;;  %18292 = vst [vmem:[#allocation22_spill] sm:$0xff] %v15175_v38  ;;  %v15177_v12 = vpop.f32.mrb[174].mxu0  ;;  %v18294_v41 = vld [vmem:[#allocation55_spill] sm:$0xff]  ;;  %v15192_v39 = vmul.f32 %v15122_v44, %v15122_v44  ;;  %v15218_v6 = vmul.f32 %v15158_v51, %v15158_v51 }
 0x2d9   : > { %18285 = vst [vmem:[#allocation60_spill] sm:$0xff] %v15155_v57  ;;  %18293 = vst [vmem:[#allocation38_spill] sm:$0xff] %v15177_v12  ;;  %v15188_v42 = vld [vmem:[%s11104_s24 + $0x388] sm:$0xff]  ;;  %v15194_v38 = vpop.f32.mrb[175].mxu0  ;;  %v10578_v12 = vld [vmem:[%s10740_s18 + $0x258] sm:$0xff]  ;;  %v15198_v30 = vpop.permute.xlu0 %6505 }
 0x2da   : > { %18291 = vst [vmem:[#allocation5_spill] sm:$0xff] %v15173_v10  ;;  %8491 = vst.msk [vmem:[%s12423_s27 + $0x250] sm:$0xff] %vm410_vm0, %v8299_v43  ;;  %v7148_v43 = vmul.f32 %v10578_v12, %v15070_v25  ;;  %v15201_v16 = vld [vmem:[%s11104_s24 + $0x380] sm:$0xff]  ;;  %v15204_v15 = vmul.f32 0.020408163, %v14705_v40  ;;  %6665 = vperm.xlu0 %10111, %v18299_v61   ;;  %v15214_v25 = vmul.f32 %v15155_v57, %v15155_v57  ;;  %v18301_v40 = vld [vmem:[#allocation53_spill] sm:$0xff] }
 0x2db   : > { %18295 = vst [vmem:[#allocation55_spill] sm:$0xff] %v15188_v42  ;;  %18296 = vst [vmem:[#allocation82_spill] sm:$0xff] %v15194_v38  ;;  %v15207_v53 = vmul.f32 0.020408163, %v14715_v11  ;;  %v7643_v44 = vpop.permute.xlu1 %7642  ;;  %v18300_v38 = vld [vmem:[#allocation26_spill] sm:$0xff]  ;;  %v15223_v11 = vpop.f32.mrb[154].mxu1  ;;  %v4510_v61 = vsub.f32 %v4126_v20, %v15119_v24  ;;  %v15233_v51 = vmul.f32 %v15173_v10, %v15173_v10 }
 0x2dc   : > { %18297 = vst [vmem:[#allocation83_spill] sm:$0xff] %v15204_v15  ;;  %v15221_v55 = vmul.f32 0.020408163, %v18301_v40  ;;  %18303 = vst [vmem:[#allocation26_spill] sm:$0xff] %v15223_v11  ;;  %v8300_v12 = vadd.f32 %v7643_v44, %v7148_v43  ;;  %7802 = vperm.xlu1 %10112, %v6028_v22   ;;  %v15229_v57 = vld [vmem:[%s11104_s24 + $0x390] sm:$0xff]  ;;  %v15235_v28 = vpop.f32.mrb[155].mxu1 }
 0x2dd   : > { %18298 = vst [vmem:[#allocation84_spill] sm:$0xff] %v15207_v53  ;;  %18304 = vst [vmem:[#allocation53_spill] sm:$0xff] %v15235_v28  ;;  %v15237_v40 = vpop.f32.mrb[176].mxu0  ;;  %v10579_v11 = vld [vmem:[%s10740_s18 + $0x260] sm:$0xff]  ;;  %v15244_v24 = vld [vmem:[%s11104_s24 + $0x398] sm:$0xff]  ;;  %v7648_v10 = vpop.permute.xlu0 %7647  ;;  %v4702_v42 = vmax.f32 %v4510_v61, 0.0 }
 0x2de   : > { %18302 = vst [vmem:[#allocation13_spill] sm:$0xff] %v15221_v55  ;;  %18305 = vst [vmem:[#allocation85_spill] sm:$0xff] %v15237_v40  ;;  %v7149_v22 = vmul.f32 %v10579_v11, %v15091_v45  ;;  %v15247_v44 = vmul.f32 0.020408163, %v14756_v35  ;;  %v15250_v43 = vmul.f32 0.020408163, %v14764_v58  ;;  %v15262_v11 = vmul.f32 %v15204_v15, %v15204_v15  ;;  %7807 = vperm.xlu0 %10111, %v6029_v13  }
 0x2df   : > { %v15252_v48 = vpop.f32.mrb[177].mxu0  ;;  %8492 = vst.msk [vmem:[%s12423_s27 + $0x258] sm:$0xff] %vm410_vm0, %v8300_v12  ;;  %v4701_v40 = vmax.f32 %v4509_v33, 0.0  ;;  %v4127_v28 = vmul.f32 0.020408163, %v14898_v54  ;;  %v15258_v45 = vld [vmem:[%s11104_s24 + $0x3a0] sm:$0xff]  ;;  %v15266_v35 = vmul.f32 %v15207_v53, %v15207_v53  ;;  %v15271_v20 = vpop.permute.xlu1 %6510  ;;  %v15275_v54 = vmul.f32 %v15221_v55, %v15221_v55 }
 0x2e0   : > { %18306 = vst [vmem:[#allocation86_spill] sm:$0xff] %v15247_v44  ;;  %18307 = vst [vmem:[#allocation87_spill] sm:$0xff] %v15250_v43  ;;  %v15269_v58 = vld [vmem:[%s11104_s24 + $0x3a8] sm:$0xff]  ;;  %v8301_v12 = vadd.f32 %v7648_v10, %v7149_v22  ;;  %v18311_v33 = vld [vmem:[#allocation33_spill] sm:$0xff]  ;;  %v15281_v15 = vmul.f32 0.020408163, %v14794_v3  ;;  %6670 = vperm.xlu1 %10112, %v18315_v46   ;;  %v15307_v61 = vmul.f32 %v15250_v43, %v15250_v43 }
 0x2e1   : > { %18308 = vst [vmem:[#allocation88_spill] sm:$0xff] %v15252_v48  ;;  %18309 = vst [vmem:[#allocation89_spill] sm:$0xff] %v15266_v35  ;;  %v15278_v48 = vmul.f32 0.020408163, %v18311_v33  ;;  %v15283_v53 = vpop.f32.mrb[156].mxu1  ;;  %v15293_v33 = vpop.f32.mrb[178].mxu0  ;;  %v4511_v46 = vsub.f32 %v4127_v28, %v15146_v62 }
 0x2e2   : > { %18310 = vst [vmem:[#allocation90_spill] sm:$0xff] %v15269_v58  ;;  %18313 = vst [vmem:[#allocation91_spill] sm:$0xff] %v15281_v15  ;;  %v4128_v35 = vmul.f32 0.020408163, %v14896_v21  ;;  %v15291_v22 = vpop.f32.mrb[157].mxu1  ;;  %v15303_v21 = vmul.f32 %v15247_v44, %v15247_v44  ;;  %v15309_v13 = vpop.f32.mrb[179].mxu0 }
 0x2e3   : > { %18312 = vst [vmem:[#allocation33_spill] sm:$0xff] %v15278_v48  ;;  %18314 = vst [vmem:[#allocation92_spill] sm:$0xff] %v15283_v53  ;;  %v10580_v10 = vld [vmem:[%s10740_s18 + $0x268] sm:$0xff]  ;;  %v15313_v55 = vpop.permute.xlu0 %6515  ;;  %v4130_v3 = vmul.f32 0.020408163, %v14917_v36  ;;  %v7653_v44 = vpop.permute.xlu1 %7652  ;;  %v18319_v53 = vld [vmem:[#allocation69_spill] sm:$0xff] }
 0x2e4   : > { %18316 = vst [vmem:[#allocation37_spill] sm:$0xff] %v15291_v22  ;;  %18317 = vst [vmem:[#allocation93_spill] sm:$0xff] %v15293_v33  ;;  %v4893_v33 = vadd.f32 1e-05, %v4701_v40  ;;  %v15318_v22 = vld [vmem:[%s11104_s24 + $0x3b8] sm:$0xff]  ;;  %6675 = vperm.xlu0 %10111, %v18319_v53   ;;  %v15331_v40 = vmul.f32 %v15281_v15, %v15281_v15  ;;  %v15336_v28 = vpop.f32.mrb[158].mxu1 }
 0x2e5   : > { %8493 = vst.msk [vmem:[%s12423_s27 + $0x260] sm:$0xff] %vm410_vm0, %v8301_v12  ;;  %18318 = vst [vmem:[#allocation94_spill] sm:$0xff] %v15309_v13  ;;  %v7150_v12 = vmul.f32 %v10580_v10, %v15148_v60  ;;  %v4129_v43 = vmul.f32 0.020408163, %v14924_v52  ;;  %v15327_v60 = vmul.f32 %v15278_v48, %v15278_v48  ;;  %v15334_v36 = vmul.f32 0.020408163, %v14806_v19 }
 0x2e6   : > { %18321 = vst [vmem:[#allocation95_spill] sm:$0xff] %v15336_v28  ;;  %v18322_v52 = vsub.f32 %v15132_v9, %v18294_v41  ;;  %v4894_v53 = vadd.f32 1e-05, %v4702_v42  ;;  %v4512_v10 = vsub.f32 %v4128_v35, %v15142_v29  ;;  %v15343_v48 = vmul.f32 0.020408163, %v14822_v50  ;;  %v15345_v13 = vpop.f32.mrb[159].mxu1 }
 0x2e7   : > { %18320 = vst [vmem:[#allocation69_spill] sm:$0xff] %v15334_v36  ;;  %v8302_v62 = vadd.f32 %v7653_v44, %v7150_v12  ;;  %18324 = vst [vmem:[#allocation97_spill] sm:$0xff] %v15345_v13  ;;  %v15347_v15 = vpop.f32.mrb[180].mxu0  ;;  %v10581_v58 = vld [vmem:[%s10740_s18 + $0x270] sm:$0xff]  ;;  %v4132_v28 = vmul.f32 0.020408163, %v14937_v31  ;;  %v7658_v50 = vpop.permute.xlu0 %7657  ;;  %10361 = vrsqrt.f32 %v4893_v33  ;;  %v4514_v44 = vsub.f32 %v4130_v3, %v15166_v8 }
 0x2e8   : > { %7812 = vperm.xlu1 %10112, %v18322_v52   ;;  %18323 = vst [vmem:[#allocation96_spill] sm:$0xff] %v15343_v48  ;;  %18325 = vst [vmem:[#allocation98_spill] sm:$0xff] %v15347_v15  ;;  %v7151_v19 = vmul.f32 %v10581_v58, %v15198_v30  ;;  %v15355_v42 = vmul.f32 0.020408163, %v14834_v5  ;;  %v15357_v29 = vpop.f32.mrb[181].mxu0  ;;  %v4703_v41 = vmax.f32 %v4511_v46, 0.0  ;;  %v15363_v31 = vpop.permute.xlu1 %6520  ;;  %v18327_v5 = vsub.f32 %v15152_v47, %v18300_v38 }
 0x2e9   : > { %8494 = vst.msk [vmem:[%s12423_s27 + $0x268] sm:$0xff] %vm410_vm0, %v8302_v62  ;;  %v4131_v30 = vmul.f32 0.020408163, %v14941_v49  ;;  %v4513_v58 = vsub.f32 %v4129_v43, %v15170_v56  ;;  %v15373_v33 = vmul.f32 %v15334_v36, %v15334_v36  ;;  %v15376_v8 = vld [vmem:[%s11104_s24 + $0x3c0] sm:$0xff]  ;;  %v15378_v49 = vpop.f32.mrb[160].mxu1  ;;  %v18329_v46 = vld [vmem:[#allocation43_spill] sm:$0xff]  ;;  %10363 = vrsqrt.f32 %v4894_v53 }
 0x2ea   : > { %18326 = vst [vmem:[#allocation99_spill] sm:$0xff] %v15355_v42  ;;  %v8303_v35 = vadd.f32 %v7658_v50, %v7151_v19  ;;  %7817 = vperm.xlu0 %10111, %v18327_v5   ;;  %18328 = vst [vmem:[#allocation100_spill] sm:$0xff] %v15378_v49  ;;  %v4704_v3 = vmax.f32 %v4512_v10, 0.0  ;;  %v4134_v47 = vmul.f32 0.020408163, %v14956_v27  ;;  %v15384_v56 = vmul.f32 %v15343_v48, %v15343_v48  ;;  %v15387_v38 = vld [vmem:[%s11104_s24 + $0x3c8] sm:$0xff] }
 0x2eb   : > { %v15389_v43 = vpop.f32.mrb[161].mxu1  ;;  %v15391_v62 = vpop.f32.mrb[182].mxu0  ;;  %v4516_v52 = vsub.f32 %v4132_v28, %v15192_v39  ;;  %v4133_v19 = vmul.f32 0.020408163, %v14960_v59  ;;  %v15399_v53 = vmul.f32 %v15355_v42, %v15355_v42  ;;  %v15402_v27 = vmul.f32 0.020408163, %v14843_v63 }
 0x2ec   : > { %6680 = vperm.xlu1 %10112, %v18329_v46   ;;  %18330 = vst [vmem:[#allocation43_spill] sm:$0xff] %v15389_v43  ;;  %8495 = vst.msk [vmem:[%s12423_s27 + $0x270] sm:$0xff] %vm410_vm0, %v8303_v35  ;;  %v15404_v10 = vpop.f32.mrb[183].mxu0  ;;  %v10582_v50 = vld [vmem:[%s10740_s18 + $0x278] sm:$0xff]  ;;  %v15408_v46 = vpop.permute.xlu0 %6525  ;;  %v4895_v9 = vadd.f32 1e-05, %v4703_v41  ;;  %v4515_v39 = vsub.f32 %v4131_v30, %v15214_v25 }
 0x2ed   : > { %18331 = vst [vmem:[#allocation101_spill] sm:$0xff] %v15402_v27  ;;  %v7152_v5 = vmul.f32 %v10582_v50, %v15271_v20  ;;  %v4706_v35 = vmax.f32 %v4514_v44, 0.0  ;;  %v7663_v59 = vpop.permute.xlu1 %7662  ;;  %v4705_v28 = vmax.f32 %v4513_v58, 0.0  ;;  %v4136_v12 = vmul.f32 0.020408163, %v14974_v2  ;;  %v15417_v50 = vpop.f32.mrb[162].mxu1 }
 0x2ee   : > { %6685 = vperm.xlu0 %10111, %v14804_v4   ;;  %18332 = vst [vmem:[#allocation102_spill] sm:$0xff] %v15417_v50  ;;  %v18333_v44 = vsub.f32 %v15138_v14, %v14721_v32  ;;  %v4896_v25 = vadd.f32 1e-05, %v4704_v3  ;;  %v4518_v4 = vsub.f32 %v4134_v47, %v15218_v6  ;;  %v18334_v30 = vld [vmem:[#allocation61_spill] sm:$0xff]  ;;  %v15424_v2 = vpop.f32.mrb[163].mxu1  ;;  %v10583_v48 = vld [vmem:[%s10740_s18 + $0x280] sm:$0xff]  ;;  %v4517_v20 = vsub.f32 %v4133_v19, %v15233_v51 }
 0x2ef   : > { %v8304_v41 = vadd.f32 %v7663_v59, %v7152_v5  ;;  %v4135_v58 = vmul.f32 0.020408163, %v18334_v30  ;;  %18335 = vst [vmem:[#allocation61_spill] sm:$0xff] %v15424_v2  ;;  %v7153_v63 = vmul.f32 %v10583_v48, %v15313_v55  ;;  %v4708_v42 = vmax.f32 %v4516_v52, 0.0  ;;  %v18336_v36 = vld [vmem:[#allocation73_spill] sm:$0xff]  ;;  %v15432_v5 = vpop.f32.mrb[184].mxu0 }
 0x2f0   : > { %7822 = vperm.xlu1 %10112, %v18333_v44   ;;  %v15430_v15 = vmul.f32 0.020408163, %v18336_v36  ;;  %v7668_v32 = vpop.permute.xlu0 %7667  ;;  %10365 = vrsqrt.f32 %v4895_v9  ;;  %v4898_v14 = vadd.f32 1e-05, %v4706_v35  ;;  %v4707_v6 = vmax.f32 %v4515_v39, 0.0  ;;  %v15440_v48 = vpop.f32.mrb[185].mxu0 }
 0x2f1   : > { %8496 = vst.msk [vmem:[%s12423_s27 + $0x278] sm:$0xff] %vm410_vm0, %v8304_v41  ;;  %v15438_v3 = vmul.f32 %v15402_v27, %v15402_v27  ;;  %v15442_v51 = vpop.permute.xlu1 %6530  ;;  %v8305_v55 = vadd.f32 %v7668_v32, %v7153_v63  ;;  %v18338_v36 = vsub.f32 %v15201_v16, %v14771_v7  ;;  %v4897_v47 = vadd.f32 1e-05, %v4705_v28  ;;  %v18339_v52 = vld [vmem:[#allocation64_spill] sm:$0xff]  ;;  %v15449_v35 = vpop.f32.mrb[164].mxu1  ;;  %v18342_v44 = vld [vmem:[#allocation89_spill] sm:$0xff] }
 0x2f2   : > { %18337 = vst [vmem:[#allocation73_spill] sm:$0xff] %v15430_v15  ;;  %v4520_v9 = vsub.f32 %v4136_v12, %v15262_v11  ;;  %v4138_v19 = vmul.f32 0.020408163, %v18339_v52  ;;  %18340 = vst [vmem:[#allocation64_spill] sm:$0xff] %v15449_v35  ;;  %v10362_v39 = vpop.eup %10361  ;;  %v18341_v59 = vld [vmem:[#allocation40_spill] sm:$0xff]  ;;  %10367 = vrsqrt.f32 %v4896_v25  ;;  %v4710_v41 = vmax.f32 %v4518_v4, 0.0 }
 0x2f3   : > { %7827 = vperm.xlu0 %10111, %v18338_v36   ;;  %v4519_v30 = vsub.f32 %v4135_v58, %v18342_v44  ;;  %v18343_v63 = vld [vmem:[#allocation10_spill] sm:$0xff]  ;;  %v15455_v16 = vpop.f32.mrb[165].mxu1  ;;  %8497 = vst.msk [vmem:[%s12423_s27 + $0x280] sm:$0xff] %vm410_vm0, %v8305_v55  ;;  %v4900_v11 = vadd.f32 1e-05, %v4708_v42  ;;  %v4709_v12 = vmax.f32 %v4517_v20, 0.0  ;;  %v15461_v28 = vmul.f32 %v15430_v15, %v15430_v15  ;;  %v10364_v4 = vpop.eup %10363 }
 0x2f4   : > { %6690 = vperm.xlu1 %10112, %v18341_v59   ;;  %v4137_v32 = vmul.f32 0.020408163, %v18343_v63  ;;  %v5277_v7 = vld [vmem:[%s11072_s21 + $0x3e0] sm:$0xff]  ;;  %18344 = vst [vmem:[#allocation40_spill] sm:$0xff] %v15455_v16  ;;  %v18345_v36 = vld [vmem:[#allocation76_spill] sm:$0xff]  ;;  %v15466_v25 = vpop.f32.mrb[186].mxu0  ;;  %v15470_v44 = vpop.permute.xlu0 %6535  ;;  %10369 = vrsqrt.f32 %v4898_v14  ;;  %v4522_v35 = vsub.f32 %v4138_v19, %v15275_v54 }
 0x2f5   : > { %v15464_v52 = vmul.f32 0.020408163, %v18345_v36  ;;  %v10584_v58 = vld [vmem:[%s10740_s18 + $0x288] sm:$0xff]  ;;  %v4899_v55 = vadd.f32 1e-05, %v4707_v6  ;;  %v18347_v20 = vld [vmem:[#allocation77_spill] sm:$0xff]  ;;  %v7673_v36 = vpop.permute.xlu1 %7672  ;;  %10371 = vrsqrt.f32 %v4897_v47 }
 0x2f6   : > { %v7154_v59 = vmul.f32 %v10584_v58, %v15363_v31  ;;  %v5278_v42 = vld [vmem:[%s11072_s21 + $0x3e8] sm:$0xff]  ;;  %v15474_v63 = vmul.f32 0.020408163, %v18347_v20  ;;  %v15476_v27 = vpop.f32.mrb[187].mxu0  ;;  %v18350_v15 = vld [vmem:[#allocation68_spill] sm:$0xff]  ;;  %v4712_v16 = vmax.f32 %v4520_v9, 0.0  ;;  %v15480_v31 = vmul.f32 %v10362_v39, %v5277_v7 }
 0x2f7   : > { %18346 = vst [vmem:[#allocation89_spill] sm:$0xff] %v15464_v52  ;;  %18349 = vst [vmem:[#allocation76_spill] sm:$0xff] %v15476_v27  ;;  %6695 = vperm.xlu0 %10111, %v18350_v15   ;;  %v15483_v58 = vld [vmem:[%s11104_s24 + $0x3d0] sm:$0xff]  ;;  %v15485_v14 = vpop.f32.mrb[166].mxu1  ;;  %v18353_v20 = vld [vmem:[#allocation55_spill] sm:$0xff]  ;;  %v4711_v49 = vmax.f32 %v4519_v30, 0.0  ;;  %v4521_v15 = vsub.f32 %v4137_v32, %v15303_v21  ;;  %10373 = vrsqrt.f32 %v4900_v11  ;;  %v15495_v39 = vmul.f32 %v10364_v4, %v5278_v42 }
 0x2f8   : > { %18348 = vst [vmem:[#allocation10_spill] sm:$0xff] %v15474_v63  ;;  %18351 = vst [vmem:[#allocation77_spill] sm:$0xff] %v15480_v31  ;;  %v8306_v6 = vadd.f32 %v7673_v36, %v7154_v59  ;;  %v18354_v2 = vld [vmem:[#allocation66_spill] sm:$0xff]  ;;  %v4902_v43 = vadd.f32 1e-05, %v4710_v41  ;;  %v15491_v47 = vpop.f32.mrb[167].mxu1  ;;  %10375 = vrsqrt.f32 %v4899_v55  ;;  %v15506_v32 = vmul.f32 %v15464_v52, %v15464_v52 }
 0x2f9   : > { %18352 = vst [vmem:[#allocation68_spill] sm:$0xff] %v15485_v14  ;;  %v18355_v50 = vsub.f32 %v18353_v20, %v18354_v2  ;;  %18356 = vst [vmem:[#allocation55_spill] sm:$0xff] %v15491_v47  ;;  %v10585_v54 = vld [vmem:[%s10740_s18 + $0x290] sm:$0xff]  ;;  %v4901_v19 = vadd.f32 1e-05, %v4709_v12  ;;  %v15497_v7 = vpop.f32.mrb[188].mxu0  ;;  %v15514_v4 = vpop.permute.xlu1 %6540  ;;  %v18362_v55 = vsub.f32 %v15229_v57, %v14820_v23 }
 0x2fa   : > { %v7155_v9 = vmul.f32 %v10585_v54, %v15408_v46  ;;  %18357 = vst [vmem:[#allocation66_spill] sm:$0xff] %v15495_v39  ;;  %18358 = vst [vmem:[#allocation103_spill] sm:$0xff] %v15497_v7  ;;  %v18359_v2 = vld [vmem:[#allocation27_spill] sm:$0xff]  ;;  %v18360_v30 = vld [vmem:[#allocation80_spill] sm:$0xff]  ;;  %v15512_v12 = vpop.f32.mrb[189].mxu0  ;;  %v4714_v36 = vmax.f32 %v4522_v35, 0.0  ;;  %10377 = vrsqrt.f32 %v4902_v43  ;;  %v15533_v35 = vmul.f32 %v15474_v63, %v15474_v63 }
 0x2fb   : > { %7832 = vperm.xlu1 %10112, %v18355_v50   ;;  %8498 = vst.msk [vmem:[%s12423_s27 + $0x288] sm:$0xff] %vm410_vm0, %v8306_v6  ;;  %v7678_v50 = vpop.permute.xlu0 %7677  ;;  %v4140_v41 = vmul.f32 0.020408163, %v18359_v2  ;;  %v15509_v46 = vld [vmem:[%s11104_s24 + $0x3d8] sm:$0xff]  ;;  %v5279_v11 = vld [vmem:[%s11072_s21 + $0x3f0] sm:$0xff]  ;;  %18361 = vst [vmem:[#allocation27_spill] sm:$0xff] %v15512_v12  ;;  %7837 = vperm.xlu0 %10111, %v18362_v55   ;;  %v10366_v2 = vpop.eup %10365  ;;  %10379 = vrsqrt.f32 %v4901_v19 }
 0x2fc   : > { %v8307_v59 = vadd.f32 %v7678_v50, %v7155_v9  ;;  %v4904_v42 = vadd.f32 1e-05, %v4712_v16  ;;  %v18363_v6 = vld [vmem:[#allocation39_spill] sm:$0xff]  ;;  %v15520_v54 = vpop.f32.mrb[168].mxu1  ;;  %v18365_v21 = vld [vmem:[#allocation44_spill] sm:$0xff]  ;;  %v4713_v47 = vmax.f32 %v4521_v15, 0.0  ;;  %v10368_v43 = vpop.eup %10367 }
 0x2fd   : > { %v4139_v20 = vmul.f32 0.020408163, %v18363_v6  ;;  %18364 = vst [vmem:[#allocation80_spill] sm:$0xff] %v15520_v54  ;;  %v4903_v52 = vadd.f32 1e-05, %v4711_v49  ;;  %v18366_v14 = vld [vmem:[#allocation42_spill] sm:$0xff] }
 0x2fe   : > { %v15524_v13 = vmul.f32 0.020408163, %v18366_v14  ;;  %v15526_v9 = vpop.f32.mrb[169].mxu1  ;;  %8499 = vst.msk [vmem:[%s12423_s27 + $0x290] sm:$0xff] %vm410_vm0, %v8307_v59  ;;  %v18369_v23 = vld [vmem:[#allocation67_spill] sm:$0xff]  ;;  %v18370_v16 = vld [vmem:[#allocation30_spill] sm:$0xff]  ;;  %10381 = vrsqrt.f32 %v4904_v42 }
 0x2ff   : > { %6700 = vperm.xlu1 %10112, %v18365_v21   ;;  %18368 = vst [vmem:[#allocation44_spill] sm:$0xff] %v15526_v9  ;;  %v4142_v57 = vmul.f32 0.020408163, %v18369_v23  ;;  %v15536_v50 = vmul.f32 0.020408163, %v18370_v16  ;;  %v10586_v49 = vld [vmem:[%s10740_s18 + $0x298] sm:$0xff]  ;;  %v15540_v14 = vpop.permute.xlu0 %6545  ;;  %v4524_v21 = vsub.f32 %v4140_v41, %v15307_v61  ;;  %v7683_v23 = vpop.permute.xlu1 %7682  ;;  %v4523_v54 = vsub.f32 %v4139_v20, %v15327_v60 }
 0x300   : > { %18367 = vst [vmem:[#allocation39_spill] sm:$0xff] %v15524_v13  ;;  %v7156_v15 = vmul.f32 %v10586_v49, %v15442_v51  ;;  %v18372_v55 = vld [vmem:[#allocation49_spill] sm:$0xff]  ;;  %v18373_v59 = vld [vmem:[#allocation52_spill] sm:$0xff]  ;;  %v18374_v63 = vld [vmem:[#allocation46_spill] sm:$0xff]  ;;  %v4906_v16 = vadd.f32 1e-05, %v4714_v36  ;;  %v15548_v51 = vmul.f32 %v10366_v2, %v5279_v11  ;;  %v15552_v61 = vpop.eup %10369  ;;  %10383 = vrsqrt.f32 %v4903_v52 }
 0x301   : > { %18371 = vst [vmem:[#allocation42_spill] sm:$0xff] %v15536_v50  ;;  %v4141_v19 = vmul.f32 0.020408163, %v18372_v55  ;;  %6705 = vperm.xlu0 %10111, %v18374_v63   ;;  %v15550_v49 = vpop.f32.mrb[170].mxu1  ;;  %v18377_v55 = vsub.f32 %v15244_v24, %v14811_v17  ;;  %v4905_v6 = vadd.f32 1e-05, %v4713_v47  ;;  %v15559_v63 = vmul.f32 %v15524_v13, %v15524_v13  ;;  %v10372_v11 = vpop.eup %10371 }
 0x302   : > { %18375 = vst [vmem:[#allocation67_spill] sm:$0xff] %v15548_v51  ;;  %18376 = vst [vmem:[#allocation30_spill] sm:$0xff] %v15550_v49  ;;  %v8308_v41 = vadd.f32 %v7683_v23, %v7156_v15  ;;  %v5280_v60 = vld [vmem:[%s11072_s21 + $0x3f8] sm:$0xff]  ;;  %v15562_v42 = vpop.f32.mrb[171].mxu1  ;;  %v10587_v36 = vld [vmem:[%s10740_s18 + $0x2a0] sm:$0xff]  ;;  %v4526_v2 = vsub.f32 %v4142_v57, %v15331_v40  ;;  %v15572_v52 = vpop.f32.mrb[190].mxu0  ;;  %10385 = vrsqrt.f32 %v4906_v16 }
 0x303   : > { %7842 = vperm.xlu1 %10112, %v18377_v55   ;;  %18378 = vst [vmem:[#allocation49_spill] sm:$0xff] %v15562_v42  ;;  %v7157_v20 = vmul.f32 %v10587_v36, %v15470_v44  ;;  %v18379_v15 = vld [vmem:[#allocation63_spill] sm:$0xff]  ;;  %v5281_v49 = vld [vmem:[%s11072_s21 + $0x400] sm:$0xff]  ;;  %18382 = vst [vmem:[#allocation46_spill] sm:$0xff] %v15572_v52  ;;  %v7688_v47 = vpop.permute.xlu0 %7687  ;;  %v4716_v55 = vmax.f32 %v4524_v21, 0.0  ;;  %v4525_v13 = vsub.f32 %v4141_v19, %v15373_v33  ;;  %v15581_v40 = vpop.f32.mrb[191].mxu0  ;;  %10387 = vrsqrt.f32 %v4905_v6 }
 0x304   : > { %v4144_v23 = vmul.f32 0.020408163, %v18379_v15  ;;  %v18380_v17 = vld [vmem:[#allocation78_spill] sm:$0xff]  ;;  %8500 = vst.msk [vmem:[%s12423_s27 + $0x298] sm:$0xff] %vm410_vm0, %v8308_v41  ;;  %v18384_v12 = vld [vmem:[#allocation9_spill] sm:$0xff]  ;;  %v15583_v57 = vpop.eup %10373  ;;  %v15585_v36 = vpop.permute.xlu1 %6550  ;;  %v18387_v41 = vsub.f32 %v15258_v45, %v14850_v0  ;;  %v4715_v33 = vmax.f32 %v4523_v54, 0.0  ;;  %v15600_v0 = vmul.f32 %v10372_v11, %v5281_v49 }
 0x305   : > { %v15570_v24 = vmul.f32 0.020408163, %v18380_v17  ;;  %v18383_v42 = vld [vmem:[#allocation54_spill] sm:$0xff]  ;;  %v15579_v44 = vmul.f32 0.020408163, %v18384_v12  ;;  %18386 = vst [vmem:[#allocation78_spill] sm:$0xff] %v15581_v40  ;;  %v8309_v15 = vadd.f32 %v7688_v47, %v7157_v20  ;;  %v15596_v40 = vmul.f32 %v15536_v50, %v15536_v50 }
 0x306   : > { %v4143_v9 = vmul.f32 0.020408163, %v18383_v42  ;;  %7847 = vperm.xlu0 %10111, %v18387_v41   ;;  %v18388_v21 = vld [vmem:[#allocation18_spill] sm:$0xff]  ;;  %v15591_v12 = vpop.f32.mrb[172].mxu1  ;;  %v10376_v42 = vpop.eup %10375  ;;  %v18390_v17 = vld [vmem:[#allocation41_spill] sm:$0xff]  ;;  %v15598_v20 = vmul.f32 %v10368_v43, %v5280_v60  ;;  %v4718_v54 = vmax.f32 %v4526_v2, 0.0  ;;  %v4528_v16 = vsub.f32 %v4144_v23, %v15384_v56 }
 0x307   : > { %18381 = vst [vmem:[#allocation52_spill] sm:$0xff] %v15570_v24  ;;  %18385 = vst [vmem:[#allocation63_spill] sm:$0xff] %v15579_v44  ;;  %v4146_v19 = vmul.f32 0.020408163, %v18388_v21  ;;  %6710 = vperm.xlu1 %10112, %v18390_v17   ;;  %v15602_v45 = vpop.f32.mrb[173].mxu1  ;;  %v18394_v47 = vld [vmem:[#allocation24_spill] sm:$0xff]  ;;  %v15610_v6 = vmul.f32 %v15570_v24, %v15570_v24  ;;  %v15613_v17 = vpop.eup %10377 }
 0x308   : > { %18389 = vst [vmem:[#allocation54_spill] sm:$0xff] %v15591_v12  ;;  %18391 = vst [vmem:[#allocation9_spill] sm:$0xff] %v15598_v20  ;;  %v4145_v41 = vmul.f32 0.020408163, %v18394_v47  ;;  %v5282_v21 = vld [vmem:[%s11072_s21 + $0x408] sm:$0xff]  ;;  %v15617_v60 = vpop.permute.xlu0 %6555  ;;  %v4527_v2 = vsub.f32 %v4143_v9, %v15399_v53  ;;  %v15620_v56 = vpop.eup %10379  ;;  %v18398_v9 = vld [vmem:[#allocation90_spill] sm:$0xff] }
 0x309   : > { %18392 = vst [vmem:[#allocation18_spill] sm:$0xff] %v15600_v0  ;;  %18393 = vst [vmem:[#allocation41_spill] sm:$0xff] %v15602_v45  ;;  %v10588_v43 = vld [vmem:[%s10740_s18 + $0x2a8] sm:$0xff]  ;;  %v4908_v11 = vadd.f32 1e-05, %v4716_v55  ;;  %v7693_v23 = vpop.permute.xlu1 %7692  ;;  %v4530_v50 = vsub.f32 %v4146_v19, %v15438_v3  ;;  %v5283_v55 = vld [vmem:[%s11072_s21 + $0x410] sm:$0xff]  ;;  %v15637_v3 = vmul.f32 %v15552_v61, %v5282_v21 }
 0x30a   : > { %8501 = vst.msk [vmem:[%s12423_s27 + $0x2a0] sm:$0xff] %vm410_vm0, %v8309_v15  ;;  %v7158_v49 = vmul.f32 %v10588_v43, %v15514_v4  ;;  %v4717_v15 = vmax.f32 %v4525_v13, 0.0  ;;  %v18395_v47 = vld [vmem:[#allocation31_spill] sm:$0xff]  ;;  %v4907_v24 = vadd.f32 1e-05, %v4715_v33  ;;  %v15627_v4 = vmul.f32 %v15579_v44, %v15579_v44  ;;  %v15630_v13 = vpop.f32.mrb[174].mxu1  ;;  %v15644_v44 = vpop.eup %10381 }
 0x30b   : > { %6715 = vperm.xlu0 %10111, %v18395_v47   ;;  %v18396_v12 = vld [vmem:[#allocation59_spill] sm:$0xff]  ;;  %18397 = vst [vmem:[#allocation24_spill] sm:$0xff] %v15630_v13  ;;  %v18401_v47 = vld [vmem:[#allocation6_spill] sm:$0xff]  ;;  %18402 = vst [vmem:[#allocation31_spill] sm:$0xff] %v15637_v3  ;;  %v15642_v7 = vpop.f32.mrb[175].mxu1  ;;  %10389 = vrsqrt.f32 %v4908_v11 }
 0x30c   : > { %v4148_v45 = vmul.f32 0.020408163, %v18396_v12  ;;  %v8310_v53 = vadd.f32 %v7693_v23, %v7158_v49  ;;  %v18399_v43 = vld [vmem:[#allocation15_spill] sm:$0xff]  ;;  %v4147_v33 = vmul.f32 0.020408163, %v18401_v47  ;;  %18405 = vst [vmem:[#allocation90_spill] sm:$0xff] %v15642_v7  ;;  %v7698_v61 = vpop.permute.xlu0 %7697  ;;  %10391 = vrsqrt.f32 %v4907_v24 }
 0x30d   : > { %v18400_v52 = vsub.f32 %v18398_v9, %v18399_v43  ;;  %v18403_v19 = vld [vmem:[#allocation11_spill] sm:$0xff]  ;;  %v10589_v27 = vld [vmem:[%s10740_s18 + $0x2b0] sm:$0xff]  ;;  %v4910_v49 = vadd.f32 1e-05, %v4718_v54  ;;  %v4720_v23 = vmax.f32 %v4528_v16, 0.0  ;;  %v4529_v9 = vsub.f32 %v4145_v41, %v15461_v28  ;;  %v15650_v43 = vpop.eup %10383  ;;  %v15656_v7 = vpop.permute.xlu1 %6560 }
 0x30e   : > { %v15640_v12 = vmul.f32 0.020408163, %v18403_v19  ;;  %v7159_v13 = vmul.f32 %v10589_v27, %v15540_v14  ;;  %8502 = vst.msk [vmem:[%s12423_s27 + $0x2a8] sm:$0xff] %vm410_vm0, %v8310_v53  ;;  %v4909_v21 = vadd.f32 1e-05, %v4717_v15  ;;  %v4719_v47 = vmax.f32 %v4527_v2, 0.0 }
 0x30f   : > { %7852 = vperm.xlu1 %10112, %v18400_v52   ;;  %v5284_v52 = vld [vmem:[%s11072_s21 + $0x418] sm:$0xff]  ;;  %v15654_v19 = vmul.f32 %v10376_v42, %v5283_v55  ;;  %v18407_v27 = vsub.f32 %v15323_v26, %v14885_v37  ;;  %v4722_v28 = vmax.f32 %v4530_v50, 0.0  ;;  %v4532_v14 = vsub.f32 %v4148_v45, %v15506_v32  ;;  %v18408_v54 = vld [vmem:[#allocation71_spill] sm:$0xff]  ;;  %v15665_v41 = vpop.f32.mrb[176].mxu1  ;;  %v18411_v11 = vld [vmem:[#allocation56_spill] sm:$0xff]  ;;  %v15675_v32 = vpop.eup %10385 }
 0x310   : > { %18404 = vst [vmem:[#allocation59_spill] sm:$0xff] %v15640_v12  ;;  %v8311_v3 = vadd.f32 %v7698_v61, %v7159_v13  ;;  %v15663_v16 = vmul.f32 0.020408163, %v18408_v54  ;;  %18410 = vst [vmem:[#allocation11_spill] sm:$0xff] %v15665_v41  ;;  %v4531_v42 = vsub.f32 %v4147_v33, %v15533_v35  ;;  %v18412_v15 = vld [vmem:[#allocation19_spill] sm:$0xff]  ;;  %v15671_v26 = vmul.f32 %v15583_v57, %v5284_v52  ;;  %v15673_v37 = vpop.f32.mrb[177].mxu1  ;;  %v15683_v35 = vpop.eup %10387 }
 0x311   : > { %18406 = vst [vmem:[#allocation15_spill] sm:$0xff] %v15654_v19  ;;  %7857 = vperm.xlu0 %10111, %v18407_v27   ;;  %v4150_v2 = vmul.f32 0.020408163, %v18412_v15  ;;  %18414 = vst [vmem:[#allocation56_spill] sm:$0xff] %v15673_v37  ;;  %10393 = vrsqrt.f32 %v4910_v49  ;;  %v4912_v50 = vadd.f32 1e-05, %v4720_v23  ;;  %v15681_v24 = vmul.f32 %v15640_v12, %v15640_v12  ;;  %v15687_v57 = vpop.permute.xlu0 %6565  ;;  %v7703_v49 = vpop.permute.xlu1 %7702 }
 0x312   : > { %18409 = vst [vmem:[#allocation6_spill] sm:$0xff] %v15663_v16  ;;  %18413 = vst [vmem:[#allocation71_spill] sm:$0xff] %v15671_v26  ;;  %v4721_v45 = vmax.f32 %v4529_v9, 0.0  ;;  %v10590_v55 = vld [vmem:[%s10740_s18 + $0x2b8] sm:$0xff]  ;;  %10395 = vrsqrt.f32 %v4909_v21  ;;  %v4911_v53 = vadd.f32 1e-05, %v4719_v47  ;;  %v15696_v27 = vmul.f32 %v15663_v16, %v15663_v16 }
 0x313   : > { %6720 = vperm.xlu1 %10112, %v18411_v11   ;;  %8503 = vst.msk [vmem:[%s12423_s27 + $0x2b0] sm:$0xff] %vm410_vm0, %v8311_v3  ;;  %v7160_v13 = vmul.f32 %v10590_v55, %v15585_v36  ;;  %v5285_v33 = vld [vmem:[%s11072_s21 + $0x420] sm:$0xff]  ;;  %v18415_v52 = vld [vmem:[#allocation48_spill] sm:$0xff]  ;;  %v18417_v23 = vld [vmem:[#allocation21_spill] sm:$0xff]  ;;  %v4914_v9 = vadd.f32 1e-05, %v4722_v28  ;;  %v18421_v11 = vsub.f32 %v15318_v22, %v14878_v18  ;;  %v4534_v28 = vsub.f32 %v4150_v2, %v15559_v63 }
 0x314   : > { %v15691_v3 = vmul.f32 0.020408163, %v18415_v52  ;;  %v4724_v61 = vmax.f32 %v4532_v14, 0.0  ;;  %v18418_v36 = vld [vmem:[#allocation14_spill] sm:$0xff]  ;;  %v15701_v21 = vpop.f32.mrb[178].mxu1  ;;  %v4723_v15 = vmax.f32 %v4531_v42, 0.0  ;;  %10397 = vrsqrt.f32 %v4912_v50 }
 0x315   : > { %6725 = vperm.xlu0 %10111, %v18417_v23   ;;  %v15699_v54 = vmul.f32 0.020408163, %v18418_v36  ;;  %18420 = vst [vmem:[#allocation21_spill] sm:$0xff] %v15701_v21  ;;  %v8312_v47 = vadd.f32 %v7703_v49, %v7160_v13  ;;  %v18422_v14 = vld [vmem:[#allocation75_spill] sm:$0xff]  ;;  %v15708_v52 = vpop.f32.mrb[179].mxu1  ;;  %v10591_v23 = vld [vmem:[%s10740_s18 + $0x2c0] sm:$0xff]  ;;  %v7708_v18 = vpop.permute.xlu0 %7707  ;;  %10399 = vrsqrt.f32 %v4911_v53  ;;  %v15717_v49 = vmul.f32 %v15620_v56, %v5285_v33 }
 0x316   : > { %18416 = vst [vmem:[#allocation19_spill] sm:$0xff] %v15691_v3  ;;  %v4149_v55 = vmul.f32 0.020408163, %v18422_v14  ;;  %18423 = vst [vmem:[#allocation14_spill] sm:$0xff] %v15708_v52  ;;  %v7161_v36 = vmul.f32 %v10591_v23, %v15617_v60  ;;  %v4913_v12 = vadd.f32 1e-05, %v4721_v45  ;;  %v15721_v63 = vmul.f32 %v15691_v3, %v15691_v3  ;;  %v15725_v50 = vpop.permute.xlu1 %6570  ;;  %v15739_v14 = vpop.eup %10389 }
 0x317   : > { %18419 = vst [vmem:[#allocation48_spill] sm:$0xff] %v15699_v54  ;;  %7862 = vperm.xlu1 %10112, %v18421_v11   ;;  %v18424_v16 = vld [vmem:[#allocation7_spill] sm:$0xff]  ;;  %8504 = vst.msk [vmem:[%s12423_s27 + $0x2b8] sm:$0xff] %vm410_vm0, %v8312_v47  ;;  %v18425_v22 = vld [vmem:[#allocation62_spill] sm:$0xff]  ;;  %v18427_v45 = vsub.f32 %v15376_v8, %v14921_v34  ;;  %v4916_v53 = vadd.f32 1e-05, %v4724_v61  ;;  %v15732_v56 = vmul.f32 %v15699_v54, %v15699_v54  ;;  %10401 = vrsqrt.f32 %v4914_v9  ;;  %v15753_v3 = vpop.eup %10391 }
 0x318   : > { %v4152_v13 = vmul.f32 0.020408163, %v18424_v16  ;;  %v4151_v42 = vmul.f32 0.020408163, %v18425_v22  ;;  %18426 = vst [vmem:[#allocation75_spill] sm:$0xff] %v15717_v49  ;;  %v5286_v2 = vld [vmem:[%s11072_s21 + $0x428] sm:$0xff]  ;;  %v8313_v16 = vadd.f32 %v7708_v18, %v7161_v36  ;;  %v4533_v34 = vsub.f32 %v4149_v55, %v15596_v40 }
 0x319   : > { %v5287_v60 = vld [vmem:[%s11072_s21 + $0x430] sm:$0xff]  ;;  %7867 = vperm.xlu0 %10111, %v18427_v45   ;;  %v18428_v33 = vld [vmem:[#allocation2_spill] sm:$0xff]  ;;  %v15737_v11 = vpop.f32.mrb[180].mxu1  ;;  %v18431_v23 = vld [vmem:[#allocation65_spill] sm:$0xff]  ;;  %v4915_v36 = vadd.f32 1e-05, %v4723_v15  ;;  %10403 = vrsqrt.f32 %v4913_v12  ;;  %v15748_v45 = vmul.f32 %v15613_v17, %v5286_v2  ;;  %v18436_v2 = vsub.f32 %v15387_v38, %v14912_v1 }
 0x31a   : > { %v15735_v47 = vmul.f32 0.020408163, %v18428_v33  ;;  %18430 = vst [vmem:[#allocation62_spill] sm:$0xff] %v15737_v11  ;;  %v4726_v18 = vmax.f32 %v4534_v28, 0.0  ;;  %v5288_v8 = vld [vmem:[%s11072_s21 + $0x438] sm:$0xff]  ;;  %v3750_v61 = vpop.f32.mrb[181].mxu1  ;;  %v4536_v22 = vsub.f32 %v4152_v13, %v15610_v6  ;;  %v15751_v33 = vmul.f32 %v15650_v43, %v5287_v60  ;;  %v15757_v28 = vpop.permute.xlu0 %6575 }
 0x31b   : > { %6730 = vperm.xlu1 %10112, %v18431_v23   ;;  %8505 = vst.msk [vmem:[%s12423_s27 + $0x2c0] sm:$0xff] %vm410_vm0, %v8313_v16  ;;  %v10592_v9 = vld [vmem:[%s10740_s18 + $0x2c8] sm:$0xff]  ;;  %v4535_v40 = vsub.f32 %v4151_v42, %v15627_v4  ;;  %v18433_v55 = vld [vmem:[#allocation81_spill] sm:$0xff]  ;;  %v15764_v6 = vmul.f32 0.020408163, %v15357_v29  ;;  %v15766_v17 = vpop.eup %10393  ;;  %v7713_v12 = vpop.permute.xlu1 %7712  ;;  %10405 = vrsqrt.f32 %v4916_v53  ;;  %v15774_v4 = vmul.f32 %v15644_v44, %v5288_v8  ;;  %v18449_v11 = vld [vmem:[#allocation26_spill] sm:$0xff] }
 0x31c   : > { %18429 = vst [vmem:[#allocation7_spill] sm:$0xff] %v15735_v47  ;;  %18432 = vst [vmem:[#allocation2_spill] sm:$0xff] %v15751_v33  ;;  %v7162_v15 = vmul.f32 %v10592_v9, %v15656_v7  ;;  %v15761_v16 = vmul.f32 0.020408163, %v18433_v55  ;;  %v15771_v7 = vmul.f32 %v15735_v47, %v15735_v47  ;;  %v15776_v43 = vmul.f32 0.020408163, %v3750_v61  ;;  %v15778_v13 = vpop.eup %10395 }
 0x31d   : > { %18435 = vst [vmem:[#allocation81_spill] sm:$0xff] %v15764_v6  ;;  %6735 = vperm.xlu0 %10111, %v15480_v31   ;;  %v10075_v29 = vpop.f32.mrb[182].mxu1  ;;  %10407 = vrsqrt.f32 %v4915_v36  ;;  %v4918_v60 = vadd.f32 1e-05, %v4726_v18  ;;  %v4725_v53 = vmax.f32 %v4533_v34, 0.0  ;;  %v10593_v9 = vld [vmem:[%s10740_s18 + $0x2d0] sm:$0xff]  ;;  %v15789_v54 = vmul.f32 %v15764_v6, %v15764_v6 }
 0x31e   : > { %18434 = vst [vmem:[#allocation65_spill] sm:$0xff] %v15761_v16  ;;  %v8314_v42 = vadd.f32 %v7713_v12, %v7162_v15  ;;  %v3760_v23 = vpop.f32.mrb[183].mxu1  ;;  %v7163_v55 = vmul.f32 %v10593_v9, %v15687_v57  ;;  %v4728_v44 = vmax.f32 %v4536_v22, 0.0  ;;  %v18437_v8 = vld [vmem:[#allocation35_spill] sm:$0xff]  ;;  %v5289_v61 = vld [vmem:[%s11072_s21 + $0x440] sm:$0xff]  ;;  %v7718_v15 = vpop.permute.xlu0 %7717  ;;  %v4727_v1 = vmax.f32 %v4535_v40, 0.0 }
 0x31f   : > { %7872 = vperm.xlu1 %10112, %v18436_v2   ;;  %v4154_v47 = vmul.f32 0.020408163, %v18437_v8  ;;  %v15795_v38 = vmul.f32 %v15761_v16, %v15761_v16  ;;  %v18438_v36 = vld [vmem:[#allocation51_spill] sm:$0xff]  ;;  %v15801_v57 = vmul.f32 0.020408163, %v15391_v62  ;;  %v15803_v34 = vpop.eup %10397  ;;  %v15805_v22 = vpop.permute.xlu1 %6580  ;;  %v18442_v40 = vld [vmem:[#allocation22_spill] sm:$0xff]  ;;  %10409 = vrsqrt.f32 %v4918_v60 }
 0x320   : > { %8506 = vst.msk [vmem:[%s12423_s27 + $0x2c8] sm:$0xff] %vm410_vm0, %v8314_v42  ;;  %v15798_v18 = vmul.f32 0.020408163, %v18438_v36  ;;  %v8315_v12 = vadd.f32 %v7718_v15, %v7163_v55  ;;  %v18441_v42 = vsub.f32 %v15483_v58, %v18360_v30  ;;  %v15811_v2 = vmul.f32 0.020408163, %v18442_v40  ;;  %v10078_v8 = vpop.f32.mrb[184].mxu1  ;;  %v15818_v36 = vpop.eup %10399 }
 0x321   : > { %18440 = vst [vmem:[#allocation51_spill] sm:$0xff] %v15801_v57  ;;  %v15816_v62 = vmul.f32 0.020408163, %v15404_v10  ;;  %v4917_v55 = vadd.f32 1e-05, %v4725_v53  ;;  %v15822_v15 = vmul.f32 %v15683_v35, %v5289_v61  ;;  %v15826_v58 = vmul.f32 %v15801_v57, %v15801_v57  ;;  %v18444_v9 = vld [vmem:[#allocation4_spill] sm:$0xff]  ;;  %v15840_v35 = vpop.eup %10401 }
 0x322   : > { %18439 = vst [vmem:[#allocation35_spill] sm:$0xff] %v15798_v18  ;;  %7877 = vperm.xlu0 %10111, %v18441_v42   ;;  %v15828_v30 = vmul.f32 0.020408163, %v10075_v29  ;;  %v3770_v42 = vpop.f32.mrb[185].mxu1  ;;  %8507 = vst.msk [vmem:[%s12423_s27 + $0x2d0] sm:$0xff] %vm410_vm0, %v8315_v12  ;;  %v4538_v40 = vsub.f32 %v4154_v47, %v15681_v24  ;;  %v10594_v61 = vld [vmem:[%s10740_s18 + $0x2d8] sm:$0xff]  ;;  %v15844_v29 = vpop.permute.xlu0 %6585 }
 0x323   : > { %18443 = vst [vmem:[#allocation22_spill] sm:$0xff] %v15816_v62  ;;  %6740 = vperm.xlu1 %10112, %v15495_v39   ;;  %v4920_v10 = vadd.f32 1e-05, %v4728_v44  ;;  %v15834_v16 = vmul.f32 0.020408163, %v18444_v9  ;;  %v15838_v53 = vmul.f32 %v15816_v62, %v15816_v62  ;;  %v7164_v39 = vmul.f32 %v10594_v61, %v15725_v50  ;;  %v15853_v47 = vpop.eup %10403  ;;  %v7723_v9 = vpop.permute.xlu1 %7722 }
 0x324   : > { %v15848_v44 = vmul.f32 0.020408163, %v3760_v23  ;;  %v15851_v24 = vmul.f32 0.020408163, %v15432_v5  ;;  %v4919_v31 = vadd.f32 1e-05, %v4727_v1  ;;  %v4537_v50 = vsub.f32 %v15811_v2, %v15696_v27 }
 0x325   : > { %18445 = vst [vmem:[#allocation4_spill] sm:$0xff] %v15834_v16  ;;  %v15859_v61 = vmul.f32 0.020408163, %v15440_v48  ;;  %v10081_v23 = vpop.f32.mrb[186].mxu1  ;;  %v8316_v12 = vadd.f32 %v7723_v9, %v7164_v39  ;;  %v18448_v5 = vsub.f32 %v15509_v46, %v18373_v59  ;;  %v4156_v21 = vmul.f32 0.020408163, %v18449_v11  ;;  %v15871_v1 = vpop.eup %10405 }
 0x326   : > { %18446 = vst [vmem:[#allocation104_spill] sm:$0xff] %v15851_v24  ;;  %6745 = vperm.xlu0 %10111, %v15548_v51   ;;  %v15869_v60 = vmul.f32 %v15851_v24, %v15851_v24  ;;  %v3780_v27 = vpop.f32.mrb[187].mxu1  ;;  %18450 = vst [vmem:[#allocation26_spill] sm:$0xff] %v15871_v1  ;;  %v10595_v48 = vld [vmem:[%s10740_s18 + $0x2e0] sm:$0xff]  ;;  %v15879_v46 = vmul.f32 0.020408163, %v10078_v8  ;;  %v7728_v9 = vpop.permute.xlu0 %7727  ;;  %10411 = vrsqrt.f32 %v4917_v55 }
 0x327   : > { %18447 = vst [vmem:[#allocation105_spill] sm:$0xff] %v15859_v61  ;;  %7882 = vperm.xlu1 %10112, %v18448_v5   ;;  %v7165_v2 = vmul.f32 %v10595_v48, %v15757_v28  ;;  %v15877_v39 = vmul.f32 %v15859_v61, %v15859_v61  ;;  %v15881_v59 = vmul.f32 0.020408163, %v3770_v42  ;;  %v15883_v11 = vpop.eup %10407  ;;  %8508 = vst.msk [vmem:[%s12423_s27 + $0x2d8] sm:$0xff] %vm410_vm0, %v8316_v12  ;;  %v4730_v5 = vmax.f32 %v4538_v40, 0.0  ;;  %v18451_v51 = vld [vmem:[#allocation53_spill] sm:$0xff]  ;;  %v15892_v48 = vpop.permute.xlu1 %6590 }
 0x328   : > { %v4155_v52 = vmul.f32 0.020408163, %v18451_v51  ;;  %v15890_v28 = vmul.f32 %v15798_v18, %v15798_v18  ;;  %v15900_v40 = vmul.f32 0.020408163, %v15466_v25  ;;  %v10084_v51 = vpop.f32.mrb[188].mxu1  ;;  %10413 = vrsqrt.f32 %v4920_v10  ;;  %v10596_v10 = vld [vmem:[%s10740_s18 + $0x2e8] sm:$0xff] }
 0x329   : > { %v8317_v8 = vadd.f32 %v7728_v9, %v7165_v2  ;;  %v4540_v12 = vsub.f32 %v4156_v21, %v15721_v63  ;;  %v15906_v2 = vmul.f32 %v15834_v16, %v15834_v16  ;;  %v18453_v9 = vld [vmem:[#allocation76_spill] sm:$0xff]  ;;  %v3790_v42 = vpop.f32.mrb[189].mxu1  ;;  %10415 = vrsqrt.f32 %v4919_v31 }
 0x32a   : > { %6755 = vperm.xlu0 %10111, %v15600_v0   ;;  %18452 = vst [vmem:[#allocation53_spill] sm:$0xff] %v15900_v40  ;;  %v15909_v18 = vmul.f32 0.020408163, %v18453_v9  ;;  %v4729_v55 = vmax.f32 %v4537_v50, 0.0  ;;  %v15915_v25 = vmul.f32 %v15900_v40, %v15900_v40  ;;  %v7166_v21 = vmul.f32 %v10596_v10, %v15805_v22  ;;  %v15921_v63 = vpop.permute.xlu0 %6595  ;;  %v18455_v16 = vld [vmem:[#allocation8_spill] sm:$0xff]  ;;  %v18457_v22 = vld [vmem:[#allocation17_spill] sm:$0xff] }
 0x32b   : > { %6750 = vperm.xlu1 %10112, %v15598_v20   ;;  %8509 = vst.msk [vmem:[%s12423_s27 + $0x2e0] sm:$0xff] %vm410_vm0, %v8317_v8  ;;  %v15917_v20 = vmul.f32 0.020408163, %v10081_v23  ;;  %v15924_v0 = vmul.f32 0.020408163, %v18455_v16  ;;  %v7733_v50 = vpop.permute.xlu1 %7732  ;;  %v4539_v8 = vsub.f32 %v4155_v52, %v15732_v56  ;;  %v10087_v41 = vpop.f32.mrb[190].mxu1 }
 0x32c   : > { %18454 = vst [vmem:[#allocation76_spill] sm:$0xff] %v15909_v18  ;;  %v15928_v9 = vmul.f32 %v15909_v18, %v15909_v18  ;;  %v15930_v31 = vmul.f32 0.020408163, %v3780_v27  ;;  %v15933_v23 = vadd.f32 1e-05, %v4730_v5  ;;  %v8318_v37 = vadd.f32 %v7733_v50, %v7166_v21  ;;  %v18459_v40 = vld [vmem:[#allocation31_spill] sm:$0xff]  ;;  %v15947_v52 = vpop.eup %10409 }
 0x32d   : > { %18456 = vst [vmem:[#allocation8_spill] sm:$0xff] %v15924_v0  ;;  %v15937_v10 = vmul.f32 0.020408163, %v18457_v22  ;;  %v4732_v27 = vmax.f32 %v4540_v12, 0.0  ;;  %v3800_v24 = vpop.f32.mrb[191].mxu1  ;;  %18462 = vst [vmem:[#allocation106_spill] sm:$0xff] %v15947_v52 }
 0x32e   : > { %6765 = vperm.xlu0 %10111, %v15654_v19   ;;  %v18460_v19 = vld [vmem:[#allocation103_spill] sm:$0xff]  ;;  %v10597_v56 = vld [vmem:[%s10740_s18 + $0x2f0] sm:$0xff]  ;;  %v15951_v61 = vadd.f32 1e-05, %v4729_v55  ;;  %v15956_v21 = vmul.f32 0.020408163, %v10084_v51  ;;  %v7738_v12 = vpop.permute.xlu0 %7737  ;;  %10417 = vrsqrt.f32 %v15933_v23 }
 0x32f   : > { %18458 = vst [vmem:[#allocation17_spill] sm:$0xff] %v15937_v10  ;;  %6760 = vperm.xlu1 %10112, %v18459_v40   ;;  %v15945_v5 = vmul.f32 0.020408163, %v18460_v19  ;;  %v7167_v22 = vmul.f32 %v10597_v56, %v15844_v29  ;;  %v18463_v16 = vld [vmem:[#allocation27_spill] sm:$0xff]  ;;  %8510 = vst.msk [vmem:[%s12423_s27 + $0x2e8] sm:$0xff] %vm410_vm0, %v8318_v37  ;;  %v18466_v50 = vld [vmem:[#allocation92_spill] sm:$0xff]  ;;  %v15963_v19 = vmul.f32 %v15924_v0, %v15924_v0 }
 0x330   : > { %v15954_v57 = vmul.f32 0.020408163, %v18463_v16  ;;  %18465 = vst [vmem:[#allocation107_spill] sm:$0xff] %v15956_v21  ;;  %v4158_v18 = vmul.f32 0.020408163, %v18466_v50  ;;  %v15971_v16 = vpop.permute.xlu1 %6600  ;;  %v4731_v37 = vmax.f32 %v4539_v8, 0.0  ;;  %v15979_v0 = vpop.eup %10411  ;;  %10419 = vrsqrt.f32 %v15951_v61 }
 0x331   : > { %18461 = vst [vmem:[#allocation103_spill] sm:$0xff] %v15945_v5  ;;  %v15967_v29 = vmul.f32 %v15945_v5, %v15945_v5  ;;  %v15969_v55 = vmul.f32 0.020408163, %v3790_v42  ;;  %v8319_v51 = vadd.f32 %v7738_v12, %v7167_v22  ;;  %v18468_v56 = vld [vmem:[#allocation37_spill] sm:$0xff]  ;;  %v4924_v5 = vadd.f32 1e-05, %v4732_v27 }
 0x332   : > { %18464 = vst [vmem:[#allocation27_spill] sm:$0xff] %v15954_v57  ;;  %6775 = vperm.xlu0 %10111, %v15717_v49   ;;  %v4157_v50 = vmul.f32 0.020408163, %v18468_v56  ;;  %v15977_v40 = vmul.f32 %v15954_v57, %v15954_v57  ;;  %v18469_v42 = vld [vmem:[#allocation95_spill] sm:$0xff]  ;;  %v15985_v22 = vmul.f32 %v15937_v10, %v15937_v10  ;;  %v18470_v12 = vld [vmem:[#allocation97_spill] sm:$0xff]  ;;  %v18471_v57 = vld [vmem:[#allocation46_spill] sm:$0xff]  ;;  %v16000_v6 = vpop.eup %10413  ;;  %v16004_v8 = vpop.permute.xlu0 %6605 }
 0x333   : > { %18467 = vst [vmem:[#allocation92_spill] sm:$0xff] %v15967_v29  ;;  %6770 = vperm.xlu1 %10112, %v15671_v26   ;;  %v4160_v62 = vmul.f32 0.020408163, %v18469_v42  ;;  %8511 = vst.msk [vmem:[%s12423_s27 + $0x2f0] sm:$0xff] %vm410_vm0, %v8319_v51  ;;  %v4159_v56 = vmul.f32 0.020408163, %v18470_v12  ;;  %v4542_v51 = vsub.f32 %v4158_v18, %v15771_v7  ;;  %v16011_v49 = vpop.eup %10415  ;;  %10421 = vrsqrt.f32 %v4924_v5 }
 0x334   : > { %v15995_v26 = vmul.f32 0.020408163, %v18471_v57  ;;  %v18473_v27 = vld [vmem:[#allocation78_spill] sm:$0xff]  ;;  %18475 = vst [vmem:[#allocation97_spill] sm:$0xff] %v16000_v6  ;;  %v10598_v10 = vld [vmem:[%s10740_s18 + $0x2f8] sm:$0xff]  ;;  %18476 = vst [vmem:[#allocation46_spill] sm:$0xff] %v16011_v49  ;;  %v7743_v57 = vpop.permute.xlu1 %7742 }
 0x335   : > { %v15998_v42 = vmul.f32 0.020408163, %v18473_v27  ;;  %v7168_v52 = vmul.f32 %v10598_v10, %v15892_v48  ;;  %v16007_v12 = vmul.f32 0.020408163, %v10087_v41  ;;  %v16009_v29 = vmul.f32 0.020408163, %v3800_v24 }
 0x336   : > { %18472 = vst [vmem:[#allocation37_spill] sm:$0xff] %v15995_v26  ;;  %6785 = vperm.xlu0 %10111, %v15751_v33   ;;  %v4541_v27 = vsub.f32 %v4157_v50, %v15795_v38  ;;  %v5290_v21 = vld [vmem:[%s11072_s21 + $0x448] sm:$0xff]  ;;  %v18477_v6 = vld [vmem:[#allocation100_spill] sm:$0xff]  ;;  %v16019_v7 = vmul.f32 %v15995_v26, %v15995_v26  ;;  %v4544_v24 = vsub.f32 %v4160_v62, %v15890_v28  ;;  %v18479_v38 = vld [vmem:[#allocation34_spill] sm:$0xff]  ;;  %v4923_v62 = vadd.f32 1e-05, %v4731_v37 }
 0x337   : > { %18474 = vst [vmem:[#allocation95_spill] sm:$0xff] %v15998_v42  ;;  %v4162_v48 = vmul.f32 0.020408163, %v18477_v6  ;;  %v16023_v41 = vmul.f32 %v15998_v42, %v15998_v42  ;;  %v8320_v18 = vadd.f32 %v7743_v57, %v7168_v52  ;;  %6780 = vperm.xlu1 %10112, %v15748_v45   ;;  %v18478_v10 = vld [vmem:[#allocation43_spill] sm:$0xff]  ;;  %v16029_v50 = vmul.f32 0.020408163, %v18479_v38  ;;  %v7748_v57 = vpop.permute.xlu0 %7747 }
 0x338   : > { %v4161_v33 = vmul.f32 0.020408163, %v18478_v10  ;;  %v10599_v49 = vld [vmem:[%s10740_s18 + $0x300] sm:$0xff]  ;;  %v4543_v26 = vsub.f32 %v4159_v56, %v15906_v2  ;;  %v5291_v1 = vld [vmem:[%s11072_s21 + $0x450] sm:$0xff]  ;;  %v4734_v28 = vmax.f32 %v4542_v51, 0.0  ;;  %v4733_v56 = vmax.f32 %v4541_v27, 0.0 }
 0x339   : > { %18480 = vst [vmem:[#allocation78_spill] sm:$0xff] %v16029_v50  ;;  %v7169_v6 = vmul.f32 %v10599_v49, %v15921_v63  ;;  %8512 = vst.msk [vmem:[%s12423_s27 + $0x2f8] sm:$0xff] %vm410_vm0, %v8320_v18  ;;  %v16043_v49 = vmul.f32 %v15675_v32, %v5290_v21  ;;  %v16045_v63 = vpop.permute.xlu1 %6610  ;;  %v4546_v10 = vsub.f32 %v4162_v48, %v15963_v19  ;;  %v5293_v38 = vld [vmem:[%s11072_s21 + $0x460] sm:$0xff]  ;;  %v18481_v23 = vld [vmem:[#allocation12_spill] sm:$0xff]  ;;  %v4736_v32 = vmax.f32 %v4544_v24, 0.0 }
 0x33a   : > { %6795 = vperm.xlu0 %10111, %v15822_v15   ;;  %v16051_v42 = vmul.f32 0.020408163, %v18481_v23  ;;  %v16056_v21 = vmul.f32 %v15753_v3, %v5291_v1  ;;  %v4545_v37 = vsub.f32 %v4161_v33, %v15985_v22  ;;  %v4735_v19 = vmax.f32 %v4543_v26, 0.0  ;;  %v18484_v27 = vld [vmem:[#allocation102_spill] sm:$0xff]  ;;  %v10600_v18 = vld [vmem:[%s10740_s18 + $0x308] sm:$0xff]  ;;  %v5292_v33 = vld [vmem:[%s11072_s21 + $0x458] sm:$0xff] }
 0x33b   : > { %v8321_v2 = vadd.f32 %v7748_v57, %v7169_v6  ;;  %6790 = vperm.xlu1 %10112, %v15774_v4   ;;  %v4356_v51 = vmul.f32 %v16029_v50, %v16029_v50  ;;  %v4164_v48 = vmul.f32 0.020408163, %v18484_v27  ;;  %v7170_v61 = vmul.f32 %v10600_v18, %v15971_v16  ;;  %v16066_v3 = vpop.permute.xlu0 %6615  ;;  %v5294_v16 = vld [vmem:[%s11072_s21 + $0x468] sm:$0xff]  ;;  %v5295_v23 = vld [vmem:[%s11072_s21 + $0x470] sm:$0xff] }
 0x33c   : > { %18482 = vst [vmem:[#allocation100_spill] sm:$0xff] %v16051_v42  ;;  %18483 = vst [vmem:[#allocation43_spill] sm:$0xff] %v16056_v21  ;;  %10423 = vrsqrt.f32 %v4923_v62  ;;  %v4926_v24 = vadd.f32 1e-05, %v4734_v28  ;;  %v16070_v1 = vmul.f32 %v15778_v13, %v5293_v38  ;;  %v4925_v5 = vadd.f32 1e-05, %v4733_v56 }
 0x33d   : > { %8513 = vst.msk [vmem:[%s12423_s27 + $0x300] sm:$0xff] %vm410_vm0, %v8321_v2  ;;  %v7753_v26 = vpop.permute.xlu1 %7752  ;;  %v4738_v22 = vmax.f32 %v4546_v10, 0.0  ;;  %v4355_v6 = vmul.f32 %v16051_v42, %v16051_v42  ;;  %v18485_v62 = vld [vmem:[#allocation70_spill] sm:$0xff]  ;;  %v4928_v57 = vadd.f32 1e-05, %v4736_v32  ;;  %v4737_v13 = vmax.f32 %v4545_v37, 0.0 }
 0x33e   : > { %6805 = vperm.xlu0 %10111, %v16056_v21   ;;  %v16077_v28 = vmul.f32 0.020408163, %v18485_v62  ;;  %v8322_v2 = vadd.f32 %v7753_v26, %v7170_v61  ;;  %v18487_v38 = vld [vmem:[#allocation61_spill] sm:$0xff]  ;;  %v10601_v27 = vld [vmem:[%s10740_s18 + $0x310] sm:$0xff]  ;;  %v4927_v10 = vadd.f32 1e-05, %v4735_v19  ;;  %v4548_v52 = vsub.f32 %v4164_v48, %v4356_v51  ;;  %v16102_v48 = vpop.eup %10417 }
 0x33f   : > { %6800 = vperm.xlu1 %10112, %v16043_v49   ;;  %v4163_v56 = vmul.f32 0.020408163, %v18487_v38  ;;  %v7171_v18 = vmul.f32 %v10601_v27, %v16004_v8  ;;  %v18488_v50 = vld [vmem:[#allocation16_spill] sm:$0xff]  ;;  %v5296_v21 = vld [vmem:[%s11072_s21 + $0x478] sm:$0xff]  ;;  %10425 = vrsqrt.f32 %v4926_v24  ;;  %v7758_v32 = vpop.permute.xlu0 %7757  ;;  %v16091_v61 = vmul.f32 %v15739_v14, %v5292_v33  ;;  %v5297_v33 = vld [vmem:[%s11072_s21 + $0x480] sm:$0xff] }
 0x340   : > { %18486 = vst [vmem:[#allocation34_spill] sm:$0xff] %v16077_v28  ;;  %v16085_v42 = vmul.f32 0.020408163, %v18488_v50  ;;  %8514 = vst.msk [vmem:[%s12423_s27 + $0x308] sm:$0xff] %vm410_vm0, %v8322_v2  ;;  %v16094_v37 = vmul.f32 %v15766_v17, %v5294_v16  ;;  %10427 = vrsqrt.f32 %v4925_v5  ;;  %v4930_v8 = vadd.f32 1e-05, %v4738_v22  ;;  %v16119_v22 = vpop.eup %10419 }
 0x341   : > { %v16096_v19 = vpop.permute.xlu1 %6620  ;;  %v8323_v51 = vadd.f32 %v7758_v32, %v7171_v18  ;;  %v16100_v50 = vmul.f32 %v15818_v36, %v5295_v23  ;;  %10429 = vrsqrt.f32 %v4928_v57  ;;  %v4929_v14 = vadd.f32 1e-05, %v4737_v13  ;;  %v10602_v16 = vld [vmem:[%s10740_s18 + $0x318] sm:$0xff]  ;;  %v16134_v38 = vpop.eup %10421  ;;  %v18494_v23 = vld [vmem:[#allocation47_spill] sm:$0xff] }
 0x342   : > { %18489 = vst [vmem:[#allocation12_spill] sm:$0xff] %v16085_v42  ;;  %6815 = vperm.xlu0 %10111, %v16070_v1   ;;  %v4547_v24 = vsub.f32 %v4163_v56, %v4355_v6  ;;  %v16106_v17 = vmul.f32 %v15803_v34, %v5296_v21  ;;  %10431 = vrsqrt.f32 %v4927_v10  ;;  %v4740_v5 = vmax.f32 %v4548_v52, 0.0  ;;  %v18490_v21 = vld [vmem:[#allocation64_spill] sm:$0xff]  ;;  %v18491_v57 = vld [vmem:[#allocation29_spill] sm:$0xff] }
 0x343   : > { %6810 = vperm.xlu1 %10112, %v16091_v61   ;;  %8515 = vst.msk [vmem:[%s12423_s27 + $0x310] sm:$0xff] %vm410_vm0, %v8323_v51  ;;  %v16113_v26 = vmul.f32 %v16077_v28, %v16077_v28  ;;  %v16117_v36 = vmul.f32 %v16085_v42, %v16085_v42  ;;  %v7172_v6 = vmul.f32 %v10602_v16, %v16045_v63  ;;  %v16123_v34 = vpop.permute.xlu0 %6625  ;;  %v16126_v62 = vmul.f32 0.020408163, %v18490_v21  ;;  %v10603_v51 = vld [vmem:[%s10740_s18 + $0x320] sm:$0xff]  ;;  %v18498_v21 = vld [vmem:[#allocation40_spill] sm:$0xff]  ;;  %v18529_v28 = vld [vmem:[#allocation3_spill] sm:$0xff] }
 0x344   : > { %v16129_v52 = vmul.f32 0.020408163, %v18491_v57  ;;  %v18493_v2 = vsub.f32 %v15776_v43, %v15789_v54  ;;  %10433 = vrsqrt.f32 %v4930_v8  ;;  %v16138_v63 = vmul.f32 %v15853_v47, %v5297_v33 }
 0x345   : > { %v7763_v56 = vpop.permute.xlu1 %7762  ;;  %v16141_v27 = vmul.f32 0.020408163, %v18494_v23  ;;  %v18496_v18 = vsub.f32 %v15828_v30, %v15826_v58  ;;  %10435 = vrsqrt.f32 %v4929_v14  ;;  %v16148_v32 = vmax.f32 %v4547_v24, 0.0  ;;  %v5298_v30 = vld [vmem:[%s11072_s21 + $0x488] sm:$0xff] }
 0x346   : > { %18492 = vst [vmem:[#allocation102_spill] sm:$0xff] %v16129_v52  ;;  %v4757_v13 = vmax.f32 %v18493_v2, 0.0  ;;  %6825 = vperm.xlu0 %10111, %v16100_v50   ;;  %v16146_v54 = vpop.eup %10423  ;;  %v8324_v43 = vadd.f32 %v7763_v56, %v7172_v6  ;;  %v18497_v47 = vsub.f32 %v15848_v44, %v15838_v53  ;;  %v7173_v33 = vmul.f32 %v10603_v51, %v16066_v3  ;;  %v5299_v44 = vld [vmem:[%s11072_s21 + $0x490] sm:$0xff] }
 0x347   : > { %18495 = vst [vmem:[#allocation70_spill] sm:$0xff] %v16141_v27  ;;  %v4760_v10 = vmax.f32 %v18496_v18, 0.0  ;;  %6820 = vperm.xlu1 %10112, %v16094_v37   ;;  %v4932_v16 = vadd.f32 1e-05, %v4740_v5  ;;  %v16157_v58 = vmul.f32 0.020408163, %v18498_v21  ;;  %v18499_v14 = vsub.f32 %v15881_v59, %v15877_v39  ;;  %v7768_v57 = vpop.permute.xlu0 %7767 }
 0x348   : > { %v4759_v8 = vmax.f32 %v18497_v47, 0.0  ;;  %8516 = vst.msk [vmem:[%s12423_s27 + $0x318] sm:$0xff] %vm410_vm0, %v8324_v43  ;;  %v4550_v24 = vsub.f32 %v16126_v62, %v16113_v26  ;;  %v16169_v53 = vmul.f32 %v16129_v52, %v16129_v52  ;;  %v4949_v3 = vadd.f32 1e-05, %v4757_v13  ;;  %v18501_v59 = vld [vmem:[#allocation68_spill] sm:$0xff] }
 0x349   : > { %v4761_v6 = vmax.f32 %v18499_v14, 0.0  ;;  %v18500_v5 = vsub.f32 %v15879_v46, %v15869_v60  ;;  %v16175_v56 = vpop.permute.xlu1 %6630  ;;  %v8325_v39 = vadd.f32 %v7768_v57, %v7173_v33  ;;  %v4168_v23 = vmul.f32 0.020408163, %v18501_v59  ;;  %v16182_v43 = vpop.eup %10425  ;;  %v5301_v14 = vld [vmem:[%s11072_s21 + $0x4a0] sm:$0xff] }
 0x34a   : > { %6835 = vperm.xlu0 %10111, %v16138_v63   ;;  %v4952_v26 = vadd.f32 1e-05, %v4760_v10  ;;  %v18502_v62 = vsub.f32 %v15917_v20, %v15915_v25  ;;  %v16187_v60 = vmul.f32 %v16141_v27, %v16141_v27  ;;  %v16190_v46 = vmul.f32 %v15840_v35, %v5298_v30  ;;  %v16195_v51 = vpop.eup %10427  ;;  %v18505_v30 = vld [vmem:[#allocation55_spill] sm:$0xff] }
 0x34b   : > { %v4762_v2 = vmax.f32 %v18500_v5, 0.0  ;;  %6830 = vperm.xlu1 %10112, %v16106_v17   ;;  %v4951_v13 = vadd.f32 1e-05, %v4759_v8  ;;  %v18503_v10 = vsub.f32 %v15930_v31, %v15928_v9  ;;  %10437 = vrsqrt.f32 %v4932_v16  ;;  %8517 = vst.msk [vmem:[%s12423_s27 + $0x320] sm:$0xff] %vm410_vm0, %v8325_v39  ;;  %v16205_v21 = vpop.eup %10429  ;;  %v10604_v8 = vld [vmem:[%s10740_s18 + $0x328] sm:$0xff]  ;;  %v16209_v31 = vpop.permute.xlu0 %6635 }
 0x34c   : > { %v4764_v18 = vmax.f32 %v18502_v62, 0.0  ;;  %v16200_v20 = vmul.f32 %v15883_v11, %v5299_v44  ;;  %v4953_v25 = vadd.f32 1e-05, %v4761_v6  ;;  %v18504_v33 = vsub.f32 %v15969_v55, %v15977_v40  ;;  %v16213_v57 = vpop.eup %10431  ;;  %v5300_v44 = vld [vmem:[%s11072_s21 + $0x498] sm:$0xff] }
 0x34d   : > { %v4763_v47 = vmax.f32 %v18503_v10, 0.0  ;;  %v7174_v9 = vmul.f32 %v10604_v8, %v16096_v19  ;;  %v4167_v16 = vmul.f32 0.020408163, %v18505_v30  ;;  %10439 = vrsqrt.f32 %v4949_v3  ;;  %v7773_v55 = vpop.permute.xlu1 %7772  ;;  %v18506_v3 = vld [vmem:[#allocation57_spill] sm:$0xff]  ;;  %v18509_v10 = vld [vmem:[#allocation26_spill] sm:$0xff]  ;;  %v18513_v30 = vld [vmem:[#allocation44_spill] sm:$0xff] }
 0x34e   : > { %v4765_v35 = vmax.f32 %v18504_v33, 0.0  ;;  %v4954_v11 = vadd.f32 1e-05, %v4762_v2  ;;  %v4549_v6 = vsub.f32 %v16157_v58, %v16117_v36  ;;  %v4552_v40 = vsub.f32 %v4168_v23, %v16169_v53  ;;  %6845 = vperm.xlu0 %10111, %v16200_v20   ;;  %v16224_v59 = vpop.eup %10433  ;;  %v10605_v36 = vld [vmem:[%s10740_s18 + $0x330] sm:$0xff] }
 0x34f   : > { %10441 = vrsqrt.f32 %v4952_v26  ;;  %v4956_v19 = vadd.f32 1e-05, %v4764_v18  ;;  %v8326_v5 = vadd.f32 %v7773_v55, %v7174_v9  ;;  %6840 = vperm.xlu1 %10112, %v16190_v46   ;;  %v16222_v2 = vmul.f32 0.020408163, %v18506_v3  ;;  %v16231_v26 = vpop.eup %10435  ;;  %v5303_v33 = vld [vmem:[%s11072_s21 + $0x4b0] sm:$0xff]  ;;  %v18516_v3 = vld [vmem:[#allocation106_spill] sm:$0xff] }
 0x350   : > { %10443 = vrsqrt.f32 %v4951_v13  ;;  %v4955_v39 = vadd.f32 1e-05, %v4763_v47  ;;  %v7175_v58 = vmul.f32 %v10605_v36, %v16123_v34  ;;  %v16229_v53 = vmul.f32 %v15979_v0, %v5301_v14  ;;  %v7778_v13 = vpop.permute.xlu0 %7777  ;;  %v18511_v0 = vld [vmem:[#allocation25_spill] sm:$0xff] }
 0x351   : > { %18507 = vst [vmem:[#allocation61_spill] sm:$0xff] %v16222_v2  ;;  %10445 = vrsqrt.f32 %v4953_v25  ;;  %v4957_v23 = vadd.f32 1e-05, %v4765_v35  ;;  %v4742_v62 = vmax.f32 %v4550_v24, 0.0  ;;  %8518 = vst.msk [vmem:[%s12423_s27 + $0x328] sm:$0xff] %vm410_vm0, %v8326_v5  ;;  %v4551_v18 = vsub.f32 %v4167_v16, %v16187_v60  ;;  %v16243_v25 = vpop.permute.xlu1 %6640  ;;  %v5302_v24 = vld [vmem:[%s11072_s21 + $0x4a8] sm:$0xff] }
 0x352   : > { %18508 = vst [vmem:[#allocation16_spill] sm:$0xff] %v16229_v53  ;;  %v16237_v47 = vmul.f32 %v18509_v10, %v5300_v44  ;;  %10447 = vrsqrt.f32 %v4954_v11  ;;  %v4741_v34 = vmax.f32 %v4549_v6, 0.0  ;;  %v16241_v8 = vmul.f32 0.020408163, %v18511_v0  ;;  %6855 = vperm.xlu0 %10111, %v16229_v53   ;;  %v18514_v11 = vld [vmem:[#allocation46_spill] sm:$0xff]  ;;  %v10606_v44 = vld [vmem:[%s10740_s18 + $0x338] sm:$0xff] }
 0x353   : > { %v8327_v35 = vadd.f32 %v7778_v13, %v7175_v58  ;;  %10449 = vrsqrt.f32 %v4956_v19  ;;  %v4744_v60 = vmax.f32 %v4552_v40, 0.0  ;;  %v4361_v9 = vmul.f32 %v16222_v2, %v16222_v2  ;;  %v5304_v58 = vld [vmem:[%s11072_s21 + $0x4b8] sm:$0xff] }
 0x354   : > { %18510 = vst [vmem:[#allocation64_spill] sm:$0xff] %v16237_v47  ;;  %18512 = vst [vmem:[#allocation29_spill] sm:$0xff] %v16241_v8  ;;  %v4169_v16 = vmul.f32 0.020408163, %v18513_v30  ;;  %6850 = vperm.xlu1 %10112, %v16237_v47   ;;  %10451 = vrsqrt.f32 %v4955_v39  ;;  %v4931_v14 = vadd.f32 1e-05, %v16148_v32  ;;  %v16255_v6 = vmul.f32 %v18514_v11, %v5303_v33  ;;  %v16259_v5 = vpop.permute.xlu0 %6645 }
 0x355   : > { %8519 = vst.msk [vmem:[%s12423_s27 + $0x330] sm:$0xff] %vm410_vm0, %v8327_v35  ;;  %10453 = vrsqrt.f32 %v4957_v23  ;;  %v4934_v55 = vadd.f32 1e-05, %v4742_v62  ;;  %v7176_v40 = vmul.f32 %v10606_v44, %v16175_v56  ;;  %v4743_v19 = vmax.f32 %v4551_v18, 0.0  ;;  %v5305_v39 = vld [vmem:[%s11072_s21 + $0x4c0] sm:$0xff]  ;;  %v16266_v32 = vpop.eup %10437  ;;  %v18518_v23 = vld [vmem:[#allocation80_spill] sm:$0xff]  ;;  %v7783_v33 = vpop.permute.xlu1 %7782 }
 0x356   : > { %18515 = vst [vmem:[#allocation47_spill] sm:$0xff] %v16255_v6  ;;  %v16262_v36 = vmul.f32 %v18516_v3, %v5302_v24  ;;  %v4933_v13 = vadd.f32 1e-05, %v4741_v34  ;;  %v16270_v10 = vmul.f32 %v16241_v8, %v16241_v8  ;;  %v16273_v62 = vmul.f32 0.020408163, %v18518_v23  ;;  %v18519_v56 = vld [vmem:[#allocation36_spill] sm:$0xff]  ;;  %6865 = vperm.xlu0 %10111, %v16255_v6  }
 0x357   : > { %v16276_v18 = vmul.f32 0.020408163, %v18519_v56  ;;  %v10440_v0 = vpop.eup %10439  ;;  %v4936_v35 = vadd.f32 1e-05, %v4744_v60  ;;  %v4553_v24 = vsub.f32 %v4169_v16, %v4361_v9  ;;  %v18521_v30 = vld [vmem:[#allocation23_spill] sm:$0xff]  ;;  %v8328_v11 = vadd.f32 %v7783_v33, %v7176_v40  ;;  %v10607_v3 = vld [vmem:[%s10740_s18 + $0x340] sm:$0xff] }
 0x358   : > { %18517 = vst [vmem:[#allocation40_spill] sm:$0xff] %v16262_v36  ;;  %v16280_v34 = vmul.f32 0.020408163, %v18521_v30  ;;  %6860 = vperm.xlu1 %10112, %v16262_v36   ;;  %10455 = vrsqrt.f32 %v4931_v14  ;;  %v7177_v23 = vmul.f32 %v10607_v3, %v16209_v31  ;;  %v16286_v56 = vmul.f32 %v16119_v22, %v5305_v39  ;;  %v5306_v8 = vld [vmem:[%s11072_s21 + $0x4c8] sm:$0xff]  ;;  %v18524_v9 = vld [vmem:[#allocation49_spill] sm:$0xff]  ;;  %v7788_v14 = vpop.permute.xlu0 %7787  ;;  %v5307_v31 = vld [vmem:[%s11072_s21 + $0x4d0] sm:$0xff] }
 0x359   : > { %18520 = vst [vmem:[#allocation68_spill] sm:$0xff] %v16276_v18  ;;  %v10442_v44 = vpop.eup %10441  ;;  %10457 = vrsqrt.f32 %v4934_v55  ;;  %v16289_v60 = vadd.f32 1e-05, %v4743_v19  ;;  %8520 = vst.msk [vmem:[%s12423_s27 + $0x338] sm:$0xff] %vm410_vm0, %v8328_v11  ;;  %v16294_v16 = vmul.f32 0.020408163, %v18524_v9  ;;  %v16303_v55 = vmul.f32 %v16276_v18, %v16276_v18  ;;  %v16308_v11 = vpop.permute.xlu1 %6650 }
 0x35a   : > { %18522 = vst [vmem:[#allocation55_spill] sm:$0xff] %v16280_v34  ;;  %18523 = vst [vmem:[#allocation57_spill] sm:$0xff] %v16286_v56  ;;  %v10444_v52 = vpop.eup %10443  ;;  %v18525_v40 = vld [vmem:[#allocation97_spill] sm:$0xff]  ;;  %v5333_v22 = vld [vmem:[%s11072_s21 + $0x5a0] sm:$0xff]  ;;  %10459 = vrsqrt.f32 %v4933_v13  ;;  %v8329_v3 = vadd.f32 %v7788_v14, %v7177_v23  ;;  %6875 = vperm.xlu0 %10111, %v16286_v56   ;;  %v16316_v18 = vmax.f32 %v4553_v24, 0.0  ;;  %v16333_v24 = vmul.f32 %v16146_v54, %v5307_v31 }
 0x35b   : > { %v16297_v33 = vmul.f32 %v18525_v40, %v5304_v58  ;;  %v10446_v39 = vpop.eup %10445  ;;  %v18527_v19 = vld [vmem:[#allocation79_spill] sm:$0xff]  ;;  %v5335_v58 = vld [vmem:[%s11072_s21 + $0x5b0] sm:$0xff]  ;;  %v5336_v9 = vld [vmem:[%s11072_s21 + $0x5b8] sm:$0xff]  ;;  %10461 = vrsqrt.f32 %v4936_v35  ;;  %v16325_v27 = vmul.f32 0.020408163, %v18529_v28  ;;  %v16330_v35 = vmul.f32 %v16102_v48, %v5306_v8 }
 0x35c   : > { %v16306_v30 = vmul.f32 0.020408163, %v18527_v19  ;;  %v5337_v40 = vld [vmem:[%s11072_s21 + $0x5c0] sm:$0xff]  ;;  %v10448_v2 = vpop.eup %10447  ;;  %v16320_v19 = vmul.f32 %v16280_v34, %v16280_v34  ;;  %v5338_v23 = vld [vmem:[%s11072_s21 + $0x5c8] sm:$0xff]  ;;  %8521 = vst.msk [vmem:[%s12423_s27 + $0x340] sm:$0xff] %vm410_vm0, %v8329_v3  ;;  %18532 = vst [vmem:[#allocation106_spill] sm:$0xff] %v16333_v24  ;;  %v16337_v42 = vmul.f32 %v10440_v0, %v5333_v22  ;;  %v16341_v6 = vpop.permute.xlu0 %6655  ;;  %v16343_v28 = vmul.f32 %v10444_v52, %v5335_v58 }
 0x35d   : > { %18526 = vst [vmem:[#allocation26_spill] sm:$0xff] %v16297_v33  ;;  %6870 = vperm.xlu1 %10112, %v16297_v33   ;;  %v10450_v14 = vpop.eup %10449  ;;  %18530 = vst [vmem:[#allocation44_spill] sm:$0xff] %v16325_v27  ;;  %v5308_v13 = vld [vmem:[%s11072_s21 + $0x4d8] sm:$0xff]  ;;  %v5309_v34 = vld [vmem:[%s11072_s21 + $0x4e0] sm:$0xff]  ;;  %v16345_v3 = vmul.f32 %v10442_v44, %v5336_v9  ;;  %v16347_v48 = vmul.f32 %v10446_v39, %v5337_v40  ;;  %v4555_v0 = vsub.f32 %v16294_v16, %v16303_v55  ;;  %v7793_v52 = vpop.permute.xlu1 %7792 }
 0x35e   : > { %18528 = vst [vmem:[#allocation25_spill] sm:$0xff] %v16306_v30  ;;  %18531 = vst [vmem:[#allocation46_spill] sm:$0xff] %v16330_v35  ;;  %v10452_v33 = vpop.eup %10451  ;;  %v10608_v56 = vld [vmem:[%s10740_s18 + $0x348] sm:$0xff]  ;;  %v5339_v54 = vld [vmem:[%s11072_s21 + $0x5d0] sm:$0xff]  ;;  %v16355_v22 = vmul.f32 %v16306_v30, %v16306_v30  ;;  %6885 = vperm.xlu0 %10111, %v16333_v24   ;;  %v16361_v44 = vmul.f32 %v10448_v2, %v5338_v23  ;;  %v16369_v16 = vmul.f32 %v16134_v38, %v5308_v13 }
 0x35f   : > { %v7178_v36 = vmul.f32 %v10608_v56, %v16243_v25  ;;  %v5340_v8 = vld [vmem:[%s11072_s21 + $0x5d8] sm:$0xff]  ;;  %v10454_v31 = vpop.eup %10453  ;;  %v5341_v39 = vld [vmem:[%s11072_s21 + $0x5e0] sm:$0xff]  ;;  %v16372_v55 = vmul.f32 %v16195_v51, %v5309_v34  ;;  %v16376_v47 = vmul.f32 %v10452_v33, %v5339_v54  ;;  %v5311_v38 = vld [vmem:[%s11072_s21 + $0x4f0] sm:$0xff]  ;;  %10463 = vrsqrt.f32 %v16289_v60 }
 0x360   : > { %v18533_v25 = vld [vmem:[#allocation41_spill] sm:$0xff]  ;;  %v18534_v58 = vld [vmem:[#allocation82_spill] sm:$0xff]  ;;  %18536 = vst [vmem:[#allocation36_spill] sm:$0xff] %v16369_v16  ;;  %v16378_v2 = vmul.f32 %v10450_v14, %v5340_v8  ;;  %v16387_v13 = vmul.f32 %v10454_v31, %v5341_v39  ;;  %v4366_v31 = vmul.f32 %v16325_v27, %v16325_v27 }
 0x361   : > { %v16358_v56 = vmul.f32 0.020408163, %v18533_v25  ;;  %v16365_v9 = vmul.f32 0.020408163, %v18534_v58  ;;  %v8330_v40 = vadd.f32 %v7793_v52, %v7178_v36  ;;  %6880 = vperm.xlu1 %10112, %v16330_v35   ;;  %18537 = vst [vmem:[#allocation23_spill] sm:$0xff] %v16372_v55  ;;  %v10609_v25 = vld [vmem:[%s10740_s18 + $0x350] sm:$0xff]  ;;  %v7798_v36 = vpop.permute.xlu0 %7797  ;;  %v16406_v39 = vpop.permute.xlu1 %6660 }
 0x362   : > { %v7179_v30 = vmul.f32 %v10609_v25, %v16259_v5  ;;  %v18538_v23 = vld [vmem:[#allocation81_spill] sm:$0xff]  ;;  %v18540_v51 = vld [vmem:[#allocation22_spill] sm:$0xff]  ;;  %v18542_v5 = vld [vmem:[#allocation51_spill] sm:$0xff]  ;;  %v16401_v8 = vpop.eup %10455  ;;  %6895 = vperm.xlu0 %10111, %v16372_v55  }
 0x363   : > { %18535 = vst [vmem:[#allocation80_spill] sm:$0xff] %v16365_v9  ;;  %v16382_v58 = vmul.f32 %v16337_v42, %v18538_v23  ;;  %8522 = vst.msk [vmem:[%s12423_s27 + $0x348] sm:$0xff] %vm410_vm0, %v8330_v40  ;;  %v16391_v34 = vmul.f32 %v16343_v28, %v18540_v51  ;;  %v16395_v33 = vmul.f32 %v16345_v3, %v18542_v5  ;;  %v18544_v14 = vld [vmem:[#allocation105_spill] sm:$0xff]  ;;  %v18546_v52 = vld [vmem:[#allocation30_spill] sm:$0xff] }
 0x364   : > { %v16399_v54 = vmul.f32 %v16347_v48, %v18544_v14  ;;  %v4172_v40 = vmul.f32 0.020408163, %v18546_v52  ;;  %v8331_v25 = vadd.f32 %v7798_v36, %v7179_v30  ;;  %v5310_v23 = vld [vmem:[%s11072_s21 + $0x4e8] sm:$0xff]  ;;  %v18547_v51 = vld [vmem:[#allocation104_spill] sm:$0xff]  ;;  %v16414_v14 = vpop.eup %10457  ;;  %v4557_v52 = vsub.f32 %v16358_v56, %v16355_v22  ;;  %v18552_v36 = vld [vmem:[#allocation90_spill] sm:$0xff] }
 0x365   : > { %18539 = vst [vmem:[#allocation49_spill] sm:$0xff] %v16382_v58  ;;  %18541 = vst [vmem:[#allocation97_spill] sm:$0xff] %v16391_v34  ;;  %v16412_v5 = vmul.f32 %v16361_v44, %v18547_v51  ;;  %v18550_v58 = vld [vmem:[#allocation38_spill] sm:$0xff]  ;;  %6890 = vperm.xlu1 %10112, %v16369_v16   ;;  %v16423_v30 = vpop.eup %10459  ;;  %v4175_v55 = vmul.f32 0.020408163, %v18552_v36  ;;  %v16429_v51 = vmul.f32 %v16213_v57, %v5311_v38  ;;  %v18556_v22 = vld [vmem:[#allocation53_spill] sm:$0xff]  ;;  %v16445_v36 = vpop.permute.xlu0 %6665 }
 0x366   : > { %18543 = vst [vmem:[#allocation79_spill] sm:$0xff] %v16395_v33  ;;  %18545 = vst [vmem:[#allocation3_spill] sm:$0xff] %v16399_v54  ;;  %v4747_v33 = vmax.f32 %v4555_v0, 0.0  ;;  %v18549_v54 = vld [vmem:[#allocation54_spill] sm:$0xff]  ;;  %v16420_v27 = vmul.f32 0.020408163, %v18550_v58  ;;  %v16437_v56 = vmul.f32 %v16378_v2, %v18556_v22  ;;  %v16439_v58 = vpop.eup %10461  ;;  %v16448_v57 = vmul.f32 %v16182_v43, %v5310_v23 }
 0x367   : > { %18548 = vst [vmem:[#allocation41_spill] sm:$0xff] %v16412_v5  ;;  %v4174_v34 = vmul.f32 0.020408163, %v18549_v54  ;;  %8523 = vst.msk [vmem:[%s12423_s27 + $0x350] sm:$0xff] %vm410_vm0, %v8331_v25  ;;  %v18554_v0 = vld [vmem:[#allocation76_spill] sm:$0xff]  ;;  %v10610_v5 = vld [vmem:[%s10740_s18 + $0x358] sm:$0xff]  ;;  %v4367_v25 = vmul.f32 %v16365_v9, %v16365_v9  ;;  %v18560_v22 = vsub.f32 %v16273_v62, %v16270_v10  ;;  %v7803_v9 = vpop.permute.xlu1 %7802  ;;  %6905 = vperm.xlu0 %10111, %v16429_v51  }
 0x368   : > { %18551 = vst [vmem:[#allocation82_spill] sm:$0xff] %v16420_v27  ;;  %18553 = vst [vmem:[#allocation81_spill] sm:$0xff] %v16429_v51  ;;  %v16433_v54 = vmul.f32 %v16376_v47, %v18554_v0  ;;  %v7180_v16 = vmul.f32 %v10610_v5, %v16308_v11  ;;  %v5313_v38 = vld [vmem:[%s11072_s21 + $0x500] sm:$0xff]  ;;  %v18558_v0 = vld [vmem:[#allocation27_spill] sm:$0xff]  ;;  %v4937_v23 = vadd.f32 1e-05, %v16316_v18  ;;  %v4368_v18 = vmul.f32 %v16420_v27, %v16420_v27 }
 0x369   : > { %18557 = vst [vmem:[#allocation51_spill] sm:$0xff] %v16437_v56  ;;  %v4746_v11 = vmax.f32 %v18560_v22, 0.0  ;;  %v18561_v5 = vld [vmem:[#allocation88_spill] sm:$0xff]  ;;  %v5312_v43 = vld [vmem:[%s11072_s21 + $0x4f8] sm:$0xff]  ;;  %6900 = vperm.xlu1 %10112, %v16448_v57   ;;  %v4939_v60 = vadd.f32 1e-05, %v4747_v33  ;;  %v16471_v24 = vmul.f32 %v16231_v26, %v5313_v38  ;;  %v4559_v53 = vsub.f32 %v4175_v55, %v4367_v25 }
 0x36a   : > { %18555 = vst [vmem:[#allocation22_spill] sm:$0xff] %v16433_v54  ;;  %v16453_v54 = vmul.f32 %v16387_v13, %v18558_v0  ;;  %v16460_v56 = vmul.f32 0.020408163, %v18561_v5  ;;  %v4556_v0 = vsub.f32 %v4172_v40, %v16320_v19  ;;  %v8332_v35 = vadd.f32 %v7803_v9, %v7180_v16  ;;  %v18562_v10 = vld [vmem:[#allocation24_spill] sm:$0xff]  ;;  %v10611_v22 = vld [vmem:[%s10740_s18 + $0x360] sm:$0xff]  ;;  %v7808_v19 = vpop.permute.xlu0 %7807 }
 0x36b   : > { %v4176_v62 = vmul.f32 0.020408163, %v18562_v10  ;;  %v7181_v5 = vmul.f32 %v10611_v22, %v16341_v6  ;;  %v4749_v51 = vmax.f32 %v4557_v52, 0.0  ;;  %v16478_v9 = vmul.f32 %v16205_v21, %v5312_v43  ;;  %v5315_v16 = vld [vmem:[%s11072_s21 + $0x510] sm:$0xff]  ;;  %6915 = vperm.xlu0 %10111, %v16471_v24   ;;  %v18566_v52 = vld [vmem:[#allocation94_spill] sm:$0xff] }
 0x36c   : > { %18559 = vst [vmem:[#allocation105_spill] sm:$0xff] %v16453_v54  ;;  %v4558_v54 = vsub.f32 %v4174_v34, %v4366_v31  ;;  %8524 = vst.msk [vmem:[%s12423_s27 + $0x358] sm:$0xff] %vm410_vm0, %v8332_v35  ;;  %v18563_v34 = vld [vmem:[#allocation85_spill] sm:$0xff]  ;;  %v4369_v26 = vmul.f32 %v16460_v56, %v16460_v56  ;;  %v18565_v6 = vld [vmem:[#allocation56_spill] sm:$0xff]  ;;  %v16487_v31 = vpop.permute.xlu1 %6670  ;;  %v4938_v21 = vadd.f32 1e-05, %v4746_v11  ;;  %10465 = vrsqrt.f32 %v4937_v23 }
 0x36d   : > { %v16482_v33 = vmul.f32 0.020408163, %v18563_v34  ;;  %v4177_v40 = vmul.f32 0.020408163, %v18565_v6  ;;  %v8333_v55 = vadd.f32 %v7808_v19, %v7181_v5  ;;  %v5314_v35 = vld [vmem:[%s11072_s21 + $0x508] sm:$0xff]  ;;  %6910 = vperm.xlu1 %10112, %v16478_v9   ;;  %v4748_v38 = vmax.f32 %v4556_v0, 0.0 }
 0x36e   : > { %v16492_v25 = vmul.f32 0.020408163, %v18566_v52  ;;  %10467 = vrsqrt.f32 %v4939_v60  ;;  %v4750_v43 = vmax.f32 %v4558_v54, 0.0  ;;  %v16498_v10 = vmul.f32 %v16401_v8, %v5315_v16  ;;  %v10612_v19 = vld [vmem:[%s10740_s18 + $0x368] sm:$0xff]  ;;  %v16502_v23 = vpop.permute.xlu0 %6675  ;;  %v5317_v6 = vld [vmem:[%s11072_s21 + $0x520] sm:$0xff]  ;;  %v10464_v52 = vpop.eup %10463 }
 0x36f   : > { %18564 = vst [vmem:[#allocation30_spill] sm:$0xff] %v16482_v33  ;;  %8525 = vst.msk [vmem:[%s12423_s27 + $0x360] sm:$0xff] %vm410_vm0, %v8333_v55  ;;  %v4941_v22 = vadd.f32 1e-05, %v4749_v51  ;;  %v4560_v5 = vsub.f32 %v4176_v62, %v4368_v18  ;;  %v7182_v11 = vmul.f32 %v10612_v19, %v16406_v39  ;;  %v16505_v34 = vmul.f32 %v16224_v59, %v5314_v35  ;;  %v18568_v60 = vld [vmem:[#allocation11_spill] sm:$0xff]  ;;  %v5316_v51 = vld [vmem:[%s11072_s21 + $0x518] sm:$0xff] }
 0x370   : > { %18567 = vst [vmem:[#allocation104_spill] sm:$0xff] %v16492_v25  ;;  %v4751_v0 = vmax.f32 %v4559_v53, 0.0  ;;  %v4370_v54 = vmul.f32 %v16482_v33, %v16482_v33  ;;  %v4178_v55 = vmul.f32 0.020408163, %v18568_v60  ;;  %v4561_v8 = vsub.f32 %v4177_v40, %v4369_v26  ;;  %v7813_v16 = vpop.permute.xlu1 %7812  ;;  %6925 = vperm.xlu0 %10111, %v16498_v10   ;;  %v18569_v39 = vld [vmem:[#allocation93_spill] sm:$0xff]  ;;  %v18571_v18 = vld [vmem:[#allocation14_spill] sm:$0xff] }
 0x371   : > { %v16514_v62 = vmul.f32 0.020408163, %v18569_v39  ;;  %v4371_v59 = vmul.f32 %v16492_v25, %v16492_v25  ;;  %v4179_v53 = vmul.f32 0.020408163, %v18571_v18  ;;  %v8334_v35 = vadd.f32 %v7813_v16, %v7182_v11  ;;  %6920 = vperm.xlu1 %10112, %v16505_v34   ;;  %v10613_v40 = vld [vmem:[%s10740_s18 + $0x370] sm:$0xff] }
 0x372   : > { %10469 = vrsqrt.f32 %v4938_v21  ;;  %v4940_v26 = vadd.f32 1e-05, %v4748_v38  ;;  %v7183_v19 = vmul.f32 %v10613_v40, %v16445_v36  ;;  %v16523_v60 = vmul.f32 %v16423_v30, %v5317_v6  ;;  %v7818_v33 = vpop.permute.xlu0 %7817  ;;  %v5319_v11 = vld [vmem:[%s11072_s21 + $0x530] sm:$0xff]  ;;  %v5318_v30 = vld [vmem:[%s11072_s21 + $0x528] sm:$0xff] }
 0x373   : > { %18570 = vst [vmem:[#allocation54_spill] sm:$0xff] %v16514_v62  ;;  %v4942_v39 = vadd.f32 1e-05, %v4750_v43  ;;  %10471 = vrsqrt.f32 %v4941_v22  ;;  %8526 = vst.msk [vmem:[%s12423_s27 + $0x368] sm:$0xff] %vm410_vm0, %v8334_v35  ;;  %v16528_v18 = vmul.f32 %v16266_v32, %v5316_v51  ;;  %v4752_v16 = vmax.f32 %v4560_v5, 0.0  ;;  %v18572_v22 = vld [vmem:[#allocation21_spill] sm:$0xff] }
 0x374   : > { %v4943_v21 = vadd.f32 1e-05, %v4751_v0  ;;  %v4562_v38 = vsub.f32 %v4178_v55, %v4370_v54  ;;  %v6681_v25 = vpop.permute.xlu1 %6680  ;;  %v8335_v27 = vadd.f32 %v7818_v33, %v7183_v19  ;;  %6935 = vperm.xlu0 %10111, %v16523_v60   ;;  %v4753_v36 = vmax.f32 %v4561_v8, 0.0  ;;  %v18573_v5 = vld [vmem:[#allocation98_spill] sm:$0xff]  ;;  %v10614_v55 = vld [vmem:[%s10740_s18 + $0x378] sm:$0xff] }
 0x375   : > { %v4372_v43 = vmul.f32 %v16514_v62, %v16514_v62  ;;  %v4180_v6 = vmul.f32 0.020408163, %v18572_v22  ;;  %v4563_v32 = vsub.f32 %v4179_v53, %v4371_v59  ;;  %6930 = vperm.xlu1 %10112, %v16528_v18   ;;  %10473 = vrsqrt.f32 %v4940_v26  ;;  %v5321_v59 = vld [vmem:[%s11072_s21 + $0x540] sm:$0xff] }
 0x376   : > { %v16538_v0 = vmul.f32 0.020408163, %v18573_v5  ;;  %8527 = vst.msk [vmem:[%s12423_s27 + $0x370] sm:$0xff] %vm410_vm0, %v8335_v27  ;;  %v16542_v33 = vmul.f32 %v10464_v52, %v5319_v11  ;;  %v10466_v54 = vpop.eup %10465  ;;  %10475 = vrsqrt.f32 %v4942_v39  ;;  %v7184_v8 = vmul.f32 %v10614_v55, %v16487_v31  ;;  %v6686_v51 = vpop.permute.xlu0 %6685  ;;  %v5320_v27 = vld [vmem:[%s11072_s21 + $0x538] sm:$0xff]  ;;  %v10615_v22 = vld [vmem:[%s10740_s18 + $0x380] sm:$0xff] }
 0x377   : > { %v16547_v35 = vmul.f32 %v16414_v14, %v5318_v30  ;;  %v4944_v26 = vadd.f32 1e-05, %v4752_v16  ;;  %10477 = vrsqrt.f32 %v4943_v21  ;;  %v4754_v40 = vmax.f32 %v4562_v38, 0.0  ;;  %v18575_v30 = vld [vmem:[#allocation62_spill] sm:$0xff] }
 0x378   : > { %18574 = vst [vmem:[#allocation38_spill] sm:$0xff] %v16538_v0  ;;  %v10468_v53 = vpop.eup %10467  ;;  %v7823_v19 = vpop.permute.xlu1 %7822  ;;  %6945 = vperm.xlu0 %10111, %v16542_v33   ;;  %v4945_v52 = vadd.f32 1e-05, %v4753_v36  ;;  %v4564_v39 = vsub.f32 %v4180_v6, %v4372_v43  ;;  %v4755_v11 = vmax.f32 %v4563_v32, 0.0  ;;  %v4374_v14 = vmul.f32 %v16538_v0, %v16538_v0  ;;  %v5323_v43 = vld [vmem:[%s11072_s21 + $0x550] sm:$0xff] }
 0x379   : > { %v8336_v31 = vadd.f32 %v7823_v19, %v7184_v8  ;;  %6940 = vperm.xlu1 %10112, %v16547_v35   ;;  %v4182_v16 = vmul.f32 0.020408163, %v18575_v30  ;;  %v7185_v21 = vmul.f32 %v10615_v22, %v16502_v23  ;;  %v16558_v38 = vmul.f32 %v10466_v54, %v5321_v59  ;;  %v5322_v19 = vld [vmem:[%s11072_s21 + $0x548] sm:$0xff] }
 0x37a   : > { %v7828_v5 = vpop.permute.xlu0 %7827  ;;  %v16563_v36 = vmul.f32 %v16439_v58, %v5320_v27  ;;  %v4946_v32 = vadd.f32 1e-05, %v4754_v40  ;;  %10479 = vrsqrt.f32 %v4945_v52  ;;  %v4947_v54 = vadd.f32 1e-05, %v4755_v11  ;;  %v10616_v40 = vld [vmem:[%s10740_s18 + $0x388] sm:$0xff] }
 0x37b   : > { %8528 = vst.msk [vmem:[%s12423_s27 + $0x378] sm:$0xff] %vm410_vm0, %v8336_v31  ;;  %v8337_v8 = vadd.f32 %v7828_v5, %v7185_v21  ;;  %10481 = vrsqrt.f32 %v4944_v26  ;;  %v4756_v59 = vmax.f32 %v4564_v39, 0.0  ;;  %v4566_v58 = vsub.f32 %v4182_v16, %v4374_v14  ;;  %v5325_v21 = vld [vmem:[%s11072_s21 + $0x560] sm:$0xff]  ;;  %v5324_v26 = vld [vmem:[%s11072_s21 + $0x558] sm:$0xff]  ;;  %v10617_v5 = vld [vmem:[%s10740_s18 + $0x390] sm:$0xff] }
 0x37c   : > { %v10470_v6 = vpop.eup %10469  ;;  %v6691_v55 = vpop.permute.xlu1 %6690  ;;  %6955 = vperm.xlu0 %10111, %v16558_v38   ;;  %v16571_v27 = vmul.f32 %v10468_v53, %v5323_v43  ;;  %v7186_v31 = vmul.f32 %v10616_v40, %v6681_v25  ;;  %10483 = vrsqrt.f32 %v4946_v32  ;;  %v7187_v43 = vmul.f32 %v10617_v5, %v6686_v51 }
 0x37d   : > { %v10472_v23 = vpop.eup %10471  ;;  %6950 = vperm.xlu1 %10112, %v16563_v36   ;;  %8529 = vst.msk [vmem:[%s12423_s27 + $0x380] sm:$0xff] %vm410_vm0, %v8337_v8  ;;  %v16574_v22 = vmul.f32 %v10470_v6, %v5322_v19  ;;  %10485 = vrsqrt.f32 %v4947_v54  ;;  %v4948_v14 = vadd.f32 1e-05, %v4756_v59  ;;  %v4758_v16 = vmax.f32 %v4566_v58, 0.0  ;;  %v5327_v19 = vld [vmem:[%s11072_s21 + $0x570] sm:$0xff]  ;;  %v5326_v59 = vld [vmem:[%s11072_s21 + $0x568] sm:$0xff] }
 0x37e   : > { %v6696_v30 = vpop.permute.xlu0 %6695  ;;  %v16581_v6 = vmul.f32 %v10472_v23, %v5325_v21 }
 0x37f   : > { %v10474_v52 = vpop.eup %10473  ;;  %10487 = vrsqrt.f32 %v4948_v14  ;;  %v4950_v51 = vadd.f32 1e-05, %v4758_v16  ;;  %v5328_v14 = vld [vmem:[%s11072_s21 + $0x578] sm:$0xff] }
 0x380   : > { %v7833_v11 = vpop.permute.xlu1 %7832  ;;  %6965 = vperm.xlu0 %10111, %v16571_v27   ;;  %v10476_v39 = vpop.eup %10475  ;;  %v16585_v8 = vmul.f32 %v10474_v52, %v5324_v26  ;;  %v5329_v26 = vld [vmem:[%s11072_s21 + $0x580] sm:$0xff] }
 0x381   : > { %v8338_v53 = vadd.f32 %v7833_v11, %v7186_v31  ;;  %6960 = vperm.xlu1 %10112, %v16574_v22   ;;  %v10478_v25 = vpop.eup %10477  ;;  %v10618_v31 = vld [vmem:[%s10740_s18 + $0x398] sm:$0xff]  ;;  %v16596_v11 = vmul.f32 %v10476_v39, %v5326_v59  ;;  %10489 = vrsqrt.f32 %v4950_v51  ;;  %v5331_v59 = vld [vmem:[%s11072_s21 + $0x590] sm:$0xff]  ;;  %v10620_v51 = vld [vmem:[%s10740_s18 + $0x3a8] sm:$0xff] }
 0x382   : > { %v7838_v32 = vpop.permute.xlu0 %7837  ;;  %v16593_v23 = vmul.f32 %v10478_v25, %v5327_v19  ;;  %v7188_v21 = vmul.f32 %v10618_v31, %v6691_v55  ;;  %v10619_v55 = vld [vmem:[%s10740_s18 + $0x3a0] sm:$0xff] }
 0x383   : > { %8530 = vst.msk [vmem:[%s12423_s27 + $0x388] sm:$0xff] %vm410_vm0, %v8338_v53  ;;  %v8339_v40 = vadd.f32 %v7838_v32, %v7187_v43  ;;  %v7189_v43 = vmul.f32 %v10619_v55, %v6696_v30  ;;  %v5332_v55 = vld [vmem:[%s11072_s21 + $0x598] sm:$0xff] }
 0x384   : > { %v6701_v54 = vpop.permute.xlu1 %6700  ;;  %6975 = vperm.xlu0 %10111, %v16581_v6   ;;  %v10480_v58 = vpop.eup %10479 }
 0x385   : > { %6970 = vperm.xlu1 %10112, %v16585_v8   ;;  %8531 = vst.msk [vmem:[%s12423_s27 + $0x390] sm:$0xff] %vm410_vm0, %v8339_v40  ;;  %v10482_v53 = vpop.eup %10481  ;;  %v16603_v32 = vmul.f32 %v10480_v58, %v5329_v26  ;;  %v7190_v58 = vmul.f32 %v10620_v51, %v6701_v54 }
 0x386   : > { %v6706_v52 = vpop.permute.xlu0 %6705  ;;  %v10484_v25 = vpop.eup %10483  ;;  %v16607_v40 = vmul.f32 %v10482_v53, %v5328_v14 }
 0x387   : > { %v10486_v39 = vpop.eup %10485 }
 0x388   : > { %v7843_v5 = vpop.permute.xlu1 %7842  ;;  %6985 = vperm.xlu0 %10111, %v16593_v23   ;;  %18576 = vst [vmem:[#allocation90_spill] sm:$0xff] %v16607_v40  ;;  %v16615_v30 = vmul.f32 %v10486_v39, %v5331_v59  ;;  %v18579_v39 = vld [vmem:[#allocation107_spill] sm:$0xff]  ;;  %v18580_v59 = vld [vmem:[#allocation92_spill] sm:$0xff] }
 0x389   : > { %v8340_v16 = vadd.f32 %v7843_v5, %v7188_v21  ;;  %6980 = vperm.xlu1 %10112, %v16596_v11   ;;  %v5330_v5 = vld [vmem:[%s11072_s21 + $0x588] sm:$0xff]  ;;  %v10488_v14 = vpop.eup %10487 }
 0x38a   : > { %v7848_v19 = vpop.permute.xlu0 %7847  ;;  %18577 = vst [vmem:[#allocation76_spill] sm:$0xff] %v16615_v30  ;;  %v16618_v53 = vmul.f32 %v10484_v25, %v5330_v5  ;;  %v10621_v25 = vld [vmem:[%s10740_s18 + $0x3b0] sm:$0xff]  ;;  %v16632_v62 = vmul.f32 %v10488_v14, %v5332_v55 }
 0x38b   : > { %8532 = vst.msk [vmem:[%s12423_s27 + $0x398] sm:$0xff] %vm410_vm0, %v8340_v16  ;;  %v8341_v21 = vadd.f32 %v7848_v19, %v7189_v43  ;;  %v18578_v43 = vsub.f32 %v16009_v29, %v16023_v41  ;;  %v7191_v5 = vmul.f32 %v10621_v25, %v6706_v52  ;;  %v5334_v41 = vld [vmem:[%s11072_s21 + $0x5a8] sm:$0xff] }
 0x38c   : > { %v6711_v31 = vpop.permute.xlu1 %6710  ;;  %6995 = vperm.xlu0 %10111, %v16603_v32  }
 0x38d   : > { %6990 = vperm.xlu1 %10112, %v16607_v40   ;;  %8533 = vst.msk [vmem:[%s12423_s27 + $0x3a0] sm:$0xff] %vm410_vm0, %v8341_v21  ;;  %v4767_v19 = vmax.f32 %v18578_v43, 0.0  ;;  %v18581_v21 = vsub.f32 %v18579_v39, %v18580_v59  ;;  %v18582_v43 = vsub.f32 %v16007_v12, %v16019_v7  ;;  %v10623_v7 = vld [vmem:[%s10740_s18 + $0x3c0] sm:$0xff] }
 0x38e   : > { %v6716_v26 = vpop.permute.xlu0 %6715 }
 0x38f   : > { %v4766_v54 = vmax.f32 %v18581_v21, 0.0  ;;  %v4768_v52 = vmax.f32 %v18582_v43, 0.0  ;;  %v18583_v43 = vld [vmem:[#allocation50_spill] sm:$0xff] }
 0x390   : > { %v7853_v16 = vpop.permute.xlu1 %7852  ;;  %7005 = vperm.xlu0 %10111, %v16615_v30   ;;  %v10490_v30 = vpop.eup %10489 }
 0x391   : > { %v8342_v0 = vadd.f32 %v7853_v16, %v7190_v58  ;;  %7000 = vperm.xlu1 %10112, %v16618_v53   ;;  %v4959_v58 = vadd.f32 1e-05, %v4767_v19  ;;  %v4958_v16 = vadd.f32 1e-05, %v4766_v54  ;;  %v16643_v39 = vmul.f32 %v10490_v30, %v5334_v41  ;;  %v5343_v41 = vld [vmem:[%s11072_s21 + $0x5f0] sm:$0xff] }
 0x392   : > { %v7858_v51 = vpop.permute.xlu0 %7857  ;;  %v4960_v12 = vadd.f32 1e-05, %v4768_v52  ;;  %v7193_v19 = vmul.f32 %v10623_v7, %v6716_v26  ;;  %v18584_v52 = vld [vmem:[#allocation77_spill] sm:$0xff] }
 0x393   : > { %8534 = vst.msk [vmem:[%s12423_s27 + $0x3a8] sm:$0xff] %vm410_vm0, %v8342_v0  ;;  %v8343_v29 = vadd.f32 %v7858_v51, %v7191_v5  ;;  %v10622_v0 = vld [vmem:[%s10740_s18 + $0x3b8] sm:$0xff]  ;;  %10491 = vrsqrt.f32 %v4959_v58 }
 0x394   : > { %v6721_v40 = vpop.permute.xlu1 %6720  ;;  %7015 = vperm.xlu0 %10111, %v16337_v42   ;;  %v7192_v14 = vmul.f32 %v10622_v0, %v6711_v31  ;;  %10493 = vrsqrt.f32 %v4958_v16  ;;  %v5853_v0 = vmul.f32 %v18584_v52, %v18583_v43 }
 0x395   : > { %7010 = vperm.xlu1 %10112, %v16632_v62   ;;  %8535 = vst.msk [vmem:[%s12423_s27 + $0x3b0] sm:$0xff] %vm410_vm0, %v8343_v29  ;;  %10495 = vrsqrt.f32 %v4960_v12  ;;  %v5661_v12 = vld [vmem:[%s11104_s24 + $0x3e0] sm:$0xff] }
 0x396   : > { %v6726_v55 = vpop.permute.xlu0 %6725 }
 0x398   : > { %v7863_v59 = vpop.permute.xlu1 %7862  ;;  %7025 = vperm.xlu0 %10111, %v16343_v28   ;;  %v10624_v28 = vld [vmem:[%s10740_s18 + $0x3c8] sm:$0xff] }
 0x399   : > { %v8344_v42 = vadd.f32 %v7863_v59, %v7192_v14  ;;  %7020 = vperm.xlu1 %10112, %v16643_v39   ;;  %v7194_v54 = vmul.f32 %v10624_v28, %v6721_v40  ;;  %v10626_v14 = vld [vmem:[%s10740_s18 + $0x3d8] sm:$0xff]  ;;  %v18586_v28 = vld [vmem:[#allocation67_spill] sm:$0xff] }
 0x39a   : > { %v7868_v31 = vpop.permute.xlu0 %7867 }
 0x39b   : > { %8536 = vst.msk [vmem:[%s12423_s27 + $0x3b8] sm:$0xff] %vm410_vm0, %v8344_v42  ;;  %v8345_v30 = vadd.f32 %v7868_v31, %v7193_v19  ;;  %v6045_v31 = vsub.f32 %v5661_v12, %v5853_v0 }
 0x39c   : > { %v6731_v21 = vpop.permute.xlu1 %6730  ;;  %7035 = vperm.xlu0 %10111, %v16347_v48   ;;  %v10625_v48 = vld [vmem:[%s10740_s18 + $0x3d0] sm:$0xff] }
 0x39d   : > { %7030 = vperm.xlu1 %10112, %v16345_v3   ;;  %8537 = vst.msk [vmem:[%s12423_s27 + $0x3c0] sm:$0xff] %vm410_vm0, %v8345_v30  ;;  %v7195_v51 = vmul.f32 %v10625_v48, %v6726_v55  ;;  %v10492_v29 = vpop.eup %10491  ;;  %v7196_v55 = vmul.f32 %v10626_v14, %v6731_v21  ;;  %v18585_v30 = vld [vmem:[#allocation32_spill] sm:$0xff]  ;;  %v18588_v48 = vld [vmem:[#allocation66_spill] sm:$0xff] }
 0x39e   : > { %v16655_v25 = vpop.permute.xlu0 %6735  ;;  %v10494_v40 = vpop.eup %10493  ;;  %v5855_v21 = vmul.f32 %v18586_v28, %v18585_v30  ;;  %v18591_v14 = vld [vmem:[#allocation72_spill] sm:$0xff]  ;;  %v18594_v30 = vld [vmem:[#allocation15_spill] sm:$0xff] }
 0x3a0   : > { %v7873_v26 = vpop.permute.xlu1 %7872  ;;  %7045 = vperm.xlu0 %10111, %v16376_v47   ;;  %v5342_v47 = vld [vmem:[%s11072_s21 + $0x5e8] sm:$0xff] }
 0x3a1   : > { %v8346_v5 = vadd.f32 %v7873_v26, %v7194_v54  ;;  %7040 = vperm.xlu1 %10112, %v16361_v44   ;;  %v16670_v44 = vmul.f32 %v10492_v29, %v5343_v41  ;;  %v16677_v42 = vmul.f32 %v10494_v40, %v5342_v47  ;;  %v5663_v29 = vld [vmem:[%s11104_s24 + $0x3f0] sm:$0xff]  ;;  %v5662_v41 = vld [vmem:[%s11104_s24 + $0x3e8] sm:$0xff]  ;;  %v18590_v47 = vld [vmem:[#allocation18_spill] sm:$0xff] }
 0x3a2   : > { %v7878_v3 = vpop.permute.xlu0 %7877  ;;  %v6047_v40 = vsub.f32 %v5663_v29, %v5855_v21 }
 0x3a3   : > { %8538 = vst.msk [vmem:[%s12423_s27 + $0x3c8] sm:$0xff] %vm410_vm0, %v8346_v5  ;;  %v8347_v16 = vadd.f32 %v7878_v3, %v7195_v51  ;;  %v18587_v5 = vld [vmem:[#allocation45_spill] sm:$0xff] }
 0x3a4   : > { %v16663_v58 = vpop.permute.xlu1 %6740  ;;  %7055 = vperm.xlu0 %10111, %v16387_v13   ;;  %v10496_v13 = vpop.eup %10495  ;;  %v5854_v51 = vmul.f32 %v18588_v48, %v18587_v5  ;;  %v18595_v48 = vld [vmem:[#allocation58_spill] sm:$0xff] }
 0x3a5   : > { %7050 = vperm.xlu1 %10112, %v16378_v2   ;;  %8539 = vst.msk [vmem:[%s12423_s27 + $0x3d0] sm:$0xff] %vm410_vm0, %v8347_v16  ;;  %v5344_v2 = vld [vmem:[%s11072_s21 + $0x5f8] sm:$0xff]  ;;  %v18589_v16 = vld [vmem:[#allocation74_spill] sm:$0xff] }
 0x3a6   : > { %v16675_v59 = vpop.permute.xlu0 %6745  ;;  %v16689_v26 = vmul.f32 %v10496_v13, %v5344_v2  ;;  %v5857_v43 = vmul.f32 %v18590_v47, %v18589_v16  ;;  %v6046_v0 = vsub.f32 %v5662_v41, %v5854_v51  ;;  %v5665_v13 = vld [vmem:[%s11104_s24 + $0x400] sm:$0xff]  ;;  %v5664_v2 = vld [vmem:[%s11104_s24 + $0x3f8] sm:$0xff]  ;;  %v18596_v51 = vld [vmem:[#allocation31_spill] sm:$0xff] }
 0x3a7   : > { %v5858_v29 = vmul.f32 %v18596_v51, %v18595_v48  ;;  %v5667_v41 = vld [vmem:[%s11104_s24 + $0x410] sm:$0xff]  ;;  %v5666_v47 = vld [vmem:[%s11104_s24 + $0x408] sm:$0xff]  ;;  %v5668_v51 = vld [vmem:[%s11104_s24 + $0x418] sm:$0xff] }
 0x3a8   : > { %v7883_v7 = vpop.permute.xlu1 %7882  ;;  %7065 = vperm.xlu0 %10111, %v16670_v44  }
 0x3a9   : > { %v8348_v19 = vadd.f32 %v7883_v7, %v7196_v55  ;;  %7060 = vperm.xlu1 %10112, %v16677_v42   ;;  %v18592_v55 = vld [vmem:[#allocation9_spill] sm:$0xff] }
 0x3aa   : > { %v16687_v54 = vpop.permute.xlu0 %6755  ;;  %v5856_v12 = vmul.f32 %v18592_v55, %v18591_v14 }
 0x3ab   : > { %8540 = vst.msk [vmem:[%s12423_s27 + $0x3d8] sm:$0xff] %vm410_vm0, %v8348_v19  ;;  %v6049_v19 = vsub.f32 %v5665_v13, %v5857_v43  ;;  %v18599_v43 = vld [vmem:[#allocation75_spill] sm:$0xff]  ;;  %v6050_v13 = vsub.f32 %v5666_v47, %v5858_v29  ;;  %v5671_v47 = vld [vmem:[%s11104_s24 + $0x430] sm:$0xff] }
 0x3ac   : > { %v16694_v3 = vpop.permute.xlu1 %6750  ;;  %7887 = vperm.xlu0 %10111, %v6045_v31   ;;  %v18593_v31 = vld [vmem:[#allocation60_spill] sm:$0xff]  ;;  %v6048_v5 = vsub.f32 %v5664_v2, %v5856_v12  ;;  %v18601_v12 = vld [vmem:[#allocation71_spill] sm:$0xff] }
 0x3ad   : > { %7070 = vperm.xlu1 %10112, %v16689_v26   ;;  %v5859_v28 = vmul.f32 %v18594_v30, %v18593_v31  ;;  %v18600_v31 = vld [vmem:[#allocation20_spill] sm:$0xff]  ;;  %v5669_v30 = vld [vmem:[%s11104_s24 + $0x420] sm:$0xff] }
 0x3ae   : > { %v16700_v52 = vpop.permute.xlu0 %6765  ;;  %v5860_v2 = vmul.f32 %v18601_v12, %v18600_v31  ;;  %v5670_v12 = vld [vmem:[%s11104_s24 + $0x428] sm:$0xff] }
 0x3b0   : > { %v16705_v7 = vpop.permute.xlu1 %6760  ;;  %7897 = vperm.xlu0 %10111, %v6047_v40   ;;  %v6051_v40 = vsub.f32 %v5667_v41, %v5859_v28  ;;  %v18603_v28 = vld [vmem:[#allocation2_spill] sm:$0xff] }
 0x3b1   : > { %7892 = vperm.xlu1 %10112, %v6046_v0   ;;  %v18598_v0 = vld [vmem:[#allocation5_spill] sm:$0xff] }
 0x3b2   : > { %v16710_v21 = vpop.permute.xlu0 %6775  ;;  %v5861_v14 = vmul.f32 %v18599_v43, %v18598_v0  ;;  %v6052_v0 = vsub.f32 %v5668_v51, %v5860_v2  ;;  %v18604_v43 = vld [vmem:[#allocation28_spill] sm:$0xff]  ;;  %v5673_v51 = vld [vmem:[%s11104_s24 + $0x440] sm:$0xff] }
 0x3b3   : > { %v5862_v29 = vmul.f32 %v15748_v45, %v18604_v43  ;;  %v5672_v43 = vld [vmem:[%s11104_s24 + $0x438] sm:$0xff] }
 0x3b4   : > { %v16715_v16 = vpop.permute.xlu1 %6770  ;;  %7907 = vperm.xlu0 %10111, %v6049_v19   ;;  %v6053_v19 = vsub.f32 %v5669_v30, %v5861_v14 }
 0x3b5   : > { %18597 = vst [vmem:[#allocation53_spill] sm:$0xff] %v16715_v16  ;;  %7902 = vperm.xlu1 %10112, %v6048_v5   ;;  %v18602_v5 = vld [vmem:[#allocation84_spill] sm:$0xff] }
 0x3b6   : > { %v16720_v55 = vpop.permute.xlu0 %6785  ;;  %v5863_v41 = vmul.f32 %v18603_v28, %v18602_v5  ;;  %v6054_v5 = vsub.f32 %v5670_v12, %v5862_v29  ;;  %v18607_v28 = vld [vmem:[#allocation83_spill] sm:$0xff]  ;;  %v5675_v12 = vld [vmem:[%s11104_s24 + $0x450] sm:$0xff] }
 0x3b7   : > { %v5864_v2 = vmul.f32 %v15774_v4, %v18607_v28  ;;  %v5674_v28 = vld [vmem:[%s11104_s24 + $0x448] sm:$0xff] }
 0x3b8   : > { %v16725_v48 = vpop.permute.xlu1 %6780  ;;  %7917 = vperm.xlu0 %10111, %v6051_v40   ;;  %v6055_v40 = vsub.f32 %v5671_v47, %v5863_v41  ;;  %v18609_v41 = vld [vmem:[#allocation43_spill] sm:$0xff] }
 0x3b9   : > { %7912 = vperm.xlu1 %10112, %v6050_v13   ;;  %v18606_v13 = vld [vmem:[#allocation86_spill] sm:$0xff] }
 0x3ba   : > { %v16730_v16 = vpop.permute.xlu0 %6795  ;;  %v5865_v14 = vmul.f32 %v15822_v15, %v18606_v13  ;;  %v6056_v15 = vsub.f32 %v5672_v43, %v5864_v2  ;;  %v18610_v13 = vld [vmem:[#allocation13_spill] sm:$0xff]  ;;  %v5677_v43 = vld [vmem:[%s11104_s24 + $0x460] sm:$0xff] }
 0x3bb   : > { %v5866_v29 = vmul.f32 %v16043_v49, %v18610_v13  ;;  %v5676_v13 = vld [vmem:[%s11104_s24 + $0x458] sm:$0xff] }
 0x3bc   : > { %v16735_v31 = vpop.permute.xlu1 %6790  ;;  %7927 = vperm.xlu0 %10111, %v6053_v19   ;;  %v6057_v19 = vsub.f32 %v5673_v51, %v5865_v14 }
 0x3bd   : > { %18605 = vst [vmem:[#allocation27_spill] sm:$0xff] %v16735_v31  ;;  %7922 = vperm.xlu1 %10112, %v6052_v0   ;;  %v18608_v0 = vld [vmem:[#allocation33_spill] sm:$0xff] }
 0x3be   : > { %v16740_v30 = vpop.permute.xlu0 %6805  ;;  %v5867_v47 = vmul.f32 %v18609_v41, %v18608_v0  ;;  %v6058_v0 = vsub.f32 %v5674_v28, %v5866_v29  ;;  %v18612_v41 = vld [vmem:[#allocation87_spill] sm:$0xff]  ;;  %v5679_v28 = vld [vmem:[%s11104_s24 + $0x470] sm:$0xff] }
 0x3bf   : > { %v5868_v2 = vmul.f32 %v16091_v61, %v18612_v41  ;;  %v5678_v41 = vld [vmem:[%s11104_s24 + $0x468] sm:$0xff] }
 0x3c0   : > { %v16745_v45 = vpop.permute.xlu1 %6800  ;;  %7937 = vperm.xlu0 %10111, %v6055_v40   ;;  %v6059_v40 = vsub.f32 %v5675_v12, %v5867_v47 }
 0x3c1   : > { %7932 = vperm.xlu1 %10112, %v6054_v5   ;;  %v18611_v5 = vld [vmem:[#allocation69_spill] sm:$0xff] }
 0x3c2   : > { %v16750_v31 = vpop.permute.xlu0 %6815  ;;  %v5869_v14 = vmul.f32 %v16070_v1, %v18611_v5  ;;  %v6060_v1 = vsub.f32 %v5676_v13, %v5868_v2  ;;  %v18614_v5 = vld [vmem:[#allocation91_spill] sm:$0xff]  ;;  %v5681_v13 = vld [vmem:[%s11104_s24 + $0x480] sm:$0xff] }
 0x3c3   : > { %v5870_v29 = vmul.f32 %v16094_v37, %v18614_v5  ;;  %v5680_v5 = vld [vmem:[%s11104_s24 + $0x478] sm:$0xff] }
 0x3c4   : > { %v16755_v4 = vpop.permute.xlu1 %6810  ;;  %7947 = vperm.xlu0 %10111, %v6057_v19   ;;  %v6061_v19 = vsub.f32 %v5677_v43, %v5869_v14 }
 0x3c5   : > { %7942 = vperm.xlu1 %10112, %v6056_v15   ;;  %v18613_v15 = vld [vmem:[#allocation99_spill] sm:$0xff] }
 0x3c6   : > { %v16760_v51 = vpop.permute.xlu0 %6825  ;;  %v5871_v47 = vmul.f32 %v16100_v50, %v18613_v15  ;;  %v6062_v50 = vsub.f32 %v5678_v41, %v5870_v29  ;;  %v18616_v15 = vld [vmem:[#allocation96_spill] sm:$0xff] }
 0x3c7   : > { %v5872_v2 = vmul.f32 %v16106_v17, %v18616_v15  ;;  %v5683_v41 = vld [vmem:[%s11104_s24 + $0x490] sm:$0xff]  ;;  %v5682_v15 = vld [vmem:[%s11104_s24 + $0x488] sm:$0xff] }
 0x3c8   : > { %v16765_v49 = vpop.permute.xlu1 %6820  ;;  %7957 = vperm.xlu0 %10111, %v6059_v40   ;;  %v6063_v40 = vsub.f32 %v5679_v28, %v5871_v47 }
 0x3c9   : > { %7952 = vperm.xlu1 %10112, %v6058_v0   ;;  %v18615_v0 = vld [vmem:[#allocation73_spill] sm:$0xff] }
 0x3ca   : > { %v16770_v12 = vpop.permute.xlu0 %6835  ;;  %v5873_v14 = vmul.f32 %v16138_v63, %v18615_v0  ;;  %v6064_v63 = vsub.f32 %v5680_v5, %v5872_v2  ;;  %v18620_v0 = vld [vmem:[#allocation101_spill] sm:$0xff]  ;;  %v18626_v2 = vld [vmem:[#allocation64_spill] sm:$0xff] }
 0x3cb   : > { %v5874_v29 = vmul.f32 %v16190_v46, %v18620_v0  ;;  %v5684_v0 = vld [vmem:[%s11104_s24 + $0x498] sm:$0xff] }
 0x3cc   : > { %v16775_v61 = vpop.permute.xlu1 %6830  ;;  %7967 = vperm.xlu0 %10111, %v6061_v19   ;;  %v6065_v19 = vsub.f32 %v5681_v13, %v5873_v14  ;;  %v18623_v14 = vld [vmem:[#allocation16_spill] sm:$0xff] }
 0x3cd   : > { %7962 = vperm.xlu1 %10112, %v6060_v1   ;;  %v18618_v1 = vld [vmem:[#allocation10_spill] sm:$0xff] }
 0x3ce   : > { %v16780_v43 = vpop.permute.xlu0 %6845  ;;  %v5875_v47 = vmul.f32 %v16200_v20, %v18618_v1  ;;  %v6066_v20 = vsub.f32 %v5682_v15, %v5874_v29  ;;  %v18625_v1 = vld [vmem:[#allocation89_spill] sm:$0xff]  ;;  %v18632_v29 = vld [vmem:[#allocation40_spill] sm:$0xff] }
 0x3cf   : > { %v5876_v5 = vmul.f32 %v18626_v2, %v18625_v1  ;;  %v5686_v2 = vld [vmem:[%s11104_s24 + $0x4a8] sm:$0xff] }
 0x3d0   : > { %v16785_v37 = vpop.permute.xlu1 %6840  ;;  %7977 = vperm.xlu0 %10111, %v6063_v40   ;;  %v6067_v40 = vsub.f32 %v5683_v41, %v5875_v47  ;;  %v18629_v47 = vld [vmem:[#allocation47_spill] sm:$0xff] }
 0x3d1   : > { %18617 = vst [vmem:[#allocation88_spill] sm:$0xff] %v16785_v37  ;;  %7972 = vperm.xlu1 %10112, %v6062_v50   ;;  %v18622_v50 = vld [vmem:[#allocation42_spill] sm:$0xff] }
 0x3d2   : > { %v16790_v28 = vpop.permute.xlu0 %6855  ;;  %v5877_v13 = vmul.f32 %v18623_v14, %v18622_v50  ;;  %v6068_v50 = vsub.f32 %v5684_v0, %v5876_v5  ;;  %v18631_v14 = vld [vmem:[#allocation39_spill] sm:$0xff]  ;;  %v18638_v5 = vld [vmem:[#allocation26_spill] sm:$0xff] }
 0x3d3   : > { %18619 = vst [vmem:[#allocation24_spill] sm:$0xff] %v16790_v28  ;;  %v5685_v28 = vld [vmem:[%s11104_s24 + $0x4a0] sm:$0xff]  ;;  %v5878_v15 = vmul.f32 %v18632_v29, %v18631_v14  ;;  %v5688_v29 = vld [vmem:[%s11104_s24 + $0x4b8] sm:$0xff] }
 0x3d4   : > { %v16795_v17 = vpop.permute.xlu1 %6850  ;;  %7987 = vperm.xlu0 %10111, %v6065_v19   ;;  %v6069_v19 = vsub.f32 %v5685_v28, %v5877_v13  ;;  %v18635_v28 = vld [vmem:[#allocation57_spill] sm:$0xff] }
 0x3d5   : > { %18621 = vst [vmem:[#allocation85_spill] sm:$0xff] %v16795_v17  ;;  %7982 = vperm.xlu1 %10112, %v6064_v63   ;;  %v18628_v63 = vld [vmem:[#allocation63_spill] sm:$0xff] }
 0x3d6   : > { %v16800_v37 = vpop.permute.xlu0 %6865  ;;  %v5879_v41 = vmul.f32 %v18629_v47, %v18628_v63  ;;  %v6070_v63 = vsub.f32 %v5686_v2, %v5878_v15  ;;  %v18637_v47 = vld [vmem:[#allocation52_spill] sm:$0xff]  ;;  %v18644_v15 = vld [vmem:[#allocation46_spill] sm:$0xff] }
 0x3d7   : > { %18624 = vst [vmem:[#allocation56_spill] sm:$0xff] %v16800_v37  ;;  %v5687_v37 = vld [vmem:[%s11104_s24 + $0x4b0] sm:$0xff]  ;;  %v5880_v0 = vmul.f32 %v18638_v5, %v18637_v47  ;;  %v5690_v5 = vld [vmem:[%s11104_s24 + $0x4c8] sm:$0xff] }
 0x3d8   : > { %v16805_v46 = vpop.permute.xlu1 %6860  ;;  %7997 = vperm.xlu0 %10111, %v6067_v40   ;;  %v6071_v40 = vsub.f32 %v5687_v37, %v5879_v41  ;;  %v18641_v37 = vld [vmem:[#allocation106_spill] sm:$0xff] }
 0x3d9   : > { %18627 = vst [vmem:[#allocation94_spill] sm:$0xff] %v16805_v46  ;;  %7992 = vperm.xlu1 %10112, %v6066_v20   ;;  %v18634_v20 = vld [vmem:[#allocation6_spill] sm:$0xff] }
 0x3da   : > { %v16810_v17 = vpop.permute.xlu0 %6875  ;;  %v5881_v13 = vmul.f32 %v18635_v28, %v18634_v20  ;;  %v6072_v20 = vsub.f32 %v5688_v29, %v5880_v0  ;;  %v18643_v28 = vld [vmem:[#allocation59_spill] sm:$0xff]  ;;  %v18649_v0 = vld [vmem:[#allocation36_spill] sm:$0xff] }
 0x3db   : > { %18630 = vst [vmem:[#allocation11_spill] sm:$0xff] %v16810_v17  ;;  %v5689_v17 = vld [vmem:[%s11104_s24 + $0x4c0] sm:$0xff]  ;;  %v5882_v2 = vmul.f32 %v18644_v15, %v18643_v28  ;;  %v5692_v15 = vld [vmem:[%s11104_s24 + $0x4d8] sm:$0xff] }
 0x3dc   : > { %v16815_v1 = vpop.permute.xlu1 %6870  ;;  %8007 = vperm.xlu0 %10111, %v6069_v19   ;;  %v6073_v19 = vsub.f32 %v5689_v17, %v5881_v13  ;;  %v18647_v17 = vld [vmem:[#allocation23_spill] sm:$0xff] }
 0x3dd   : > { %18633 = vst [vmem:[#allocation93_spill] sm:$0xff] %v16815_v1  ;;  %8002 = vperm.xlu1 %10112, %v6068_v50   ;;  %v18640_v50 = vld [vmem:[#allocation48_spill] sm:$0xff] }
 0x3de   : > { %v16820_v46 = vpop.permute.xlu0 %6885  ;;  %v5883_v41 = vmul.f32 %v18641_v37, %v18640_v50  ;;  %v6074_v50 = vsub.f32 %v5690_v5, %v5882_v2  ;;  %v18648_v37 = vld [vmem:[#allocation19_spill] sm:$0xff]  ;;  %v5695_v5 = vld [vmem:[%s11104_s24 + $0x4f0] sm:$0xff] }
 0x3df   : > { %18636 = vst [vmem:[#allocation14_spill] sm:$0xff] %v16820_v46  ;;  %v5691_v46 = vld [vmem:[%s11104_s24 + $0x4d0] sm:$0xff]  ;;  %v5884_v29 = vmul.f32 %v18649_v0, %v18648_v37  ;;  %v5694_v0 = vld [vmem:[%s11104_s24 + $0x4e8] sm:$0xff] }
 0x3e0   : > { %v16825_v14 = vpop.permute.xlu1 %6880  ;;  %8017 = vperm.xlu0 %10111, %v6071_v40   ;;  %v6075_v40 = vsub.f32 %v5691_v46, %v5883_v41  ;;  %v18651_v46 = vld [vmem:[#allocation81_spill] sm:$0xff] }
 0x3e1   : > { %18639 = vst [vmem:[#allocation21_spill] sm:$0xff] %v16825_v14  ;;  %8012 = vperm.xlu1 %10112, %v6070_v63   ;;  %v18646_v63 = vld [vmem:[#allocation65_spill] sm:$0xff] }
 0x3e2   : > { %v16830_v1 = vpop.permute.xlu0 %6895  ;;  %v5885_v13 = vmul.f32 %v18647_v17, %v18646_v63  ;;  %v6076_v63 = vsub.f32 %v5692_v15, %v5884_v29  ;;  %v18652_v17 = vld [vmem:[#allocation7_spill] sm:$0xff]  ;;  %v5697_v15 = vld [vmem:[%s11104_s24 + $0x500] sm:$0xff] }
 0x3e3   : > { %18642 = vst [vmem:[#allocation98_spill] sm:$0xff] %v16830_v1  ;;  %v5693_v1 = vld [vmem:[%s11104_s24 + $0x4e0] sm:$0xff]  ;;  %v5886_v2 = vmul.f32 %v16448_v57, %v18652_v17  ;;  %v5696_v17 = vld [vmem:[%s11104_s24 + $0x4f8] sm:$0xff] }
 0x3e4   : > { %v16835_v47 = vpop.permute.xlu1 %6890  ;;  %8027 = vperm.xlu0 %10111, %v6073_v19   ;;  %v6077_v19 = vsub.f32 %v5693_v1, %v5885_v13 }
 0x3e5   : > { %18645 = vst [vmem:[#allocation62_spill] sm:$0xff] %v16835_v47  ;;  %8022 = vperm.xlu1 %10112, %v6072_v20   ;;  %v18650_v20 = vld [vmem:[#allocation4_spill] sm:$0xff] }
 0x3e6   : > { %v16840_v14 = vpop.permute.xlu0 %6905  ;;  %v5887_v41 = vmul.f32 %v18651_v46, %v18650_v20  ;;  %v6078_v20 = vsub.f32 %v5694_v0, %v5886_v2  ;;  %v18654_v46 = vld [vmem:[#allocation35_spill] sm:$0xff]  ;;  %v5699_v0 = vld [vmem:[%s11104_s24 + $0x510] sm:$0xff] }
 0x3e7   : > { %v5888_v29 = vmul.f32 %v16478_v9, %v18654_v46  ;;  %v5698_v46 = vld [vmem:[%s11104_s24 + $0x508] sm:$0xff] }
 0x3e8   : > { %v16845_v28 = vpop.permute.xlu1 %6900  ;;  %8037 = vperm.xlu0 %10111, %v6075_v40   ;;  %v6079_v40 = vsub.f32 %v5695_v5, %v5887_v41 }
 0x3e9   : > { %8032 = vperm.xlu1 %10112, %v6074_v50   ;;  %v18653_v50 = vld [vmem:[#allocation17_spill] sm:$0xff] }
 0x3ea   : > { %v16850_v47 = vpop.permute.xlu0 %6915  ;;  %v5889_v1 = vmul.f32 %v16471_v24, %v18653_v50  ;;  %v6080_v24 = vsub.f32 %v5696_v17, %v5888_v29  ;;  %v18656_v50 = vld [vmem:[#allocation8_spill] sm:$0xff]  ;;  %v5701_v17 = vld [vmem:[%s11104_s24 + $0x520] sm:$0xff] }
 0x3eb   : > { %v5890_v2 = vmul.f32 %v16505_v34, %v18656_v50  ;;  %v5700_v50 = vld [vmem:[%s11104_s24 + $0x518] sm:$0xff] }
 0x3ec   : > { %v16855_v37 = vpop.permute.xlu1 %6910  ;;  %8047 = vperm.xlu0 %10111, %v6077_v19   ;;  %v6081_v19 = vsub.f32 %v5697_v15, %v5889_v1 }
 0x3ed   : > { %8042 = vperm.xlu1 %10112, %v6076_v63   ;;  %v18655_v63 = vld [vmem:[#allocation100_spill] sm:$0xff] }
 0x3ee   : > { %v5891_v41 = vmul.f32 %v16498_v10, %v18655_v63  ;;  %v6082_v10 = vsub.f32 %v5698_v46, %v5890_v2  ;;  %v18658_v63 = vld [vmem:[#allocation78_spill] sm:$0xff]  ;;  %v5703_v46 = vld [vmem:[%s11104_s24 + $0x530] sm:$0xff] }
 0x3ef   : > { %v16860_v13 = vpop.permute.xlu0 %6925  ;;  %v5892_v29 = vmul.f32 %v16528_v18, %v18658_v63  ;;  %v5702_v63 = vld [vmem:[%s11104_s24 + $0x528] sm:$0xff] }
 0x3f0   : > { %v16865_v57 = vpop.permute.xlu1 %6920  ;;  %8057 = vperm.xlu0 %10111, %v6079_v40   ;;  %v6083_v40 = vsub.f32 %v5699_v0, %v5891_v41 }
 0x3f1   : > { %8052 = vperm.xlu1 %10112, %v6078_v20   ;;  %v18657_v20 = vld [vmem:[#allocation12_spill] sm:$0xff] }
 0x3f2   : > { %v5893_v1 = vmul.f32 %v16523_v60, %v18657_v20  ;;  %v6084_v60 = vsub.f32 %v5700_v50, %v5892_v29  ;;  %v18660_v20 = vld [vmem:[#allocation34_spill] sm:$0xff] }
 0x3f3   : > { %v16870_v5 = vpop.permute.xlu0 %6935  ;;  %v5894_v2 = vmul.f32 %v16547_v35, %v18660_v20  ;;  %v5705_v50 = vld [vmem:[%s11104_s24 + $0x540] sm:$0xff]  ;;  %v5704_v20 = vld [vmem:[%s11104_s24 + $0x538] sm:$0xff] }
 0x3f4   : > { %v16875_v9 = vpop.permute.xlu1 %6930  ;;  %8067 = vperm.xlu0 %10111, %v6081_v19   ;;  %v6085_v19 = vsub.f32 %v5701_v17, %v5893_v1 }
 0x3f5   : > { %8062 = vperm.xlu1 %10112, %v6080_v24   ;;  %v18659_v24 = vld [vmem:[#allocation70_spill] sm:$0xff] }
 0x3f6   : > { %v5895_v41 = vmul.f32 %v16542_v33, %v18659_v24  ;;  %v6086_v33 = vsub.f32 %v5702_v63, %v5894_v2  ;;  %v18662_v24 = vld [vmem:[#allocation102_spill] sm:$0xff]  ;;  %v5707_v63 = vld [vmem:[%s11104_s24 + $0x550] sm:$0xff] }
 0x3f7   : > { %v16880_v15 = vpop.permute.xlu0 %6945  ;;  %v5896_v29 = vmul.f32 %v16563_v36, %v18662_v24  ;;  %v5706_v24 = vld [vmem:[%s11104_s24 + $0x548] sm:$0xff] }
 0x3f8   : > { %v16885_v34 = vpop.permute.xlu1 %6940  ;;  %8077 = vperm.xlu0 %10111, %v6083_v40   ;;  %v6087_v40 = vsub.f32 %v5703_v46, %v5895_v41 }
 0x3f9   : > { %8072 = vperm.xlu1 %10112, %v6082_v10   ;;  %v18661_v10 = vld [vmem:[#allocation61_spill] sm:$0xff] }
 0x3fa   : > { %v5897_v1 = vmul.f32 %v16558_v38, %v18661_v10  ;;  %v6088_v38 = vsub.f32 %v5704_v20, %v5896_v29  ;;  %v18664_v10 = vld [vmem:[#allocation29_spill] sm:$0xff]  ;;  %v5709_v20 = vld [vmem:[%s11104_s24 + $0x560] sm:$0xff] }
 0x3fb   : > { %v16890_v0 = vpop.permute.xlu0 %6955  ;;  %v5898_v2 = vmul.f32 %v16574_v22, %v18664_v10  ;;  %v5708_v10 = vld [vmem:[%s11104_s24 + $0x558] sm:$0xff] }
 0x3fc   : > { %v16895_v18 = vpop.permute.xlu1 %6950  ;;  %8087 = vperm.xlu0 %10111, %v6085_v19   ;;  %v6089_v19 = vsub.f32 %v5705_v50, %v5897_v1 }
 0x3fd   : > { %8082 = vperm.xlu1 %10112, %v6084_v60   ;;  %v18663_v60 = vld [vmem:[#allocation68_spill] sm:$0xff] }
 0x3fe   : > { %v5899_v41 = vmul.f32 %v16571_v27, %v18663_v60  ;;  %v6090_v27 = vsub.f32 %v5706_v24, %v5898_v2  ;;  %v18666_v60 = vld [vmem:[#allocation55_spill] sm:$0xff]  ;;  %v5711_v24 = vld [vmem:[%s11104_s24 + $0x570] sm:$0xff] }
 0x3ff   : > { %v16900_v17 = vpop.permute.xlu0 %6965  ;;  %v5900_v29 = vmul.f32 %v16585_v8, %v18666_v60  ;;  %v5710_v60 = vld [vmem:[%s11104_s24 + $0x568] sm:$0xff] }
 0x400   : > { %v16905_v35 = vpop.permute.xlu1 %6960  ;;  %8097 = vperm.xlu0 %10111, %v6087_v40   ;;  %v6091_v40 = vsub.f32 %v5707_v63, %v5899_v41 }
 0x401   : > { %8092 = vperm.xlu1 %10112, %v6086_v33   ;;  %v18665_v33 = vld [vmem:[#allocation25_spill] sm:$0xff] }
 0x402   : > { %v5901_v1 = vmul.f32 %v16581_v6, %v18665_v33  ;;  %v6092_v6 = vsub.f32 %v5708_v10, %v5900_v29  ;;  %v18668_v33 = vld [vmem:[#allocation44_spill] sm:$0xff]  ;;  %v18671_v29 = vld [vmem:[#allocation90_spill] sm:$0xff] }
 0x403   : > { %v16910_v46 = vpop.permute.xlu0 %6975  ;;  %v5902_v2 = vmul.f32 %v16596_v11, %v18668_v33  ;;  %v5712_v33 = vld [vmem:[%s11104_s24 + $0x578] sm:$0xff] }
 0x404   : > { %v16915_v36 = vpop.permute.xlu1 %6970  ;;  %8107 = vperm.xlu0 %10111, %v6089_v19   ;;  %v6093_v19 = vsub.f32 %v5709_v20, %v5901_v1  ;;  %v5905_v1 = vmul.f32 %v16603_v32, %v16460_v56  ;;  %v18670_v20 = vld [vmem:[#allocation82_spill] sm:$0xff] }
 0x405   : > { %8102 = vperm.xlu1 %10112, %v6088_v38   ;;  %v18667_v38 = vld [vmem:[#allocation80_spill] sm:$0xff]  ;;  %v5904_v10 = vmul.f32 %v18671_v29, %v18670_v20 }
 0x406   : > { %v5903_v41 = vmul.f32 %v16593_v23, %v18667_v38  ;;  %v6094_v23 = vsub.f32 %v5710_v60, %v5902_v2  ;;  %v5713_v38 = vld [vmem:[%s11104_s24 + $0x580] sm:$0xff]  ;;  %v5715_v60 = vld [vmem:[%s11104_s24 + $0x590] sm:$0xff] }
 0x407   : > { %v16920_v50 = vpop.permute.xlu0 %6985  ;;  %v6096_v32 = vsub.f32 %v5712_v33, %v5904_v10 }
 0x408   : > { %v16925_v22 = vpop.permute.xlu1 %6980  ;;  %8117 = vperm.xlu0 %10111, %v6091_v40   ;;  %v6095_v40 = vsub.f32 %v5711_v24, %v5903_v41  ;;  %v18673_v41 = vld [vmem:[#allocation76_spill] sm:$0xff] }
 0x409   : > { %8112 = vperm.xlu1 %10112, %v6090_v27  }
 0x40b   : > { %v16930_v63 = vpop.permute.xlu0 %6995 }
 0x40c   : > { %v16935_v8 = vpop.permute.xlu1 %6990  ;;  %8127 = vperm.xlu0 %10111, %v6093_v19   ;;  %v6097_v19 = vsub.f32 %v5713_v38, %v5905_v1  ;;  %v18675_v38 = vld [vmem:[#allocation54_spill] sm:$0xff] }
 0x40d   : > { %8122 = vperm.xlu1 %10112, %v6092_v6   ;;  %v18672_v6 = vld [vmem:[#allocation104_spill] sm:$0xff] }
 0x40e   : > { %v5907_v24 = vmul.f32 %v18673_v41, %v18672_v6  ;;  %v5908_v6 = vmul.f32 %v16632_v62, %v18675_v38  ;;  %v5717_v41 = vld [vmem:[%s11104_s24 + $0x5a0] sm:$0xff]  ;;  %v5718_v62 = vld [vmem:[%s11104_s24 + $0x5a8] sm:$0xff] }
 0x40f   : > { %v16940_v27 = vpop.permute.xlu0 %7005 }
 0x410   : > { %18669 = vst [vmem:[#allocation107_spill] sm:$0xff] %v16940_v27  ;;  %v16945_v11 = vpop.permute.xlu1 %7000  ;;  %8137 = vperm.xlu0 %10111, %v6095_v40   ;;  %v18674_v27 = vld [vmem:[#allocation30_spill] sm:$0xff]  ;;  %v5714_v40 = vld [vmem:[%s11104_s24 + $0x588] sm:$0xff]  ;;  %v6099_v29 = vsub.f32 %v5715_v60, %v5907_v24 }
 0x411   : > { %8132 = vperm.xlu1 %10112, %v6094_v23   ;;  %v5906_v2 = vmul.f32 %v16618_v53, %v18674_v27  ;;  %v5716_v53 = vld [vmem:[%s11104_s24 + $0x598] sm:$0xff] }
 0x412   : > { %v18677_v27 = vld [vmem:[#allocation49_spill] sm:$0xff]  ;;  %v6100_v24 = vsub.f32 %v5716_v53, %v5908_v6 }
 0x413   : > { %v16950_v56 = vpop.permute.xlu0 %7015  ;;  %v6098_v23 = vsub.f32 %v5714_v40, %v5906_v2  ;;  %v6101_v33 = vsub.f32 %v5717_v41, %v18677_v27  ;;  %v5719_v2 = vld [vmem:[%s11104_s24 + $0x5b0] sm:$0xff]  ;;  %v5721_v41 = vld [vmem:[%s11104_s24 + $0x5c0] sm:$0xff]  ;;  %v5720_v6 = vld [vmem:[%s11104_s24 + $0x5b8] sm:$0xff] }
 0x414   : > { %v16955_v20 = vpop.permute.xlu1 %7010  ;;  %8147 = vperm.xlu0 %10111, %v6097_v19  }
 0x415   : > { %8142 = vperm.xlu1 %10112, %v6096_v32   ;;  %v18679_v32 = vld [vmem:[#allocation38_spill] sm:$0xff] }
 0x416   : > { %v5910_v60 = vmul.f32 %v16643_v39, %v18679_v32  ;;  %v18684_v39 = vld [vmem:[#allocation3_spill] sm:$0xff] }
 0x417   : > { %v16958_v1 = vpop.permute.xlu0 %7025  ;;  %v6105_v53 = vsub.f32 %v5721_v41, %v18684_v39  ;;  %v18686_v32 = vld [vmem:[#allocation79_spill] sm:$0xff]  ;;  %v10627_v39 = vld [vmem:[%s10740_s18 + $0x3e0] sm:$0xff] }
 0x418   : > { %v16963_v10 = vpop.permute.xlu1 %7020  ;;  %8157 = vperm.xlu0 %10111, %v6099_v29   ;;  %v18681_v29 = vld [vmem:[#allocation97_spill] sm:$0xff] }
 0x419   : > { %18676 = vst [vmem:[#allocation92_spill] sm:$0xff] %v16963_v10  ;;  %8152 = vperm.xlu1 %10112, %v6098_v23   ;;  %v6103_v38 = vsub.f32 %v5719_v2, %v18681_v29  ;;  %v6102_v10 = vsub.f32 %v5718_v62, %v5910_v60  ;;  %v5722_v60 = vld [vmem:[%s11104_s24 + $0x5c8] sm:$0xff]  ;;  %v18688_v62 = vld [vmem:[#allocation22_spill] sm:$0xff] }
 0x41b   : > { %v16967_v19 = vpop.permute.xlu0 %7035 }
 0x41c   : > { %18678 = vst [vmem:[#allocation50_spill] sm:$0xff] %v16967_v19  ;;  %v16972_v40 = vpop.permute.xlu1 %7030  ;;  %8167 = vperm.xlu0 %10111, %v6101_v33   ;;  %v5726_v19 = vld [vmem:[%s11104_s24 + $0x5e8] sm:$0xff] }
 0x41d   : > { %18680 = vst [vmem:[#allocation77_spill] sm:$0xff] %v16972_v40  ;;  %8162 = vperm.xlu1 %10112, %v6100_v24   ;;  %v6104_v24 = vsub.f32 %v5720_v6, %v18686_v32  ;;  %v5723_v40 = vld [vmem:[%s11104_s24 + $0x5d0] sm:$0xff]  ;;  %v5724_v6 = vld [vmem:[%s11104_s24 + $0x5d8] sm:$0xff] }
 0x41e   : > { %v6107_v29 = vsub.f32 %v5723_v40, %v18688_v62  ;;  %v18692_v32 = vld [vmem:[#allocation105_spill] sm:$0xff]  ;;  %v18693_v40 = vld [vmem:[#allocation95_spill] sm:$0xff] }
 0x41f   : > { %v16976_v23 = vpop.permute.xlu0 %7045  ;;  %v5919_v62 = vmul.f32 %v16670_v44, %v18693_v40  ;;  %v5728_v40 = vld [vmem:[%s11104_s24 + $0x5f8] sm:$0xff] }
 0x420   : > { %18682 = vst [vmem:[#allocation32_spill] sm:$0xff] %v16976_v23  ;;  %v16979_v27 = vpop.permute.xlu1 %7040  ;;  %8177 = vperm.xlu0 %10111, %v6103_v38   ;;  %v5725_v23 = vld [vmem:[%s11104_s24 + $0x5e0] sm:$0xff] }
 0x421   : > { %18683 = vst [vmem:[#allocation67_spill] sm:$0xff] %v16979_v27  ;;  %8172 = vperm.xlu1 %10112, %v6102_v10   ;;  %v18690_v27 = vld [vmem:[#allocation41_spill] sm:$0xff] }
 0x422   : > { %v6106_v10 = vsub.f32 %v5722_v60, %v18690_v27  ;;  %v18694_v27 = vld [vmem:[#allocation51_spill] sm:$0xff] }
 0x423   : > { %v16983_v33 = vpop.permute.xlu0 %7055  ;;  %v6108_v60 = vsub.f32 %v5724_v6, %v18694_v27  ;;  %v10629_v6 = vld [vmem:[%s10740_s18 + $0x3e8] sm:$0xff]  ;;  %v10630_v27 = vld [vmem:[%s10740_s18 + $0x400] sm:$0xff] }
 0x424   : > { %18685 = vst [vmem:[#allocation45_spill] sm:$0xff] %v16983_v33  ;;  %v16987_v2 = vpop.permute.xlu1 %7050  ;;  %8187 = vperm.xlu0 %10111, %v6105_v53   ;;  %v7197_v53 = vmul.f32 %v10627_v39, %v16655_v25  ;;  %v10628_v25 = vld [vmem:[%s10740_s18 + $0x3f0] sm:$0xff] }
 0x425   : > { %18687 = vst [vmem:[#allocation66_spill] sm:$0xff] %v16987_v2  ;;  %8182 = vperm.xlu1 %10112, %v6104_v24   ;;  %v6109_v24 = vsub.f32 %v5725_v23, %v18692_v32  ;;  %v18695_v2 = vld [vmem:[#allocation103_spill] sm:$0xff]  ;;  %v7199_v23 = vmul.f32 %v10628_v25, %v16675_v59  ;;  %v10632_v25 = vld [vmem:[%s10740_s18 + $0x410] sm:$0xff] }
 0x427   : > { %v16991_v38 = vpop.permute.xlu0 %7065 }
 0x428   : > { %18689 = vst [vmem:[#allocation74_spill] sm:$0xff] %v16991_v38  ;;  %v16995_v41 = vpop.permute.xlu1 %7060  ;;  %8197 = vperm.xlu0 %10111, %v6107_v29   ;;  %v5727_v29 = vld [vmem:[%s11104_s24 + $0x5f0] sm:$0xff] }
 0x429   : > { %18691 = vst [vmem:[#allocation18_spill] sm:$0xff] %v16995_v41  ;;  %8192 = vperm.xlu1 %10112, %v6106_v10   ;;  %v5918_v41 = vmul.f32 %v16677_v42, %v18695_v2  ;;  %v6111_v44 = vsub.f32 %v5727_v29, %v5919_v62  ;;  %v7198_v42 = vmul.f32 %v10629_v6, %v16663_v58  ;;  %v10631_v58 = vld [vmem:[%s10740_s18 + $0x3f8] sm:$0xff] }
 0x42a   : > { %v7201_v62 = vmul.f32 %v10630_v27, %v16687_v54  ;;  %v7203_v54 = vmul.f32 %v10632_v25, %v16700_v52  ;;  %v10635_v52 = vld [vmem:[%s10740_s18 + $0x418] sm:$0xff]  ;;  %v10636_v27 = vld [vmem:[%s10740_s18 + $0x430] sm:$0xff]  ;;  %v18698_v25 = vld [vmem:[#allocation27_spill] sm:$0xff] }
 0x42b   : > { %v7888_v38 = vpop.permute.xlu0 %7887  ;;  %v6110_v39 = vsub.f32 %v5726_v19, %v5918_v41  ;;  %v7200_v19 = vmul.f32 %v10631_v58, %v16694_v3 }
 0x42c   : > { %v17007_v33 = vpop.permute.xlu1 %7070  ;;  %v8349_v10 = vadd.f32 %v7888_v38, %v7197_v53  ;;  %8207 = vperm.xlu0 %10111, %v6109_v24   ;;  %v18696_v38 = vld [vmem:[#allocation37_spill] sm:$0xff] }
 0x42d   : > { %8202 = vperm.xlu1 %10112, %v6108_v60   ;;  %v5920_v53 = vmul.f32 %v16689_v26, %v18696_v38 }
 0x42e   : > { %8541 = vst.msk [vmem:[%s12423_s27 + $0x3e0] sm:$0xff] %vm410_vm0, %v8349_v10 }
 0x42f   : > { %v7898_v2 = vpop.permute.xlu0 %7897  ;;  %v6112_v41 = vsub.f32 %v5728_v40, %v5920_v53  ;;  %v18697_v53 = vld [vmem:[#allocation53_spill] sm:$0xff] }
 0x430   : > { %v7893_v32 = vpop.permute.xlu1 %7892  ;;  %v8351_v24 = vadd.f32 %v7898_v2, %v7199_v23  ;;  %8217 = vperm.xlu0 %10111, %v6111_v44   ;;  %v10633_v23 = vld [vmem:[%s10740_s18 + $0x408] sm:$0xff] }
 0x431   : > { %v8350_v59 = vadd.f32 %v7893_v32, %v7198_v42  ;;  %8212 = vperm.xlu1 %10112, %v6110_v39   ;;  %v7202_v3 = vmul.f32 %v10633_v23, %v16705_v7  ;;  %v10634_v39 = vld [vmem:[%s10740_s18 + $0x420] sm:$0xff]  ;;  %v7204_v32 = vmul.f32 %v10635_v52, %v18697_v53 }
 0x432   : > { %8543 = vst.msk [vmem:[%s12423_s27 + $0x3f0] sm:$0xff] %vm410_vm0, %v8351_v24  ;;  %v7205_v38 = vmul.f32 %v10634_v39, %v16710_v21  ;;  %v10637_v21 = vld [vmem:[%s10740_s18 + $0x428] sm:$0xff] }
 0x433   : > { %8542 = vst.msk [vmem:[%s12423_s27 + $0x3e8] sm:$0xff] %vm410_vm0, %v8350_v59  ;;  %v7908_v26 = vpop.permute.xlu0 %7907  ;;  %v7206_v58 = vmul.f32 %v10637_v21, %v16725_v48 }
 0x434   : > { %v7903_v60 = vpop.permute.xlu1 %7902  ;;  %v8353_v29 = vadd.f32 %v7908_v26, %v7201_v62  ;;  %v7207_v62 = vmul.f32 %v10636_v27, %v16720_v55  ;;  %v10639_v55 = vld [vmem:[%s10740_s18 + $0x438] sm:$0xff] }
 0x435   : > { %v8352_v10 = vadd.f32 %v7903_v60, %v7200_v19  ;;  %8222 = vperm.xlu1 %10112, %v6112_v41  }
 0x436   : > { %8545 = vst.msk [vmem:[%s12423_s27 + $0x400] sm:$0xff] %vm410_vm0, %v8353_v29  ;;  %v10638_v29 = vld [vmem:[%s10740_s18 + $0x440] sm:$0xff] }
 0x437   : > { %8544 = vst.msk [vmem:[%s12423_s27 + $0x3f8] sm:$0xff] %vm410_vm0, %v8352_v10  ;;  %v7918_v44 = vpop.permute.xlu0 %7917  ;;  %v7209_v10 = vmul.f32 %v10638_v29, %v16730_v16  ;;  %v10641_v16 = vld [vmem:[%s10740_s18 + $0x448] sm:$0xff] }
 0x438   : > { %v7913_v6 = vpop.permute.xlu1 %7912  ;;  %v8355_v42 = vadd.f32 %v7918_v44, %v7203_v54  ;;  %v7208_v54 = vmul.f32 %v10639_v55, %v18698_v25 }
 0x439   : > { %v8354_v2 = vadd.f32 %v7913_v6, %v7202_v3  ;;  %v10640_v6 = vld [vmem:[%s10740_s18 + $0x450] sm:$0xff] }
 0x43a   : > { %8547 = vst.msk [vmem:[%s12423_s27 + $0x410] sm:$0xff] %vm410_vm0, %v8355_v42  ;;  %v7211_v42 = vmul.f32 %v10640_v6, %v16740_v30  ;;  %v10643_v30 = vld [vmem:[%s10740_s18 + $0x458] sm:$0xff] }
 0x43b   : > { %8546 = vst.msk [vmem:[%s12423_s27 + $0x408] sm:$0xff] %vm410_vm0, %v8354_v2  ;;  %v7928_v7 = vpop.permute.xlu0 %7927  ;;  %v7210_v2 = vmul.f32 %v10641_v16, %v16745_v45 }
 0x43c   : > { %v7923_v24 = vpop.permute.xlu1 %7922  ;;  %v8357_v40 = vadd.f32 %v7928_v7, %v7205_v38 }
 0x43d   : > { %v8356_v59 = vadd.f32 %v7923_v24, %v7204_v32  ;;  %v10642_v32 = vld [vmem:[%s10740_s18 + $0x460] sm:$0xff]  ;;  %v7212_v24 = vmul.f32 %v10643_v30, %v16755_v4 }
 0x43e   : > { %8549 = vst.msk [vmem:[%s12423_s27 + $0x420] sm:$0xff] %vm410_vm0, %v8357_v40  ;;  %v7213_v7 = vmul.f32 %v10642_v32, %v16750_v31  ;;  %v10645_v31 = vld [vmem:[%s10740_s18 + $0x468] sm:$0xff] }
 0x43f   : > { %8548 = vst.msk [vmem:[%s12423_s27 + $0x418] sm:$0xff] %vm410_vm0, %v8356_v59  ;;  %v7938_v19 = vpop.permute.xlu0 %7937 }
 0x440   : > { %v7933_v26 = vpop.permute.xlu1 %7932  ;;  %v8359_v41 = vadd.f32 %v7938_v19, %v7207_v62  ;;  %v10644_v62 = vld [vmem:[%s10740_s18 + $0x470] sm:$0xff] }
 0x441   : > { %v8358_v60 = vadd.f32 %v7933_v26, %v7206_v58  ;;  %v7215_v21 = vmul.f32 %v10644_v62, %v16760_v51  ;;  %v7214_v58 = vmul.f32 %v10645_v31, %v16765_v49  ;;  %v10647_v51 = vld [vmem:[%s10740_s18 + $0x478] sm:$0xff]  ;;  %v18703_v62 = vld [vmem:[#allocation94_spill] sm:$0xff] }
 0x442   : > { %8551 = vst.msk [vmem:[%s12423_s27 + $0x430] sm:$0xff] %vm410_vm0, %v8359_v41 }
 0x443   : > { %8550 = vst.msk [vmem:[%s12423_s27 + $0x428] sm:$0xff] %vm410_vm0, %v8358_v60  ;;  %v7948_v48 = vpop.permute.xlu0 %7947  ;;  %v10646_v60 = vld [vmem:[%s10740_s18 + $0x480] sm:$0xff] }
 0x444   : > { %v7943_v23 = vpop.permute.xlu1 %7942  ;;  %v8361_v3 = vadd.f32 %v7948_v48, %v7209_v10  ;;  %v7217_v29 = vmul.f32 %v10646_v60, %v16770_v12  ;;  %v7216_v10 = vmul.f32 %v10647_v51, %v16775_v61  ;;  %v10648_v48 = vld [vmem:[%s10740_s18 + $0x490] sm:$0xff]  ;;  %v10649_v12 = vld [vmem:[%s10740_s18 + $0x488] sm:$0xff]  ;;  %v18705_v51 = vld [vmem:[#allocation93_spill] sm:$0xff] }
 0x445   : > { %v8360_v44 = vadd.f32 %v7943_v23, %v7208_v54  ;;  %v7219_v23 = vmul.f32 %v10648_v48, %v16780_v43  ;;  %v10651_v43 = vld [vmem:[%s10740_s18 + $0x498] sm:$0xff]  ;;  %v10656_v48 = vld [vmem:[%s10740_s18 + $0x4d0] sm:$0xff] }
 0x446   : > { %8553 = vst.msk [vmem:[%s12423_s27 + $0x440] sm:$0xff] %vm410_vm0, %v8361_v3  ;;  %v18699_v3 = vld [vmem:[#allocation88_spill] sm:$0xff] }
 0x447   : > { %8552 = vst.msk [vmem:[%s12423_s27 + $0x438] sm:$0xff] %vm410_vm0, %v8360_v44  ;;  %v7958_v39 = vpop.permute.xlu0 %7957  ;;  %v7218_v44 = vmul.f32 %v10649_v12, %v18699_v3  ;;  %v10657_v3 = vld [vmem:[%s10740_s18 + $0x4c8] sm:$0xff] }
 0x448   : > { %v7953_v38 = vpop.permute.xlu1 %7952  ;;  %v8363_v52 = vadd.f32 %v7958_v39, %v7211_v42  ;;  %v18700_v39 = vld [vmem:[#allocation24_spill] sm:$0xff] }
 0x449   : > { %v8362_v53 = vadd.f32 %v7953_v38, %v7210_v2  ;;  %v10650_v2 = vld [vmem:[%s10740_s18 + $0x4a0] sm:$0xff] }
 0x44a   : > { %8555 = vst.msk [vmem:[%s12423_s27 + $0x450] sm:$0xff] %vm410_vm0, %v8363_v52  ;;  %v7221_v38 = vmul.f32 %v10650_v2, %v18700_v39  ;;  %v18701_v52 = vld [vmem:[#allocation85_spill] sm:$0xff]  ;;  %v10658_v39 = vld [vmem:[%s10740_s18 + $0x4e0] sm:$0xff] }
 0x44b   : > { %8554 = vst.msk [vmem:[%s12423_s27 + $0x448] sm:$0xff] %vm410_vm0, %v8362_v53  ;;  %v7968_v45 = vpop.permute.xlu0 %7967  ;;  %v7220_v53 = vmul.f32 %v10651_v43, %v18701_v52  ;;  %v10659_v52 = vld [vmem:[%s10740_s18 + $0x4d8] sm:$0xff] }
 0x44c   : > { %v7963_v40 = vpop.permute.xlu1 %7962  ;;  %v8365_v59 = vadd.f32 %v7968_v45, %v7213_v7  ;;  %v10652_v45 = vld [vmem:[%s10740_s18 + $0x4b0] sm:$0xff] }
 0x44d   : > { %v8364_v27 = vadd.f32 %v7963_v40, %v7212_v24  ;;  %v18702_v40 = vld [vmem:[#allocation56_spill] sm:$0xff] }
 0x44e   : > { %8557 = vst.msk [vmem:[%s12423_s27 + $0x460] sm:$0xff] %vm410_vm0, %v8365_v59  ;;  %v7223_v59 = vmul.f32 %v10652_v45, %v18702_v40  ;;  %v10660_v40 = vld [vmem:[%s10740_s18 + $0x4f0] sm:$0xff] }
 0x44f   : > { %8556 = vst.msk [vmem:[%s12423_s27 + $0x458] sm:$0xff] %vm410_vm0, %v8364_v27  ;;  %v7978_v4 = vpop.permute.xlu0 %7977  ;;  %v10653_v27 = vld [vmem:[%s10740_s18 + $0x4a8] sm:$0xff] }
 0x450   : > { %v7973_v19 = vpop.permute.xlu1 %7972  ;;  %v8367_v26 = vadd.f32 %v7978_v4, %v7215_v21  ;;  %v7222_v21 = vmul.f32 %v10653_v27, %v18703_v62  ;;  %v10661_v27 = vld [vmem:[%s10740_s18 + $0x4e8] sm:$0xff] }
 0x451   : > { %v8366_v41 = vadd.f32 %v7973_v19, %v7214_v58  ;;  %v7230_v62 = vmul.f32 %v10661_v27, %v16845_v28 }
 0x452   : > { %8559 = vst.msk [vmem:[%s12423_s27 + $0x470] sm:$0xff] %vm410_vm0, %v8367_v26  ;;  %v10654_v26 = vld [vmem:[%s10740_s18 + $0x4c0] sm:$0xff] }
 0x453   : > { %8558 = vst.msk [vmem:[%s12423_s27 + $0x468] sm:$0xff] %vm410_vm0, %v8366_v41  ;;  %v7988_v49 = vpop.permute.xlu0 %7987  ;;  %v18704_v41 = vld [vmem:[#allocation11_spill] sm:$0xff] }
 0x454   : > { %v7983_v55 = vpop.permute.xlu1 %7982  ;;  %v8369_v25 = vadd.f32 %v7988_v49, %v7217_v29  ;;  %v7225_v60 = vmul.f32 %v10654_v26, %v18704_v41  ;;  %v10655_v29 = vld [vmem:[%s10740_s18 + $0x4b8] sm:$0xff] }
 0x455   : > { %v8368_v54 = vadd.f32 %v7983_v55, %v7216_v10  ;;  %v7224_v10 = vmul.f32 %v10655_v29, %v18705_v51 }
 0x456   : > { %8561 = vst.msk [vmem:[%s12423_s27 + $0x480] sm:$0xff] %vm410_vm0, %v8369_v25 }
 0x457   : > { %8560 = vst.msk [vmem:[%s12423_s27 + $0x478] sm:$0xff] %vm410_vm0, %v8368_v54  ;;  %v7998_v61 = vpop.permute.xlu0 %7997 }
 0x458   : > { %v7993_v6 = vpop.permute.xlu1 %7992  ;;  %v8371_v42 = vadd.f32 %v7998_v61, %v7219_v23  ;;  %v18706_v23 = vld [vmem:[#allocation14_spill] sm:$0xff] }
 0x459   : > { %v8370_v16 = vadd.f32 %v7993_v6, %v7218_v44  ;;  %v7227_v12 = vmul.f32 %v10656_v48, %v18706_v23  ;;  %v18707_v44 = vld [vmem:[#allocation21_spill] sm:$0xff]  ;;  %v10666_v23 = vld [vmem:[%s10740_s18 + $0x520] sm:$0xff] }
 0x45a   : > { %8563 = vst.msk [vmem:[%s12423_s27 + $0x490] sm:$0xff] %vm410_vm0, %v8371_v42  ;;  %v7226_v61 = vmul.f32 %v10657_v3, %v18707_v44 }
 0x45b   : > { %8562 = vst.msk [vmem:[%s12423_s27 + $0x488] sm:$0xff] %vm410_vm0, %v8370_v16  ;;  %v8008_v32 = vpop.permute.xlu0 %8007 }
 0x45c   : > { %v8003_v7 = vpop.permute.xlu1 %8002  ;;  %v8373_v30 = vadd.f32 %v8008_v32, %v7221_v38  ;;  %v18708_v38 = vld [vmem:[#allocation98_spill] sm:$0xff] }
 0x45d   : > { %v8372_v24 = vadd.f32 %v8003_v7, %v7220_v53  ;;  %v7229_v43 = vmul.f32 %v10658_v39, %v18708_v38  ;;  %v18709_v53 = vld [vmem:[#allocation62_spill] sm:$0xff] }
 0x45e   : > { %8565 = vst.msk [vmem:[%s12423_s27 + $0x4a0] sm:$0xff] %vm410_vm0, %v8373_v30  ;;  %v7228_v32 = vmul.f32 %v10659_v52, %v18709_v53  ;;  %v10670_v52 = vld [vmem:[%s10740_s18 + $0x540] sm:$0xff] }
 0x45f   : > { %8564 = vst.msk [vmem:[%s12423_s27 + $0x498] sm:$0xff] %vm410_vm0, %v8372_v24  ;;  %v8018_v31 = vpop.permute.xlu0 %8017  ;;  %v7241_v53 = vmul.f32 %v10670_v52, %v16890_v0  ;;  %v10673_v0 = vld [vmem:[%s10740_s18 + $0x548] sm:$0xff] }
 0x460   : > { %v8013_v58 = vpop.permute.xlu1 %8012  ;;  %v8375_v4 = vadd.f32 %v8018_v31, %v7223_v59  ;;  %v7231_v59 = vmul.f32 %v10660_v40, %v16840_v14  ;;  %v10663_v14 = vld [vmem:[%s10740_s18 + $0x4f8] sm:$0xff] }
 0x461   : > { %v8374_v19 = vadd.f32 %v8013_v58, %v7222_v21  ;;  %v7232_v41 = vmul.f32 %v10663_v14, %v16855_v37 }
 0x462   : > { %8567 = vst.msk [vmem:[%s12423_s27 + $0x4b0] sm:$0xff] %vm410_vm0, %v8375_v4 }
 0x463   : > { %8566 = vst.msk [vmem:[%s12423_s27 + $0x4a8] sm:$0xff] %vm410_vm0, %v8374_v19  ;;  %v8028_v49 = vpop.permute.xlu0 %8027  ;;  %v10662_v19 = vld [vmem:[%s10740_s18 + $0x500] sm:$0xff] }
 0x464   : > { %v8023_v55 = vpop.permute.xlu1 %8022  ;;  %v8377_v25 = vadd.f32 %v8028_v49, %v7225_v60  ;;  %v7233_v26 = vmul.f32 %v10662_v19, %v16850_v47  ;;  %v10665_v47 = vld [vmem:[%s10740_s18 + $0x508] sm:$0xff] }
 0x465   : > { %v8376_v54 = vadd.f32 %v8023_v55, %v7224_v10  ;;  %v10664_v10 = vld [vmem:[%s10740_s18 + $0x510] sm:$0xff]  ;;  %v7234_v55 = vmul.f32 %v10665_v47, %v16865_v57 }
 0x466   : > { %8569 = vst.msk [vmem:[%s12423_s27 + $0x4c0] sm:$0xff] %vm410_vm0, %v8377_v25  ;;  %v7235_v49 = vmul.f32 %v10664_v10, %v16860_v13  ;;  %v10667_v13 = vld [vmem:[%s10740_s18 + $0x518] sm:$0xff] }
 0x467   : > { %8568 = vst.msk [vmem:[%s12423_s27 + $0x4b8] sm:$0xff] %vm410_vm0, %v8376_v54  ;;  %v8038_v6 = vpop.permute.xlu0 %8037  ;;  %v7236_v3 = vmul.f32 %v10667_v13, %v16875_v9 }
 0x468   : > { %v8033_v42 = vpop.permute.xlu1 %8032  ;;  %v8379_v16 = vadd.f32 %v8038_v6, %v7227_v12  ;;  %v7237_v12 = vmul.f32 %v10666_v23, %v16870_v5  ;;  %v10669_v5 = vld [vmem:[%s10740_s18 + $0x528] sm:$0xff] }
 0x469   : > { %v8378_v2 = vadd.f32 %v8033_v42, %v7226_v61  ;;  %v10668_v42 = vld [vmem:[%s10740_s18 + $0x530] sm:$0xff]  ;;  %v18710_v23 = vld [vmem:[#allocation107_spill] sm:$0xff] }
 0x46a   : > { %8571 = vst.msk [vmem:[%s12423_s27 + $0x4d0] sm:$0xff] %vm410_vm0, %v8379_v16  ;;  %v7239_v16 = vmul.f32 %v10668_v42, %v16880_v15  ;;  %v10671_v15 = vld [vmem:[%s10740_s18 + $0x538] sm:$0xff] }
 0x46b   : > { %8570 = vst.msk [vmem:[%s12423_s27 + $0x4c8] sm:$0xff] %vm410_vm0, %v8378_v2  ;;  %v8048_v7 = vpop.permute.xlu0 %8047  ;;  %v7238_v2 = vmul.f32 %v10669_v5, %v16885_v34  ;;  %v10683_v42 = vld [vmem:[%s10740_s18 + $0x598] sm:$0xff] }
 0x46c   : > { %v8043_v30 = vpop.permute.xlu1 %8042  ;;  %v8381_v24 = vadd.f32 %v8048_v7, %v7229_v43 }
 0x46d   : > { %v8380_v45 = vadd.f32 %v8043_v30, %v7228_v32  ;;  %v7240_v32 = vmul.f32 %v10671_v15, %v16895_v18 }
 0x46e   : > { %8573 = vst.msk [vmem:[%s12423_s27 + $0x4e0] sm:$0xff] %vm410_vm0, %v8381_v24 }
 0x46f   : > { %8572 = vst.msk [vmem:[%s12423_s27 + $0x4d8] sm:$0xff] %vm410_vm0, %v8380_v45  ;;  %v8058_v21 = vpop.permute.xlu0 %8057  ;;  %v10672_v45 = vld [vmem:[%s10740_s18 + $0x550] sm:$0xff] }
 0x470   : > { %v8053_v31 = vpop.permute.xlu1 %8052  ;;  %v8383_v58 = vadd.f32 %v8058_v21, %v7231_v59  ;;  %v7243_v40 = vmul.f32 %v10672_v45, %v16900_v17  ;;  %v7242_v59 = vmul.f32 %v10673_v0, %v16905_v35  ;;  %v10675_v17 = vld [vmem:[%s10740_s18 + $0x558] sm:$0xff] }
 0x471   : > { %v8382_v4 = vadd.f32 %v8053_v31, %v7230_v62  ;;  %v10674_v31 = vld [vmem:[%s10740_s18 + $0x560] sm:$0xff] }
 0x472   : > { %8575 = vst.msk [vmem:[%s12423_s27 + $0x4f0] sm:$0xff] %vm410_vm0, %v8383_v58  ;;  %v7245_v58 = vmul.f32 %v10674_v31, %v16910_v46  ;;  %v10677_v46 = vld [vmem:[%s10740_s18 + $0x568] sm:$0xff] }
 0x473   : > { %8574 = vst.msk [vmem:[%s12423_s27 + $0x4e8] sm:$0xff] %vm410_vm0, %v8382_v4  ;;  %v8068_v28 = vpop.permute.xlu0 %8067  ;;  %v7244_v4 = vmul.f32 %v10675_v17, %v16915_v36  ;;  %v10689_v31 = vld [vmem:[%s10740_s18 + $0x5c8] sm:$0xff] }
 0x474   : > { %v8063_v60 = vpop.permute.xlu1 %8062  ;;  %v8385_v29 = vadd.f32 %v8068_v28, %v7233_v26 }
 0x475   : > { %v8384_v51 = vadd.f32 %v8063_v60, %v7232_v41  ;;  %v10676_v41 = vld [vmem:[%s10740_s18 + $0x570] sm:$0xff]  ;;  %v7246_v60 = vmul.f32 %v10677_v46, %v16925_v22  ;;  %v10691_v46 = vld [vmem:[%s10740_s18 + $0x5d8] sm:$0xff] }
 0x476   : > { %8577 = vst.msk [vmem:[%s12423_s27 + $0x500] sm:$0xff] %vm410_vm0, %v8385_v29  ;;  %v7247_v28 = vmul.f32 %v10676_v41, %v16920_v50  ;;  %v10679_v50 = vld [vmem:[%s10740_s18 + $0x578] sm:$0xff] }
 0x477   : > { %8576 = vst.msk [vmem:[%s12423_s27 + $0x4f8] sm:$0xff] %vm410_vm0, %v8384_v51  ;;  %v8078_v37 = vpop.permute.xlu0 %8077  ;;  %v18716_v41 = vld [vmem:[#allocation45_spill] sm:$0xff] }
 0x478   : > { %v8073_v25 = vpop.permute.xlu1 %8072  ;;  %v8387_v54 = vadd.f32 %v8078_v37, %v7235_v49  ;;  %v10678_v49 = vld [vmem:[%s10740_s18 + $0x580] sm:$0xff] }
 0x479   : > { %v8386_v48 = vadd.f32 %v8073_v25, %v7234_v55  ;;  %v7249_v47 = vmul.f32 %v10678_v49, %v16930_v63  ;;  %v7248_v55 = vmul.f32 %v10679_v50, %v16935_v8  ;;  %v10681_v63 = vld [vmem:[%s10740_s18 + $0x588] sm:$0xff]  ;;  %v18718_v50 = vld [vmem:[#allocation74_spill] sm:$0xff] }
 0x47a   : > { %8579 = vst.msk [vmem:[%s12423_s27 + $0x510] sm:$0xff] %vm410_vm0, %v8387_v54  ;;  %v7250_v13 = vmul.f32 %v10681_v63, %v16945_v11  ;;  %v10694_v63 = vld [vmem:[%s10740_s18 + $0x5f8] sm:$0xff] }
 0x47b   : > { %8578 = vst.msk [vmem:[%s12423_s27 + $0x508] sm:$0xff] %vm410_vm0, %v8386_v48  ;;  %v8088_v57 = vpop.permute.xlu0 %8087  ;;  %v10680_v48 = vld [vmem:[%s10740_s18 + $0x590] sm:$0xff] }
 0x47c   : > { %v8083_v44 = vpop.permute.xlu1 %8082  ;;  %v8389_v61 = vadd.f32 %v8088_v57, %v7237_v12  ;;  %v7251_v12 = vmul.f32 %v10680_v48, %v18710_v23 }
 0x47d   : > { %v8388_v6 = vadd.f32 %v8083_v44, %v7236_v3 }
 0x47e   : > { %8581 = vst.msk [vmem:[%s12423_s27 + $0x520] sm:$0xff] %vm410_vm0, %v8389_v61  ;;  %v10682_v61 = vld [vmem:[%s10740_s18 + $0x5a0] sm:$0xff] }
 0x47f   : > { %8580 = vst.msk [vmem:[%s12423_s27 + $0x518] sm:$0xff] %vm410_vm0, %v8388_v6  ;;  %v8098_v9 = vpop.permute.xlu0 %8097  ;;  %v7253_v6 = vmul.f32 %v10682_v61, %v16950_v56  ;;  %v10685_v56 = vld [vmem:[%s10740_s18 + $0x5a8] sm:$0xff] }
 0x480   : > { %v8093_v39 = vpop.permute.xlu1 %8092  ;;  %v8391_v38 = vadd.f32 %v8098_v9, %v7239_v16  ;;  %v7252_v16 = vmul.f32 %v10683_v42, %v16955_v20 }
 0x481   : > { %v8390_v43 = vadd.f32 %v8093_v39, %v7238_v2  ;;  %v10684_v39 = vld [vmem:[%s10740_s18 + $0x5b0] sm:$0xff] }
 0x482   : > { %8583 = vst.msk [vmem:[%s12423_s27 + $0x530] sm:$0xff] %vm410_vm0, %v8391_v38  ;;  %v7255_v38 = vmul.f32 %v10684_v39, %v16958_v1  ;;  %v10687_v1 = vld [vmem:[%s10740_s18 + $0x5b8] sm:$0xff] }
 0x483   : > { %8582 = vst.msk [vmem:[%s12423_s27 + $0x528] sm:$0xff] %vm410_vm0, %v8390_v43  ;;  %v8108_v34 = vpop.permute.xlu0 %8107  ;;  %v18711_v43 = vld [vmem:[#allocation92_spill] sm:$0xff] }
 0x484   : > { %v8103_v7 = vpop.permute.xlu1 %8102  ;;  %v8393_v30 = vadd.f32 %v8108_v34, %v7241_v53  ;;  %v7254_v52 = vmul.f32 %v10685_v56, %v18711_v43  ;;  %v10686_v34 = vld [vmem:[%s10740_s18 + $0x5c0] sm:$0xff] }
 0x485   : > { %v8392_v24 = vadd.f32 %v8103_v7, %v7240_v32  ;;  %v18712_v7 = vld [vmem:[#allocation50_spill] sm:$0xff] }
 0x486   : > { %8585 = vst.msk [vmem:[%s12423_s27 + $0x540] sm:$0xff] %vm410_vm0, %v8393_v30  ;;  %v7257_v30 = vmul.f32 %v10686_v34, %v18712_v7 }
 0x487   : > { %8584 = vst.msk [vmem:[%s12423_s27 + $0x538] sm:$0xff] %vm410_vm0, %v8392_v24  ;;  %v8118_v18 = vpop.permute.xlu0 %8117  ;;  %v18713_v24 = vld [vmem:[#allocation77_spill] sm:$0xff] }
 0x488   : > { %v8113_v27 = vpop.permute.xlu1 %8112  ;;  %v8395_v62 = vadd.f32 %v8118_v18, %v7243_v40  ;;  %v7256_v45 = vmul.f32 %v10687_v1, %v18713_v24 }
 0x489   : > { %v8394_v21 = vadd.f32 %v8113_v27, %v7242_v59  ;;  %v10688_v27 = vld [vmem:[%s10740_s18 + $0x5d0] sm:$0xff] }
 0x48a   : > { %8587 = vst.msk [vmem:[%s12423_s27 + $0x550] sm:$0xff] %vm410_vm0, %v8395_v62  ;;  %v18714_v62 = vld [vmem:[#allocation32_spill] sm:$0xff] }
 0x48b   : > { %8586 = vst.msk [vmem:[%s12423_s27 + $0x548] sm:$0xff] %vm410_vm0, %v8394_v21  ;;  %v8128_v35 = vpop.permute.xlu0 %8127  ;;  %v7259_v21 = vmul.f32 %v10688_v27, %v18714_v62 }
 0x48c   : > { %v8123_v19 = vpop.permute.xlu1 %8122  ;;  %v8397_v26 = vadd.f32 %v8128_v35, %v7245_v58  ;;  %v18715_v58 = vld [vmem:[#allocation67_spill] sm:$0xff] }
 0x48d   : > { %v8396_v14 = vadd.f32 %v8123_v19, %v7244_v4  ;;  %v7258_v17 = vmul.f32 %v10689_v31, %v18715_v58 }
 0x48e   : > { %8589 = vst.msk [vmem:[%s12423_s27 + $0x560] sm:$0xff] %vm410_vm0, %v8397_v26 }
 0x48f   : > { %8588 = vst.msk [vmem:[%s12423_s27 + $0x558] sm:$0xff] %vm410_vm0, %v8396_v14  ;;  %v8138_v36 = vpop.permute.xlu0 %8137  ;;  %v10690_v14 = vld [vmem:[%s10740_s18 + $0x5e0] sm:$0xff] }
 0x490   : > { %v8133_v29 = vpop.permute.xlu1 %8132  ;;  %v8399_v51 = vadd.f32 %v8138_v36, %v7247_v28  ;;  %v7261_v28 = vmul.f32 %v10690_v14, %v18716_v41 }
 0x491   : > { %v8398_v10 = vadd.f32 %v8133_v29, %v7246_v60  ;;  %v18717_v60 = vld [vmem:[#allocation66_spill] sm:$0xff] }
 0x492   : > { %8591 = vst.msk [vmem:[%s12423_s27 + $0x570] sm:$0xff] %vm410_vm0, %v8399_v51  ;;  %v7260_v36 = vmul.f32 %v10691_v46, %v18717_v60 }
 0x493   : > { %8590 = vst.msk [vmem:[%s12423_s27 + $0x568] sm:$0xff] %vm410_vm0, %v8398_v10  ;;  %v8148_v22 = vpop.permute.xlu0 %8147 }
 0x494   : > { %v8143_v37 = vpop.permute.xlu1 %8142  ;;  %v8401_v25 = vadd.f32 %v8148_v22, %v7249_v47  ;;  %v10692_v47 = vld [vmem:[%s10740_s18 + $0x5f0] sm:$0xff]  ;;  %v10693_v22 = vld [vmem:[%s10740_s18 + $0x5e8] sm:$0xff] }
 0x495   : > { %v8400_v54 = vadd.f32 %v8143_v37, %v7248_v55  ;;  %v7263_v55 = vmul.f32 %v10692_v47, %v18718_v50  ;;  %v18719_v37 = vld [vmem:[#allocation18_spill] sm:$0xff] }
 0x496   : > { %8593 = vst.msk [vmem:[%s12423_s27 + $0x580] sm:$0xff] %vm410_vm0, %v8401_v25  ;;  %v7262_v25 = vmul.f32 %v10693_v22, %v18719_v37 }
 0x497   : > { %8592 = vst.msk [vmem:[%s12423_s27 + $0x578] sm:$0xff] %vm410_vm0, %v8400_v54  ;;  %v8158_v8 = vpop.permute.xlu0 %8157 }
 0x498   : > { %v8153_v3 = vpop.permute.xlu1 %8152  ;;  %v8403_v57 = vadd.f32 %v8158_v8, %v7251_v12 }
 0x499   : > { %v8402_v44 = vadd.f32 %v8153_v3, %v7250_v13  ;;  %v7264_v13 = vmul.f32 %v10694_v63, %v17007_v33 }
 0x49a   : > { %8595 = vst.msk [vmem:[%s12423_s27 + $0x590] sm:$0xff] %vm410_vm0, %v8403_v57 }
 0x49b   : > { %8594 = vst.msk [vmem:[%s12423_s27 + $0x588] sm:$0xff] %vm410_vm0, %v8402_v44  ;;  %v8168_v11 = vpop.permute.xlu0 %8167 }
 0x49c   : > { %v8163_v5 = vpop.permute.xlu1 %8162  ;;  %v8405_v2 = vadd.f32 %v8168_v11, %v7253_v6 }
 0x49d   : > { %v8404_v9 = vadd.f32 %v8163_v5, %v7252_v16 }
 0x49e   : > { %8597 = vst.msk [vmem:[%s12423_s27 + $0x5a0] sm:$0xff] %vm410_vm0, %v8405_v2 }
 0x49f   : > { %8596 = vst.msk [vmem:[%s12423_s27 + $0x598] sm:$0xff] %vm410_vm0, %v8404_v9  ;;  %v8178_v20 = vpop.permute.xlu0 %8177 }
 0x4a0   : > { %v8173_v53 = vpop.permute.xlu1 %8172  ;;  %v8407_v15 = vadd.f32 %v8178_v20, %v7255_v38 }
 0x4a1   : > { %v8406_v32 = vadd.f32 %v8173_v53, %v7254_v52 }
 0x4a2   : > { %8599 = vst.msk [vmem:[%s12423_s27 + $0x5b0] sm:$0xff] %vm410_vm0, %v8407_v15 }
 0x4a3   : > { %8598 = vst.msk [vmem:[%s12423_s27 + $0x5a8] sm:$0xff] %vm410_vm0, %v8406_v32  ;;  %v8188_v40 = vpop.permute.xlu0 %8187 }
 0x4a4   : > { %v8183_v0 = vpop.permute.xlu1 %8182  ;;  %v8409_v59 = vadd.f32 %v8188_v40, %v7257_v30 }
 0x4a5   : > { %v8408_v18 = vadd.f32 %v8183_v0, %v7256_v45 }
 0x4a6   : > { %8601 = vst.msk [vmem:[%s12423_s27 + $0x5c0] sm:$0xff] %vm410_vm0, %v8409_v59 }
 0x4a7   : > { %8600 = vst.msk [vmem:[%s12423_s27 + $0x5b8] sm:$0xff] %vm410_vm0, %v8408_v18  ;;  %v8198_v4 = vpop.permute.xlu0 %8197 }
 0x4a8   : > { %v8193_v35 = vpop.permute.xlu1 %8192  ;;  %v8411_v19 = vadd.f32 %v8198_v4, %v7259_v21 }
 0x4a9   : > { %v8410_v26 = vadd.f32 %v8193_v35, %v7258_v17 }
 0x4aa   : > { %8603 = vst.msk [vmem:[%s12423_s27 + $0x5d0] sm:$0xff] %vm410_vm0, %v8411_v19 }
 0x4ab   : > { %8602 = vst.msk [vmem:[%s12423_s27 + $0x5c8] sm:$0xff] %vm410_vm0, %v8410_v26  ;;  %v8208_v29 = vpop.permute.xlu0 %8207 }
 0x4ac   : > { %v8203_v51 = vpop.permute.xlu1 %8202  ;;  %v8413_v10 = vadd.f32 %v8208_v29, %v7261_v28 }
 0x4ad   : > { %v8412_v49 = vadd.f32 %v8203_v51, %v7260_v36 }
 0x4ae   : > { %8605 = vst.msk [vmem:[%s12423_s27 + $0x5e0] sm:$0xff] %vm410_vm0, %v8413_v10 }
 0x4af   : > { %8604 = vst.msk [vmem:[%s12423_s27 + $0x5d8] sm:$0xff] %vm410_vm0, %v8412_v49  ;;  %v8218_v54 = vpop.permute.xlu0 %8217 }
 0x4b0   : > { %v8213_v48 = vpop.permute.xlu1 %8212  ;;  %v8415_v23 = vadd.f32 %v8218_v54, %v7263_v55 }
 0x4b1   : > { %v8414_v12 = vadd.f32 %v8213_v48, %v7262_v25 }
 0x4b2   : > { %8607 = vst.msk [vmem:[%s12423_s27 + $0x5f0] sm:$0xff] %vm410_vm0, %v8415_v23 }
 0x4b3   : > { %8606 = vst.msk [vmem:[%s12423_s27 + $0x5e8] sm:$0xff] %vm410_vm0, %v8414_v12 }
 0x4b4   : > { %v8223_v8 = vpop.permute.xlu1 %8222 }
 0x4b5   : > { %v8416_v3 = vadd.f32 %v8223_v8, %v7264_v13 }
 0x4b7   : > { %8608 = vst.msk [vmem:[%s12423_s27 + $0x5f8] sm:$0xff] %vm410_vm0, %v8416_v3 }
 0x4b8 PF: > { %s13_s12 = sadd.s32 1, %s10701_s12  }
 0x4b9   : > { %p10_p4 = scmp.ge.s32.totalorder %s13_s12, 4  }
 0x4bb   :  { %12 = sbr.rel (!%p10_p4) target bundleno = 1 (0x1), region = 68 }

</bundles_post_ra>
